<compile_context>
chip_gen: v7x
topology: tpu7x:2x2x1
jax: 0.10.0
libtpu: 0.0.40
codegen_flags: <defaults>
</compile_context>

<pallas_src>
import math
import jax
import jax.numpy as jnp
from jax.experimental import pallas as pl
from jax.experimental.pallas import tpu as pltpu


# ----------------------------------------------------------------------------
# Static architecture config (Python ints only — never traced)
# ----------------------------------------------------------------------------
#            (num_blocks, out_channels, first_stride)
LAYER_CFG = [(3, 64, 1), (4, 128, 2), (6, 256, 2), (3, 512, 2)]
STEM_CFG = dict(kh=7, kw=7, stride=2, pad=3)


def _round_up(a, b):
    return (a + b - 1) // b * b


def _pick_tile(total, candidates):
    for c in candidates:
        if total % c == 0:
            return c
    return total


# ----------------------------------------------------------------------------
# Pallas kernel: tiled matmul + bias [+ residual] [+ relu], f32 VMEM accumulator
# ----------------------------------------------------------------------------
def _make_mm_kernel(relu: bool, has_res: bool):
    def kernel(*refs):
        if has_res:
            x_ref, w_ref, b_ref, r_ref, o_ref, acc_ref = refs
        else:
            x_ref, w_ref, b_ref, o_ref, acc_ref = refs

        k = pl.program_id(2)

        @pl.when(k == 0)
        def _():
            acc_ref[...] = jnp.zeros_like(acc_ref)

        # bf16 x bf16 -> f32 accumulate on the MXU
        acc_ref[...] += jnp.dot(x_ref[...], w_ref[...],
                                preferred_element_type=jnp.float32)

        @pl.when(k == pl.num_programs(2) - 1)
        def _():
            out = acc_ref[...] + b_ref[...]                 # f32 epilogue
            if has_res:
                out = out + r_ref[...].astype(jnp.float32)
            if relu:
                out = jnp.maximum(out, 0.0)
            o_ref[...] = out.astype(o_ref.dtype)

    return kernel


def fused_matmul(x, w, bias, residual=None, relu=False, out_dtype=jnp.bfloat16):
    """y = relu(x @ w + bias [+ residual]).

    x:(M,K) any float dtype   w:(Kp,N) bf16 (Kp >= K, Kp % 128 == 0 or Kp == K)
    bias:(N,) f32             residual:(M,N) optional
    """
    M, K = x.shape
    Kp, N = w.shape
    assert Kp >= K and (Kp == K or Kp % 128 == 0), (K, Kp)

    Mp = _round_up(max(M, 8), 8)

    # tile selection (v6e/v7x-friendly: 256-wide output tiles when possible)
    tm = Mp if Mp <= 512 else _pick_tile(Mp, (512, 256, 128, 64, 32, 16, 8))
    tn = N if N <= 256 else _pick_tile(N, (256, 128))
    tk = Kp if Kp <= 1024 else _pick_tile(Kp, (512, 384, 256, 128))

    # pad + cast operands (bf16 into the MXU, f32 accumulation inside the kernel)
    xp = x.astype(jnp.bfloat16)
    if Kp > K:
        xp = jnp.pad(xp, ((0, 0), (0, Kp - K)))
    if Mp > M:
        xp = jnp.pad(xp, ((0, Mp - M), (0, 0)))
    wp = w.astype(jnp.bfloat16)
    b2 = bias.reshape(1, N).astype(jnp.float32)

    in_specs = [
        pl.BlockSpec((tm, tk), lambda i, j, k: (i, k)),
        pl.BlockSpec((tk, tn), lambda i, j, k: (k, j)),
        pl.BlockSpec((1, tn), lambda i, j, k: (0, j)),
    ]
    args = [xp, wp, b2]

    if residual is not None:
        rp = residual.astype(jnp.bfloat16)
        if Mp > M:
            rp = jnp.pad(rp, ((0, Mp - M), (0, 0)))
        in_specs.append(pl.BlockSpec((tm, tn), lambda i, j, k: (i, j)))
        args.append(rp)

    out = pl.pallas_call(
        _make_mm_kernel(relu, residual is not None),
        out_shape=jax.ShapeDtypeStruct((Mp, N), out_dtype),
        grid=(Mp // tm, N // tn, Kp // tk),
        in_specs=in_specs,
        out_specs=pl.BlockSpec((tm, tn), lambda i, j, k: (i, j)),
        scratch_shapes=[pltpu.VMEM((tm, tn), jnp.float32)],
        compiler_params=pltpu.CompilerParams(
            dimension_semantics=("parallel", "parallel", "arbitrary")),
    )(*args)

    return out[:M] if Mp > M else out


# ----------------------------------------------------------------------------
# Plain-JAX glue: im2col (static strides) + conv wrapper
# ----------------------------------------------------------------------------
def im2col(x, kh, kw, stride, pad):
    """x: (N,H,W,C) NHWC -> (N*Ho*Wo, kh*kw*C), patch features ordered (kh, kw, C)."""
    N, H, W, C = x.shape
    xp = jnp.pad(x, ((0, 0), (pad, pad), (pad, pad), (0, 0)))
    Ho = (H + 2 * pad - kh) // stride + 1
    Wo = (W + 2 * pad - kw) // stride + 1
    cols = []
    for i in range(kh):
        for j in range(kw):
            cols.append(xp[:, i:i + stride * Ho:stride, j:j + stride * Wo:stride, :])
    patches = jnp.concatenate(cols, axis=-1)            # (N, Ho, Wo, kh*kw*C)
    return patches.reshape(N * Ho * Wo, kh * kw * C), Ho, Wo


def conv_mm(x, p, kh, kw, stride, pad, relu, residual=None, out_dtype=jnp.bfloat16):
    """Conv2d+BN (pre-folded into p['w']/p['b']) with optional fused residual+relu."""
    wmat, shift = p["w"], p["b"]
    cout = wmat.shape[1]
    B = x.shape[0]
    patches, Ho, Wo = im2col(x, kh, kw, stride, pad)
    res_mat = residual.reshape(B * Ho * Wo, cout) if residual is not None else None
    out = fused_matmul(patches, wmat, shift, residual=res_mat, relu=relu,
                       out_dtype=out_dtype)
    return out.reshape(B, Ho, Wo, cout)


# ----------------------------------------------------------------------------
# Forward pass (architecture is static; params contain only arrays)
# ----------------------------------------------------------------------------
def resnet34_forward(params, x_nchw):
    x = jnp.transpose(x_nchw, (0, 2, 3, 1)).astype(jnp.bfloat16)   # NCHW -> NHWC, bf16 activations

    # stem: conv7x7/2 + BN + relu   (maxpool is Identity in myResNet34)
    x = conv_mm(x, params["conv1"], kh=STEM_CFG["kh"], kw=STEM_CFG["kw"],
                stride=STEM_CFG["stride"], pad=STEM_CFG["pad"], relu=True)

    for li, (num_blocks, out_c, layer_stride) in enumerate(LAYER_CFG):
        for bi in range(num_blocks):
            stride = layer_stride if bi == 0 else 1
            blk = params["layers"][li][bi]
            identity = x
            out = conv_mm(x, blk["conv1"], kh=3, kw=3, stride=stride, pad=1, relu=True)
            if "down" in blk:
                identity = conv_mm(x, blk["down"], kh=1, kw=1, stride=stride, pad=0, relu=False)
            # second conv: residual add + relu fused into the Pallas epilogue
            x = conv_mm(out, blk["conv2"], kh=3, kw=3, stride=1, pad=1, relu=True,
                        residual=identity)

    # AdaptiveAvgPool2d((1,1)) + flatten: tiny op, done in plain jnp (backbone.fc = Identity)
    feat = jnp.mean(x.astype(jnp.float32), axis=(1, 2))            # (B, 512)
    # fc1: Linear(512, 2048)
    y = fused_matmul(feat, params["fc1_w"], params["fc1_b"], relu=False,
                     out_dtype=jnp.float32)
    return y


# ----------------------------------------------------------------------------
# Deterministic synthetic parameters + one-time BN fold / pad / bf16 cast
# ----------------------------------------------------------------------------
class KeyGen:
    def __init__(self, key):
        self._key = key

    def __call__(self):
        self._key, k = jax.random.split(self._key)
        return k


def _raw_conv_bn(kg, kh, kw, cin, cout):
    fan_in = kh * kw * cin
    return {
        "w": jax.random.normal(kg(), (kh, kw, cin, cout), jnp.float32) * math.sqrt(2.0 / fan_in),
        "gamma": 1.0 + 0.1 * jax.random.normal(kg(), (cout,), jnp.float32),
        "beta": 0.01 * jax.random.normal(kg(), (cout,), jnp.float32),
        "mean": 0.01 * jax.random.normal(kg(), (cout,), jnp.float32),
        "var": jax.random.uniform(kg(), (cout,), jnp.float32, 0.8, 1.2),
    }


def _fold_conv_bn(p):
    """Fold BN (eval, eps=1e-5) into the conv weight; pad K to 128; cast weight to bf16."""
    kh, kw, cin, cout = p["w"].shape
    scale = p["gamma"] / jnp.sqrt(p["var"] + 1e-5)
    shift = p["beta"] - p["mean"] * scale
    wmat = p["w"].reshape(kh * kw * cin, cout) * scale[None, :]
    K = kh * kw * cin
    Kp = _round_up(K, 128)
    if Kp > K:
        wmat = jnp.pad(wmat, ((0, Kp - K), (0, 0)))
    return {"w": wmat.astype(jnp.bfloat16), "b": shift.astype(jnp.float32)}


def init_resnet34_params(seed=42):
    """Raw (unfolded) synthetic parameters with torchvision resnet34 shapes + fc1."""
    kg = KeyGen(jax.random.PRNGKey(seed))
    raw = {"conv1": _raw_conv_bn(kg, 7, 7, 3, 64)}
    layers = []
    in_c = 64
    for (num_blocks, out_c, layer_stride) in LAYER_CFG:
        layer = []
        for b in range(num_blocks):
            stride = layer_stride if b == 0 else 1
            cin = in_c if b == 0 else out_c
            blk = {
                "conv1": _raw_conv_bn(kg, 3, 3, cin, out_c),
                "conv2": _raw_conv_bn(kg, 3, 3, out_c, out_c),
            }
            if b == 0 and (stride != 1 or cin != out_c):
                blk["down"] = _raw_conv_bn(kg, 1, 1, cin, out_c)
            layer.append(blk)
        layers.append(layer)
        in_c = out_c
    raw["layers"] = layers
    raw["fc1_w"] = jax.random.normal(kg(), (512, 2048), jnp.float32) * math.sqrt(1.0 / 512.0)
    raw["fc1_b"] = 0.01 * jax.random.normal(kg(), (2048,), jnp.float32)
    return raw


def prepare_params(raw):
    """One-time preprocessing (outside the per-forward path): BN fold, K pad, bf16 weights."""
    params = {"conv1": _fold_conv_bn(raw["conv1"])}
    layers = []
    for layer in raw["layers"]:
        new_layer = []
        for blk in layer:
            nb = {"conv1": _fold_conv_bn(blk["conv1"]),
                  "conv2": _fold_conv_bn(blk["conv2"])}
            if "down" in blk:
                nb["down"] = _fold_conv_bn(blk["down"])
            new_layer.append(nb)
        layers.append(new_layer)
    params["layers"] = layers
    params["fc1_w"] = raw["fc1_w"].astype(jnp.bfloat16)   # K=512 already a multiple of 128
    params["fc1_b"] = raw["fc1_b"].astype(jnp.float32)
    return params


# ----------------------------------------------------------------------------
if __name__ == "__main__":
    raw = init_resnet34_params(seed=42)
    params = prepare_params(raw)          # BN fold / pad / bf16 done once, outside jit

    # small input consistent with the module: NCHW, 3 channels (conv1 expects 3)
    x = jax.random.normal(jax.random.PRNGKey(0), (2, 3, 16, 16), jnp.float32)

    fwd = jax.jit(resnet34_forward)
    y = fwd(params, x)
    y = jax.block_until_ready(y)

    assert y.shape == (2, 2048), y.shape
    assert bool(jnp.all(jnp.isfinite(y)))
    print("KERNEL_OK")
</pallas_src>

<mosaic_0001>
module attributes {stable_mosaic.version = 11 : i64} {
  func.func @kernel(%arg0: i32, %arg1: i32, %arg2: i32, %arg3: memref<128x256xbf16, #tpu.memory_space<vmem>>, %arg4: memref<256x64xbf16, #tpu.memory_space<vmem>>, %arg5: memref<1x64xf32, #tpu.memory_space<vmem>>, %arg6: memref<128x64xbf16, #tpu.memory_space<vmem>>, %arg7: memref<128x64xf32, #tpu.memory_space<vmem>>) attributes {dimension_semantics = [#tpu.dimension_semantics<parallel>, #tpu.dimension_semantics<parallel>, #tpu.dimension_semantics<arbitrary>], iteration_bounds = array<i64: 1, 1, 1>, scalar_prefetch = 0 : i64, scratch_operands = 1 : i64, tpu.core_type = #tpu.core_type<tc>, window_params = [{transform_indices = @transform_0, window_bounds = array<i64: 128, 256>}, {transform_indices = @transform_1, window_bounds = array<i64: 256, 64>}, {transform_indices = @transform_2, window_bounds = array<i64: 1, 64>}, {transform_indices = @transform_3, window_bounds = array<i64: 128, 64>}]} {
    %c0_i32 = arith.constant 0 : i32
    %0 = arith.cmpi eq, %arg2, %c0_i32 : i32
    %1 = arith.extui %0 : i1 to i32
    %c0_i32_0 = arith.constant 0 : i32
    %2 = arith.cmpi ne, %1, %c0_i32_0 : i32
    scf.if %2 {
      %cst_10 = arith.constant 0.000000e+00 : f32
      %12 = vector.broadcast %cst_10 : f32 to vector<128x64xf32>
      %c0_11 = arith.constant 0 : index
      %c0_12 = arith.constant 0 : index
      %13 = vector.load %arg7[%c0_11, %c0_12] : memref<128x64xf32, #tpu.memory_space<vmem>>, vector<128x64xf32>
      tpu.vector_store %arg7[%c0_11, %c0_12], %12 {strides = array<i32>} : memref<128x64xf32, #tpu.memory_space<vmem>>, vector<128x64xf32>,
    } else {
    }
    %c0 = arith.constant 0 : index
    %c0_1 = arith.constant 0 : index
    %3 = vector.load %arg7[%c0, %c0_1] : memref<128x64xf32, #tpu.memory_space<vmem>>, vector<128x64xf32>
    %c0_2 = arith.constant 0 : index
    %c0_3 = arith.constant 0 : index
    %4 = vector.load %arg3[%c0_2, %c0_3] : memref<128x256xbf16, #tpu.memory_space<vmem>>, vector<128x256xbf16>
    %c0_4 = arith.constant 0 : index
    %c0_5 = arith.constant 0 : index
    %5 = vector.load %arg4[%c0_4, %c0_5] : memref<256x64xbf16, #tpu.memory_space<vmem>>, vector<256x64xbf16>
    %cst = arith.constant dense<0.000000e+00> : vector<128x64xf32>
    %6 = tpu.matmul %4, %5, %cst {dimension_numbers = #tpu.dot_dimension_numbers<[1], [0], [0], [1], [0, 0, 1, 1], [], []>} : vector<128x256xbf16>, vector<256x64xbf16>, vector<128x64xf32> -> vector<128x64xf32>
    %7 = arith.addf %3, %6 : vector<128x64xf32>
    %c0_6 = arith.constant 0 : index
    %c0_7 = arith.constant 0 : index
    %8 = vector.load %arg7[%c0_6, %c0_7] : memref<128x64xf32, #tpu.memory_space<vmem>>, vector<128x64xf32>
    tpu.vector_store %arg7[%c0_6, %c0_7], %7 {strides = array<i32>} : memref<128x64xf32, #tpu.memory_space<vmem>>, vector<128x64xf32>,
    %c0_i32_8 = arith.constant 0 : i32
    %9 = arith.cmpi eq, %arg2, %c0_i32_8 : i32
    %10 = arith.extui %9 : i1 to i32
    %c0_i32_9 = arith.constant 0 : i32
    %11 = arith.cmpi ne, %10, %c0_i32_9 : i32
    scf.if %11 {
      %c0_10 = arith.constant 0 : index
      %c0_11 = arith.constant 0 : index
      %12 = vector.load %arg7[%c0_10, %c0_11] : memref<128x64xf32, #tpu.memory_space<vmem>>, vector<128x64xf32>
      %c0_12 = arith.constant 0 : index
      %c0_13 = arith.constant 0 : index
      %13 = vector.load %arg5[%c0_12, %c0_13] : memref<1x64xf32, #tpu.memory_space<vmem>>, vector<1x64xf32>
      %14 = vector.broadcast %13 : vector<1x64xf32> to vector<128x64xf32>
      %15 = arith.addf %12, %14 : vector<128x64xf32>
      %cst_14 = arith.constant 0.000000e+00 : f32
      %16 = vector.broadcast %cst_14 : f32 to vector<128x64xf32>
      %17 = arith.maximumf %15, %16 : vector<128x64xf32>
      %18 = arith.truncf %17 : vector<128x64xf32> to vector<128x64xbf16>
      %c0_15 = arith.constant 0 : index
      %c0_16 = arith.constant 0 : index
      %19 = vector.load %arg6[%c0_15, %c0_16] : memref<128x64xbf16, #tpu.memory_space<vmem>>, vector<128x64xbf16>
      tpu.vector_store %arg6[%c0_15, %c0_16], %18 {strides = array<i32>} : memref<128x64xbf16, #tpu.memory_space<vmem>>, vector<128x64xbf16>,
    } else {
    }
    return
  }
  func.func @transform_0(%arg0: i32, %arg1: i32, %arg2: i32) -> (i32, i32) {
    %c0_i32 = arith.constant 0 : i32
    return %arg0, %arg2 : i32, i32
  }
  func.func @transform_1(%arg0: i32, %arg1: i32, %arg2: i32) -> (i32, i32) {
    %c0_i32 = arith.constant 0 : i32
    return %arg2, %arg1 : i32, i32
  }
  func.func @transform_2(%arg0: i32, %arg1: i32, %arg2: i32) -> (i32, i32) {
    %c0_i32 = arith.constant 0 : i32
    %c0_i32_0 = arith.constant 0 : i32
    return %c0_i32, %arg1 : i32, i32
  }
  func.func @transform_3(%arg0: i32, %arg1: i32, %arg2: i32) -> (i32, i32) {
    %c0_i32 = arith.constant 0 : i32
    return %arg0, %arg1 : i32, i32
  }
}

module attributes {stable_mosaic.version = 11 : i64} {
  func.func @kernel(%arg0: i32, %arg1: i32, %arg2: i32, %arg3: memref<128x640xbf16, #tpu.memory_space<vmem>>, %arg4: memref<640x64xbf16, #tpu.memory_space<vmem>>, %arg5: memref<1x64xf32, #tpu.memory_space<vmem>>, %arg6: memref<128x64xbf16, #tpu.memory_space<vmem>>, %arg7: memref<128x64xf32, #tpu.memory_space<vmem>>) attributes {dimension_semantics = [#tpu.dimension_semantics<parallel>, #tpu.dimension_semantics<parallel>, #tpu.dimension_semantics<arbitrary>], iteration_bounds = array<i64: 1, 1, 1>, scalar_prefetch = 0 : i64, scratch_operands = 1 : i64, tpu.core_type = #tpu.core_type<tc>, window_params = [{transform_indices = @transform_0, window_bounds = array<i64: 128, 640>}, {transform_indices = @transform_1, window_bounds = array<i64: 640, 64>}, {transform_indices = @transform_2, window_bounds = array<i64: 1, 64>}, {transform_indices = @transform_3, window_bounds = array<i64: 128, 64>}]} {
    %c0_i32 = arith.constant 0 : i32
    %0 = arith.cmpi eq, %arg2, %c0_i32 : i32
    %1 = arith.extui %0 : i1 to i32
    %c0_i32_0 = arith.constant 0 : i32
    %2 = arith.cmpi ne, %1, %c0_i32_0 : i32
    scf.if %2 {
      %cst_10 = arith.constant 0.000000e+00 : f32
      %12 = vector.broadcast %cst_10 : f32 to vector<128x64xf32>
      %c0_11 = arith.constant 0 : index
      %c0_12 = arith.constant 0 : index
      %13 = vector.load %arg7[%c0_11, %c0_12] : memref<128x64xf32, #tpu.memory_space<vmem>>, vector<128x64xf32>
      tpu.vector_store %arg7[%c0_11, %c0_12], %12 {strides = array<i32>} : memref<128x64xf32, #tpu.memory_space<vmem>>, vector<128x64xf32>,
    } else {
    }
    %c0 = arith.constant 0 : index
    %c0_1 = arith.constant 0 : index
    %3 = vector.load %arg7[%c0, %c0_1] : memref<128x64xf32, #tpu.memory_space<vmem>>, vector<128x64xf32>
    %c0_2 = arith.constant 0 : index
    %c0_3 = arith.constant 0 : index
    %4 = vector.load %arg3[%c0_2, %c0_3] : memref<128x640xbf16, #tpu.memory_space<vmem>>, vector<128x640xbf16>
    %c0_4 = arith.constant 0 : index
    %c0_5 = arith.constant 0 : index
    %5 = vector.load %arg4[%c0_4, %c0_5] : memref<640x64xbf16, #tpu.memory_space<vmem>>, vector<640x64xbf16>
    %cst = arith.constant dense<0.000000e+00> : vector<128x64xf32>
    %6 = tpu.matmul %4, %5, %cst {dimension_numbers = #tpu.dot_dimension_numbers<[1], [0], [0], [1], [0, 0, 1, 1], [], []>} : vector<128x640xbf16>, vector<640x64xbf16>, vector<128x64xf32> -> vector<128x64xf32>
    %7 = arith.addf %3, %6 : vector<128x64xf32>
    %c0_6 = arith.constant 0 : index
    %c0_7 = arith.constant 0 : index
    %8 = vector.load %arg7[%c0_6, %c0_7] : memref<128x64xf32, #tpu.memory_space<vmem>>, vector<128x64xf32>
    tpu.vector_store %arg7[%c0_6, %c0_7], %7 {strides = array<i32>} : memref<128x64xf32, #tpu.memory_space<vmem>>, vector<128x64xf32>,
    %c0_i32_8 = arith.constant 0 : i32
    %9 = arith.cmpi eq, %arg2, %c0_i32_8 : i32
    %10 = arith.extui %9 : i1 to i32
    %c0_i32_9 = arith.constant 0 : i32
    %11 = arith.cmpi ne, %10, %c0_i32_9 : i32
    scf.if %11 {
      %c0_10 = arith.constant 0 : index
      %c0_11 = arith.constant 0 : index
      %12 = vector.load %arg7[%c0_10, %c0_11] : memref<128x64xf32, #tpu.memory_space<vmem>>, vector<128x64xf32>
      %c0_12 = arith.constant 0 : index
      %c0_13 = arith.constant 0 : index
      %13 = vector.load %arg5[%c0_12, %c0_13] : memref<1x64xf32, #tpu.memory_space<vmem>>, vector<1x64xf32>
      %14 = vector.broadcast %13 : vector<1x64xf32> to vector<128x64xf32>
      %15 = arith.addf %12, %14 : vector<128x64xf32>
      %cst_14 = arith.constant 0.000000e+00 : f32
      %16 = vector.broadcast %cst_14 : f32 to vector<128x64xf32>
      %17 = arith.maximumf %15, %16 : vector<128x64xf32>
      %18 = arith.truncf %17 : vector<128x64xf32> to vector<128x64xbf16>
      %c0_15 = arith.constant 0 : index
      %c0_16 = arith.constant 0 : index
      %19 = vector.load %arg6[%c0_15, %c0_16] : memref<128x64xbf16, #tpu.memory_space<vmem>>, vector<128x64xbf16>
      tpu.vector_store %arg6[%c0_15, %c0_16], %18 {strides = array<i32>} : memref<128x64xbf16, #tpu.memory_space<vmem>>, vector<128x64xbf16>,
    } else {
    }
    return
  }
  func.func @transform_0(%arg0: i32, %arg1: i32, %arg2: i32) -> (i32, i32) {
    %c0_i32 = arith.constant 0 : i32
    return %arg0, %arg2 : i32, i32
  }
  func.func @transform_1(%arg0: i32, %arg1: i32, %arg2: i32) -> (i32, i32) {
    %c0_i32 = arith.constant 0 : i32
    return %arg2, %arg1 : i32, i32
  }
  func.func @transform_2(%arg0: i32, %arg1: i32, %arg2: i32) -> (i32, i32) {
    %c0_i32 = arith.constant 0 : i32
    %c0_i32_0 = arith.constant 0 : i32
    return %c0_i32, %arg1 : i32, i32
  }
  func.func @transform_3(%arg0: i32, %arg1: i32, %arg2: i32) -> (i32, i32) {
    %c0_i32 = arith.constant 0 : i32
    return %arg0, %arg1 : i32, i32
  }
}

module attributes {stable_mosaic.version = 11 : i64} {
  func.func @kernel(%arg0: i32, %arg1: i32, %arg2: i32, %arg3: memref<128x640xbf16, #tpu.memory_space<vmem>>, %arg4: memref<640x64xbf16, #tpu.memory_space<vmem>>, %arg5: memref<1x64xf32, #tpu.memory_space<vmem>>, %arg6: memref<128x64xbf16, #tpu.memory_space<vmem>>, %arg7: memref<128x64xbf16, #tpu.memory_space<vmem>>, %arg8: memref<128x64xf32, #tpu.memory_space<vmem>>) attributes {dimension_semantics = [#tpu.dimension_semantics<parallel>, #tpu.dimension_semantics<parallel>, #tpu.dimension_semantics<arbitrary>], iteration_bounds = array<i64: 1, 1, 1>, scalar_prefetch = 0 : i64, scratch_operands = 1 : i64, tpu.core_type = #tpu.core_type<tc>, window_params = [{transform_indices = @transform_0, window_bounds = array<i64: 128, 640>}, {transform_indices = @transform_1, window_bounds = array<i64: 640, 64>}, {transform_indices = @transform_2, window_bounds = array<i64: 1, 64>}, {transform_indices = @transform_3, window_bounds = array<i64: 128, 64>}, {transform_indices = @transform_4, window_bounds = array<i64: 128, 64>}]} {
    %c0_i32 = arith.constant 0 : i32
    %0 = arith.cmpi eq, %arg2, %c0_i32 : i32
    %1 = arith.extui %0 : i1 to i32
    %c0_i32_0 = arith.constant 0 : i32
    %2 = arith.cmpi ne, %1, %c0_i32_0 : i32
    scf.if %2 {
      %cst_10 = arith.constant 0.000000e+00 : f32
      %12 = vector.broadcast %cst_10 : f32 to vector<128x64xf32>
      %c0_11 = arith.constant 0 : index
      %c0_12 = arith.constant 0 : index
      %13 = vector.load %arg8[%c0_11, %c0_12] : memref<128x64xf32, #tpu.memory_space<vmem>>, vector<128x64xf32>
      tpu.vector_store %arg8[%c0_11, %c0_12], %12 {strides = array<i32>} : memref<128x64xf32, #tpu.memory_space<vmem>>, vector<128x64xf32>,
    } else {
    }
    %c0 = arith.constant 0 : index
    %c0_1 = arith.constant 0 : index
    %3 = vector.load %arg8[%c0, %c0_1] : memref<128x64xf32, #tpu.memory_space<vmem>>, vector<128x64xf32>
    %c0_2 = arith.constant 0 : index
    %c0_3 = arith.constant 0 : index
    %4 = vector.load %arg3[%c0_2, %c0_3] : memref<128x640xbf16, #tpu.memory_space<vmem>>, vector<128x640xbf16>
    %c0_4 = arith.constant 0 : index
    %c0_5 = arith.constant 0 : index
    %5 = vector.load %arg4[%c0_4, %c0_5] : memref<640x64xbf16, #tpu.memory_space<vmem>>, vector<640x64xbf16>
    %cst = arith.constant dense<0.000000e+00> : vector<128x64xf32>
    %6 = tpu.matmul %4, %5, %cst {dimension_numbers = #tpu.dot_dimension_numbers<[1], [0], [0], [1], [0, 0, 1, 1], [], []>} : vector<128x640xbf16>, vector<640x64xbf16>, vector<128x64xf32> -> vector<128x64xf32>
    %7 = arith.addf %3, %6 : vector<128x64xf32>
    %c0_6 = arith.constant 0 : index
    %c0_7 = arith.constant 0 : index
    %8 = vector.load %arg8[%c0_6, %c0_7] : memref<128x64xf32, #tpu.memory_space<vmem>>, vector<128x64xf32>
    tpu.vector_store %arg8[%c0_6, %c0_7], %7 {strides = array<i32>} : memref<128x64xf32, #tpu.memory_space<vmem>>, vector<128x64xf32>,
    %c0_i32_8 = arith.constant 0 : i32
    %9 = arith.cmpi eq, %arg2, %c0_i32_8 : i32
    %10 = arith.extui %9 : i1 to i32
    %c0_i32_9 = arith.constant 0 : i32
    %11 = arith.cmpi ne, %10, %c0_i32_9 : i32
    scf.if %11 {
      %c0_10 = arith.constant 0 : index
      %c0_11 = arith.constant 0 : index
      %12 = vector.load %arg8[%c0_10, %c0_11] : memref<128x64xf32, #tpu.memory_space<vmem>>, vector<128x64xf32>
      %c0_12 = arith.constant 0 : index
      %c0_13 = arith.constant 0 : index
      %13 = vector.load %arg5[%c0_12, %c0_13] : memref<1x64xf32, #tpu.memory_space<vmem>>, vector<1x64xf32>
      %14 = vector.broadcast %13 : vector<1x64xf32> to vector<128x64xf32>
      %15 = arith.addf %12, %14 : vector<128x64xf32>
      %c0_14 = arith.constant 0 : index
      %c0_15 = arith.constant 0 : index
      %16 = vector.load %arg6[%c0_14, %c0_15] : memref<128x64xbf16, #tpu.memory_space<vmem>>, vector<128x64xbf16>
      %17 = arith.extf %16 : vector<128x64xbf16> to vector<128x64xf32>
      %18 = arith.addf %15, %17 : vector<128x64xf32>
      %cst_16 = arith.constant 0.000000e+00 : f32
      %19 = vector.broadcast %cst_16 : f32 to vector<128x64xf32>
      %20 = arith.maximumf %18, %19 : vector<128x64xf32>
      %21 = arith.truncf %20 : vector<128x64xf32> to vector<128x64xbf16>
      %c0_17 = arith.constant 0 : index
      %c0_18 = arith.constant 0 : index
      %22 = vector.load %arg7[%c0_17, %c0_18] : memref<128x64xbf16, #tpu.memory_space<vmem>>, vector<128x64xbf16>
      tpu.vector_store %arg7[%c0_17, %c0_18], %21 {strides = array<i32>} : memref<128x64xbf16, #tpu.memory_space<vmem>>, vector<128x64xbf16>,
    } else {
    }
    return
  }
  func.func @transform_0(%arg0: i32, %arg1: i32, %arg2: i32) -> (i32, i32) {
    %c0_i32 = arith.constant 0 : i32
    return %arg0, %arg2 : i32, i32
  }
  func.func @transform_1(%arg0: i32, %arg1: i32, %arg2: i32) -> (i32, i32) {
    %c0_i32 = arith.constant 0 : i32
    return %arg2, %arg1 : i32, i32
  }
  func.func @transform_2(%arg0: i32, %arg1: i32, %arg2: i32) -> (i32, i32) {
    %c0_i32 = arith.constant 0 : i32
    %c0_i32_0 = arith.constant 0 : i32
    return %c0_i32, %arg1 : i32, i32
  }
  func.func @transform_3(%arg0: i32, %arg1: i32, %arg2: i32) -> (i32, i32) {
    %c0_i32 = arith.constant 0 : i32
    return %arg0, %arg1 : i32, i32
  }
  func.func @transform_4(%arg0: i32, %arg1: i32, %arg2: i32) -> (i32, i32) {
    %c0_i32 = arith.constant 0 : i32
    return %arg0, %arg1 : i32, i32
  }
}

module attributes {stable_mosaic.version = 11 : i64} {
  func.func @kernel(%arg0: i32, %arg1: i32, %arg2: i32, %arg3: memref<32x640xbf16, #tpu.memory_space<vmem>>, %arg4: memref<640x128xbf16, #tpu.memory_space<vmem>>, %arg5: memref<1x128xf32, #tpu.memory_space<vmem>>, %arg6: memref<32x128xbf16, #tpu.memory_space<vmem>>, %arg7: memref<32x128xf32, #tpu.memory_space<vmem>>) attributes {dimension_semantics = [#tpu.dimension_semantics<parallel>, #tpu.dimension_semantics<parallel>, #tpu.dimension_semantics<arbitrary>], iteration_bounds = array<i64: 1, 1, 1>, scalar_prefetch = 0 : i64, scratch_operands = 1 : i64, tpu.core_type = #tpu.core_type<tc>, window_params = [{transform_indices = @transform_0, window_bounds = array<i64: 32, 640>}, {transform_indices = @transform_1, window_bounds = array<i64: 640, 128>}, {transform_indices = @transform_2, window_bounds = array<i64: 1, 128>}, {transform_indices = @transform_3, window_bounds = array<i64: 32, 128>}]} {
    %c0_i32 = arith.constant 0 : i32
    %0 = arith.cmpi eq, %arg2, %c0_i32 : i32
    %1 = arith.extui %0 : i1 to i32
    %c0_i32_0 = arith.constant 0 : i32
    %2 = arith.cmpi ne, %1, %c0_i32_0 : i32
    scf.if %2 {
      %cst_10 = arith.constant 0.000000e+00 : f32
      %12 = vector.broadcast %cst_10 : f32 to vector<32x128xf32>
      %c0_11 = arith.constant 0 : index
      %c0_12 = arith.constant 0 : index
      %13 = vector.load %arg7[%c0_11, %c0_12] : memref<32x128xf32, #tpu.memory_space<vmem>>, vector<32x128xf32>
      tpu.vector_store %arg7[%c0_11, %c0_12], %12 {strides = array<i32>} : memref<32x128xf32, #tpu.memory_space<vmem>>, vector<32x128xf32>,
    } else {
    }
    %c0 = arith.constant 0 : index
    %c0_1 = arith.constant 0 : index
    %3 = vector.load %arg7[%c0, %c0_1] : memref<32x128xf32, #tpu.memory_space<vmem>>, vector<32x128xf32>
    %c0_2 = arith.constant 0 : index
    %c0_3 = arith.constant 0 : index
    %4 = vector.load %arg3[%c0_2, %c0_3] : memref<32x640xbf16, #tpu.memory_space<vmem>>, vector<32x640xbf16>
    %c0_4 = arith.constant 0 : index
    %c0_5 = arith.constant 0 : index
    %5 = vector.load %arg4[%c0_4, %c0_5] : memref<640x128xbf16, #tpu.memory_space<vmem>>, vector<640x128xbf16>
    %cst = arith.constant dense<0.000000e+00> : vector<32x128xf32>
    %6 = tpu.matmul %4, %5, %cst {dimension_numbers = #tpu.dot_dimension_numbers<[1], [0], [0], [1], [0, 0, 1, 1], [], []>} : vector<32x640xbf16>, vector<640x128xbf16>, vector<32x128xf32> -> vector<32x128xf32>
    %7 = arith.addf %3, %6 : vector<32x128xf32>
    %c0_6 = arith.constant 0 : index
    %c0_7 = arith.constant 0 : index
    %8 = vector.load %arg7[%c0_6, %c0_7] : memref<32x128xf32, #tpu.memory_space<vmem>>, vector<32x128xf32>
    tpu.vector_store %arg7[%c0_6, %c0_7], %7 {strides = array<i32>} : memref<32x128xf32, #tpu.memory_space<vmem>>, vector<32x128xf32>,
    %c0_i32_8 = arith.constant 0 : i32
    %9 = arith.cmpi eq, %arg2, %c0_i32_8 : i32
    %10 = arith.extui %9 : i1 to i32
    %c0_i32_9 = arith.constant 0 : i32
    %11 = arith.cmpi ne, %10, %c0_i32_9 : i32
    scf.if %11 {
      %c0_10 = arith.constant 0 : index
      %c0_11 = arith.constant 0 : index
      %12 = vector.load %arg7[%c0_10, %c0_11] : memref<32x128xf32, #tpu.memory_space<vmem>>, vector<32x128xf32>
      %c0_12 = arith.constant 0 : index
      %c0_13 = arith.constant 0 : index
      %13 = vector.load %arg5[%c0_12, %c0_13] : memref<1x128xf32, #tpu.memory_space<vmem>>, vector<1x128xf32>
      %14 = vector.broadcast %13 : vector<1x128xf32> to vector<32x128xf32>
      %15 = arith.addf %12, %14 : vector<32x128xf32>
      %cst_14 = arith.constant 0.000000e+00 : f32
      %16 = vector.broadcast %cst_14 : f32 to vector<32x128xf32>
      %17 = arith.maximumf %15, %16 : vector<32x128xf32>
      %18 = arith.truncf %17 : vector<32x128xf32> to vector<32x128xbf16>
      %c0_15 = arith.constant 0 : index
      %c0_16 = arith.constant 0 : index
      %19 = vector.load %arg6[%c0_15, %c0_16] : memref<32x128xbf16, #tpu.memory_space<vmem>>, vector<32x128xbf16>
      tpu.vector_store %arg6[%c0_15, %c0_16], %18 {strides = array<i32>} : memref<32x128xbf16, #tpu.memory_space<vmem>>, vector<32x128xbf16>,
    } else {
    }
    return
  }
  func.func @transform_0(%arg0: i32, %arg1: i32, %arg2: i32) -> (i32, i32) {
    %c0_i32 = arith.constant 0 : i32
    return %arg0, %arg2 : i32, i32
  }
  func.func @transform_1(%arg0: i32, %arg1: i32, %arg2: i32) -> (i32, i32) {
    %c0_i32 = arith.constant 0 : i32
    return %arg2, %arg1 : i32, i32
  }
  func.func @transform_2(%arg0: i32, %arg1: i32, %arg2: i32) -> (i32, i32) {
    %c0_i32 = arith.constant 0 : i32
    %c0_i32_0 = arith.constant 0 : i32
    return %c0_i32, %arg1 : i32, i32
  }
  func.func @transform_3(%arg0: i32, %arg1: i32, %arg2: i32) -> (i32, i32) {
    %c0_i32 = arith.constant 0 : i32
    return %arg0, %arg1 : i32, i32
  }
}

module attributes {stable_mosaic.version = 11 : i64} {
  func.func @kernel(%arg0: i32, %arg1: i32, %arg2: i32, %arg3: memref<32x128xbf16, #tpu.memory_space<vmem>>, %arg4: memref<128x128xbf16, #tpu.memory_space<vmem>>, %arg5: memref<1x128xf32, #tpu.memory_space<vmem>>, %arg6: memref<32x128xbf16, #tpu.memory_space<vmem>>, %arg7: memref<32x128xf32, #tpu.memory_space<vmem>>) attributes {dimension_semantics = [#tpu.dimension_semantics<parallel>, #tpu.dimension_semantics<parallel>, #tpu.dimension_semantics<arbitrary>], iteration_bounds = array<i64: 1, 1, 1>, scalar_prefetch = 0 : i64, scratch_operands = 1 : i64, tpu.core_type = #tpu.core_type<tc>, window_params = [{transform_indices = @transform_0, window_bounds = array<i64: 32, 128>}, {transform_indices = @transform_1, window_bounds = array<i64: 128, 128>}, {transform_indices = @transform_2, window_bounds = array<i64: 1, 128>}, {transform_indices = @transform_3, window_bounds = array<i64: 32, 128>}]} {
    %c0_i32 = arith.constant 0 : i32
    %0 = arith.cmpi eq, %arg2, %c0_i32 : i32
    %1 = arith.extui %0 : i1 to i32
    %c0_i32_0 = arith.constant 0 : i32
    %2 = arith.cmpi ne, %1, %c0_i32_0 : i32
    scf.if %2 {
      %cst_10 = arith.constant 0.000000e+00 : f32
      %12 = vector.broadcast %cst_10 : f32 to vector<32x128xf32>
      %c0_11 = arith.constant 0 : index
      %c0_12 = arith.constant 0 : index
      %13 = vector.load %arg7[%c0_11, %c0_12] : memref<32x128xf32, #tpu.memory_space<vmem>>, vector<32x128xf32>
      tpu.vector_store %arg7[%c0_11, %c0_12], %12 {strides = array<i32>} : memref<32x128xf32, #tpu.memory_space<vmem>>, vector<32x128xf32>,
    } else {
    }
    %c0 = arith.constant 0 : index
    %c0_1 = arith.constant 0 : index
    %3 = vector.load %arg7[%c0, %c0_1] : memref<32x128xf32, #tpu.memory_space<vmem>>, vector<32x128xf32>
    %c0_2 = arith.constant 0 : index
    %c0_3 = arith.constant 0 : index
    %4 = vector.load %arg3[%c0_2, %c0_3] : memref<32x128xbf16, #tpu.memory_space<vmem>>, vector<32x128xbf16>
    %c0_4 = arith.constant 0 : index
    %c0_5 = arith.constant 0 : index
    %5 = vector.load %arg4[%c0_4, %c0_5] : memref<128x128xbf16, #tpu.memory_space<vmem>>, vector<128x128xbf16>
    %cst = arith.constant dense<0.000000e+00> : vector<32x128xf32>
    %6 = tpu.matmul %4, %5, %cst {dimension_numbers = #tpu.dot_dimension_numbers<[1], [0], [0], [1], [0, 0, 1, 1], [], []>} : vector<32x128xbf16>, vector<128x128xbf16>, vector<32x128xf32> -> vector<32x128xf32>
    %7 = arith.addf %3, %6 : vector<32x128xf32>
    %c0_6 = arith.constant 0 : index
    %c0_7 = arith.constant 0 : index
    %8 = vector.load %arg7[%c0_6, %c0_7] : memref<32x128xf32, #tpu.memory_space<vmem>>, vector<32x128xf32>
    tpu.vector_store %arg7[%c0_6, %c0_7], %7 {strides = array<i32>} : memref<32x128xf32, #tpu.memory_space<vmem>>, vector<32x128xf32>,
    %c0_i32_8 = arith.constant 0 : i32
    %9 = arith.cmpi eq, %arg2, %c0_i32_8 : i32
    %10 = arith.extui %9 : i1 to i32
    %c0_i32_9 = arith.constant 0 : i32
    %11 = arith.cmpi ne, %10, %c0_i32_9 : i32
    scf.if %11 {
      %c0_10 = arith.constant 0 : index
      %c0_11 = arith.constant 0 : index
      %12 = vector.load %arg7[%c0_10, %c0_11] : memref<32x128xf32, #tpu.memory_space<vmem>>, vector<32x128xf32>
      %c0_12 = arith.constant 0 : index
      %c0_13 = arith.constant 0 : index
      %13 = vector.load %arg5[%c0_12, %c0_13] : memref<1x128xf32, #tpu.memory_space<vmem>>, vector<1x128xf32>
      %14 = vector.broadcast %13 : vector<1x128xf32> to vector<32x128xf32>
      %15 = arith.addf %12, %14 : vector<32x128xf32>
      %16 = arith.truncf %15 : vector<32x128xf32> to vector<32x128xbf16>
      %c0_14 = arith.constant 0 : index
      %c0_15 = arith.constant 0 : index
      %17 = vector.load %arg6[%c0_14, %c0_15] : memref<32x128xbf16, #tpu.memory_space<vmem>>, vector<32x128xbf16>
      tpu.vector_store %arg6[%c0_14, %c0_15], %16 {strides = array<i32>} : memref<32x128xbf16, #tpu.memory_space<vmem>>, vector<32x128xbf16>,
    } else {
    }
    return
  }
  func.func @transform_0(%arg0: i32, %arg1: i32, %arg2: i32) -> (i32, i32) {
    %c0_i32 = arith.constant 0 : i32
    return %arg0, %arg2 : i32, i32
  }
  func.func @transform_1(%arg0: i32, %arg1: i32, %arg2: i32) -> (i32, i32) {
    %c0_i32 = arith.constant 0 : i32
    return %arg2, %arg1 : i32, i32
  }
  func.func @transform_2(%arg0: i32, %arg1: i32, %arg2: i32) -> (i32, i32) {
    %c0_i32 = arith.constant 0 : i32
    %c0_i32_0 = arith.constant 0 : i32
    return %c0_i32, %arg1 : i32, i32
  }
  func.func @transform_3(%arg0: i32, %arg1: i32, %arg2: i32) -> (i32, i32) {
    %c0_i32 = arith.constant 0 : i32
    return %arg0, %arg1 : i32, i32
  }
}

module attributes {stable_mosaic.version = 11 : i64} {
  func.func @kernel(%arg0: i32, %arg1: i32, %arg2: i32, %arg3: memref<32x384xbf16, #tpu.memory_space<vmem>>, %arg4: memref<384x128xbf16, #tpu.memory_space<vmem>>, %arg5: memref<1x128xf32, #tpu.memory_space<vmem>>, %arg6: memref<32x128xbf16, #tpu.memory_space<vmem>>, %arg7: memref<32x128xbf16, #tpu.memory_space<vmem>>, %arg8: memref<32x128xf32, #tpu.memory_space<vmem>>) attributes {dimension_semantics = [#tpu.dimension_semantics<parallel>, #tpu.dimension_semantics<parallel>, #tpu.dimension_semantics<arbitrary>], iteration_bounds = array<i64: 1, 1, 3>, scalar_prefetch = 0 : i64, scratch_operands = 1 : i64, tpu.core_type = #tpu.core_type<tc>, window_params = [{transform_indices = @transform_0, window_bounds = array<i64: 32, 384>}, {transform_indices = @transform_1, window_bounds = array<i64: 384, 128>}, {transform_indices = @transform_2, window_bounds = array<i64: 1, 128>}, {transform_indices = @transform_3, window_bounds = array<i64: 32, 128>}, {transform_indices = @transform_4, window_bounds = array<i64: 32, 128>}]} {
    %c0_i32 = arith.constant 0 : i32
    %0 = arith.cmpi eq, %arg2, %c0_i32 : i32
    %1 = arith.extui %0 : i1 to i32
    %c0_i32_0 = arith.constant 0 : i32
    %2 = arith.cmpi ne, %1, %c0_i32_0 : i32
    scf.if %2 {
      %cst_9 = arith.constant 0.000000e+00 : f32
      %12 = vector.broadcast %cst_9 : f32 to vector<32x128xf32>
      %c0_10 = arith.constant 0 : index
      %c0_11 = arith.constant 0 : index
      %13 = vector.load %arg8[%c0_10, %c0_11] : memref<32x128xf32, #tpu.memory_space<vmem>>, vector<32x128xf32>
      tpu.vector_store %arg8[%c0_10, %c0_11], %12 {strides = array<i32>} : memref<32x128xf32, #tpu.memory_space<vmem>>, vector<32x128xf32>,
    } else {
    }
    %c0 = arith.constant 0 : index
    %c0_1 = arith.constant 0 : index
    %3 = vector.load %arg8[%c0, %c0_1] : memref<32x128xf32, #tpu.memory_space<vmem>>, vector<32x128xf32>
    %c0_2 = arith.constant 0 : index
    %c0_3 = arith.constant 0 : index
    %4 = vector.load %arg3[%c0_2, %c0_3] : memref<32x384xbf16, #tpu.memory_space<vmem>>, vector<32x384xbf16>
    %c0_4 = arith.constant 0 : index
    %c0_5 = arith.constant 0 : index
    %5 = vector.load %arg4[%c0_4, %c0_5] : memref<384x128xbf16, #tpu.memory_space<vmem>>, vector<384x128xbf16>
    %cst = arith.constant dense<0.000000e+00> : vector<32x128xf32>
    %6 = tpu.matmul %4, %5, %cst {dimension_numbers = #tpu.dot_dimension_numbers<[1], [0], [0], [1], [0, 0, 1, 1], [], []>} : vector<32x384xbf16>, vector<384x128xbf16>, vector<32x128xf32> -> vector<32x128xf32>
    %7 = arith.addf %3, %6 : vector<32x128xf32>
    %c0_6 = arith.constant 0 : index
    %c0_7 = arith.constant 0 : index
    %8 = vector.load %arg8[%c0_6, %c0_7] : memref<32x128xf32, #tpu.memory_space<vmem>>, vector<32x128xf32>
    tpu.vector_store %arg8[%c0_6, %c0_7], %7 {strides = array<i32>} : memref<32x128xf32, #tpu.memory_space<vmem>>, vector<32x128xf32>,
    %c2_i32 = arith.constant 2 : i32
    %9 = arith.cmpi eq, %arg2, %c2_i32 : i32
    %10 = arith.extui %9 : i1 to i32
    %c0_i32_8 = arith.constant 0 : i32
    %11 = arith.cmpi ne, %10, %c0_i32_8 : i32
    scf.if %11 {
      %c0_9 = arith.constant 0 : index
      %c0_10 = arith.constant 0 : index
      %12 = vector.load %arg8[%c0_9, %c0_10] : memref<32x128xf32, #tpu.memory_space<vmem>>, vector<32x128xf32>
      %c0_11 = arith.constant 0 : index
      %c0_12 = arith.constant 0 : index
      %13 = vector.load %arg5[%c0_11, %c0_12] : memref<1x128xf32, #tpu.memory_space<vmem>>, vector<1x128xf32>
      %14 = vector.broadcast %13 : vector<1x128xf32> to vector<32x128xf32>
      %15 = arith.addf %12, %14 : vector<32x128xf32>
      %c0_13 = arith.constant 0 : index
      %c0_14 = arith.constant 0 : index
      %16 = vector.load %arg6[%c0_13, %c0_14] : memref<32x128xbf16, #tpu.memory_space<vmem>>, vector<32x128xbf16>
      %17 = arith.extf %16 : vector<32x128xbf16> to vector<32x128xf32>
      %18 = arith.addf %15, %17 : vector<32x128xf32>
      %cst_15 = arith.constant 0.000000e+00 : f32
      %19 = vector.broadcast %cst_15 : f32 to vector<32x128xf32>
      %20 = arith.maximumf %18, %19 : vector<32x128xf32>
      %21 = arith.truncf %20 : vector<32x128xf32> to vector<32x128xbf16>
      %c0_16 = arith.constant 0 : index
      %c0_17 = arith.constant 0 : index
      %22 = vector.load %arg7[%c0_16, %c0_17] : memref<32x128xbf16, #tpu.memory_space<vmem>>, vector<32x128xbf16>
      tpu.vector_store %arg7[%c0_16, %c0_17], %21 {strides = array<i32>} : memref<32x128xbf16, #tpu.memory_space<vmem>>, vector<32x128xbf16>,
    } else {
    }
    return
  }
  func.func @transform_0(%arg0: i32, %arg1: i32, %arg2: i32) -> (i32, i32) {
    %c0_i32 = arith.constant 0 : i32
    return %arg0, %arg2 : i32, i32
  }
  func.func @transform_1(%arg0: i32, %arg1: i32, %arg2: i32) -> (i32, i32) {
    %c0_i32 = arith.constant 0 : i32
    return %arg2, %arg1 : i32, i32
  }
  func.func @transform_2(%arg0: i32, %arg1: i32, %arg2: i32) -> (i32, i32) {
    %c0_i32 = arith.constant 0 : i32
    %c0_i32_0 = arith.constant 0 : i32
    return %c0_i32, %arg1 : i32, i32
  }
  func.func @transform_3(%arg0: i32, %arg1: i32, %arg2: i32) -> (i32, i32) {
    %c0_i32 = arith.constant 0 : i32
    return %arg0, %arg1 : i32, i32
  }
  func.func @transform_4(%arg0: i32, %arg1: i32, %arg2: i32) -> (i32, i32) {
    %c0_i32 = arith.constant 0 : i32
    return %arg0, %arg1 : i32, i32
  }
}

module attributes {stable_mosaic.version = 11 : i64} {
  func.func @kernel(%arg0: i32, %arg1: i32, %arg2: i32, %arg3: memref<32x384xbf16, #tpu.memory_space<vmem>>, %arg4: memref<384x128xbf16, #tpu.memory_space<vmem>>, %arg5: memref<1x128xf32, #tpu.memory_space<vmem>>, %arg6: memref<32x128xbf16, #tpu.memory_space<vmem>>, %arg7: memref<32x128xf32, #tpu.memory_space<vmem>>) attributes {dimension_semantics = [#tpu.dimension_semantics<parallel>, #tpu.dimension_semantics<parallel>, #tpu.dimension_semantics<arbitrary>], iteration_bounds = array<i64: 1, 1, 3>, scalar_prefetch = 0 : i64, scratch_operands = 1 : i64, tpu.core_type = #tpu.core_type<tc>, window_params = [{transform_indices = @transform_0, window_bounds = array<i64: 32, 384>}, {transform_indices = @transform_1, window_bounds = array<i64: 384, 128>}, {transform_indices = @transform_2, window_bounds = array<i64: 1, 128>}, {transform_indices = @transform_3, window_bounds = array<i64: 32, 128>}]} {
    %c0_i32 = arith.constant 0 : i32
    %0 = arith.cmpi eq, %arg2, %c0_i32 : i32
    %1 = arith.extui %0 : i1 to i32
    %c0_i32_0 = arith.constant 0 : i32
    %2 = arith.cmpi ne, %1, %c0_i32_0 : i32
    scf.if %2 {
      %cst_9 = arith.constant 0.000000e+00 : f32
      %12 = vector.broadcast %cst_9 : f32 to vector<32x128xf32>
      %c0_10 = arith.constant 0 : index
      %c0_11 = arith.constant 0 : index
      %13 = vector.load %arg7[%c0_10, %c0_11] : memref<32x128xf32, #tpu.memory_space<vmem>>, vector<32x128xf32>
      tpu.vector_store %arg7[%c0_10, %c0_11], %12 {strides = array<i32>} : memref<32x128xf32, #tpu.memory_space<vmem>>, vector<32x128xf32>,
    } else {
    }
    %c0 = arith.constant 0 : index
    %c0_1 = arith.constant 0 : index
    %3 = vector.load %arg7[%c0, %c0_1] : memref<32x128xf32, #tpu.memory_space<vmem>>, vector<32x128xf32>
    %c0_2 = arith.constant 0 : index
    %c0_3 = arith.constant 0 : index
    %4 = vector.load %arg3[%c0_2, %c0_3] : memref<32x384xbf16, #tpu.memory_space<vmem>>, vector<32x384xbf16>
    %c0_4 = arith.constant 0 : index
    %c0_5 = arith.constant 0 : index
    %5 = vector.load %arg4[%c0_4, %c0_5] : memref<384x128xbf16, #tpu.memory_space<vmem>>, vector<384x128xbf16>
    %cst = arith.constant dense<0.000000e+00> : vector<32x128xf32>
    %6 = tpu.matmul %4, %5, %cst {dimension_numbers = #tpu.dot_dimension_numbers<[1], [0], [0], [1], [0, 0, 1, 1], [], []>} : vector<32x384xbf16>, vector<384x128xbf16>, vector<32x128xf32> -> vector<32x128xf32>
    %7 = arith.addf %3, %6 : vector<32x128xf32>
    %c0_6 = arith.constant 0 : index
    %c0_7 = arith.constant 0 : index
    %8 = vector.load %arg7[%c0_6, %c0_7] : memref<32x128xf32, #tpu.memory_space<vmem>>, vector<32x128xf32>
    tpu.vector_store %arg7[%c0_6, %c0_7], %7 {strides = array<i32>} : memref<32x128xf32, #tpu.memory_space<vmem>>, vector<32x128xf32>,
    %c2_i32 = arith.constant 2 : i32
    %9 = arith.cmpi eq, %arg2, %c2_i32 : i32
    %10 = arith.extui %9 : i1 to i32
    %c0_i32_8 = arith.constant 0 : i32
    %11 = arith.cmpi ne, %10, %c0_i32_8 : i32
    scf.if %11 {
      %c0_9 = arith.constant 0 : index
      %c0_10 = arith.constant 0 : index
      %12 = vector.load %arg7[%c0_9, %c0_10] : memref<32x128xf32, #tpu.memory_space<vmem>>, vector<32x128xf32>
      %c0_11 = arith.constant 0 : index
      %c0_12 = arith.constant 0 : index
      %13 = vector.load %arg5[%c0_11, %c0_12] : memref<1x128xf32, #tpu.memory_space<vmem>>, vector<1x128xf32>
      %14 = vector.broadcast %13 : vector<1x128xf32> to vector<32x128xf32>
      %15 = arith.addf %12, %14 : vector<32x128xf32>
      %cst_13 = arith.constant 0.000000e+00 : f32
      %16 = vector.broadcast %cst_13 : f32 to vector<32x128xf32>
      %17 = arith.maximumf %15, %16 : vector<32x128xf32>
      %18 = arith.truncf %17 : vector<32x128xf32> to vector<32x128xbf16>
      %c0_14 = arith.constant 0 : index
      %c0_15 = arith.constant 0 : index
      %19 = vector.load %arg6[%c0_14, %c0_15] : memref<32x128xbf16, #tpu.memory_space<vmem>>, vector<32x128xbf16>
      tpu.vector_store %arg6[%c0_14, %c0_15], %18 {strides = array<i32>} : memref<32x128xbf16, #tpu.memory_space<vmem>>, vector<32x128xbf16>,
    } else {
    }
    return
  }
  func.func @transform_0(%arg0: i32, %arg1: i32, %arg2: i32) -> (i32, i32) {
    %c0_i32 = arith.constant 0 : i32
    return %arg0, %arg2 : i32, i32
  }
  func.func @transform_1(%arg0: i32, %arg1: i32, %arg2: i32) -> (i32, i32) {
    %c0_i32 = arith.constant 0 : i32
    return %arg2, %arg1 : i32, i32
  }
  func.func @transform_2(%arg0: i32, %arg1: i32, %arg2: i32) -> (i32, i32) {
    %c0_i32 = arith.constant 0 : i32
    %c0_i32_0 = arith.constant 0 : i32
    return %c0_i32, %arg1 : i32, i32
  }
  func.func @transform_3(%arg0: i32, %arg1: i32, %arg2: i32) -> (i32, i32) {
    %c0_i32 = arith.constant 0 : i32
    return %arg0, %arg1 : i32, i32
  }
}

module attributes {stable_mosaic.version = 11 : i64} {
  func.func @kernel(%arg0: i32, %arg1: i32, %arg2: i32, %arg3: memref<8x384xbf16, #tpu.memory_space<vmem>>, %arg4: memref<384x256xbf16, #tpu.memory_space<vmem>>, %arg5: memref<1x256xf32, #tpu.memory_space<vmem>>, %arg6: memref<8x256xbf16, #tpu.memory_space<vmem>>, %arg7: memref<8x256xf32, #tpu.memory_space<vmem>>) attributes {dimension_semantics = [#tpu.dimension_semantics<parallel>, #tpu.dimension_semantics<parallel>, #tpu.dimension_semantics<arbitrary>], iteration_bounds = array<i64: 1, 1, 3>, scalar_prefetch = 0 : i64, scratch_operands = 1 : i64, tpu.core_type = #tpu.core_type<tc>, window_params = [{transform_indices = @transform_0, window_bounds = array<i64: 8, 384>}, {transform_indices = @transform_1, window_bounds = array<i64: 384, 256>}, {transform_indices = @transform_2, window_bounds = array<i64: 1, 256>}, {transform_indices = @transform_3, window_bounds = array<i64: 8, 256>}]} {
    %c0_i32 = arith.constant 0 : i32
    %0 = arith.cmpi eq, %arg2, %c0_i32 : i32
    %1 = arith.extui %0 : i1 to i32
    %c0_i32_0 = arith.constant 0 : i32
    %2 = arith.cmpi ne, %1, %c0_i32_0 : i32
    scf.if %2 {
      %cst_9 = arith.constant 0.000000e+00 : f32
      %12 = vector.broadcast %cst_9 : f32 to vector<8x256xf32>
      %c0_10 = arith.constant 0 : index
      %c0_11 = arith.constant 0 : index
      %13 = vector.load %arg7[%c0_10, %c0_11] : memref<8x256xf32, #tpu.memory_space<vmem>>, vector<8x256xf32>
      tpu.vector_store %arg7[%c0_10, %c0_11], %12 {strides = array<i32>} : memref<8x256xf32, #tpu.memory_space<vmem>>, vector<8x256xf32>,
    } else {
    }
    %c0 = arith.constant 0 : index
    %c0_1 = arith.constant 0 : index
    %3 = vector.load %arg7[%c0, %c0_1] : memref<8x256xf32, #tpu.memory_space<vmem>>, vector<8x256xf32>
    %c0_2 = arith.constant 0 : index
    %c0_3 = arith.constant 0 : index
    %4 = vector.load %arg3[%c0_2, %c0_3] : memref<8x384xbf16, #tpu.memory_space<vmem>>, vector<8x384xbf16>
    %c0_4 = arith.constant 0 : index
    %c0_5 = arith.constant 0 : index
    %5 = vector.load %arg4[%c0_4, %c0_5] : memref<384x256xbf16, #tpu.memory_space<vmem>>, vector<384x256xbf16>
    %cst = arith.constant dense<0.000000e+00> : vector<8x256xf32>
    %6 = tpu.matmul %4, %5, %cst {dimension_numbers = #tpu.dot_dimension_numbers<[1], [0], [0], [1], [0, 0, 1, 1], [], []>} : vector<8x384xbf16>, vector<384x256xbf16>, vector<8x256xf32> -> vector<8x256xf32>
    %7 = arith.addf %3, %6 : vector<8x256xf32>
    %c0_6 = arith.constant 0 : index
    %c0_7 = arith.constant 0 : index
    %8 = vector.load %arg7[%c0_6, %c0_7] : memref<8x256xf32, #tpu.memory_space<vmem>>, vector<8x256xf32>
    tpu.vector_store %arg7[%c0_6, %c0_7], %7 {strides = array<i32>} : memref<8x256xf32, #tpu.memory_space<vmem>>, vector<8x256xf32>,
    %c2_i32 = arith.constant 2 : i32
    %9 = arith.cmpi eq, %arg2, %c2_i32 : i32
    %10 = arith.extui %9 : i1 to i32
    %c0_i32_8 = arith.constant 0 : i32
    %11 = arith.cmpi ne, %10, %c0_i32_8 : i32
    scf.if %11 {
      %c0_9 = arith.constant 0 : index
      %c0_10 = arith.constant 0 : index
      %12 = vector.load %arg7[%c0_9, %c0_10] : memref<8x256xf32, #tpu.memory_space<vmem>>, vector<8x256xf32>
      %c0_11 = arith.constant 0 : index
      %c0_12 = arith.constant 0 : index
      %13 = vector.load %arg5[%c0_11, %c0_12] : memref<1x256xf32, #tpu.memory_space<vmem>>, vector<1x256xf32>
      %14 = vector.broadcast %13 : vector<1x256xf32> to vector<8x256xf32>
      %15 = arith.addf %12, %14 : vector<8x256xf32>
      %cst_13 = arith.constant 0.000000e+00 : f32
      %16 = vector.broadcast %cst_13 : f32 to vector<8x256xf32>
      %17 = arith.maximumf %15, %16 : vector<8x256xf32>
      %18 = arith.truncf %17 : vector<8x256xf32> to vector<8x256xbf16>
      %c0_14 = arith.constant 0 : index
      %c0_15 = arith.constant 0 : index
      %19 = vector.load %arg6[%c0_14, %c0_15] : memref<8x256xbf16, #tpu.memory_space<vmem>>, vector<8x256xbf16>
      tpu.vector_store %arg6[%c0_14, %c0_15], %18 {strides = array<i32>} : memref<8x256xbf16, #tpu.memory_space<vmem>>, vector<8x256xbf16>,
    } else {
    }
    return
  }
  func.func @transform_0(%arg0: i32, %arg1: i32, %arg2: i32) -> (i32, i32) {
    %c0_i32 = arith.constant 0 : i32
    return %arg0, %arg2 : i32, i32
  }
  func.func @transform_1(%arg0: i32, %arg1: i32, %arg2: i32) -> (i32, i32) {
    %c0_i32 = arith.constant 0 : i32
    return %arg2, %arg1 : i32, i32
  }
  func.func @transform_2(%arg0: i32, %arg1: i32, %arg2: i32) -> (i32, i32) {
    %c0_i32 = arith.constant 0 : i32
    %c0_i32_0 = arith.constant 0 : i32
    return %c0_i32, %arg1 : i32, i32
  }
  func.func @transform_3(%arg0: i32, %arg1: i32, %arg2: i32) -> (i32, i32) {
    %c0_i32 = arith.constant 0 : i32
    return %arg0, %arg1 : i32, i32
  }
}

module attributes {stable_mosaic.version = 11 : i64} {
  func.func @kernel(%arg0: i32, %arg1: i32, %arg2: i32, %arg3: memref<8x384xbf16, #tpu.memory_space<vmem>>, %arg4: memref<384x256xbf16, #tpu.memory_space<vmem>>, %arg5: memref<1x256xf32, #tpu.memory_space<vmem>>, %arg6: memref<8x256xbf16, #tpu.memory_space<vmem>>, %arg7: memref<8x256xf32, #tpu.memory_space<vmem>>) attributes {dimension_semantics = [#tpu.dimension_semantics<parallel>, #tpu.dimension_semantics<parallel>, #tpu.dimension_semantics<arbitrary>], iteration_bounds = array<i64: 1, 1, 6>, scalar_prefetch = 0 : i64, scratch_operands = 1 : i64, tpu.core_type = #tpu.core_type<tc>, window_params = [{transform_indices = @transform_0, window_bounds = array<i64: 8, 384>}, {transform_indices = @transform_1, window_bounds = array<i64: 384, 256>}, {transform_indices = @transform_2, window_bounds = array<i64: 1, 256>}, {transform_indices = @transform_3, window_bounds = array<i64: 8, 256>}]} {
    %c0_i32 = arith.constant 0 : i32
    %0 = arith.cmpi eq, %arg2, %c0_i32 : i32
    %1 = arith.extui %0 : i1 to i32
    %c0_i32_0 = arith.constant 0 : i32
    %2 = arith.cmpi ne, %1, %c0_i32_0 : i32
    scf.if %2 {
      %cst_9 = arith.constant 0.000000e+00 : f32
      %12 = vector.broadcast %cst_9 : f32 to vector<8x256xf32>
      %c0_10 = arith.constant 0 : index
      %c0_11 = arith.constant 0 : index
      %13 = vector.load %arg7[%c0_10, %c0_11] : memref<8x256xf32, #tpu.memory_space<vmem>>, vector<8x256xf32>
      tpu.vector_store %arg7[%c0_10, %c0_11], %12 {strides = array<i32>} : memref<8x256xf32, #tpu.memory_space<vmem>>, vector<8x256xf32>,
    } else {
    }
    %c0 = arith.constant 0 : index
    %c0_1 = arith.constant 0 : index
    %3 = vector.load %arg7[%c0, %c0_1] : memref<8x256xf32, #tpu.memory_space<vmem>>, vector<8x256xf32>
    %c0_2 = arith.constant 0 : index
    %c0_3 = arith.constant 0 : index
    %4 = vector.load %arg3[%c0_2, %c0_3] : memref<8x384xbf16, #tpu.memory_space<vmem>>, vector<8x384xbf16>
    %c0_4 = arith.constant 0 : index
    %c0_5 = arith.constant 0 : index
    %5 = vector.load %arg4[%c0_4, %c0_5] : memref<384x256xbf16, #tpu.memory_space<vmem>>, vector<384x256xbf16>
    %cst = arith.constant dense<0.000000e+00> : vector<8x256xf32>
    %6 = tpu.matmul %4, %5, %cst {dimension_numbers = #tpu.dot_dimension_numbers<[1], [0], [0], [1], [0, 0, 1, 1], [], []>} : vector<8x384xbf16>, vector<384x256xbf16>, vector<8x256xf32> -> vector<8x256xf32>
    %7 = arith.addf %3, %6 : vector<8x256xf32>
    %c0_6 = arith.constant 0 : index
    %c0_7 = arith.constant 0 : index
    %8 = vector.load %arg7[%c0_6, %c0_7] : memref<8x256xf32, #tpu.memory_space<vmem>>, vector<8x256xf32>
    tpu.vector_store %arg7[%c0_6, %c0_7], %7 {strides = array<i32>} : memref<8x256xf32, #tpu.memory_space<vmem>>, vector<8x256xf32>,
    %c5_i32 = arith.constant 5 : i32
    %9 = arith.cmpi eq, %arg2, %c5_i32 : i32
    %10 = arith.extui %9 : i1 to i32
    %c0_i32_8 = arith.constant 0 : i32
    %11 = arith.cmpi ne, %10, %c0_i32_8 : i32
    scf.if %11 {
      %c0_9 = arith.constant 0 : index
      %c0_10 = arith.constant 0 : index
      %12 = vector.load %arg7[%c0_9, %c0_10] : memref<8x256xf32, #tpu.memory_space<vmem>>, vector<8x256xf32>
      %c0_11 = arith.constant 0 : index
      %c0_12 = arith.constant 0 : index
      %13 = vector.load %arg5[%c0_11, %c0_12] : memref<1x256xf32, #tpu.memory_space<vmem>>, vector<1x256xf32>
      %14 = vector.broadcast %13 : vector<1x256xf32> to vector<8x256xf32>
      %15 = arith.addf %12, %14 : vector<8x256xf32>
      %cst_13 = arith.constant 0.000000e+00 : f32
      %16 = vector.broadcast %cst_13 : f32 to vector<8x256xf32>
      %17 = arith.maximumf %15, %16 : vector<8x256xf32>
      %18 = arith.truncf %17 : vector<8x256xf32> to vector<8x256xbf16>
      %c0_14 = arith.constant 0 : index
      %c0_15 = arith.constant 0 : index
      %19 = vector.load %arg6[%c0_14, %c0_15] : memref<8x256xbf16, #tpu.memory_space<vmem>>, vector<8x256xbf16>
      tpu.vector_store %arg6[%c0_14, %c0_15], %18 {strides = array<i32>} : memref<8x256xbf16, #tpu.memory_space<vmem>>, vector<8x256xbf16>,
    } else {
    }
    return
  }
  func.func @transform_0(%arg0: i32, %arg1: i32, %arg2: i32) -> (i32, i32) {
    %c0_i32 = arith.constant 0 : i32
    return %arg0, %arg2 : i32, i32
  }
  func.func @transform_1(%arg0: i32, %arg1: i32, %arg2: i32) -> (i32, i32) {
    %c0_i32 = arith.constant 0 : i32
    return %arg2, %arg1 : i32, i32
  }
  func.func @transform_2(%arg0: i32, %arg1: i32, %arg2: i32) -> (i32, i32) {
    %c0_i32 = arith.constant 0 : i32
    %c0_i32_0 = arith.constant 0 : i32
    return %c0_i32, %arg1 : i32, i32
  }
  func.func @transform_3(%arg0: i32, %arg1: i32, %arg2: i32) -> (i32, i32) {
    %c0_i32 = arith.constant 0 : i32
    return %arg0, %arg1 : i32, i32
  }
}

module attributes {stable_mosaic.version = 11 : i64} {
  func.func @kernel(%arg0: i32, %arg1: i32, %arg2: i32, %arg3: memref<8x128xbf16, #tpu.memory_space<vmem>>, %arg4: memref<128x256xbf16, #tpu.memory_space<vmem>>, %arg5: memref<1x256xf32, #tpu.memory_space<vmem>>, %arg6: memref<8x256xbf16, #tpu.memory_space<vmem>>, %arg7: memref<8x256xf32, #tpu.memory_space<vmem>>) attributes {dimension_semantics = [#tpu.dimension_semantics<parallel>, #tpu.dimension_semantics<parallel>, #tpu.dimension_semantics<arbitrary>], iteration_bounds = array<i64: 1, 1, 1>, scalar_prefetch = 0 : i64, scratch_operands = 1 : i64, tpu.core_type = #tpu.core_type<tc>, window_params = [{transform_indices = @transform_0, window_bounds = array<i64: 8, 128>}, {transform_indices = @transform_1, window_bounds = array<i64: 128, 256>}, {transform_indices = @transform_2, window_bounds = array<i64: 1, 256>}, {transform_indices = @transform_3, window_bounds = array<i64: 8, 256>}]} {
    %c0_i32 = arith.constant 0 : i32
    %0 = arith.cmpi eq, %arg2, %c0_i32 : i32
    %1 = arith.extui %0 : i1 to i32
    %c0_i32_0 = arith.constant 0 : i32
    %2 = arith.cmpi ne, %1, %c0_i32_0 : i32
    scf.if %2 {
      %cst_10 = arith.constant 0.000000e+00 : f32
      %12 = vector.broadcast %cst_10 : f32 to vector<8x256xf32>
      %c0_11 = arith.constant 0 : index
      %c0_12 = arith.constant 0 : index
      %13 = vector.load %arg7[%c0_11, %c0_12] : memref<8x256xf32, #tpu.memory_space<vmem>>, vector<8x256xf32>
      tpu.vector_store %arg7[%c0_11, %c0_12], %12 {strides = array<i32>} : memref<8x256xf32, #tpu.memory_space<vmem>>, vector<8x256xf32>,
    } else {
    }
    %c0 = arith.constant 0 : index
    %c0_1 = arith.constant 0 : index
    %3 = vector.load %arg7[%c0, %c0_1] : memref<8x256xf32, #tpu.memory_space<vmem>>, vector<8x256xf32>
    %c0_2 = arith.constant 0 : index
    %c0_3 = arith.constant 0 : index
    %4 = vector.load %arg3[%c0_2, %c0_3] : memref<8x128xbf16, #tpu.memory_space<vmem>>, vector<8x128xbf16>
    %c0_4 = arith.constant 0 : index
    %c0_5 = arith.constant 0 : index
    %5 = vector.load %arg4[%c0_4, %c0_5] : memref<128x256xbf16, #tpu.memory_space<vmem>>, vector<128x256xbf16>
    %cst = arith.constant dense<0.000000e+00> : vector<8x256xf32>
    %6 = tpu.matmul %4, %5, %cst {dimension_numbers = #tpu.dot_dimension_numbers<[1], [0], [0], [1], [0, 0, 1, 1], [], []>} : vector<8x128xbf16>, vector<128x256xbf16>, vector<8x256xf32> -> vector<8x256xf32>
    %7 = arith.addf %3, %6 : vector<8x256xf32>
    %c0_6 = arith.constant 0 : index
    %c0_7 = arith.constant 0 : index
    %8 = vector.load %arg7[%c0_6, %c0_7] : memref<8x256xf32, #tpu.memory_space<vmem>>, vector<8x256xf32>
    tpu.vector_store %arg7[%c0_6, %c0_7], %7 {strides = array<i32>} : memref<8x256xf32, #tpu.memory_space<vmem>>, vector<8x256xf32>,
    %c0_i32_8 = arith.constant 0 : i32
    %9 = arith.cmpi eq, %arg2, %c0_i32_8 : i32
    %10 = arith.extui %9 : i1 to i32
    %c0_i32_9 = arith.constant 0 : i32
    %11 = arith.cmpi ne, %10, %c0_i32_9 : i32
    scf.if %11 {
      %c0_10 = arith.constant 0 : index
      %c0_11 = arith.constant 0 : index
      %12 = vector.load %arg7[%c0_10, %c0_11] : memref<8x256xf32, #tpu.memory_space<vmem>>, vector<8x256xf32>
      %c0_12 = arith.constant 0 : index
      %c0_13 = arith.constant 0 : index
      %13 = vector.load %arg5[%c0_12, %c0_13] : memref<1x256xf32, #tpu.memory_space<vmem>>, vector<1x256xf32>
      %14 = vector.broadcast %13 : vector<1x256xf32> to vector<8x256xf32>
      %15 = arith.addf %12, %14 : vector<8x256xf32>
      %16 = arith.truncf %15 : vector<8x256xf32> to vector<8x256xbf16>
      %c0_14 = arith.constant 0 : index
      %c0_15 = arith.constant 0 : index
      %17 = vector.load %arg6[%c0_14, %c0_15] : memref<8x256xbf16, #tpu.memory_space<vmem>>, vector<8x256xbf16>
      tpu.vector_store %arg6[%c0_14, %c0_15], %16 {strides = array<i32>} : memref<8x256xbf16, #tpu.memory_space<vmem>>, vector<8x256xbf16>,
    } else {
    }
    return
  }
  func.func @transform_0(%arg0: i32, %arg1: i32, %arg2: i32) -> (i32, i32) {
    %c0_i32 = arith.constant 0 : i32
    return %arg0, %arg2 : i32, i32
  }
  func.func @transform_1(%arg0: i32, %arg1: i32, %arg2: i32) -> (i32, i32) {
    %c0_i32 = arith.constant 0 : i32
    return %arg2, %arg1 : i32, i32
  }
  func.func @transform_2(%arg0: i32, %arg1: i32, %arg2: i32) -> (i32, i32) {
    %c0_i32 = arith.constant 0 : i32
    %c0_i32_0 = arith.constant 0 : i32
    return %c0_i32, %arg1 : i32, i32
  }
  func.func @transform_3(%arg0: i32, %arg1: i32, %arg2: i32) -> (i32, i32) {
    %c0_i32 = arith.constant 0 : i32
    return %arg0, %arg1 : i32, i32
  }
}

module attributes {stable_mosaic.version = 11 : i64} {
  func.func @kernel(%arg0: i32, %arg1: i32, %arg2: i32, %arg3: memref<8x384xbf16, #tpu.memory_space<vmem>>, %arg4: memref<384x256xbf16, #tpu.memory_space<vmem>>, %arg5: memref<1x256xf32, #tpu.memory_space<vmem>>, %arg6: memref<8x256xbf16, #tpu.memory_space<vmem>>, %arg7: memref<8x256xbf16, #tpu.memory_space<vmem>>, %arg8: memref<8x256xf32, #tpu.memory_space<vmem>>) attributes {dimension_semantics = [#tpu.dimension_semantics<parallel>, #tpu.dimension_semantics<parallel>, #tpu.dimension_semantics<arbitrary>], iteration_bounds = array<i64: 1, 1, 6>, scalar_prefetch = 0 : i64, scratch_operands = 1 : i64, tpu.core_type = #tpu.core_type<tc>, window_params = [{transform_indices = @transform_0, window_bounds = array<i64: 8, 384>}, {transform_indices = @transform_1, window_bounds = array<i64: 384, 256>}, {transform_indices = @transform_2, window_bounds = array<i64: 1, 256>}, {transform_indices = @transform_3, window_bounds = array<i64: 8, 256>}, {transform_indices = @transform_4, window_bounds = array<i64: 8, 256>}]} {
    %c0_i32 = arith.constant 0 : i32
    %0 = arith.cmpi eq, %arg2, %c0_i32 : i32
    %1 = arith.extui %0 : i1 to i32
    %c0_i32_0 = arith.constant 0 : i32
    %2 = arith.cmpi ne, %1, %c0_i32_0 : i32
    scf.if %2 {
      %cst_9 = arith.constant 0.000000e+00 : f32
      %12 = vector.broadcast %cst_9 : f32 to vector<8x256xf32>
      %c0_10 = arith.constant 0 : index
      %c0_11 = arith.constant 0 : index
      %13 = vector.load %arg8[%c0_10, %c0_11] : memref<8x256xf32, #tpu.memory_space<vmem>>, vector<8x256xf32>
      tpu.vector_store %arg8[%c0_10, %c0_11], %12 {strides = array<i32>} : memref<8x256xf32, #tpu.memory_space<vmem>>, vector<8x256xf32>,
    } else {
    }
    %c0 = arith.constant 0 : index
    %c0_1 = arith.constant 0 : index
    %3 = vector.load %arg8[%c0, %c0_1] : memref<8x256xf32, #tpu.memory_space<vmem>>, vector<8x256xf32>
    %c0_2 = arith.constant 0 : index
    %c0_3 = arith.constant 0 : index
    %4 = vector.load %arg3[%c0_2, %c0_3] : memref<8x384xbf16, #tpu.memory_space<vmem>>, vector<8x384xbf16>
    %c0_4 = arith.constant 0 : index
    %c0_5 = arith.constant 0 : index
    %5 = vector.load %arg4[%c0_4, %c0_5] : memref<384x256xbf16, #tpu.memory_space<vmem>>, vector<384x256xbf16>
    %cst = arith.constant dense<0.000000e+00> : vector<8x256xf32>
    %6 = tpu.matmul %4, %5, %cst {dimension_numbers = #tpu.dot_dimension_numbers<[1], [0], [0], [1], [0, 0, 1, 1], [], []>} : vector<8x384xbf16>, vector<384x256xbf16>, vector<8x256xf32> -> vector<8x256xf32>
    %7 = arith.addf %3, %6 : vector<8x256xf32>
    %c0_6 = arith.constant 0 : index
    %c0_7 = arith.constant 0 : index
    %8 = vector.load %arg8[%c0_6, %c0_7] : memref<8x256xf32, #tpu.memory_space<vmem>>, vector<8x256xf32>
    tpu.vector_store %arg8[%c0_6, %c0_7], %7 {strides = array<i32>} : memref<8x256xf32, #tpu.memory_space<vmem>>, vector<8x256xf32>,
    %c5_i32 = arith.constant 5 : i32
    %9 = arith.cmpi eq, %arg2, %c5_i32 : i32
    %10 = arith.extui %9 : i1 to i32
    %c0_i32_8 = arith.constant 0 : i32
    %11 = arith.cmpi ne, %10, %c0_i32_8 : i32
    scf.if %11 {
      %c0_9 = arith.constant 0 : index
      %c0_10 = arith.constant 0 : index
      %12 = vector.load %arg8[%c0_9, %c0_10] : memref<8x256xf32, #tpu.memory_space<vmem>>, vector<8x256xf32>
      %c0_11 = arith.constant 0 : index
      %c0_12 = arith.constant 0 : index
      %13 = vector.load %arg5[%c0_11, %c0_12] : memref<1x256xf32, #tpu.memory_space<vmem>>, vector<1x256xf32>
      %14 = vector.broadcast %13 : vector<1x256xf32> to vector<8x256xf32>
      %15 = arith.addf %12, %14 : vector<8x256xf32>
      %c0_13 = arith.constant 0 : index
      %c0_14 = arith.constant 0 : index
      %16 = vector.load %arg6[%c0_13, %c0_14] : memref<8x256xbf16, #tpu.memory_space<vmem>>, vector<8x256xbf16>
      %17 = arith.extf %16 : vector<8x256xbf16> to vector<8x256xf32>
      %18 = arith.addf %15, %17 : vector<8x256xf32>
      %cst_15 = arith.constant 0.000000e+00 : f32
      %19 = vector.broadcast %cst_15 : f32 to vector<8x256xf32>
      %20 = arith.maximumf %18, %19 : vector<8x256xf32>
      %21 = arith.truncf %20 : vector<8x256xf32> to vector<8x256xbf16>
      %c0_16 = arith.constant 0 : index
      %c0_17 = arith.constant 0 : index
      %22 = vector.load %arg7[%c0_16, %c0_17] : memref<8x256xbf16, #tpu.memory_space<vmem>>, vector<8x256xbf16>
      tpu.vector_store %arg7[%c0_16, %c0_17], %21 {strides = array<i32>} : memref<8x256xbf16, #tpu.memory_space<vmem>>, vector<8x256xbf16>,
    } else {
    }
    return
  }
  func.func @transform_0(%arg0: i32, %arg1: i32, %arg2: i32) -> (i32, i32) {
    %c0_i32 = arith.constant 0 : i32
    return %arg0, %arg2 : i32, i32
  }
  func.func @transform_1(%arg0: i32, %arg1: i32, %arg2: i32) -> (i32, i32) {
    %c0_i32 = arith.constant 0 : i32
    return %arg2, %arg1 : i32, i32
  }
  func.func @transform_2(%arg0: i32, %arg1: i32, %arg2: i32) -> (i32, i32) {
    %c0_i32 = arith.constant 0 : i32
    %c0_i32_0 = arith.constant 0 : i32
    return %c0_i32, %arg1 : i32, i32
  }
  func.func @transform_3(%arg0: i32, %arg1: i32, %arg2: i32) -> (i32, i32) {
    %c0_i32 = arith.constant 0 : i32
    return %arg0, %arg1 : i32, i32
  }
  func.func @transform_4(%arg0: i32, %arg1: i32, %arg2: i32) -> (i32, i32) {
    %c0_i32 = arith.constant 0 : i32
    return %arg0, %arg1 : i32, i32
  }
}

module attributes {stable_mosaic.version = 11 : i64} {
  func.func @kernel(%arg0: i32, %arg1: i32, %arg2: i32, %arg3: memref<8x384xbf16, #tpu.memory_space<vmem>>, %arg4: memref<384x256xbf16, #tpu.memory_space<vmem>>, %arg5: memref<1x256xf32, #tpu.memory_space<vmem>>, %arg6: memref<8x256xbf16, #tpu.memory_space<vmem>>, %arg7: memref<8x256xf32, #tpu.memory_space<vmem>>) attributes {dimension_semantics = [#tpu.dimension_semantics<parallel>, #tpu.dimension_semantics<parallel>, #tpu.dimension_semantics<arbitrary>], iteration_bounds = array<i64: 1, 2, 6>, scalar_prefetch = 0 : i64, scratch_operands = 1 : i64, tpu.core_type = #tpu.core_type<tc>, window_params = [{transform_indices = @transform_0, window_bounds = array<i64: 8, 384>}, {transform_indices = @transform_1, window_bounds = array<i64: 384, 256>}, {transform_indices = @transform_2, window_bounds = array<i64: 1, 256>}, {transform_indices = @transform_3, window_bounds = array<i64: 8, 256>}]} {
    %c0_i32 = arith.constant 0 : i32
    %0 = arith.cmpi eq, %arg2, %c0_i32 : i32
    %1 = arith.extui %0 : i1 to i32
    %c0_i32_0 = arith.constant 0 : i32
    %2 = arith.cmpi ne, %1, %c0_i32_0 : i32
    scf.if %2 {
      %cst_9 = arith.constant 0.000000e+00 : f32
      %12 = vector.broadcast %cst_9 : f32 to vector<8x256xf32>
      %c0_10 = arith.constant 0 : index
      %c0_11 = arith.constant 0 : index
      %13 = vector.load %arg7[%c0_10, %c0_11] : memref<8x256xf32, #tpu.memory_space<vmem>>, vector<8x256xf32>
      tpu.vector_store %arg7[%c0_10, %c0_11], %12 {strides = array<i32>} : memref<8x256xf32, #tpu.memory_space<vmem>>, vector<8x256xf32>,
    } else {
    }
    %c0 = arith.constant 0 : index
    %c0_1 = arith.constant 0 : index
    %3 = vector.load %arg7[%c0, %c0_1] : memref<8x256xf32, #tpu.memory_space<vmem>>, vector<8x256xf32>
    %c0_2 = arith.constant 0 : index
    %c0_3 = arith.constant 0 : index
    %4 = vector.load %arg3[%c0_2, %c0_3] : memref<8x384xbf16, #tpu.memory_space<vmem>>, vector<8x384xbf16>
    %c0_4 = arith.constant 0 : index
    %c0_5 = arith.constant 0 : index
    %5 = vector.load %arg4[%c0_4, %c0_5] : memref<384x256xbf16, #tpu.memory_space<vmem>>, vector<384x256xbf16>
    %cst = arith.constant dense<0.000000e+00> : vector<8x256xf32>
    %6 = tpu.matmul %4, %5, %cst {dimension_numbers = #tpu.dot_dimension_numbers<[1], [0], [0], [1], [0, 0, 1, 1], [], []>} : vector<8x384xbf16>, vector<384x256xbf16>, vector<8x256xf32> -> vector<8x256xf32>
    %7 = arith.addf %3, %6 : vector<8x256xf32>
    %c0_6 = arith.constant 0 : index
    %c0_7 = arith.constant 0 : index
    %8 = vector.load %arg7[%c0_6, %c0_7] : memref<8x256xf32, #tpu.memory_space<vmem>>, vector<8x256xf32>
    tpu.vector_store %arg7[%c0_6, %c0_7], %7 {strides = array<i32>} : memref<8x256xf32, #tpu.memory_space<vmem>>, vector<8x256xf32>,
    %c5_i32 = arith.constant 5 : i32
    %9 = arith.cmpi eq, %arg2, %c5_i32 : i32
    %10 = arith.extui %9 : i1 to i32
    %c0_i32_8 = arith.constant 0 : i32
    %11 = arith.cmpi ne, %10, %c0_i32_8 : i32
    scf.if %11 {
      %c0_9 = arith.constant 0 : index
      %c0_10 = arith.constant 0 : index
      %12 = vector.load %arg7[%c0_9, %c0_10] : memref<8x256xf32, #tpu.memory_space<vmem>>, vector<8x256xf32>
      %c0_11 = arith.constant 0 : index
      %c0_12 = arith.constant 0 : index
      %13 = vector.load %arg5[%c0_11, %c0_12] : memref<1x256xf32, #tpu.memory_space<vmem>>, vector<1x256xf32>
      %14 = vector.broadcast %13 : vector<1x256xf32> to vector<8x256xf32>
      %15 = arith.addf %12, %14 : vector<8x256xf32>
      %cst_13 = arith.constant 0.000000e+00 : f32
      %16 = vector.broadcast %cst_13 : f32 to vector<8x256xf32>
      %17 = arith.maximumf %15, %16 : vector<8x256xf32>
      %18 = arith.truncf %17 : vector<8x256xf32> to vector<8x256xbf16>
      %c0_14 = arith.constant 0 : index
      %c0_15 = arith.constant 0 : index
      %19 = vector.load %arg6[%c0_14, %c0_15] : memref<8x256xbf16, #tpu.memory_space<vmem>>, vector<8x256xbf16>
      tpu.vector_store %arg6[%c0_14, %c0_15], %18 {strides = array<i32>} : memref<8x256xbf16, #tpu.memory_space<vmem>>, vector<8x256xbf16>,
    } else {
    }
    return
  }
  func.func @transform_0(%arg0: i32, %arg1: i32, %arg2: i32) -> (i32, i32) {
    %c0_i32 = arith.constant 0 : i32
    return %arg0, %arg2 : i32, i32
  }
  func.func @transform_1(%arg0: i32, %arg1: i32, %arg2: i32) -> (i32, i32) {
    %c0_i32 = arith.constant 0 : i32
    return %arg2, %arg1 : i32, i32
  }
  func.func @transform_2(%arg0: i32, %arg1: i32, %arg2: i32) -> (i32, i32) {
    %c0_i32 = arith.constant 0 : i32
    %c0_i32_0 = arith.constant 0 : i32
    return %c0_i32, %arg1 : i32, i32
  }
  func.func @transform_3(%arg0: i32, %arg1: i32, %arg2: i32) -> (i32, i32) {
    %c0_i32 = arith.constant 0 : i32
    return %arg0, %arg1 : i32, i32
  }
}

module attributes {stable_mosaic.version = 11 : i64} {
  func.func @kernel(%arg0: i32, %arg1: i32, %arg2: i32, %arg3: memref<8x512xbf16, #tpu.memory_space<vmem>>, %arg4: memref<512x256xbf16, #tpu.memory_space<vmem>>, %arg5: memref<1x256xf32, #tpu.memory_space<vmem>>, %arg6: memref<8x256xbf16, #tpu.memory_space<vmem>>, %arg7: memref<8x256xbf16, #tpu.memory_space<vmem>>, %arg8: memref<8x256xf32, #tpu.memory_space<vmem>>) attributes {dimension_semantics = [#tpu.dimension_semantics<parallel>, #tpu.dimension_semantics<parallel>, #tpu.dimension_semantics<arbitrary>], iteration_bounds = array<i64: 1, 2, 9>, scalar_prefetch = 0 : i64, scratch_operands = 1 : i64, tpu.core_type = #tpu.core_type<tc>, window_params = [{transform_indices = @transform_0, window_bounds = array<i64: 8, 512>}, {transform_indices = @transform_1, window_bounds = array<i64: 512, 256>}, {transform_indices = @transform_2, window_bounds = array<i64: 1, 256>}, {transform_indices = @transform_3, window_bounds = array<i64: 8, 256>}, {transform_indices = @transform_4, window_bounds = array<i64: 8, 256>}]} {
    %c0_i32 = arith.constant 0 : i32
    %0 = arith.cmpi eq, %arg2, %c0_i32 : i32
    %1 = arith.extui %0 : i1 to i32
    %c0_i32_0 = arith.constant 0 : i32
    %2 = arith.cmpi ne, %1, %c0_i32_0 : i32
    scf.if %2 {
      %cst_9 = arith.constant 0.000000e+00 : f32
      %12 = vector.broadcast %cst_9 : f32 to vector<8x256xf32>
      %c0_10 = arith.constant 0 : index
      %c0_11 = arith.constant 0 : index
      %13 = vector.load %arg8[%c0_10, %c0_11] : memref<8x256xf32, #tpu.memory_space<vmem>>, vector<8x256xf32>
      tpu.vector_store %arg8[%c0_10, %c0_11], %12 {strides = array<i32>} : memref<8x256xf32, #tpu.memory_space<vmem>>, vector<8x256xf32>,
    } else {
    }
    %c0 = arith.constant 0 : index
    %c0_1 = arith.constant 0 : index
    %3 = vector.load %arg8[%c0, %c0_1] : memref<8x256xf32, #tpu.memory_space<vmem>>, vector<8x256xf32>
    %c0_2 = arith.constant 0 : index
    %c0_3 = arith.constant 0 : index
    %4 = vector.load %arg3[%c0_2, %c0_3] : memref<8x512xbf16, #tpu.memory_space<vmem>>, vector<8x512xbf16>
    %c0_4 = arith.constant 0 : index
    %c0_5 = arith.constant 0 : index
    %5 = vector.load %arg4[%c0_4, %c0_5] : memref<512x256xbf16, #tpu.memory_space<vmem>>, vector<512x256xbf16>
    %cst = arith.constant dense<0.000000e+00> : vector<8x256xf32>
    %6 = tpu.matmul %4, %5, %cst {dimension_numbers = #tpu.dot_dimension_numbers<[1], [0], [0], [1], [0, 0, 1, 1], [], []>} : vector<8x512xbf16>, vector<512x256xbf16>, vector<8x256xf32> -> vector<8x256xf32>
    %7 = arith.addf %3, %6 : vector<8x256xf32>
    %c0_6 = arith.constant 0 : index
    %c0_7 = arith.constant 0 : index
    %8 = vector.load %arg8[%c0_6, %c0_7] : memref<8x256xf32, #tpu.memory_space<vmem>>, vector<8x256xf32>
    tpu.vector_store %arg8[%c0_6, %c0_7], %7 {strides = array<i32>} : memref<8x256xf32, #tpu.memory_space<vmem>>, vector<8x256xf32>,
    %c8_i32 = arith.constant 8 : i32
    %9 = arith.cmpi eq, %arg2, %c8_i32 : i32
    %10 = arith.extui %9 : i1 to i32
    %c0_i32_8 = arith.constant 0 : i32
    %11 = arith.cmpi ne, %10, %c0_i32_8 : i32
    scf.if %11 {
      %c0_9 = arith.constant 0 : index
      %c0_10 = arith.constant 0 : index
      %12 = vector.load %arg8[%c0_9, %c0_10] : memref<8x256xf32, #tpu.memory_space<vmem>>, vector<8x256xf32>
      %c0_11 = arith.constant 0 : index
      %c0_12 = arith.constant 0 : index
      %13 = vector.load %arg5[%c0_11, %c0_12] : memref<1x256xf32, #tpu.memory_space<vmem>>, vector<1x256xf32>
      %14 = vector.broadcast %13 : vector<1x256xf32> to vector<8x256xf32>
      %15 = arith.addf %12, %14 : vector<8x256xf32>
      %c0_13 = arith.constant 0 : index
      %c0_14 = arith.constant 0 : index
      %16 = vector.load %arg6[%c0_13, %c0_14] : memref<8x256xbf16, #tpu.memory_space<vmem>>, vector<8x256xbf16>
      %17 = arith.extf %16 : vector<8x256xbf16> to vector<8x256xf32>
      %18 = arith.addf %15, %17 : vector<8x256xf32>
      %cst_15 = arith.constant 0.000000e+00 : f32
      %19 = vector.broadcast %cst_15 : f32 to vector<8x256xf32>
      %20 = arith.maximumf %18, %19 : vector<8x256xf32>
      %21 = arith.truncf %20 : vector<8x256xf32> to vector<8x256xbf16>
      %c0_16 = arith.constant 0 : index
      %c0_17 = arith.constant 0 : index
      %22 = vector.load %arg7[%c0_16, %c0_17] : memref<8x256xbf16, #tpu.memory_space<vmem>>, vector<8x256xbf16>
      tpu.vector_store %arg7[%c0_16, %c0_17], %21 {strides = array<i32>} : memref<8x256xbf16, #tpu.memory_space<vmem>>, vector<8x256xbf16>,
    } else {
    }
    return
  }
  func.func @transform_0(%arg0: i32, %arg1: i32, %arg2: i32) -> (i32, i32) {
    %c0_i32 = arith.constant 0 : i32
    return %arg0, %arg2 : i32, i32
  }
  func.func @transform_1(%arg0: i32, %arg1: i32, %arg2: i32) -> (i32, i32) {
    %c0_i32 = arith.constant 0 : i32
    return %arg2, %arg1 : i32, i32
  }
  func.func @transform_2(%arg0: i32, %arg1: i32, %arg2: i32) -> (i32, i32) {
    %c0_i32 = arith.constant 0 : i32
    %c0_i32_0 = arith.constant 0 : i32
    return %c0_i32, %arg1 : i32, i32
  }
  func.func @transform_3(%arg0: i32, %arg1: i32, %arg2: i32) -> (i32, i32) {
    %c0_i32 = arith.constant 0 : i32
    return %arg0, %arg1 : i32, i32
  }
  func.func @transform_4(%arg0: i32, %arg1: i32, %arg2: i32) -> (i32, i32) {
    %c0_i32 = arith.constant 0 : i32
    return %arg0, %arg1 : i32, i32
  }
}

module attributes {stable_mosaic.version = 11 : i64} {
  func.func @kernel(%arg0: i32, %arg1: i32, %arg2: i32, %arg3: memref<8x256xbf16, #tpu.memory_space<vmem>>, %arg4: memref<256x256xbf16, #tpu.memory_space<vmem>>, %arg5: memref<1x256xf32, #tpu.memory_space<vmem>>, %arg6: memref<8x256xbf16, #tpu.memory_space<vmem>>, %arg7: memref<8x256xf32, #tpu.memory_space<vmem>>) attributes {dimension_semantics = [#tpu.dimension_semantics<parallel>, #tpu.dimension_semantics<parallel>, #tpu.dimension_semantics<arbitrary>], iteration_bounds = array<i64: 1, 2, 1>, scalar_prefetch = 0 : i64, scratch_operands = 1 : i64, tpu.core_type = #tpu.core_type<tc>, window_params = [{transform_indices = @transform_0, window_bounds = array<i64: 8, 256>}, {transform_indices = @transform_1, window_bounds = array<i64: 256, 256>}, {transform_indices = @transform_2, window_bounds = array<i64: 1, 256>}, {transform_indices = @transform_3, window_bounds = array<i64: 8, 256>}]} {
    %c0_i32 = arith.constant 0 : i32
    %0 = arith.cmpi eq, %arg2, %c0_i32 : i32
    %1 = arith.extui %0 : i1 to i32
    %c0_i32_0 = arith.constant 0 : i32
    %2 = arith.cmpi ne, %1, %c0_i32_0 : i32
    scf.if %2 {
      %cst_10 = arith.constant 0.000000e+00 : f32
      %12 = vector.broadcast %cst_10 : f32 to vector<8x256xf32>
      %c0_11 = arith.constant 0 : index
      %c0_12 = arith.constant 0 : index
      %13 = vector.load %arg7[%c0_11, %c0_12] : memref<8x256xf32, #tpu.memory_space<vmem>>, vector<8x256xf32>
      tpu.vector_store %arg7[%c0_11, %c0_12], %12 {strides = array<i32>} : memref<8x256xf32, #tpu.memory_space<vmem>>, vector<8x256xf32>,
    } else {
    }
    %c0 = arith.constant 0 : index
    %c0_1 = arith.constant 0 : index
    %3 = vector.load %arg7[%c0, %c0_1] : memref<8x256xf32, #tpu.memory_space<vmem>>, vector<8x256xf32>
    %c0_2 = arith.constant 0 : index
    %c0_3 = arith.constant 0 : index
    %4 = vector.load %arg3[%c0_2, %c0_3] : memref<8x256xbf16, #tpu.memory_space<vmem>>, vector<8x256xbf16>
    %c0_4 = arith.constant 0 : index
    %c0_5 = arith.constant 0 : index
    %5 = vector.load %arg4[%c0_4, %c0_5] : memref<256x256xbf16, #tpu.memory_space<vmem>>, vector<256x256xbf16>
    %cst = arith.constant dense<0.000000e+00> : vector<8x256xf32>
    %6 = tpu.matmul %4, %5, %cst {dimension_numbers = #tpu.dot_dimension_numbers<[1], [0], [0], [1], [0, 0, 1, 1], [], []>} : vector<8x256xbf16>, vector<256x256xbf16>, vector<8x256xf32> -> vector<8x256xf32>
    %7 = arith.addf %3, %6 : vector<8x256xf32>
    %c0_6 = arith.constant 0 : index
    %c0_7 = arith.constant 0 : index
    %8 = vector.load %arg7[%c0_6, %c0_7] : memref<8x256xf32, #tpu.memory_space<vmem>>, vector<8x256xf32>
    tpu.vector_store %arg7[%c0_6, %c0_7], %7 {strides = array<i32>} : memref<8x256xf32, #tpu.memory_space<vmem>>, vector<8x256xf32>,
    %c0_i32_8 = arith.constant 0 : i32
    %9 = arith.cmpi eq, %arg2, %c0_i32_8 : i32
    %10 = arith.extui %9 : i1 to i32
    %c0_i32_9 = arith.constant 0 : i32
    %11 = arith.cmpi ne, %10, %c0_i32_9 : i32
    scf.if %11 {
      %c0_10 = arith.constant 0 : index
      %c0_11 = arith.constant 0 : index
      %12 = vector.load %arg7[%c0_10, %c0_11] : memref<8x256xf32, #tpu.memory_space<vmem>>, vector<8x256xf32>
      %c0_12 = arith.constant 0 : index
      %c0_13 = arith.constant 0 : index
      %13 = vector.load %arg5[%c0_12, %c0_13] : memref<1x256xf32, #tpu.memory_space<vmem>>, vector<1x256xf32>
      %14 = vector.broadcast %13 : vector<1x256xf32> to vector<8x256xf32>
      %15 = arith.addf %12, %14 : vector<8x256xf32>
      %16 = arith.truncf %15 : vector<8x256xf32> to vector<8x256xbf16>
      %c0_14 = arith.constant 0 : index
      %c0_15 = arith.constant 0 : index
      %17 = vector.load %arg6[%c0_14, %c0_15] : memref<8x256xbf16, #tpu.memory_space<vmem>>, vector<8x256xbf16>
      tpu.vector_store %arg6[%c0_14, %c0_15], %16 {strides = array<i32>} : memref<8x256xbf16, #tpu.memory_space<vmem>>, vector<8x256xbf16>,
    } else {
    }
    return
  }
  func.func @transform_0(%arg0: i32, %arg1: i32, %arg2: i32) -> (i32, i32) {
    %c0_i32 = arith.constant 0 : i32
    return %arg0, %arg2 : i32, i32
  }
  func.func @transform_1(%arg0: i32, %arg1: i32, %arg2: i32) -> (i32, i32) {
    %c0_i32 = arith.constant 0 : i32
    return %arg2, %arg1 : i32, i32
  }
  func.func @transform_2(%arg0: i32, %arg1: i32, %arg2: i32) -> (i32, i32) {
    %c0_i32 = arith.constant 0 : i32
    %c0_i32_0 = arith.constant 0 : i32
    return %c0_i32, %arg1 : i32, i32
  }
  func.func @transform_3(%arg0: i32, %arg1: i32, %arg2: i32) -> (i32, i32) {
    %c0_i32 = arith.constant 0 : i32
    return %arg0, %arg1 : i32, i32
  }
}

module attributes {stable_mosaic.version = 11 : i64} {
  func.func @kernel(%arg0: i32, %arg1: i32, %arg2: i32, %arg3: memref<8x512xbf16, #tpu.memory_space<vmem>>, %arg4: memref<512x256xbf16, #tpu.memory_space<vmem>>, %arg5: memref<1x256xf32, #tpu.memory_space<vmem>>, %arg6: memref<8x256xbf16, #tpu.memory_space<vmem>>, %arg7: memref<8x256xf32, #tpu.memory_space<vmem>>) attributes {dimension_semantics = [#tpu.dimension_semantics<parallel>, #tpu.dimension_semantics<parallel>, #tpu.dimension_semantics<arbitrary>], iteration_bounds = array<i64: 1, 2, 9>, scalar_prefetch = 0 : i64, scratch_operands = 1 : i64, tpu.core_type = #tpu.core_type<tc>, window_params = [{transform_indices = @transform_0, window_bounds = array<i64: 8, 512>}, {transform_indices = @transform_1, window_bounds = array<i64: 512, 256>}, {transform_indices = @transform_2, window_bounds = array<i64: 1, 256>}, {transform_indices = @transform_3, window_bounds = array<i64: 8, 256>}]} {
    %c0_i32 = arith.constant 0 : i32
    %0 = arith.cmpi eq, %arg2, %c0_i32 : i32
    %1 = arith.extui %0 : i1 to i32
    %c0_i32_0 = arith.constant 0 : i32
    %2 = arith.cmpi ne, %1, %c0_i32_0 : i32
    scf.if %2 {
      %cst_9 = arith.constant 0.000000e+00 : f32
      %12 = vector.broadcast %cst_9 : f32 to vector<8x256xf32>
      %c0_10 = arith.constant 0 : index
      %c0_11 = arith.constant 0 : index
      %13 = vector.load %arg7[%c0_10, %c0_11] : memref<8x256xf32, #tpu.memory_space<vmem>>, vector<8x256xf32>
      tpu.vector_store %arg7[%c0_10, %c0_11], %12 {strides = array<i32>} : memref<8x256xf32, #tpu.memory_space<vmem>>, vector<8x256xf32>,
    } else {
    }
    %c0 = arith.constant 0 : index
    %c0_1 = arith.constant 0 : index
    %3 = vector.load %arg7[%c0, %c0_1] : memref<8x256xf32, #tpu.memory_space<vmem>>, vector<8x256xf32>
    %c0_2 = arith.constant 0 : index
    %c0_3 = arith.constant 0 : index
    %4 = vector.load %arg3[%c0_2, %c0_3] : memref<8x512xbf16, #tpu.memory_space<vmem>>, vector<8x512xbf16>
    %c0_4 = arith.constant 0 : index
    %c0_5 = arith.constant 0 : index
    %5 = vector.load %arg4[%c0_4, %c0_5] : memref<512x256xbf16, #tpu.memory_space<vmem>>, vector<512x256xbf16>
    %cst = arith.constant dense<0.000000e+00> : vector<8x256xf32>
    %6 = tpu.matmul %4, %5, %cst {dimension_numbers = #tpu.dot_dimension_numbers<[1], [0], [0], [1], [0, 0, 1, 1], [], []>} : vector<8x512xbf16>, vector<512x256xbf16>, vector<8x256xf32> -> vector<8x256xf32>
    %7 = arith.addf %3, %6 : vector<8x256xf32>
    %c0_6 = arith.constant 0 : index
    %c0_7 = arith.constant 0 : index
    %8 = vector.load %arg7[%c0_6, %c0_7] : memref<8x256xf32, #tpu.memory_space<vmem>>, vector<8x256xf32>
    tpu.vector_store %arg7[%c0_6, %c0_7], %7 {strides = array<i32>} : memref<8x256xf32, #tpu.memory_space<vmem>>, vector<8x256xf32>,
    %c8_i32 = arith.constant 8 : i32
    %9 = arith.cmpi eq, %arg2, %c8_i32 : i32
    %10 = arith.extui %9 : i1 to i32
    %c0_i32_8 = arith.constant 0 : i32
    %11 = arith.cmpi ne, %10, %c0_i32_8 : i32
    scf.if %11 {
      %c0_9 = arith.constant 0 : index
      %c0_10 = arith.constant 0 : index
      %12 = vector.load %arg7[%c0_9, %c0_10] : memref<8x256xf32, #tpu.memory_space<vmem>>, vector<8x256xf32>
      %c0_11 = arith.constant 0 : index
      %c0_12 = arith.constant 0 : index
      %13 = vector.load %arg5[%c0_11, %c0_12] : memref<1x256xf32, #tpu.memory_space<vmem>>, vector<1x256xf32>
      %14 = vector.broadcast %13 : vector<1x256xf32> to vector<8x256xf32>
      %15 = arith.addf %12, %14 : vector<8x256xf32>
      %cst_13 = arith.constant 0.000000e+00 : f32
      %16 = vector.broadcast %cst_13 : f32 to vector<8x256xf32>
      %17 = arith.maximumf %15, %16 : vector<8x256xf32>
      %18 = arith.truncf %17 : vector<8x256xf32> to vector<8x256xbf16>
      %c0_14 = arith.constant 0 : index
      %c0_15 = arith.constant 0 : index
      %19 = vector.load %arg6[%c0_14, %c0_15] : memref<8x256xbf16, #tpu.memory_space<vmem>>, vector<8x256xbf16>
      tpu.vector_store %arg6[%c0_14, %c0_15], %18 {strides = array<i32>} : memref<8x256xbf16, #tpu.memory_space<vmem>>, vector<8x256xbf16>,
    } else {
    }
    return
  }
  func.func @transform_0(%arg0: i32, %arg1: i32, %arg2: i32) -> (i32, i32) {
    %c0_i32 = arith.constant 0 : i32
    return %arg0, %arg2 : i32, i32
  }
  func.func @transform_1(%arg0: i32, %arg1: i32, %arg2: i32) -> (i32, i32) {
    %c0_i32 = arith.constant 0 : i32
    return %arg2, %arg1 : i32, i32
  }
  func.func @transform_2(%arg0: i32, %arg1: i32, %arg2: i32) -> (i32, i32) {
    %c0_i32 = arith.constant 0 : i32
    %c0_i32_0 = arith.constant 0 : i32
    return %c0_i32, %arg1 : i32, i32
  }
  func.func @transform_3(%arg0: i32, %arg1: i32, %arg2: i32) -> (i32, i32) {
    %c0_i32 = arith.constant 0 : i32
    return %arg0, %arg1 : i32, i32
  }
}

module attributes {stable_mosaic.version = 11 : i64} {
  func.func @kernel(%arg0: i32, %arg1: i32, %arg2: i32, %arg3: memref<8x512xbf16, #tpu.memory_space<vmem>>, %arg4: memref<512x256xbf16, #tpu.memory_space<vmem>>, %arg5: memref<1x256xf32, #tpu.memory_space<vmem>>, %arg6: memref<8x256xf32, #tpu.memory_space<vmem>>, %arg7: memref<8x256xf32, #tpu.memory_space<vmem>>) attributes {dimension_semantics = [#tpu.dimension_semantics<parallel>, #tpu.dimension_semantics<parallel>, #tpu.dimension_semantics<arbitrary>], iteration_bounds = array<i64: 1, 8, 1>, scalar_prefetch = 0 : i64, scratch_operands = 1 : i64, tpu.core_type = #tpu.core_type<tc>, window_params = [{transform_indices = @transform_0, window_bounds = array<i64: 8, 512>}, {transform_indices = @transform_1, window_bounds = array<i64: 512, 256>}, {transform_indices = @transform_2, window_bounds = array<i64: 1, 256>}, {transform_indices = @transform_3, window_bounds = array<i64: 8, 256>}]} {
    %c0_i32 = arith.constant 0 : i32
    %0 = arith.cmpi eq, %arg2, %c0_i32 : i32
    %1 = arith.extui %0 : i1 to i32
    %c0_i32_0 = arith.constant 0 : i32
    %2 = arith.cmpi ne, %1, %c0_i32_0 : i32
    scf.if %2 {
      %cst_10 = arith.constant 0.000000e+00 : f32
      %12 = vector.broadcast %cst_10 : f32 to vector<8x256xf32>
      %c0_11 = arith.constant 0 : index
      %c0_12 = arith.constant 0 : index
      %13 = vector.load %arg7[%c0_11, %c0_12] : memref<8x256xf32, #tpu.memory_space<vmem>>, vector<8x256xf32>
      tpu.vector_store %arg7[%c0_11, %c0_12], %12 {strides = array<i32>} : memref<8x256xf32, #tpu.memory_space<vmem>>, vector<8x256xf32>,
    } else {
    }
    %c0 = arith.constant 0 : index
    %c0_1 = arith.constant 0 : index
    %3 = vector.load %arg7[%c0, %c0_1] : memref<8x256xf32, #tpu.memory_space<vmem>>, vector<8x256xf32>
    %c0_2 = arith.constant 0 : index
    %c0_3 = arith.constant 0 : index
    %4 = vector.load %arg3[%c0_2, %c0_3] : memref<8x512xbf16, #tpu.memory_space<vmem>>, vector<8x512xbf16>
    %c0_4 = arith.constant 0 : index
    %c0_5 = arith.constant 0 : index
    %5 = vector.load %arg4[%c0_4, %c0_5] : memref<512x256xbf16, #tpu.memory_space<vmem>>, vector<512x256xbf16>
    %cst = arith.constant dense<0.000000e+00> : vector<8x256xf32>
    %6 = tpu.matmul %4, %5, %cst {dimension_numbers = #tpu.dot_dimension_numbers<[1], [0], [0], [1], [0, 0, 1, 1], [], []>} : vector<8x512xbf16>, vector<512x256xbf16>, vector<8x256xf32> -> vector<8x256xf32>
    %7 = arith.addf %3, %6 : vector<8x256xf32>
    %c0_6 = arith.constant 0 : index
    %c0_7 = arith.constant 0 : index
    %8 = vector.load %arg7[%c0_6, %c0_7] : memref<8x256xf32, #tpu.memory_space<vmem>>, vector<8x256xf32>
    tpu.vector_store %arg7[%c0_6, %c0_7], %7 {strides = array<i32>} : memref<8x256xf32, #tpu.memory_space<vmem>>, vector<8x256xf32>,
    %c0_i32_8 = arith.constant 0 : i32
    %9 = arith.cmpi eq, %arg2, %c0_i32_8 : i32
    %10 = arith.extui %9 : i1 to i32
    %c0_i32_9 = arith.constant 0 : i32
    %11 = arith.cmpi ne, %10, %c0_i32_9 : i32
    scf.if %11 {
      %c0_10 = arith.constant 0 : index
      %c0_11 = arith.constant 0 : index
      %12 = vector.load %arg7[%c0_10, %c0_11] : memref<8x256xf32, #tpu.memory_space<vmem>>, vector<8x256xf32>
      %c0_12 = arith.constant 0 : index
      %c0_13 = arith.constant 0 : index
      %13 = vector.load %arg5[%c0_12, %c0_13] : memref<1x256xf32, #tpu.memory_space<vmem>>, vector<1x256xf32>
      %14 = vector.broadcast %13 : vector<1x256xf32> to vector<8x256xf32>
      %15 = arith.addf %12, %14 : vector<8x256xf32>
      %c0_14 = arith.constant 0 : index
      %c0_15 = arith.constant 0 : index
      %16 = vector.load %arg6[%c0_14, %c0_15] : memref<8x256xf32, #tpu.memory_space<vmem>>, vector<8x256xf32>
      tpu.vector_store %arg6[%c0_14, %c0_15], %15 {strides = array<i32>} : memref<8x256xf32, #tpu.memory_space<vmem>>, vector<8x256xf32>,
    } else {
    }
    return
  }
  func.func @transform_0(%arg0: i32, %arg1: i32, %arg2: i32) -> (i32, i32) {
    %c0_i32 = arith.constant 0 : i32
    return %arg0, %arg2 : i32, i32
  }
  func.func @transform_1(%arg0: i32, %arg1: i32, %arg2: i32) -> (i32, i32) {
    %c0_i32 = arith.constant 0 : i32
    return %arg2, %arg1 : i32, i32
  }
  func.func @transform_2(%arg0: i32, %arg1: i32, %arg2: i32) -> (i32, i32) {
    %c0_i32 = arith.constant 0 : i32
    %c0_i32_0 = arith.constant 0 : i32
    return %c0_i32, %arg1 : i32, i32
  }
  func.func @transform_3(%arg0: i32, %arg1: i32, %arg2: i32) -> (i32, i32) {
    %c0_i32 = arith.constant 0 : i32
    return %arg0, %arg1 : i32, i32
  }
}

</mosaic_0001>

<bundles_post_ra>
// kernel: resnet34_forward.39
= control target key start
LH: loop header
LB: loop body
LE: loop exit
PB: predicated region body
PF: predicated region fallthrough
CT: control target
= control target key end

     0   :  { %vm22_vm0 = vcmask 523264   ;;  %vm1125_vm1 = vcmask 519168   ;;  %s2100_s1 = inlined_call_operand.vmem [shape: bf16[640,64], index: 1, kind: input, shape index: {}]   ;;  %s2101_s0 = inlined_call_operand.vmem [shape: bf16[128,640], index: 0, kind: input, shape index: {}]   ;;  %s2102_s3 = inlined_call_operand.vmem [shape: bf16[128,64], index: 3, kind: input, shape index: {}]   ;;  %s2103_s2 = inlined_call_operand.vmem [shape: f32[1,64], index: 2, kind: input, shape index: {}]   ;;  %s2104_s4 = inlined_call_operand.vmem [shape: bf16[128,64], index: 4, kind: output, shape index: {}]  }
   0x1   :  { %v1491_v0 = vld [vmem:[%s2100_s1 + $0x40] sm:$0xff]   ;;  %v1495_v4 = vld [vmem:[%s2100_s1 + $0x48] sm:$0xff]   ;;  %v1499_v8 = vld [vmem:[%s2100_s1 + $0x50] sm:$0xff]  }
   0x2   :  { %v1492_v1 = vld [vmem:[%s2100_s1 + $0xc0] sm:$0xff]   ;;  %1298 = vmatprep.subr.bf16.mxu0 %v1491_v0  ;;  %v1496_v5 = vld [vmem:[%s2100_s1 + $0xc8] sm:$0xff]   ;;  %v1500_v9 = vld [vmem:[%s2100_s1 + $0xd0] sm:$0xff]  }
   0x3   :  { %v1493_v2 = vld [vmem:[%s2100_s1] sm:$0xff]   ;;  %1362 = vmatprep.subr.bf16.mxu1 %v1492_v1  ;;  %v1497_v6 = vld [vmem:[%s2100_s1 + $0x8] sm:$0xff]   ;;  %v1501_v10 = vld [vmem:[%s2100_s1 + $0x10] sm:$0xff]  }
   0x4   :  { %v1494_v3 = vld [vmem:[%s2100_s1 + $0x80] sm:$0xff]   ;;  %1299 = vmatpush3.bf16.msra.mxu0 %v1493_v2  ;;  %v1498_v7 = vld [vmem:[%s2100_s1 + $0x88] sm:$0xff]   ;;  %v1502_v11 = vld [vmem:[%s2100_s1 + $0x90] sm:$0xff]  }
   0x5   :  { %1363 = vmatpush3.bf16.msra.mxu1 %v1494_v3  ;;  %1300 = vmatprep.subr.bf16.mxu0 %v1495_v4  ;;  %v1503_v12 = vld [vmem:[%s2100_s1 + $0x58] sm:$0xff]   ;;  %v1507_v16 = vld [vmem:[%s2100_s1 + $0x60] sm:$0xff]   ;;  %v1511_v20 = vld [vmem:[%s2100_s1 + $0x68] sm:$0xff]  }
   0x6   :  { %1364 = vmatprep.subr.bf16.mxu1 %v1496_v5  ;;  %v1504_v13 = vld [vmem:[%s2100_s1 + $0xd8] sm:$0xff]   ;;  %v1508_v17 = vld [vmem:[%s2100_s1 + $0xe0] sm:$0xff]   ;;  %v1512_v21 = vld [vmem:[%s2100_s1 + $0xe8] sm:$0xff]  }
   0x7   :  { %v1505_v14 = vld [vmem:[%s2100_s1 + $0x18] sm:$0xff]   ;;  %v1509_v18 = vld [vmem:[%s2100_s1 + $0x20] sm:$0xff]   ;;  %v1513_v22 = vld [vmem:[%s2100_s1 + $0x28] sm:$0xff]  }
   0x8   :  { %1301 = vmatpush3.bf16.msra.mxu0 %v1497_v6  ;;  %v1506_v15 = vld [vmem:[%s2100_s1 + $0x98] sm:$0xff]   ;;  %v1510_v19 = vld [vmem:[%s2100_s1 + $0xa0] sm:$0xff]   ;;  %v1514_v23 = vld [vmem:[%s2100_s1 + $0xa8] sm:$0xff]  }
   0x9   :  { %1365 = vmatpush3.bf16.msra.mxu1 %v1498_v7  ;;  %1302 = vmatprep.subr.bf16.mxu0 %v1499_v8  ;;  %v1515_v24 = vld [vmem:[%s2100_s1 + $0x70] sm:$0xff]   ;;  %v1519_v28 = vld [vmem:[%s2100_s1 + $0x78] sm:$0xff]   ;;  %v1528_v35 = vld [vmem:[%s2101_s0 + $0xc] ss:$20 sps:$4 sm:$0xff]  }
   0xa   :  { %1366 = vmatprep.subr.bf16.mxu1 %v1500_v9  ;;  %v1516_v25 = vld [vmem:[%s2100_s1 + $0xf0] sm:$0xff]   ;;  %v1520_v29 = vld [vmem:[%s2100_s1 + $0xf8] sm:$0xff]   ;;  %v1529_v36 = vld [vmem:[%s2100_s1 + $0x100] sm:$0xff]   ;;  %760 = vmatprep.mubr.bf16.mxu1 %v1528_v35 }
   0xb   :  { %v1517_v26 = vld [vmem:[%s2100_s1 + $0x30] sm:$0xff]   ;;  %v1521_v30 = vld [vmem:[%s2100_s1 + $0x38] sm:$0xff]   ;;  %v1530_v37 = vld [vmem:[%s2101_s0 + $0x2c] ss:$20 sps:$4 sm:$0xff]  }
   0xc   :  { %1303 = vmatpush3.bf16.msra.mxu0 %v1501_v10  ;;  %v1518_v27 = vld [vmem:[%s2100_s1 + $0xb0] sm:$0xff]   ;;  %v1522_v31 = vld [vmem:[%s2100_s1 + $0xb8] sm:$0xff]   ;;  %v1536_v39 = vld [vmem:[%s2100_s1 + $0x108] sm:$0xff]  }
   0xd   :  { %1367 = vmatpush3.bf16.msra.mxu1 %v1502_v11  ;;  %1304 = vmatprep.subr.bf16.mxu0 %v1503_v12  ;;  %v1523_v32 = vld [vmem:[%s2101_s0] ss:$20 sps:$4 sm:$0xff]   ;;  %v1525_v33 = vld [vmem:[%s2101_s0 + $0x4] ss:$20 sps:$4 sm:$0xff]   ;;  %v1526_v34 = vld [vmem:[%s2101_s0 + $0x8] ss:$20 sps:$4 sm:$0xff]  }
   0xe   :  { %1368 = vmatprep.subr.bf16.mxu1 %v1504_v13  ;;  %663 = vmatprep.mubr.bf16.mxu0 %v1525_v33  ;;  %v1532_v38 = vld [vmem:[%s2101_s0 + $0x34] ss:$20 sps:$4 sm:$0xff]   ;;  %v1535_v41 = vld [vmem:[%s2101_s0 + $0x30] ss:$20 sps:$4 sm:$0xff]   ;;  %v1550_v45 = vld [vmem:[%s2100_s1 + $0x118] sm:$0xff]  }
   0xf   :  { %v1534_v40 = vld [vmem:[%s2101_s0 + $0x28] ss:$20 sps:$4 sm:$0xff]   ;;  %v1543_v44 = vld [vmem:[%s2100_s1 + $0x110] sm:$0xff]   ;;  %v1542_v47 = vld [vmem:[%s2101_s0 + $0x58] ss:$20 sps:$4 sm:$0xff]  }
  0x10   :  { %1305 = vmatpush3.bf16.msra.mxu0 %v1505_v14  ;;  %v1537_v42 = vld [vmem:[%s2101_s0 + $0x54] ss:$20 sps:$4 sm:$0xff]   ;;  %v1539_v43 = vld [vmem:[%s2101_s0 + $0x5c] ss:$20 sps:$4 sm:$0xff]   ;;  %v1546_v49 = vld [vmem:[%s2101_s0 + $0x84] ss:$20 sps:$4 sm:$0xff]  }
  0x11   :  { %1369 = vmatpush3.bf16.msra.mxu1 %v1506_v15  ;;  %1306 = vmatprep.subr.bf16.mxu0 %v1507_v16  ;;  %v1541_v46 = vld [vmem:[%s2101_s0 + $0x50] ss:$20 sps:$4 sm:$0xff]   ;;  %v1564_v51 = vld [vmem:[%s2100_s1 + $0x128] sm:$0xff]   ;;  %v1549_v53 = vld [vmem:[%s2101_s0 + $0x80] ss:$20 sps:$4 sm:$0xff]   ;;  %v1587_v16 = vmov 0.0  }
  0x12   :  { %1370 = vmatprep.subr.bf16.mxu1 %v1508_v17  ;;  %v1544_v48 = vld [vmem:[%s2101_s0 + $0x7c] ss:$20 sps:$4 sm:$0xff]   ;;  %v1557_v50 = vld [vmem:[%s2100_s1 + $0x120] sm:$0xff]   ;;  %v1548_v52 = vld [vmem:[%s2101_s0 + $0x78] ss:$20 sps:$4 sm:$0xff]   ;;  %25 = vst.msk [vmem:[#allocation2 + $0x10] sm:$0xff] %vm22_vm0, %v1587_v16 }
  0x13   :  { %v1551_v54 = vld [vmem:[%s2101_s0 + $0xa4] ss:$20 sps:$4 sm:$0xff]   ;;  %v1571_v55 = vld [vmem:[%s2100_s1 + $0x130] sm:$0xff]   ;;  %v1553_v56 = vld [vmem:[%s2101_s0 + $0xac] ss:$20 sps:$4 sm:$0xff]   ;;  %23 = vst.msk [vmem:[#allocation2] sm:$0xff] %vm22_vm0, %v1587_v16 }
  0x14   :  { %1307 = vmatpush3.bf16.msra.mxu0 %v1509_v18  ;;  %v1578_v57 = vld [vmem:[%s2100_s1 + $0x138] sm:$0xff]   ;;  %v1555_v58 = vld [vmem:[%s2101_s0 + $0xa0] ss:$20 sps:$4 sm:$0xff]   ;;  %v1563_v63 = vld [vmem:[%s2101_s0 + $0xd0] ss:$20 sps:$4 sm:$0xff]   ;;  %24 = vst.msk [vmem:[#allocation2 + $0x8] sm:$0xff] %vm22_vm0, %v1587_v16 }
  0x15   :  { %1371 = vmatpush3.bf16.msra.mxu1 %v1510_v19  ;;  %1308 = vmatprep.subr.bf16.mxu0 %v1511_v20  ;;  %v1556_v59 = vld [vmem:[%s2101_s0 + $0xa8] ss:$20 sps:$4 sm:$0xff]   ;;  %v1558_v60 = vld [vmem:[%s2101_s0 + $0xcc] ss:$20 sps:$4 sm:$0xff]   ;;  %v1569_v2 = vld [vmem:[%s2101_s0 + $0xf0] ss:$20 sps:$4 sm:$0xff]  }
  0x16   :  { %1372 = vmatprep.subr.bf16.mxu1 %v1512_v21  ;;  %v1560_v61 = vld [vmem:[%s2101_s0 + $0xd4] ss:$20 sps:$4 sm:$0xff]   ;;  %v1567_v1 = vld [vmem:[%s2101_s0 + $0xfc] ss:$20 sps:$4 sm:$0xff]   ;;  %v1570_v3 = vld [vmem:[%s2101_s0 + $0xf8] ss:$20 sps:$4 sm:$0xff]  }
  0x17   :  { %v1562_v62 = vld [vmem:[%s2101_s0 + $0xc8] ss:$20 sps:$4 sm:$0xff]   ;;  %v1574_v5 = vld [vmem:[%s2101_s0 + $0x124] ss:$20 sps:$4 sm:$0xff]   ;;  %v1577_v7 = vld [vmem:[%s2101_s0 + $0x120] ss:$20 sps:$4 sm:$0xff]  }
  0x18   :  { %1309 = vmatpush3.bf16.msra.mxu0 %v1513_v22  ;;  %v1565_v0 = vld [vmem:[%s2101_s0 + $0xf4] ss:$20 sps:$4 sm:$0xff]   ;;  %v1572_v4 = vld [vmem:[%s2101_s0 + $0x11c] ss:$20 sps:$4 sm:$0xff]   ;;  %v1576_v6 = vld [vmem:[%s2101_s0 + $0x118] ss:$20 sps:$4 sm:$0xff]  }
  0x19   :  { %1373 = vmatpush3.bf16.msra.mxu1 %v1514_v23  ;;  %1310 = vmatprep.subr.bf16.mxu0 %v1515_v24  ;;  %v1579_v8 = vld [vmem:[%s2101_s0 + $0x10] ss:$20 sps:$4 sm:$0xff]   ;;  %v1581_v10 = vld [vmem:[%s2101_s0 + $0x38] ss:$20 sps:$4 sm:$0xff]   ;;  %v1583_v12 = vld [vmem:[%s2101_s0 + $0x60] ss:$20 sps:$4 sm:$0xff]  }
  0x1a   :  { %1374 = vmatprep.subr.bf16.mxu1 %v1516_v25  ;;  %v1580_v9 = vld [vmem:[%s2101_s0 + $0xb0] ss:$20 sps:$4 sm:$0xff]   ;;  %v1582_v11 = vld [vmem:[%s2101_s0 + $0xd8] ss:$20 sps:$4 sm:$0xff]   ;;  %v1584_v13 = vld [vmem:[%s2101_s0 + $0x100] ss:$20 sps:$4 sm:$0xff]  }
  0x1b   :  { %v1585_v14 = vld [vmem:[%s2101_s0 + $0x88] ss:$20 sps:$4 sm:$0xff]   ;;  %26 = vst.msk [vmem:[#allocation2 + $0x18] sm:$0xff] %vm22_vm0, %v1587_v16  ;;  %27 = vst.msk [vmem:[#allocation2 + $0x20] sm:$0xff] %vm22_vm0, %v1587_v16 }
  0x1c   :  { %1311 = vmatpush3.bf16.msra.mxu0 %v1517_v26  ;;  %v1586_v15 = vld [vmem:[%s2101_s0 + $0x128] ss:$20 sps:$4 sm:$0xff]   ;;  %28 = vst.msk [vmem:[#allocation2 + $0x28] sm:$0xff] %vm22_vm0, %v1587_v16  ;;  %29 = vst.msk [vmem:[#allocation2 + $0x30] sm:$0xff] %vm22_vm0, %v1587_v16 }
  0x1d   :  { %1375 = vmatpush3.bf16.msra.mxu1 %v1518_v27  ;;  %1312 = vmatprep.subr.bf16.mxu0 %v1519_v28  ;;  %30 = vst.msk [vmem:[#allocation2 + $0x38] sm:$0xff] %vm22_vm0, %v1587_v16  ;;  %31 = vst.msk [vmem:[#allocation2 + $0x40] sm:$0xff] %vm22_vm0, %v1587_v16 }
  0x1e   :  { %1376 = vmatprep.subr.bf16.mxu1 %v1520_v29  ;;  %32 = vst.msk [vmem:[#allocation2 + $0x48] sm:$0xff] %vm22_vm0, %v1587_v16  ;;  %33 = vst.msk [vmem:[#allocation2 + $0x50] sm:$0xff] %vm22_vm0, %v1587_v16 }
  0x1f   :  { %34 = vst.msk [vmem:[#allocation2 + $0x58] sm:$0xff] %vm22_vm0, %v1587_v16  ;;  %35 = vst.msk [vmem:[#allocation2 + $0x60] sm:$0xff] %vm22_vm0, %v1587_v16 }
  0x20   :  { %1313 = vmatpush3.bf16.msra.mxu0 %v1521_v30  ;;  %36 = vst.msk [vmem:[#allocation2 + $0x68] sm:$0xff] %vm22_vm0, %v1587_v16  ;;  %37 = vst.msk [vmem:[#allocation2 + $0x70] sm:$0xff] %vm22_vm0, %v1587_v16 }
  0x21   :  { %1377 = vmatpush3.bf16.msra.mxu1 %v1522_v31  ;;  %1442 = vmatprep.subr.bf16.mxu0 %v1529_v36  ;;  %38 = vst.msk [vmem:[#allocation2 + $0x78] sm:$0xff] %vm22_vm0, %v1587_v16 }
  0x22   :  { %1474 = vmatprep.subr.bf16.mxu1 %v1529_v36 }
  0x23   :  { %664 = vmatmul.mubr.bf16.vlgmr.msra.gmra.mrb[0].mxu0 %v1523_v32 }
  0x24   :  { %761 = vmatmul.mubr.bf16.vlgmr.msra.gmra.mrb[0].mxu1 %v1526_v34  ;;  %1443 = vmatpush3.bf16.msra.mxu0 %v1529_v36 }
  0x25   :  { %1482 = vmatpush3.bf16.msra.mxu1 %v1529_v36  ;;  %671 = vmatprep.mubr.bf16.mxu0 %v1530_v37 }
  0x26   :  { %768 = vmatprep.mubr.bf16.mxu1 %v1532_v38  ;;  %1444 = vmatprep.subr.bf16.mxu0 %v1536_v39 }
  0x27   :  { %1475 = vmatprep.subr.bf16.mxu1 %v1536_v39 }
  0x28   :  { %1445 = vmatpush3.bf16.msra.mxu0 %v1536_v39 }
  0x29   :  { %1483 = vmatpush3.bf16.msra.mxu1 %v1536_v39  ;;  %1446 = vmatprep.subr.bf16.mxu0 %v1543_v44 }
  0x2a   :  { %1476 = vmatprep.subr.bf16.mxu1 %v1543_v44 }
  0x2b   :  { %672 = vmatmul.mubr.bf16.gmra.mrb[4].mxu0 %v1534_v40 }
  0x2c   :  { %769 = vmatmul.mubr.bf16.gmra.mrb[4].mxu1 %v1535_v41  ;;  %679 = vmatprep.mubr.bf16.mxu0 %v1537_v42 }
  0x2d   :  { %776 = vmatprep.mubr.bf16.mxu1 %v1539_v43  ;;  %1447 = vmatpush3.bf16.msra.mxu0 %v1543_v44 }
  0x2e   :  { %1484 = vmatpush3.bf16.msra.mxu1 %v1543_v44  ;;  %1448 = vmatprep.subr.bf16.mxu0 %v1550_v45 }
  0x2f   :  { %1477 = vmatprep.subr.bf16.mxu1 %v1550_v45 }
  0x31   :  { %1449 = vmatpush3.bf16.msra.mxu0 %v1550_v45 }
  0x32   :  { %1485 = vmatpush3.bf16.msra.mxu1 %v1550_v45  ;;  %1450 = vmatprep.subr.bf16.mxu0 %v1557_v50 }
  0x33   :  { %680 = vmatmul.mubr.bf16.gmra.mrb[8].mxu0 %v1541_v46  ;;  %1478 = vmatprep.subr.bf16.mxu1 %v1557_v50 }
  0x34   :  { %777 = vmatmul.mubr.bf16.gmra.mrb[8].mxu1 %v1542_v47  ;;  %687 = vmatprep.mubr.bf16.mxu0 %v1544_v48 }
  0x35   :  { %784 = vmatprep.mubr.bf16.mxu1 %v1546_v49  ;;  %1451 = vmatpush3.bf16.msra.mxu0 %v1557_v50 }
  0x36   :  { %1486 = vmatpush3.bf16.msra.mxu1 %v1557_v50  ;;  %1452 = vmatprep.subr.bf16.mxu0 %v1564_v51 }
  0x37   :  { %1479 = vmatprep.subr.bf16.mxu1 %v1564_v51 }
  0x39   :  { %1453 = vmatpush3.bf16.msra.mxu0 %v1564_v51 }
  0x3a   :  { %1487 = vmatpush3.bf16.msra.mxu1 %v1564_v51  ;;  %1454 = vmatprep.subr.bf16.mxu0 %v1571_v55 }
  0x3b   :  { %688 = vmatmul.mubr.bf16.gmra.mrb[12].mxu0 %v1548_v52  ;;  %1480 = vmatprep.subr.bf16.mxu1 %v1571_v55 }
  0x3c   :  { %785 = vmatmul.mubr.bf16.gmra.mrb[12].mxu1 %v1549_v53  ;;  %695 = vmatprep.mubr.bf16.mxu0 %v1551_v54 }
  0x3d   :  { %792 = vmatprep.mubr.bf16.mxu1 %v1553_v56  ;;  %1455 = vmatpush3.bf16.msra.mxu0 %v1571_v55 }
  0x3e   :  { %1488 = vmatpush3.bf16.msra.mxu1 %v1571_v55  ;;  %1456 = vmatprep.subr.bf16.mxu0 %v1578_v57 }
  0x3f   :  { %1481 = vmatprep.subr.bf16.mxu1 %v1578_v57 }
  0x41   :  { %1457 = vmatpush3.bf16.msra.mxu0 %v1578_v57 }
  0x42   :  { %1489 = vmatpush3.bf16.msra.mxu1 %v1578_v57 }
  0x43   :  { %696 = vmatmul.mubr.bf16.gmra.mrb[16].mxu0 %v1555_v58 }
  0x44   :  { %793 = vmatmul.mubr.bf16.gmra.mrb[16].mxu1 %v1556_v59  ;;  %703 = vmatprep.mubr.bf16.mxu0 %v1558_v60 }
  0x45   :  { %800 = vmatprep.mubr.bf16.mxu1 %v1560_v61 }
  0x4b   :  { %704 = vmatmul.mubr.bf16.gmra.mrb[20].mxu0 %v1562_v62 }
  0x4c   :  { %801 = vmatmul.mubr.bf16.gmra.mrb[20].mxu1 %v1563_v63  ;;  %711 = vmatprep.mubr.bf16.mxu0 %v1565_v0 }
  0x4d   :  { %808 = vmatprep.mubr.bf16.mxu1 %v1567_v1 }
  0x53   :  { %712 = vmatmul.mubr.bf16.gmra.mrb[24].mxu0 %v1569_v2 }
  0x54   :  { %809 = vmatmul.mubr.bf16.gmra.mrb[24].mxu1 %v1570_v3  ;;  %719 = vmatprep.mubr.bf16.mxu0 %v1572_v4 }
  0x55   :  { %816 = vmatprep.mubr.bf16.mxu1 %v1574_v5 }
  0x5b   :  { %720 = vmatmul.mubr.bf16.gmra.mrb[28].mxu0 %v1576_v6 }
  0x5c   :  { %817 = vmatmul.mubr.bf16.gmra.mrb[28].mxu1 %v1577_v7  ;;  %1458 = vmatprep.mubr.bf16.mxu0 %v1579_v8 }
  0x5d   :  { %1466 = vmatprep.mubr.bf16.mxu1 %v1580_v9 }
  0x63   :  { %1459 = vmatmul.mubr.bf16.vlgmr.msra.gmra.mrb[32].mxu0 %v1581_v10 }
  0x64   :  { %1467 = vmatmul.mubr.bf16.vlgmr.msra.gmra.mrb[32].mxu1 %v1582_v11  ;;  %1462 = vmatprep.mubr.bf16.mxu0 %v1583_v12 }
  0x65   :  { %1470 = vmatprep.mubr.bf16.mxu1 %v1584_v13 }
  0x6b   :  { %1463 = vmatmul.mubr.bf16.gmra.mrb[36].mxu0 %v1585_v14 }
  0x6c   :  { %1471 = vmatmul.mubr.bf16.gmra.mrb[36].mxu1 %v1586_v15 }
  0xf6   :  { %v1314_v17 = vpop.f32.mrb[0].mxu0 }
  0xf7   :  { %v1378_v18 = vpop.f32.mrb[0].mxu1  ;;  %v1315_v19 = vpop.f32.mrb[1].mxu0 }
  0xf8   :  { %v1316_v20 = vadd.f32 %v1315_v19, %v1314_v17  ;;  %v1379_v21 = vpop.f32.mrb[1].mxu1  ;;  %v1317_v22 = vpop.f32.mrb[2].mxu0 }
  0xf9   :  { %v1380_v23 = vadd.f32 %v1379_v21, %v1378_v18  ;;  %v1381_v24 = vpop.f32.mrb[2].mxu1  ;;  %v1318_v25 = vpop.f32.mrb[3].mxu0 }
  0xfa   :  { %v1319_v26 = vadd.f32 %v1318_v25, %v1317_v22  ;;  %v1382_v27 = vpop.f32.mrb[3].mxu1 }
  0xfb   :  { %v1383_v28 = vadd.f32 %v1382_v27, %v1381_v24  ;;  %v1869_v29 = vadd.f32 %v1380_v23, %v1316_v20 }
  0xfd   :  { %v1871_v30 = vadd.f32 %v1383_v28, %v1319_v26 }
  0xfe   :  { %v1320_v31 = vpop.f32.mrb[4].mxu0 }
  0xff   :  { %v1384_v32 = vpop.f32.mrb[4].mxu1  ;;  %v1321_v33 = vpop.f32.mrb[5].mxu0 }
 0x100   :  { %v1322_v34 = vadd.f32 %v1321_v33, %v1320_v31  ;;  %v1385_v35 = vpop.f32.mrb[5].mxu1  ;;  %v1323_v36 = vpop.f32.mrb[6].mxu0 }
 0x101   :  { %v1386_v37 = vadd.f32 %v1385_v35, %v1384_v32  ;;  %v1387_v38 = vpop.f32.mrb[6].mxu1  ;;  %v1324_v39 = vpop.f32.mrb[7].mxu0 }
 0x102   :  { %v1325_v40 = vadd.f32 %v1324_v39, %v1323_v36  ;;  %v1388_v41 = vpop.f32.mrb[7].mxu1 }
 0x103   :  { %v1389_v42 = vadd.f32 %v1388_v41, %v1387_v38  ;;  %v1873_v43 = vadd.f32 %v1386_v37, %v1322_v34 }
 0x105   :  { %v1875_v44 = vadd.f32 %v1389_v42, %v1325_v40 }
 0x106   :  { %v1326_v45 = vpop.f32.mrb[8].mxu0 }
 0x107   :  { %v1390_v46 = vpop.f32.mrb[8].mxu1  ;;  %v1327_v47 = vpop.f32.mrb[9].mxu0 }
 0x108   :  { %v1328_v48 = vadd.f32 %v1327_v47, %v1326_v45  ;;  %v1391_v49 = vpop.f32.mrb[9].mxu1  ;;  %v1329_v50 = vpop.f32.mrb[10].mxu0 }
 0x109   :  { %v1392_v51 = vadd.f32 %v1391_v49, %v1390_v46  ;;  %v1393_v52 = vpop.f32.mrb[10].mxu1  ;;  %v1330_v53 = vpop.f32.mrb[11].mxu0 }
 0x10a   :  { %v1331_v54 = vadd.f32 %v1330_v53, %v1329_v50  ;;  %v1394_v55 = vpop.f32.mrb[11].mxu1 }
 0x10b   :  { %v1395_v56 = vadd.f32 %v1394_v55, %v1393_v52  ;;  %v1877_v57 = vadd.f32 %v1392_v51, %v1328_v48 }
 0x10d   :  { %v1879_v58 = vadd.f32 %v1395_v56, %v1331_v54 }
 0x10e   :  { %v1332_v59 = vpop.f32.mrb[12].mxu0 }
 0x10f   :  { %v1396_v60 = vpop.f32.mrb[12].mxu1  ;;  %v1333_v61 = vpop.f32.mrb[13].mxu0 }
 0x110   :  { %v1334_v62 = vadd.f32 %v1333_v61, %v1332_v59  ;;  %v1397_v63 = vpop.f32.mrb[13].mxu1  ;;  %v1335_v0 = vpop.f32.mrb[14].mxu0 }
 0x111   :  { %v1398_v1 = vadd.f32 %v1397_v63, %v1396_v60  ;;  %v1399_v2 = vpop.f32.mrb[14].mxu1  ;;  %v1336_v3 = vpop.f32.mrb[15].mxu0 }
 0x112   :  { %v1337_v4 = vadd.f32 %v1336_v3, %v1335_v0  ;;  %v1400_v5 = vpop.f32.mrb[15].mxu1 }
 0x113   :  { %v1401_v6 = vadd.f32 %v1400_v5, %v1399_v2  ;;  %v1881_v7 = vadd.f32 %v1398_v1, %v1334_v62 }
 0x115   :  { %v1883_v8 = vadd.f32 %v1401_v6, %v1337_v4 }
 0x116   :  { %v1338_v9 = vpop.f32.mrb[16].mxu0 }
 0x117   :  { %v1402_v10 = vpop.f32.mrb[16].mxu1  ;;  %v1339_v11 = vpop.f32.mrb[17].mxu0 }
 0x118   :  { %v1340_v12 = vadd.f32 %v1339_v11, %v1338_v9  ;;  %v1403_v13 = vpop.f32.mrb[17].mxu1  ;;  %v1341_v14 = vpop.f32.mrb[18].mxu0  ;;  %v41_v9 = vld [vmem:[#allocation2 + $0x10] sm:$0xff] }
 0x119   :  { %v1404_v15 = vadd.f32 %v1403_v13, %v1402_v10  ;;  %v1405_v16 = vpop.f32.mrb[18].mxu1  ;;  %v1342_v17 = vpop.f32.mrb[19].mxu0 }
 0x11a   :  { %v1343_v18 = vadd.f32 %v1342_v17, %v1341_v14  ;;  %v1406_v19 = vpop.f32.mrb[19].mxu1  ;;  %v39_v14 = vld [vmem:[#allocation2] sm:$0xff]  ;;  %v1901_v17 = vld [vmem:[%s2102_s3 + $0x8] sm:$0xff]  }
 0x11b   :  { %v1407_v20 = vadd.f32 %v1406_v19, %v1405_v16  ;;  %v1885_v21 = vadd.f32 %v1404_v15, %v1340_v12  ;;  %v49_v12 = vld [vmem:[#allocation2 + $0x50] sm:$0xff]  ;;  %v47_v16 = vld [vmem:[#allocation2 + $0x40] sm:$0xff] }
 0x11d   :  { %v1887_v22 = vadd.f32 %v1407_v20, %v1343_v18 }
 0x11e   :  { %v1344_v23 = vpop.f32.mrb[20].mxu0 }
 0x11f   :  { %v1408_v24 = vpop.f32.mrb[20].mxu1  ;;  %v1345_v25 = vpop.f32.mrb[21].mxu0 }
 0x120   :  { %v1346_v26 = vadd.f32 %v1345_v25, %v1344_v23  ;;  %v1409_v27 = vpop.f32.mrb[21].mxu1  ;;  %v1347_v28 = vpop.f32.mrb[22].mxu0  ;;  %v42_v23 = vld [vmem:[#allocation2 + $0x18] sm:$0xff] }
 0x121   :  { %v1410_v31 = vadd.f32 %v1409_v27, %v1408_v24  ;;  %v1411_v32 = vpop.f32.mrb[22].mxu1  ;;  %v1348_v33 = vpop.f32.mrb[23].mxu0  ;;  %v50_v25 = vld [vmem:[#allocation2 + $0x58] sm:$0xff]  ;;  %v1912_v27 = vld [vmem:[%s2102_s3] sm:$0xff]  }
 0x122   :  { %v1349_v34 = vadd.f32 %v1348_v33, %v1347_v28  ;;  %v1412_v35 = vpop.f32.mrb[23].mxu1 }
 0x123   :  { %v1413_v36 = vadd.f32 %v1412_v35, %v1411_v32  ;;  %v803_v37 = vadd.f32 %v1410_v31, %v1346_v26  ;;  %v40_v32 = vld [vmem:[#allocation2 + $0x8] sm:$0xff] }
 0x125   :  { %v806_v38 = vadd.f32 %v1413_v36, %v1349_v34  ;;  %v1919_v36 = vld [vmem:[%s2102_s3 + $0x20] sm:$0xff]  }
 0x126   :  { %v1350_v39 = vpop.f32.mrb[24].mxu0 }
 0x127   :  { %v1414_v40 = vpop.f32.mrb[24].mxu1  ;;  %v1351_v41 = vpop.f32.mrb[25].mxu0 }
 0x128   :  { %v1352_v42 = vadd.f32 %v1351_v41, %v1350_v39  ;;  %v1415_v45 = vpop.f32.mrb[25].mxu1  ;;  %v1353_v46 = vpop.f32.mrb[26].mxu0 }
 0x129   :  { %v1416_v47 = vadd.f32 %v1415_v45, %v1414_v40  ;;  %v1417_v48 = vpop.f32.mrb[26].mxu1  ;;  %v1354_v49 = vpop.f32.mrb[27].mxu0  ;;  %v48_v40 = vld [vmem:[#allocation2 + $0x48] sm:$0xff] }
 0x12a   :  { %v1355_v50 = vadd.f32 %v1354_v49, %v1353_v46  ;;  %v1418_v51 = vpop.f32.mrb[27].mxu1  ;;  %v1928_v46 = vld [vmem:[%s2102_s3 + $0x18] sm:$0xff]   ;;  %v1942_v49 = vld [vmem:[%s2102_s3 + $0x10] sm:$0xff]  }
 0x12b   :  { %v1419_v52 = vadd.f32 %v1418_v51, %v1417_v48  ;;  %v1889_v53 = vadd.f32 %v1416_v47, %v1352_v42  ;;  %v1261_v47 = vunpack.c.l.bf16 %v1912_v27  ;;  %v1277_v51 = vunpack.c.l.bf16 %v1919_v36 }
 0x12d   :  { %v1891_v54 = vadd.f32 %v1419_v52, %v1355_v50  ;;  %v1947_v50 = vld [vmem:[%s2102_s3 + $0x30] sm:$0xff]   ;;  %v1266_v52 = vunpack.c.h.bf16 %v1901_v17 }
 0x12e   :  { %v1356_v55 = vpop.f32.mrb[28].mxu0 }
 0x12f   :  { %v1420_v56 = vpop.f32.mrb[28].mxu1  ;;  %v1357_v59 = vpop.f32.mrb[29].mxu0 }
 0x130   :  { %v1358_v60 = vadd.f32 %v1357_v59, %v1356_v55  ;;  %v1421_v61 = vpop.f32.mrb[29].mxu1  ;;  %v1359_v62 = vpop.f32.mrb[30].mxu0  ;;  %v1262_v59 = vunpack.c.h.bf16 %v1912_v27 }
 0x131   :  { %v1422_v63 = vadd.f32 %v1421_v61, %v1420_v56  ;;  %v1423_v0 = vpop.f32.mrb[30].mxu1  ;;  %v1360_v1 = vpop.f32.mrb[31].mxu0  ;;  %v45_v61 = vld [vmem:[#allocation2 + $0x30] sm:$0xff] }
 0x132   :  { %v1361_v2 = vadd.f32 %v1360_v1, %v1359_v62  ;;  %v1424_v3 = vpop.f32.mrb[31].mxu1 }
 0x133   :  { %v1425_v4 = vadd.f32 %v1424_v3, %v1423_v0  ;;  %v1893_v5 = vadd.f32 %v1422_v63, %v1358_v60  ;;  %v1278_v60 = vunpack.c.h.bf16 %v1919_v36  ;;  %v1273_v63 = vunpack.c.l.bf16 %v1928_v46 }
 0x135   :  { %v1895_v6 = vadd.f32 %v1425_v4, %v1361_v2  ;;  %v53_v2 = vld [vmem:[#allocation2 + $0x70] sm:$0xff]  ;;  %v43_v4 = vld [vmem:[#allocation2 + $0x20] sm:$0xff] }
 0x136   :  { %v1460_v10 = vpop.f32.mrb[32].mxu0 }
 0x137   :  { %v868_v11 = vadd.f32 %v1460_v10, %v1873_v43  ;;  %v1468_v13 = vpop.f32.mrb[32].mxu1  ;;  %v859_v15 = vpop.f32.mrb[33].mxu0  ;;  %v1907_v43 = vld [vmem:[%s2102_s3 + $0x28] sm:$0xff]   ;;  %v1269_v10 = vunpack.c.l.bf16 %v1942_v49 }
 0x138   :  { %v900_v18 = vadd.f32 %v1468_v13, %v803_v37  ;;  %v860_v19 = vadd.f32 %v859_v15, %v1869_v29  ;;  %v891_v20 = vpop.f32.mrb[33].mxu1  ;;  %v1461_v24 = vpop.f32.mrb[34].mxu0  ;;  %v1282_v55 = vunpack.c.h.bf16 %v1907_v43  ;;  %v1968_v13 = vld [vmem:[%s2103_s2] ss:$0 sm:$0xff] }
 0x139   :  { %v924_v26 = vadd.f32 %v868_v11, %v41_v9  ;;  %v892_v28 = vadd.f32 %v891_v20, %v1885_v21  ;;  %v871_v31 = vadd.f32 %v1461_v24, %v1875_v44  ;;  %v1469_v29 = vpop.f32.mrb[34].mxu1  ;;  %v862_v33 = vpop.f32.mrb[35].mxu0  ;;  %v1265_v21 = vunpack.c.l.bf16 %v1901_v17  ;;  %v51_v15 = vld [vmem:[#allocation2 + $0x60] sm:$0xff] }
 0x13a   :  { %v932_v34 = vadd.f32 %v900_v18, %v49_v12  ;;  %v922_v35 = vadd.f32 %v860_v19, %v39_v14  ;;  %v903_v37 = vadd.f32 %v1469_v29, %v806_v38  ;;  %v863_v39 = vadd.f32 %v862_v33, %v1871_v30  ;;  %v894_v41 = vpop.f32.mrb[35].mxu1  ;;  %v1933_v38 = vld [vmem:[%s2102_s3 + $0x38] sm:$0xff]   ;;  %v44_v29 = vld [vmem:[#allocation2 + $0x28] sm:$0xff] }
 0x13b   :  { %941 = vst.msk [vmem:[#allocation2 + $0x10] sm:$0xff] %vm22_vm0, %v924_v26  ;;  %v930_v44 = vadd.f32 %v892_v28, %v47_v16  ;;  %v925_v42 = vadd.f32 %v871_v31, %v42_v23  ;;  %v895_v45 = vadd.f32 %v894_v41, %v1887_v22  ;;  %v1281_v30 = vunpack.c.l.bf16 %v1907_v43  ;;  %v46_v18 = vld [vmem:[#allocation2 + $0x38] sm:$0xff] }
 0x13c   :  { %949 = vst.msk [vmem:[#allocation2 + $0x50] sm:$0xff] %vm22_vm0, %v932_v34  ;;  %939 = vst.msk [vmem:[#allocation2] sm:$0xff] %vm22_vm0, %v922_v35  ;;  %v933_v48 = vadd.f32 %v903_v37, %v50_v25  ;;  %v923_v22 = vadd.f32 %v863_v39, %v40_v32  ;;  %v1289_v0 = vunpack.c.l.bf16 %v1933_v38  ;;  %v1285_v11 = vunpack.c.l.bf16 %v1947_v50  ;;  %v54_v28 = vld [vmem:[#allocation2 + $0x78] sm:$0xff]  ;;  %v52_v39 = vld [vmem:[#allocation2 + $0x68] sm:$0xff] }
 0x13d   :  { %947 = vst.msk [vmem:[#allocation2 + $0x40] sm:$0xff] %vm22_vm0, %v930_v44  ;;  %942 = vst.msk [vmem:[#allocation2 + $0x18] sm:$0xff] %vm22_vm0, %v925_v42  ;;  %v931_v56 = vadd.f32 %v895_v45, %v48_v40  ;;  %v1274_v12 = vunpack.c.h.bf16 %v1928_v46  ;;  %v1290_v20 = vunpack.c.h.bf16 %v1933_v38  ;;  %v1270_v23 = vunpack.c.h.bf16 %v1942_v49 }
 0x13e   :  { %950 = vst.msk [vmem:[#allocation2 + $0x58] sm:$0xff] %vm22_vm0, %v933_v48  ;;  %940 = vst.msk [vmem:[#allocation2 + $0x8] sm:$0xff] %vm22_vm0, %v923_v22  ;;  %v1464_v62 = vpop.f32.mrb[36].mxu0 }
 0x13f   :  { %948 = vst.msk [vmem:[#allocation2 + $0x48] sm:$0xff] %vm22_vm0, %v931_v56  ;;  %v884_v1 = vadd.f32 %v1464_v62, %v1881_v7  ;;  %v1472_v3 = vpop.f32.mrb[36].mxu1  ;;  %v875_v9 = vpop.f32.mrb[37].mxu0 }
 0x140   :  { %v916_v14 = vadd.f32 %v1472_v3, %v1893_v5  ;;  %v876_v7 = vadd.f32 %v875_v9, %v1877_v57  ;;  %v907_v16 = vpop.f32.mrb[37].mxu1  ;;  %v1465_v19 = vpop.f32.mrb[38].mxu0  ;;  %v1286_v5 = vunpack.c.h.bf16 %v1947_v50 }
 0x141   :  { %v928_v24 = vadd.f32 %v884_v1, %v45_v61  ;;  %v908_v25 = vadd.f32 %v907_v16, %v1889_v53  ;;  %v887_v26 = vadd.f32 %v1465_v19, %v1883_v8  ;;  %v1473_v31 = vpop.f32.mrb[38].mxu1  ;;  %v878_v32 = vpop.f32.mrb[39].mxu0 }
 0x142   :  { %v960_v57 = vld [vmem:[#allocation2 + $0x10] sm:$0xff]  ;;  %v936_v33 = vadd.f32 %v916_v14, %v53_v2  ;;  %v926_v34 = vadd.f32 %v876_v7, %v43_v4  ;;  %v919_v35 = vadd.f32 %v1473_v31, %v1895_v6  ;;  %v879_v37 = vadd.f32 %v878_v32, %v1879_v58  ;;  %v910_v40 = vpop.f32.mrb[39].mxu1 }
 0x143   :  { %v983_v41 = vadd.f32 %v1968_v13, %v960_v57  ;;  %v968_v53 = vld [vmem:[#allocation2 + $0x50] sm:$0xff]  ;;  %v958_v44 = vld [vmem:[#allocation2] sm:$0xff]  ;;  %945 = vst.msk [vmem:[#allocation2 + $0x30] sm:$0xff] %vm22_vm0, %v928_v24  ;;  %v934_v8 = vadd.f32 %v908_v25, %v51_v15  ;;  %v929_v42 = vadd.f32 %v887_v26, %v46_v18  ;;  %v911_v45 = vadd.f32 %v910_v40, %v1891_v54 }
 0x144   :  { %v991_v48 = vadd.f32 %v1968_v13, %v968_v53  ;;  %v981_v22 = vadd.f32 %v1968_v13, %v958_v44  ;;  %v966_v56 = vld [vmem:[#allocation2 + $0x40] sm:$0xff]  ;;  %v961_v6 = vld [vmem:[#allocation2 + $0x18] sm:$0xff]  ;;  %953 = vst.msk [vmem:[#allocation2 + $0x70] sm:$0xff] %vm22_vm0, %v936_v33  ;;  %943 = vst.msk [vmem:[#allocation2 + $0x20] sm:$0xff] %vm22_vm0, %v926_v34  ;;  %v937_v58 = vadd.f32 %v919_v35, %v54_v28 }
 0x145   :  { %v927_v61 = vadd.f32 %v879_v37, %v44_v29  ;;  %v1031_v62 = vadd.f32 %v1265_v21, %v983_v41  ;;  %v989_v1 = vadd.f32 %v1968_v13, %v966_v56  ;;  %v984_v2 = vadd.f32 %v1968_v13, %v961_v6  ;;  %v969_v54 = vld [vmem:[#allocation2 + $0x58] sm:$0xff]  ;;  %v959_v3 = vld [vmem:[#allocation2 + $0x8] sm:$0xff]  ;;  %951 = vst.msk [vmem:[#allocation2 + $0x60] sm:$0xff] %vm22_vm0, %v934_v8 }
 0x146   :  { %946 = vst.msk [vmem:[#allocation2 + $0x38] sm:$0xff] %vm22_vm0, %v929_v42  ;;  %v935_v4 = vadd.f32 %v911_v45, %v52_v39  ;;  %v1039_v9 = vadd.f32 %v1281_v30, %v991_v48  ;;  %v1029_v14 = vadd.f32 %v1261_v47, %v981_v22  ;;  %v992_v7 = vadd.f32 %v1968_v13, %v969_v54  ;;  %v967_v15 = vld [vmem:[#allocation2 + $0x48] sm:$0xff] }
 0x147   :  { %v982_v21 = vadd.f32 %v1968_v13, %v959_v3  ;;  %954 = vst.msk [vmem:[#allocation2 + $0x78] sm:$0xff] %vm22_vm0, %v937_v58  ;;  %944 = vst.msk [vmem:[#allocation2 + $0x28] sm:$0xff] %vm22_vm0, %v927_v61  ;;  %v1047_v16 = vmax.f32 %v1031_v62, 0.0  ;;  %v1037_v18 = vadd.f32 %v1277_v51, %v989_v1  ;;  %v1032_v19 = vadd.f32 %v1266_v52, %v984_v2 }
 0x148   :  { %v990_v30 = vadd.f32 %v1968_v13, %v967_v15  ;;  %952 = vst.msk [vmem:[#allocation2 + $0x68] sm:$0xff] %vm22_vm0, %v935_v4  ;;  %v1055_v47 = vmax.f32 %v1039_v9, 0.0  ;;  %v1045_v24 = vmax.f32 %v1029_v14, 0.0  ;;  %v1040_v25 = vadd.f32 %v1282_v55, %v992_v7 }
 0x149   :  { %v1030_v26 = vadd.f32 %v1262_v59, %v982_v21  ;;  %v1245_v28 = vpack.c.bf16 %v1047_v16, %v1047_v16  ;;  %v1053_v31 = vmax.f32 %v1037_v18, 0.0  ;;  %v1048_v29 = vmax.f32 %v1032_v19, 0.0 }
 0x14a   :  { %v1038_v51 = vadd.f32 %v1278_v60, %v990_v30  ;;  %v1253_v17 = vpack.c.bf16 %v1055_v47, %v1055_v47  ;;  %v1243_v52 = vpack.c.bf16 %v1045_v24, %v1045_v24  ;;  %v1056_v32 = vmax.f32 %v1040_v25, 0.0  ;;  %v964_v33 = vld [vmem:[#allocation2 + $0x30] sm:$0xff] }
 0x14b   :  { %v1046_v57 = vmax.f32 %v1030_v26, 0.0  ;;  %1128 = vst.msk [vmem:[%s2104_s4 + $0x8] sm:$0xf] %vm1125_vm1, %v1245_v28  ;;  %v1251_v43 = vpack.c.bf16 %v1053_v31, %v1053_v31  ;;  %v1246_v55 = vpack.c.bf16 %v1048_v29, %v1048_v29  ;;  %v987_v59 = vadd.f32 %v1968_v13, %v964_v33  ;;  %v972_v34 = vld [vmem:[#allocation2 + $0x70] sm:$0xff]  ;;  %v962_v35 = vld [vmem:[#allocation2 + $0x20] sm:$0xff] }
 0x14c   :  { %v1054_v27 = vmax.f32 %v1038_v51, 0.0  ;;  %1136 = vst.msk [vmem:[%s2104_s4 + $0x28] sm:$0xf] %vm1125_vm1, %v1253_v17  ;;  %1126 = vst.msk [vmem:[%s2104_s4] sm:$0xf] %vm1125_vm1, %v1243_v52  ;;  %v1254_v36 = vpack.c.bf16 %v1056_v32, %v1056_v32  ;;  %v995_v37 = vadd.f32 %v1968_v13, %v972_v34  ;;  %v985_v39 = vadd.f32 %v1968_v13, %v962_v35  ;;  %v970_v40 = vld [vmem:[#allocation2 + $0x60] sm:$0xff] }
 0x14d   :  { %v1244_v60 = vpack.c.bf16 %v1046_v57, %v1046_v57  ;;  %v965_v41 = vld [vmem:[#allocation2 + $0x38] sm:$0xff]  ;;  %1134 = vst.msk [vmem:[%s2104_s4 + $0x20] sm:$0xf] %vm1125_vm1, %v1251_v43  ;;  %1129 = vst.msk [vmem:[%s2104_s4 + $0xc] sm:$0xf] %vm1125_vm1, %v1246_v55  ;;  %v1035_v44 = vadd.f32 %v1273_v63, %v987_v59  ;;  %v993_v8 = vadd.f32 %v1968_v13, %v970_v40 }
 0x14e   :  { %v1252_v53 = vpack.c.bf16 %v1054_v27, %v1054_v27  ;;  %v988_v42 = vadd.f32 %v1968_v13, %v965_v41  ;;  %v973_v45 = vld [vmem:[#allocation2 + $0x78] sm:$0xff]  ;;  %v963_v48 = vld [vmem:[#allocation2 + $0x28] sm:$0xff]  ;;  %1137 = vst.msk [vmem:[%s2104_s4 + $0x2c] sm:$0xf] %vm1125_vm1, %v1254_v36  ;;  %v1043_v22 = vadd.f32 %v1289_v0, %v995_v37  ;;  %v1033_v63 = vadd.f32 %v1269_v10, %v985_v39 }
 0x14f   :  { %1127 = vst.msk [vmem:[%s2104_s4 + $0x4] sm:$0xf] %vm1125_vm1, %v1244_v60  ;;  %v996_v56 = vadd.f32 %v1968_v13, %v973_v45  ;;  %v986_v6 = vadd.f32 %v1968_v13, %v963_v48  ;;  %v971_v58 = vld [vmem:[#allocation2 + $0x68] sm:$0xff]  ;;  %v1051_v61 = vmax.f32 %v1035_v44, 0.0  ;;  %v1041_v62 = vadd.f32 %v1285_v11, %v993_v8 }
 0x150   :  { %1135 = vst.msk [vmem:[%s2104_s4 + $0x24] sm:$0xf] %vm1125_vm1, %v1252_v53  ;;  %v1036_v0 = vadd.f32 %v1274_v12, %v988_v42  ;;  %v994_v1 = vadd.f32 %v1968_v13, %v971_v58  ;;  %v1059_v10 = vmax.f32 %v1043_v22, 0.0  ;;  %v1049_v2 = vmax.f32 %v1033_v63, 0.0 }
 0x151   :  { %v1044_v54 = vadd.f32 %v1290_v20, %v996_v56  ;;  %v1034_v3 = vadd.f32 %v1270_v23, %v986_v6  ;;  %v1249_v4 = vpack.c.bf16 %v1051_v61, %v1051_v61  ;;  %v1057_v9 = vmax.f32 %v1041_v62, 0.0 }
 0x152   :  { %v1052_v14 = vmax.f32 %v1036_v0, 0.0  ;;  %v1042_v7 = vadd.f32 %v1286_v5, %v994_v1  ;;  %v1257_v11 = vpack.c.bf16 %v1059_v10, %v1059_v10  ;;  %v1247_v21 = vpack.c.bf16 %v1049_v2, %v1049_v2 }
 0x153   :  { %v1060_v46 = vmax.f32 %v1044_v54, 0.0  ;;  %v1050_v12 = vmax.f32 %v1034_v3, 0.0  ;;  %1132 = vst.msk [vmem:[%s2104_s4 + $0x18] sm:$0xf] %vm1125_vm1, %v1249_v4  ;;  %v1255_v38 = vpack.c.bf16 %v1057_v9, %v1057_v9 }
 0x154   :  { %v1250_v13 = vpack.c.bf16 %v1052_v14, %v1052_v14  ;;  %v1058_v20 = vmax.f32 %v1042_v7, 0.0  ;;  %1140 = vst.msk [vmem:[%s2104_s4 + $0x38] sm:$0xf] %vm1125_vm1, %v1257_v11  ;;  %1130 = vst.msk [vmem:[%s2104_s4 + $0x10] sm:$0xf] %vm1125_vm1, %v1247_v21 }
 0x155   :  { %v1258_v49 = vpack.c.bf16 %v1060_v46, %v1060_v46  ;;  %v1248_v50 = vpack.c.bf16 %v1050_v12, %v1050_v12  ;;  %1138 = vst.msk [vmem:[%s2104_s4 + $0x30] sm:$0xf] %vm1125_vm1, %v1255_v38 }
 0x156   :  { %1133 = vst.msk [vmem:[%s2104_s4 + $0x1c] sm:$0xf] %vm1125_vm1, %v1250_v13  ;;  %v1256_v23 = vpack.c.bf16 %v1058_v20, %v1058_v20 }
 0x157   :  { %1141 = vst.msk [vmem:[%s2104_s4 + $0x3c] sm:$0xf] %vm1125_vm1, %v1258_v49  ;;  %1131 = vst.msk [vmem:[%s2104_s4 + $0x14] sm:$0xf] %vm1125_vm1, %v1248_v50 }
 0x158   :  { %1139 = vst.msk [vmem:[%s2104_s4 + $0x34] sm:$0xf] %vm1125_vm1, %v1256_v23 }

// kernel: resnet34_forward.37
= control target key start
LH: loop header
LB: loop body
LE: loop exit
PB: predicated region body
PF: predicated region fallthrough
CT: control target
= control target key end

     0   :  { %vm19_vm0 = vcmask 523264   ;;  %v735_v32 = vmov 0.0   ;;  %vm528_vm1 = vcmask 519168   ;;  %s969_s1 = inlined_call_operand.vmem [shape: bf16[256,64], index: 1, kind: input, shape index: {}]   ;;  %s970_s0 = inlined_call_operand.vmem [shape: bf16[128,256], index: 0, kind: input, shape index: {}]   ;;  %s971_s2 = inlined_call_operand.vmem [shape: f32[1,64], index: 2, kind: input, shape index: {}]   ;;  %s972_s3 = inlined_call_operand.vmem [shape: bf16[128,64], index: 3, kind: output, shape index: {}]  }
   0x1   :  { %v695_v0 = vld [vmem:[%s969_s1 + $0x40] sm:$0xff]   ;;  %v697_v2 = vld [vmem:[%s969_s1 + $0x48] sm:$0xff]   ;;  %v699_v4 = vld [vmem:[%s969_s1 + $0x50] sm:$0xff]   ;;  %20 = vst.msk [vmem:[#allocation2] sm:$0xff] %vm19_vm0, %v735_v32 }
   0x2   :  { %v696_v1 = vld [vmem:[%s969_s1] sm:$0xff]   ;;  %614 = vmatprep.subr.bf16.mxu0 %v695_v0  ;;  %678 = vmatprep.subr.bf16.mxu1 %v695_v0  ;;  %v698_v3 = vld [vmem:[%s969_s1 + $0x8] sm:$0xff]   ;;  %v700_v5 = vld [vmem:[%s969_s1 + $0x10] sm:$0xff]   ;;  %21 = vst.msk [vmem:[#allocation2 + $0x8] sm:$0xff] %vm19_vm0, %v735_v32 }
   0x3   :  { %615 = vmatpush3.bf16.msra.mxu0 %v696_v1  ;;  %686 = vmatpush3.bf16.msra.mxu1 %v696_v1  ;;  %v701_v6 = vld [vmem:[%s969_s1 + $0x58] sm:$0xff]   ;;  %v703_v8 = vld [vmem:[%s969_s1 + $0x60] sm:$0xff]   ;;  %v705_v10 = vld [vmem:[%s969_s1 + $0x68] sm:$0xff]   ;;  %22 = vst.msk [vmem:[#allocation2 + $0x10] sm:$0xff] %vm19_vm0, %v735_v32 }
   0x4   :  { %616 = vmatprep.subr.bf16.mxu0 %v697_v2  ;;  %679 = vmatprep.subr.bf16.mxu1 %v697_v2  ;;  %v702_v7 = vld [vmem:[%s969_s1 + $0x18] sm:$0xff]   ;;  %v704_v9 = vld [vmem:[%s969_s1 + $0x20] sm:$0xff]   ;;  %v706_v13 = vld [vmem:[%s969_s1 + $0x28] sm:$0xff]   ;;  %23 = vst.msk [vmem:[#allocation2 + $0x18] sm:$0xff] %vm19_vm0, %v735_v32 }
   0x5   :  { %v713_v11 = vld [vmem:[%s970_s0 + $0x4] ss:$8 sps:$4 sm:$0xff]   ;;  %v707_v14 = vld [vmem:[%s969_s1 + $0x70] sm:$0xff]   ;;  %v709_v16 = vld [vmem:[%s969_s1 + $0x78] sm:$0xff]   ;;  %24 = vst.msk [vmem:[#allocation2 + $0x20] sm:$0xff] %vm19_vm0, %v735_v32 }
   0x6   :  { %v716_v12 = vld [vmem:[%s970_s0 + $0x44] ss:$8 sps:$4 sm:$0xff]   ;;  %308 = vmatprep.mubr.bf16.mxu0 %v713_v11  ;;  %v708_v15 = vld [vmem:[%s969_s1 + $0x30] sm:$0xff]   ;;  %v710_v17 = vld [vmem:[%s969_s1 + $0x38] sm:$0xff]   ;;  %25 = vst.msk [vmem:[#allocation2 + $0x28] sm:$0xff] %vm19_vm0, %v735_v32 }
   0x7   :  { %617 = vmatpush3.bf16.msra.mxu0 %v698_v3  ;;  %687 = vmatpush3.bf16.msra.mxu1 %v698_v3  ;;  %v711_v18 = vld [vmem:[%s970_s0] ss:$8 sps:$4 sm:$0xff]   ;;  %v717_v20 = vld [vmem:[%s970_s0 + $0x14] ss:$8 sps:$4 sm:$0xff]   ;;  %v721_v22 = vld [vmem:[%s970_s0 + $0x10] ss:$8 sps:$4 sm:$0xff]  }
   0x8   :  { %618 = vmatprep.subr.bf16.mxu0 %v699_v4  ;;  %680 = vmatprep.subr.bf16.mxu1 %v699_v4  ;;  %v714_v19 = vld [vmem:[%s970_s0 + $0x40] ss:$8 sps:$4 sm:$0xff]   ;;  %v719_v21 = vld [vmem:[%s970_s0 + $0x54] ss:$8 sps:$4 sm:$0xff]   ;;  %v722_v23 = vld [vmem:[%s970_s0 + $0x50] ss:$8 sps:$4 sm:$0xff]  }
   0x9   :  { %340 = vmatprep.mubr.bf16.mxu1 %v716_v12  ;;  %v723_v24 = vld [vmem:[%s970_s0 + $0x24] ss:$8 sps:$4 sm:$0xff]   ;;  %v727_v26 = vld [vmem:[%s970_s0 + $0x20] ss:$8 sps:$4 sm:$0xff]   ;;  %v729_v28 = vld [vmem:[%s970_s0 + $0x34] ss:$8 sps:$4 sm:$0xff]  }
   0xa   :  { %v725_v25 = vld [vmem:[%s970_s0 + $0x64] ss:$8 sps:$4 sm:$0xff]   ;;  %v728_v27 = vld [vmem:[%s970_s0 + $0x60] ss:$8 sps:$4 sm:$0xff]   ;;  %v731_v29 = vld [vmem:[%s970_s0 + $0x74] ss:$8 sps:$4 sm:$0xff]  }
   0xb   :  { %619 = vmatpush3.bf16.msra.mxu0 %v700_v5  ;;  %688 = vmatpush3.bf16.msra.mxu1 %v700_v5  ;;  %v733_v30 = vld [vmem:[%s970_s0 + $0x30] ss:$8 sps:$4 sm:$0xff]   ;;  %26 = vst.msk [vmem:[#allocation2 + $0x30] sm:$0xff] %vm19_vm0, %v735_v32  ;;  %27 = vst.msk [vmem:[#allocation2 + $0x38] sm:$0xff] %vm19_vm0, %v735_v32  ;;  %v36_v35 = vld [vmem:[#allocation2] sm:$0xff] }
   0xc   :  { %620 = vmatprep.subr.bf16.mxu0 %v701_v6  ;;  %681 = vmatprep.subr.bf16.mxu1 %v701_v6  ;;  %v734_v31 = vld [vmem:[%s970_s0 + $0x70] ss:$8 sps:$4 sm:$0xff]   ;;  %28 = vst.msk [vmem:[#allocation2 + $0x40] sm:$0xff] %vm19_vm0, %v735_v32  ;;  %29 = vst.msk [vmem:[#allocation2 + $0x48] sm:$0xff] %vm19_vm0, %v735_v32  ;;  %v37_v43 = vld [vmem:[#allocation2 + $0x8] sm:$0xff] }
   0xd   :  { %30 = vst.msk [vmem:[#allocation2 + $0x50] sm:$0xff] %vm19_vm0, %v735_v32  ;;  %31 = vst.msk [vmem:[#allocation2 + $0x58] sm:$0xff] %vm19_vm0, %v735_v32  ;;  %v38_v55 = vld [vmem:[#allocation2 + $0x10] sm:$0xff]  ;;  %v875_v63 = vld [vmem:[%s971_s2] ss:$0 sm:$0xff] }
   0xe   :  { %32 = vst.msk [vmem:[#allocation2 + $0x60] sm:$0xff] %vm19_vm0, %v735_v32  ;;  %33 = vst.msk [vmem:[#allocation2 + $0x68] sm:$0xff] %vm19_vm0, %v735_v32  ;;  %v39_v0 = vld [vmem:[#allocation2 + $0x18] sm:$0xff] }
   0xf   :  { %621 = vmatpush3.bf16.msra.mxu0 %v702_v7  ;;  %689 = vmatpush3.bf16.msra.mxu1 %v702_v7  ;;  %34 = vst.msk [vmem:[#allocation2 + $0x70] sm:$0xff] %vm19_vm0, %v735_v32  ;;  %35 = vst.msk [vmem:[#allocation2 + $0x78] sm:$0xff] %vm19_vm0, %v735_v32 }
  0x10   :  { %622 = vmatprep.subr.bf16.mxu0 %v703_v8  ;;  %682 = vmatprep.subr.bf16.mxu1 %v703_v8 }
  0x13   :  { %623 = vmatpush3.bf16.msra.mxu0 %v704_v9  ;;  %690 = vmatpush3.bf16.msra.mxu1 %v704_v9  ;;  %v44_v37 = vld [vmem:[#allocation2 + $0x40] sm:$0xff]  ;;  %v45_v45 = vld [vmem:[#allocation2 + $0x48] sm:$0xff] }
  0x14   :  { %624 = vmatprep.subr.bf16.mxu0 %v705_v10  ;;  %683 = vmatprep.subr.bf16.mxu1 %v705_v10  ;;  %v46_v57 = vld [vmem:[#allocation2 + $0x50] sm:$0xff]  ;;  %v47_v2 = vld [vmem:[#allocation2 + $0x58] sm:$0xff] }
  0x17   :  { %625 = vmatpush3.bf16.msra.mxu0 %v706_v13  ;;  %691 = vmatpush3.bf16.msra.mxu1 %v706_v13 }
  0x18   :  { %626 = vmatprep.subr.bf16.mxu0 %v707_v14  ;;  %684 = vmatprep.subr.bf16.mxu1 %v707_v14 }
  0x1b   :  { %627 = vmatpush3.bf16.msra.mxu0 %v708_v15  ;;  %692 = vmatpush3.bf16.msra.mxu1 %v708_v15 }
  0x1c   :  { %628 = vmatprep.subr.bf16.mxu0 %v709_v16  ;;  %685 = vmatprep.subr.bf16.mxu1 %v709_v16 }
  0x1f   :  { %629 = vmatpush3.bf16.msra.mxu0 %v710_v17  ;;  %693 = vmatpush3.bf16.msra.mxu1 %v710_v17 }
  0x22   :  { %309 = vmatmul.mubr.bf16.vlgmr.msra.gmra.mrb[0].mxu0 %v711_v18  ;;  %341 = vmatmul.mubr.bf16.vlgmr.msra.gmra.mrb[0].mxu1 %v714_v19 }
  0x23   :  { %316 = vmatprep.mubr.bf16.mxu0 %v717_v20  ;;  %348 = vmatprep.mubr.bf16.mxu1 %v719_v21 }
  0x2a   :  { %317 = vmatmul.mubr.bf16.gmra.mrb[4].mxu0 %v721_v22  ;;  %349 = vmatmul.mubr.bf16.gmra.mrb[4].mxu1 %v722_v23 }
  0x2b   :  { %324 = vmatprep.mubr.bf16.mxu0 %v723_v24  ;;  %356 = vmatprep.mubr.bf16.mxu1 %v725_v25 }
  0x32   :  { %325 = vmatmul.mubr.bf16.gmra.mrb[8].mxu0 %v727_v26  ;;  %357 = vmatmul.mubr.bf16.gmra.mrb[8].mxu1 %v728_v27 }
  0x33   :  { %332 = vmatprep.mubr.bf16.mxu0 %v729_v28  ;;  %364 = vmatprep.mubr.bf16.mxu1 %v731_v29  ;;  %v40_v28 = vld [vmem:[#allocation2 + $0x20] sm:$0xff] }
  0x34   :  { %v48_v29 = vld [vmem:[#allocation2 + $0x60] sm:$0xff] }
  0x3a   :  { %333 = vmatmul.mubr.bf16.gmra.mrb[12].mxu0 %v733_v30  ;;  %365 = vmatmul.mubr.bf16.gmra.mrb[12].mxu1 %v734_v31 }
  0xf5   :  { %v630_v33 = vpop.f32.mrb[0].mxu0  ;;  %v654_v34 = vpop.f32.mrb[0].mxu1 }
  0xf6   :  { %v631_v36 = vpop.f32.mrb[1].mxu0  ;;  %v655_v38 = vpop.f32.mrb[1].mxu1 }
  0xf7   :  { %v632_v39 = vadd.f32 %v631_v36, %v630_v33  ;;  %v656_v40 = vadd.f32 %v655_v38, %v654_v34  ;;  %v633_v41 = vpop.f32.mrb[2].mxu0  ;;  %v657_v42 = vpop.f32.mrb[2].mxu1  ;;  %v41_v34 = vld [vmem:[#allocation2 + $0x28] sm:$0xff] }
  0xf8   :  { %v634_v44 = vpop.f32.mrb[3].mxu0  ;;  %v658_v46 = vpop.f32.mrb[3].mxu1  ;;  %v49_v36 = vld [vmem:[#allocation2 + $0x68] sm:$0xff] }
  0xf9   :  { %v373_v47 = vadd.f32 %v632_v39, %v36_v35  ;;  %v381_v48 = vadd.f32 %v656_v40, %v44_v37  ;;  %v635_v49 = vadd.f32 %v634_v44, %v633_v41  ;;  %v659_v50 = vadd.f32 %v658_v46, %v657_v42 }
  0xfb   :  { %390 = vst.msk [vmem:[#allocation2] sm:$0xff] %vm19_vm0, %v373_v47  ;;  %398 = vst.msk [vmem:[#allocation2 + $0x40] sm:$0xff] %vm19_vm0, %v381_v48  ;;  %v374_v51 = vadd.f32 %v635_v49, %v37_v43  ;;  %v382_v52 = vadd.f32 %v659_v50, %v45_v45 }
  0xfd   :  { %391 = vst.msk [vmem:[#allocation2 + $0x8] sm:$0xff] %vm19_vm0, %v374_v51  ;;  %399 = vst.msk [vmem:[#allocation2 + $0x48] sm:$0xff] %vm19_vm0, %v382_v52  ;;  %v636_v53 = vpop.f32.mrb[4].mxu0  ;;  %v660_v54 = vpop.f32.mrb[4].mxu1 }
  0xfe   :  { %v637_v56 = vpop.f32.mrb[5].mxu0  ;;  %v661_v58 = vpop.f32.mrb[5].mxu1 }
  0xff   :  { %v638_v59 = vadd.f32 %v637_v56, %v636_v53  ;;  %v662_v60 = vadd.f32 %v661_v58, %v660_v54  ;;  %v639_v61 = vpop.f32.mrb[6].mxu0  ;;  %v663_v62 = vpop.f32.mrb[6].mxu1 }
 0x100   :  { %v640_v1 = vpop.f32.mrb[7].mxu0  ;;  %v664_v3 = vpop.f32.mrb[7].mxu1 }
 0x101   :  { %v375_v4 = vadd.f32 %v638_v59, %v38_v55  ;;  %v383_v5 = vadd.f32 %v662_v60, %v46_v57  ;;  %v641_v6 = vadd.f32 %v640_v1, %v639_v61  ;;  %v665_v7 = vadd.f32 %v664_v3, %v663_v62  ;;  %v42_v1 = vld [vmem:[#allocation2 + $0x30] sm:$0xff] }
 0x102   :  { %v409_v8 = vld [vmem:[#allocation2] sm:$0xff] }
 0x103   :  { %v417_v9 = vld [vmem:[#allocation2 + $0x40] sm:$0xff]  ;;  %v432_v10 = vadd.f32 %v875_v63, %v409_v8  ;;  %392 = vst.msk [vmem:[#allocation2 + $0x10] sm:$0xff] %vm19_vm0, %v375_v4  ;;  %400 = vst.msk [vmem:[#allocation2 + $0x50] sm:$0xff] %vm19_vm0, %v383_v5  ;;  %v376_v12 = vadd.f32 %v641_v6, %v39_v0  ;;  %v384_v13 = vadd.f32 %v665_v7, %v47_v2  ;;  %v50_v2 = vld [vmem:[#allocation2 + $0x70] sm:$0xff] }
 0x104   :  { %v440_v11 = vadd.f32 %v875_v63, %v417_v9  ;;  %v410_v14 = vld [vmem:[#allocation2 + $0x8] sm:$0xff]  ;;  %v43_v7 = vld [vmem:[#allocation2 + $0x38] sm:$0xff] }
 0x105   :  { %v418_v15 = vld [vmem:[#allocation2 + $0x48] sm:$0xff]  ;;  %v448_v16 = vmax.f32 %v432_v10, 0.0  ;;  %v433_v18 = vadd.f32 %v875_v63, %v410_v14  ;;  %393 = vst.msk [vmem:[#allocation2 + $0x18] sm:$0xff] %vm19_vm0, %v376_v12  ;;  %401 = vst.msk [vmem:[#allocation2 + $0x58] sm:$0xff] %vm19_vm0, %v384_v13  ;;  %v642_v20 = vpop.f32.mrb[8].mxu0  ;;  %v666_v21 = vpop.f32.mrb[8].mxu1 }
 0x106   :  { %v456_v17 = vmax.f32 %v440_v11, 0.0  ;;  %v441_v19 = vadd.f32 %v875_v63, %v418_v15  ;;  %v643_v22 = vpop.f32.mrb[9].mxu0  ;;  %v667_v23 = vpop.f32.mrb[9].mxu1  ;;  %v51_v9 = vld [vmem:[#allocation2 + $0x78] sm:$0xff] }
 0x107   :  { %v598_v24 = vpack.c.bf16 %v448_v16, %v448_v16  ;;  %v449_v26 = vmax.f32 %v433_v18, 0.0  ;;  %v645_v30 = vpop.f32.mrb[10].mxu0  ;;  %v669_v31 = vpop.f32.mrb[10].mxu1  ;;  %v644_v32 = vadd.f32 %v643_v22, %v642_v20  ;;  %v668_v33 = vadd.f32 %v667_v23, %v666_v21 }
 0x108   :  { %v606_v25 = vpack.c.bf16 %v456_v17, %v456_v17  ;;  %v457_v27 = vmax.f32 %v441_v19, 0.0  ;;  %v646_v35 = vpop.f32.mrb[11].mxu0  ;;  %v670_v37 = vpop.f32.mrb[11].mxu1 }
 0x109   :  { %529 = vst.msk [vmem:[%s972_s3] sm:$0xf] %vm528_vm1, %v598_v24  ;;  %v599_v38 = vpack.c.bf16 %v449_v26, %v449_v26  ;;  %v647_v40 = vadd.f32 %v646_v35, %v645_v30  ;;  %v671_v41 = vadd.f32 %v670_v37, %v669_v31  ;;  %v377_v44 = vadd.f32 %v644_v32, %v40_v28 }
 0x10a   :  { %537 = vst.msk [vmem:[%s972_s3 + $0x20] sm:$0xf] %vm528_vm1, %v606_v25  ;;  %v607_v39 = vpack.c.bf16 %v457_v27, %v457_v27  ;;  %v411_v42 = vld [vmem:[#allocation2 + $0x10] sm:$0xff]  ;;  %v385_v45 = vadd.f32 %v668_v33, %v48_v29 }
 0x10b   :  { %v419_v43 = vld [vmem:[#allocation2 + $0x50] sm:$0xff]  ;;  %530 = vst.msk [vmem:[%s972_s3 + $0x4] sm:$0xf] %vm528_vm1, %v599_v38  ;;  %v434_v46 = vadd.f32 %v875_v63, %v411_v42  ;;  %v378_v48 = vadd.f32 %v647_v40, %v41_v34  ;;  %v386_v49 = vadd.f32 %v671_v41, %v49_v36 }
 0x10c   :  { %538 = vst.msk [vmem:[%s972_s3 + $0x24] sm:$0xf] %vm528_vm1, %v607_v39  ;;  %v442_v47 = vadd.f32 %v875_v63, %v419_v43  ;;  %v412_v50 = vld [vmem:[#allocation2 + $0x18] sm:$0xff] }
 0x10d   :  { %v420_v51 = vld [vmem:[#allocation2 + $0x58] sm:$0xff]  ;;  %394 = vst.msk [vmem:[#allocation2 + $0x20] sm:$0xff] %vm19_vm0, %v377_v44  ;;  %402 = vst.msk [vmem:[#allocation2 + $0x60] sm:$0xff] %vm19_vm0, %v385_v45  ;;  %v450_v52 = vmax.f32 %v434_v46, 0.0  ;;  %v435_v54 = vadd.f32 %v875_v63, %v412_v50  ;;  %v648_v56 = vpop.f32.mrb[12].mxu0  ;;  %v672_v57 = vpop.f32.mrb[12].mxu1 }
 0x10e   :  { %v458_v53 = vmax.f32 %v442_v47, 0.0  ;;  %v443_v55 = vadd.f32 %v875_v63, %v420_v51  ;;  %395 = vst.msk [vmem:[#allocation2 + $0x28] sm:$0xff] %vm19_vm0, %v378_v48  ;;  %403 = vst.msk [vmem:[#allocation2 + $0x68] sm:$0xff] %vm19_vm0, %v386_v49  ;;  %v649_v58 = vpop.f32.mrb[13].mxu0  ;;  %v673_v59 = vpop.f32.mrb[13].mxu1 }
 0x10f   :  { %v600_v60 = vpack.c.bf16 %v450_v52, %v450_v52  ;;  %v451_v62 = vmax.f32 %v435_v54, 0.0  ;;  %v651_v3 = vpop.f32.mrb[14].mxu0  ;;  %v675_v4 = vpop.f32.mrb[14].mxu1  ;;  %v650_v5 = vadd.f32 %v649_v58, %v648_v56  ;;  %v674_v6 = vadd.f32 %v673_v59, %v672_v57 }
 0x110   :  { %v608_v61 = vpack.c.bf16 %v458_v53, %v458_v53  ;;  %v459_v0 = vmax.f32 %v443_v55, 0.0  ;;  %v652_v8 = vpop.f32.mrb[15].mxu0  ;;  %v676_v10 = vpop.f32.mrb[15].mxu1 }
 0x111   :  { %531 = vst.msk [vmem:[%s972_s3 + $0x8] sm:$0xf] %vm528_vm1, %v600_v60  ;;  %v601_v11 = vpack.c.bf16 %v451_v62, %v451_v62  ;;  %v653_v13 = vadd.f32 %v652_v8, %v651_v3  ;;  %v677_v14 = vadd.f32 %v676_v10, %v675_v4  ;;  %v379_v15 = vadd.f32 %v650_v5, %v42_v1 }
 0x112   :  { %539 = vst.msk [vmem:[%s972_s3 + $0x28] sm:$0xf] %vm528_vm1, %v608_v61  ;;  %v609_v12 = vpack.c.bf16 %v459_v0, %v459_v0  ;;  %v387_v16 = vadd.f32 %v674_v6, %v50_v2 }
 0x113   :  { %532 = vst.msk [vmem:[%s972_s3 + $0xc] sm:$0xf] %vm528_vm1, %v601_v11  ;;  %v380_v19 = vadd.f32 %v653_v13, %v43_v7  ;;  %v388_v20 = vadd.f32 %v677_v14, %v51_v9 }
 0x114   :  { %540 = vst.msk [vmem:[%s972_s3 + $0x2c] sm:$0xf] %vm528_vm1, %v609_v12  ;;  %v413_v17 = vld [vmem:[#allocation2 + $0x20] sm:$0xff] }
 0x115   :  { %v421_v18 = vld [vmem:[#allocation2 + $0x60] sm:$0xff]  ;;  %v436_v21 = vadd.f32 %v875_v63, %v413_v17  ;;  %v414_v23 = vld [vmem:[#allocation2 + $0x28] sm:$0xff]  ;;  %396 = vst.msk [vmem:[#allocation2 + $0x30] sm:$0xff] %vm19_vm0, %v379_v15  ;;  %404 = vst.msk [vmem:[#allocation2 + $0x70] sm:$0xff] %vm19_vm0, %v387_v16 }
 0x116   :  { %v444_v22 = vadd.f32 %v875_v63, %v421_v18  ;;  %v422_v24 = vld [vmem:[#allocation2 + $0x68] sm:$0xff]  ;;  %v437_v25 = vadd.f32 %v875_v63, %v414_v23  ;;  %397 = vst.msk [vmem:[#allocation2 + $0x38] sm:$0xff] %vm19_vm0, %v380_v19  ;;  %405 = vst.msk [vmem:[#allocation2 + $0x78] sm:$0xff] %vm19_vm0, %v388_v20 }
 0x117   :  { %v445_v26 = vadd.f32 %v875_v63, %v422_v24  ;;  %v452_v27 = vmax.f32 %v436_v21, 0.0 }
 0x118   :  { %v460_v28 = vmax.f32 %v444_v22, 0.0  ;;  %v453_v29 = vmax.f32 %v437_v25, 0.0 }
 0x119   :  { %v461_v30 = vmax.f32 %v445_v26, 0.0  ;;  %v602_v31 = vpack.c.bf16 %v452_v27, %v452_v27 }
 0x11a   :  { %v610_v32 = vpack.c.bf16 %v460_v28, %v460_v28  ;;  %v603_v33 = vpack.c.bf16 %v453_v29, %v453_v29 }
 0x11b   :  { %v611_v34 = vpack.c.bf16 %v461_v30, %v461_v30  ;;  %533 = vst.msk [vmem:[%s972_s3 + $0x10] sm:$0xf] %vm528_vm1, %v602_v31 }
 0x11c   :  { %541 = vst.msk [vmem:[%s972_s3 + $0x30] sm:$0xf] %vm528_vm1, %v610_v32  ;;  %534 = vst.msk [vmem:[%s972_s3 + $0x14] sm:$0xf] %vm528_vm1, %v603_v33  ;;  %v415_v35 = vld [vmem:[#allocation2 + $0x30] sm:$0xff] }
 0x11d   :  { %542 = vst.msk [vmem:[%s972_s3 + $0x34] sm:$0xf] %vm528_vm1, %v611_v34  ;;  %v423_v36 = vld [vmem:[#allocation2 + $0x70] sm:$0xff]  ;;  %v438_v37 = vadd.f32 %v875_v63, %v415_v35  ;;  %v416_v39 = vld [vmem:[#allocation2 + $0x38] sm:$0xff] }
 0x11e   :  { %v446_v38 = vadd.f32 %v875_v63, %v423_v36  ;;  %v424_v40 = vld [vmem:[#allocation2 + $0x78] sm:$0xff]  ;;  %v439_v41 = vadd.f32 %v875_v63, %v416_v39 }
 0x11f   :  { %v447_v42 = vadd.f32 %v875_v63, %v424_v40  ;;  %v454_v43 = vmax.f32 %v438_v37, 0.0 }
 0x120   :  { %v462_v44 = vmax.f32 %v446_v38, 0.0  ;;  %v455_v45 = vmax.f32 %v439_v41, 0.0 }
 0x121   :  { %v463_v46 = vmax.f32 %v447_v42, 0.0  ;;  %v604_v47 = vpack.c.bf16 %v454_v43, %v454_v43 }
 0x122   :  { %v612_v48 = vpack.c.bf16 %v462_v44, %v462_v44  ;;  %v605_v49 = vpack.c.bf16 %v455_v45, %v455_v45 }
 0x123   :  { %v613_v50 = vpack.c.bf16 %v463_v46, %v463_v46  ;;  %535 = vst.msk [vmem:[%s972_s3 + $0x18] sm:$0xf] %vm528_vm1, %v604_v47 }
 0x124   :  { %543 = vst.msk [vmem:[%s972_s3 + $0x38] sm:$0xf] %vm528_vm1, %v612_v48  ;;  %536 = vst.msk [vmem:[%s972_s3 + $0x1c] sm:$0xf] %vm528_vm1, %v605_v49 }
 0x125   :  { %544 = vst.msk [vmem:[%s972_s3 + $0x3c] sm:$0xf] %vm528_vm1, %v613_v50 }

// kernel: resnet34_forward.38
= control target key start
LH: loop header
LB: loop body
LE: loop exit
PB: predicated region body
PF: predicated region fallthrough
CT: control target
= control target key end

     0   :  { %vm19_vm0 = vcmask 523264   ;;  %vm1074_vm1 = vcmask 519168   ;;  %s1911_s1 = inlined_call_operand.vmem [shape: bf16[640,64], index: 1, kind: input, shape index: {}]   ;;  %s1912_s0 = inlined_call_operand.vmem [shape: bf16[128,640], index: 0, kind: input, shape index: {}]   ;;  %s1913_s2 = inlined_call_operand.vmem [shape: f32[1,64], index: 2, kind: input, shape index: {}]   ;;  %s1914_s3 = inlined_call_operand.vmem [shape: bf16[128,64], index: 3, kind: output, shape index: {}]  }
   0x1   :  { %v1401_v0 = vld [vmem:[%s1911_s1 + $0x40] sm:$0xff]   ;;  %v1405_v4 = vld [vmem:[%s1911_s1 + $0x48] sm:$0xff]   ;;  %v1409_v8 = vld [vmem:[%s1911_s1 + $0x50] sm:$0xff]  }
   0x2   :  { %v1402_v1 = vld [vmem:[%s1911_s1 + $0xc0] sm:$0xff]   ;;  %1208 = vmatprep.subr.bf16.mxu0 %v1401_v0  ;;  %v1406_v5 = vld [vmem:[%s1911_s1 + $0xc8] sm:$0xff]   ;;  %v1410_v9 = vld [vmem:[%s1911_s1 + $0xd0] sm:$0xff]  }
   0x3   :  { %v1403_v2 = vld [vmem:[%s1911_s1] sm:$0xff]   ;;  %1272 = vmatprep.subr.bf16.mxu1 %v1402_v1  ;;  %v1407_v6 = vld [vmem:[%s1911_s1 + $0x8] sm:$0xff]   ;;  %v1411_v10 = vld [vmem:[%s1911_s1 + $0x10] sm:$0xff]  }
   0x4   :  { %v1404_v3 = vld [vmem:[%s1911_s1 + $0x80] sm:$0xff]   ;;  %1209 = vmatpush3.bf16.msra.mxu0 %v1403_v2  ;;  %v1408_v7 = vld [vmem:[%s1911_s1 + $0x88] sm:$0xff]   ;;  %v1412_v11 = vld [vmem:[%s1911_s1 + $0x90] sm:$0xff]  }
   0x5   :  { %1273 = vmatpush3.bf16.msra.mxu1 %v1404_v3  ;;  %1210 = vmatprep.subr.bf16.mxu0 %v1405_v4  ;;  %v1413_v12 = vld [vmem:[%s1911_s1 + $0x58] sm:$0xff]   ;;  %v1417_v16 = vld [vmem:[%s1911_s1 + $0x60] sm:$0xff]   ;;  %v1421_v20 = vld [vmem:[%s1911_s1 + $0x68] sm:$0xff]  }
   0x6   :  { %1274 = vmatprep.subr.bf16.mxu1 %v1406_v5  ;;  %v1414_v13 = vld [vmem:[%s1911_s1 + $0xd8] sm:$0xff]   ;;  %v1418_v17 = vld [vmem:[%s1911_s1 + $0xe0] sm:$0xff]   ;;  %v1422_v21 = vld [vmem:[%s1911_s1 + $0xe8] sm:$0xff]  }
   0x7   :  { %v1415_v14 = vld [vmem:[%s1911_s1 + $0x18] sm:$0xff]   ;;  %v1419_v18 = vld [vmem:[%s1911_s1 + $0x20] sm:$0xff]   ;;  %v1423_v22 = vld [vmem:[%s1911_s1 + $0x28] sm:$0xff]  }
   0x8   :  { %1211 = vmatpush3.bf16.msra.mxu0 %v1407_v6  ;;  %v1416_v15 = vld [vmem:[%s1911_s1 + $0x98] sm:$0xff]   ;;  %v1420_v19 = vld [vmem:[%s1911_s1 + $0xa0] sm:$0xff]   ;;  %v1424_v23 = vld [vmem:[%s1911_s1 + $0xa8] sm:$0xff]  }
   0x9   :  { %1275 = vmatpush3.bf16.msra.mxu1 %v1408_v7  ;;  %1212 = vmatprep.subr.bf16.mxu0 %v1409_v8  ;;  %v1425_v24 = vld [vmem:[%s1911_s1 + $0x70] sm:$0xff]   ;;  %v1429_v28 = vld [vmem:[%s1911_s1 + $0x78] sm:$0xff]   ;;  %v1438_v35 = vld [vmem:[%s1912_s0 + $0xc] ss:$20 sps:$4 sm:$0xff]  }
   0xa   :  { %1276 = vmatprep.subr.bf16.mxu1 %v1410_v9  ;;  %v1426_v25 = vld [vmem:[%s1911_s1 + $0xf0] sm:$0xff]   ;;  %v1430_v29 = vld [vmem:[%s1911_s1 + $0xf8] sm:$0xff]   ;;  %v1439_v36 = vld [vmem:[%s1911_s1 + $0x100] sm:$0xff]   ;;  %757 = vmatprep.mubr.bf16.mxu1 %v1438_v35 }
   0xb   :  { %v1427_v26 = vld [vmem:[%s1911_s1 + $0x30] sm:$0xff]   ;;  %v1431_v30 = vld [vmem:[%s1911_s1 + $0x38] sm:$0xff]   ;;  %v1440_v37 = vld [vmem:[%s1912_s0 + $0x2c] ss:$20 sps:$4 sm:$0xff]  }
   0xc   :  { %1213 = vmatpush3.bf16.msra.mxu0 %v1411_v10  ;;  %v1428_v27 = vld [vmem:[%s1911_s1 + $0xb0] sm:$0xff]   ;;  %v1432_v31 = vld [vmem:[%s1911_s1 + $0xb8] sm:$0xff]   ;;  %v1446_v39 = vld [vmem:[%s1911_s1 + $0x108] sm:$0xff]  }
   0xd   :  { %1277 = vmatpush3.bf16.msra.mxu1 %v1412_v11  ;;  %1214 = vmatprep.subr.bf16.mxu0 %v1413_v12  ;;  %v1433_v32 = vld [vmem:[%s1912_s0] ss:$20 sps:$4 sm:$0xff]   ;;  %v1435_v33 = vld [vmem:[%s1912_s0 + $0x4] ss:$20 sps:$4 sm:$0xff]   ;;  %v1436_v34 = vld [vmem:[%s1912_s0 + $0x8] ss:$20 sps:$4 sm:$0xff]  }
   0xe   :  { %1278 = vmatprep.subr.bf16.mxu1 %v1414_v13  ;;  %660 = vmatprep.mubr.bf16.mxu0 %v1435_v33  ;;  %v1442_v38 = vld [vmem:[%s1912_s0 + $0x34] ss:$20 sps:$4 sm:$0xff]   ;;  %v1445_v41 = vld [vmem:[%s1912_s0 + $0x30] ss:$20 sps:$4 sm:$0xff]   ;;  %v1460_v45 = vld [vmem:[%s1911_s1 + $0x118] sm:$0xff]  }
   0xf   :  { %v1444_v40 = vld [vmem:[%s1912_s0 + $0x28] ss:$20 sps:$4 sm:$0xff]   ;;  %v1453_v44 = vld [vmem:[%s1911_s1 + $0x110] sm:$0xff]   ;;  %v1452_v47 = vld [vmem:[%s1912_s0 + $0x58] ss:$20 sps:$4 sm:$0xff]  }
  0x10   :  { %1215 = vmatpush3.bf16.msra.mxu0 %v1415_v14  ;;  %v1447_v42 = vld [vmem:[%s1912_s0 + $0x54] ss:$20 sps:$4 sm:$0xff]   ;;  %v1449_v43 = vld [vmem:[%s1912_s0 + $0x5c] ss:$20 sps:$4 sm:$0xff]   ;;  %v1456_v49 = vld [vmem:[%s1912_s0 + $0x84] ss:$20 sps:$4 sm:$0xff]  }
  0x11   :  { %1279 = vmatpush3.bf16.msra.mxu1 %v1416_v15  ;;  %1216 = vmatprep.subr.bf16.mxu0 %v1417_v16  ;;  %v1451_v46 = vld [vmem:[%s1912_s0 + $0x50] ss:$20 sps:$4 sm:$0xff]   ;;  %v1474_v51 = vld [vmem:[%s1911_s1 + $0x128] sm:$0xff]   ;;  %v1459_v53 = vld [vmem:[%s1912_s0 + $0x80] ss:$20 sps:$4 sm:$0xff]   ;;  %v1497_v16 = vmov 0.0  }
  0x12   :  { %1280 = vmatprep.subr.bf16.mxu1 %v1418_v17  ;;  %v1454_v48 = vld [vmem:[%s1912_s0 + $0x7c] ss:$20 sps:$4 sm:$0xff]   ;;  %v1467_v50 = vld [vmem:[%s1911_s1 + $0x120] sm:$0xff]   ;;  %v1458_v52 = vld [vmem:[%s1912_s0 + $0x78] ss:$20 sps:$4 sm:$0xff]   ;;  %22 = vst.msk [vmem:[#allocation2 + $0x10] sm:$0xff] %vm19_vm0, %v1497_v16 }
  0x13   :  { %v1461_v54 = vld [vmem:[%s1912_s0 + $0xa4] ss:$20 sps:$4 sm:$0xff]   ;;  %v1481_v55 = vld [vmem:[%s1911_s1 + $0x130] sm:$0xff]   ;;  %v1463_v56 = vld [vmem:[%s1912_s0 + $0xac] ss:$20 sps:$4 sm:$0xff]   ;;  %20 = vst.msk [vmem:[#allocation2] sm:$0xff] %vm19_vm0, %v1497_v16 }
  0x14   :  { %1217 = vmatpush3.bf16.msra.mxu0 %v1419_v18  ;;  %v1488_v57 = vld [vmem:[%s1911_s1 + $0x138] sm:$0xff]   ;;  %v1465_v58 = vld [vmem:[%s1912_s0 + $0xa0] ss:$20 sps:$4 sm:$0xff]   ;;  %v1473_v63 = vld [vmem:[%s1912_s0 + $0xd0] ss:$20 sps:$4 sm:$0xff]   ;;  %21 = vst.msk [vmem:[#allocation2 + $0x8] sm:$0xff] %vm19_vm0, %v1497_v16 }
  0x15   :  { %1281 = vmatpush3.bf16.msra.mxu1 %v1420_v19  ;;  %1218 = vmatprep.subr.bf16.mxu0 %v1421_v20  ;;  %v1466_v59 = vld [vmem:[%s1912_s0 + $0xa8] ss:$20 sps:$4 sm:$0xff]   ;;  %v1468_v60 = vld [vmem:[%s1912_s0 + $0xcc] ss:$20 sps:$4 sm:$0xff]   ;;  %v1479_v2 = vld [vmem:[%s1912_s0 + $0xf0] ss:$20 sps:$4 sm:$0xff]  }
  0x16   :  { %1282 = vmatprep.subr.bf16.mxu1 %v1422_v21  ;;  %v1470_v61 = vld [vmem:[%s1912_s0 + $0xd4] ss:$20 sps:$4 sm:$0xff]   ;;  %v1477_v1 = vld [vmem:[%s1912_s0 + $0xfc] ss:$20 sps:$4 sm:$0xff]   ;;  %v1480_v3 = vld [vmem:[%s1912_s0 + $0xf8] ss:$20 sps:$4 sm:$0xff]  }
  0x17   :  { %v1472_v62 = vld [vmem:[%s1912_s0 + $0xc8] ss:$20 sps:$4 sm:$0xff]   ;;  %v1484_v5 = vld [vmem:[%s1912_s0 + $0x124] ss:$20 sps:$4 sm:$0xff]   ;;  %v1487_v7 = vld [vmem:[%s1912_s0 + $0x120] ss:$20 sps:$4 sm:$0xff]  }
  0x18   :  { %1219 = vmatpush3.bf16.msra.mxu0 %v1423_v22  ;;  %v1475_v0 = vld [vmem:[%s1912_s0 + $0xf4] ss:$20 sps:$4 sm:$0xff]   ;;  %v1482_v4 = vld [vmem:[%s1912_s0 + $0x11c] ss:$20 sps:$4 sm:$0xff]   ;;  %v1486_v6 = vld [vmem:[%s1912_s0 + $0x118] ss:$20 sps:$4 sm:$0xff]  }
  0x19   :  { %1283 = vmatpush3.bf16.msra.mxu1 %v1424_v23  ;;  %1220 = vmatprep.subr.bf16.mxu0 %v1425_v24  ;;  %v1489_v8 = vld [vmem:[%s1912_s0 + $0x10] ss:$20 sps:$4 sm:$0xff]   ;;  %v1491_v10 = vld [vmem:[%s1912_s0 + $0x38] ss:$20 sps:$4 sm:$0xff]   ;;  %v1493_v12 = vld [vmem:[%s1912_s0 + $0x60] ss:$20 sps:$4 sm:$0xff]  }
  0x1a   :  { %1284 = vmatprep.subr.bf16.mxu1 %v1426_v25  ;;  %v1490_v9 = vld [vmem:[%s1912_s0 + $0xb0] ss:$20 sps:$4 sm:$0xff]   ;;  %v1492_v11 = vld [vmem:[%s1912_s0 + $0xd8] ss:$20 sps:$4 sm:$0xff]   ;;  %v1494_v13 = vld [vmem:[%s1912_s0 + $0x100] ss:$20 sps:$4 sm:$0xff]  }
  0x1b   :  { %v1495_v14 = vld [vmem:[%s1912_s0 + $0x88] ss:$20 sps:$4 sm:$0xff]   ;;  %23 = vst.msk [vmem:[#allocation2 + $0x18] sm:$0xff] %vm19_vm0, %v1497_v16  ;;  %24 = vst.msk [vmem:[#allocation2 + $0x20] sm:$0xff] %vm19_vm0, %v1497_v16 }
  0x1c   :  { %1221 = vmatpush3.bf16.msra.mxu0 %v1427_v26  ;;  %v1496_v15 = vld [vmem:[%s1912_s0 + $0x128] ss:$20 sps:$4 sm:$0xff]   ;;  %25 = vst.msk [vmem:[#allocation2 + $0x28] sm:$0xff] %vm19_vm0, %v1497_v16  ;;  %26 = vst.msk [vmem:[#allocation2 + $0x30] sm:$0xff] %vm19_vm0, %v1497_v16 }
  0x1d   :  { %1285 = vmatpush3.bf16.msra.mxu1 %v1428_v27  ;;  %1222 = vmatprep.subr.bf16.mxu0 %v1429_v28  ;;  %27 = vst.msk [vmem:[#allocation2 + $0x38] sm:$0xff] %vm19_vm0, %v1497_v16  ;;  %28 = vst.msk [vmem:[#allocation2 + $0x40] sm:$0xff] %vm19_vm0, %v1497_v16 }
  0x1e   :  { %1286 = vmatprep.subr.bf16.mxu1 %v1430_v29  ;;  %29 = vst.msk [vmem:[#allocation2 + $0x48] sm:$0xff] %vm19_vm0, %v1497_v16  ;;  %30 = vst.msk [vmem:[#allocation2 + $0x50] sm:$0xff] %vm19_vm0, %v1497_v16 }
  0x1f   :  { %31 = vst.msk [vmem:[#allocation2 + $0x58] sm:$0xff] %vm19_vm0, %v1497_v16  ;;  %32 = vst.msk [vmem:[#allocation2 + $0x60] sm:$0xff] %vm19_vm0, %v1497_v16 }
  0x20   :  { %1223 = vmatpush3.bf16.msra.mxu0 %v1431_v30  ;;  %33 = vst.msk [vmem:[#allocation2 + $0x68] sm:$0xff] %vm19_vm0, %v1497_v16  ;;  %34 = vst.msk [vmem:[#allocation2 + $0x70] sm:$0xff] %vm19_vm0, %v1497_v16 }
  0x21   :  { %1287 = vmatpush3.bf16.msra.mxu1 %v1432_v31  ;;  %1352 = vmatprep.subr.bf16.mxu0 %v1439_v36  ;;  %35 = vst.msk [vmem:[#allocation2 + $0x78] sm:$0xff] %vm19_vm0, %v1497_v16 }
  0x22   :  { %1384 = vmatprep.subr.bf16.mxu1 %v1439_v36 }
  0x23   :  { %661 = vmatmul.mubr.bf16.vlgmr.msra.gmra.mrb[0].mxu0 %v1433_v32 }
  0x24   :  { %758 = vmatmul.mubr.bf16.vlgmr.msra.gmra.mrb[0].mxu1 %v1436_v34  ;;  %1353 = vmatpush3.bf16.msra.mxu0 %v1439_v36 }
  0x25   :  { %1392 = vmatpush3.bf16.msra.mxu1 %v1439_v36  ;;  %668 = vmatprep.mubr.bf16.mxu0 %v1440_v37 }
  0x26   :  { %765 = vmatprep.mubr.bf16.mxu1 %v1442_v38  ;;  %1354 = vmatprep.subr.bf16.mxu0 %v1446_v39 }
  0x27   :  { %1385 = vmatprep.subr.bf16.mxu1 %v1446_v39 }
  0x28   :  { %1355 = vmatpush3.bf16.msra.mxu0 %v1446_v39 }
  0x29   :  { %1393 = vmatpush3.bf16.msra.mxu1 %v1446_v39  ;;  %1356 = vmatprep.subr.bf16.mxu0 %v1453_v44 }
  0x2a   :  { %1386 = vmatprep.subr.bf16.mxu1 %v1453_v44 }
  0x2b   :  { %669 = vmatmul.mubr.bf16.gmra.mrb[4].mxu0 %v1444_v40 }
  0x2c   :  { %766 = vmatmul.mubr.bf16.gmra.mrb[4].mxu1 %v1445_v41  ;;  %676 = vmatprep.mubr.bf16.mxu0 %v1447_v42 }
  0x2d   :  { %773 = vmatprep.mubr.bf16.mxu1 %v1449_v43  ;;  %1357 = vmatpush3.bf16.msra.mxu0 %v1453_v44 }
  0x2e   :  { %1394 = vmatpush3.bf16.msra.mxu1 %v1453_v44  ;;  %1358 = vmatprep.subr.bf16.mxu0 %v1460_v45 }
  0x2f   :  { %1387 = vmatprep.subr.bf16.mxu1 %v1460_v45 }
  0x31   :  { %1359 = vmatpush3.bf16.msra.mxu0 %v1460_v45 }
  0x32   :  { %1395 = vmatpush3.bf16.msra.mxu1 %v1460_v45  ;;  %1360 = vmatprep.subr.bf16.mxu0 %v1467_v50 }
  0x33   :  { %677 = vmatmul.mubr.bf16.gmra.mrb[8].mxu0 %v1451_v46  ;;  %1388 = vmatprep.subr.bf16.mxu1 %v1467_v50 }
  0x34   :  { %774 = vmatmul.mubr.bf16.gmra.mrb[8].mxu1 %v1452_v47  ;;  %684 = vmatprep.mubr.bf16.mxu0 %v1454_v48 }
  0x35   :  { %781 = vmatprep.mubr.bf16.mxu1 %v1456_v49  ;;  %1361 = vmatpush3.bf16.msra.mxu0 %v1467_v50 }
  0x36   :  { %1396 = vmatpush3.bf16.msra.mxu1 %v1467_v50  ;;  %1362 = vmatprep.subr.bf16.mxu0 %v1474_v51 }
  0x37   :  { %1389 = vmatprep.subr.bf16.mxu1 %v1474_v51 }
  0x39   :  { %1363 = vmatpush3.bf16.msra.mxu0 %v1474_v51 }
  0x3a   :  { %1397 = vmatpush3.bf16.msra.mxu1 %v1474_v51  ;;  %1364 = vmatprep.subr.bf16.mxu0 %v1481_v55 }
  0x3b   :  { %685 = vmatmul.mubr.bf16.gmra.mrb[12].mxu0 %v1458_v52  ;;  %1390 = vmatprep.subr.bf16.mxu1 %v1481_v55 }
  0x3c   :  { %782 = vmatmul.mubr.bf16.gmra.mrb[12].mxu1 %v1459_v53  ;;  %692 = vmatprep.mubr.bf16.mxu0 %v1461_v54 }
  0x3d   :  { %789 = vmatprep.mubr.bf16.mxu1 %v1463_v56  ;;  %1365 = vmatpush3.bf16.msra.mxu0 %v1481_v55 }
  0x3e   :  { %1398 = vmatpush3.bf16.msra.mxu1 %v1481_v55  ;;  %1366 = vmatprep.subr.bf16.mxu0 %v1488_v57 }
  0x3f   :  { %1391 = vmatprep.subr.bf16.mxu1 %v1488_v57 }
  0x41   :  { %1367 = vmatpush3.bf16.msra.mxu0 %v1488_v57 }
  0x42   :  { %1399 = vmatpush3.bf16.msra.mxu1 %v1488_v57 }
  0x43   :  { %693 = vmatmul.mubr.bf16.gmra.mrb[16].mxu0 %v1465_v58 }
  0x44   :  { %790 = vmatmul.mubr.bf16.gmra.mrb[16].mxu1 %v1466_v59  ;;  %700 = vmatprep.mubr.bf16.mxu0 %v1468_v60 }
  0x45   :  { %797 = vmatprep.mubr.bf16.mxu1 %v1470_v61 }
  0x4b   :  { %701 = vmatmul.mubr.bf16.gmra.mrb[20].mxu0 %v1472_v62 }
  0x4c   :  { %798 = vmatmul.mubr.bf16.gmra.mrb[20].mxu1 %v1473_v63  ;;  %708 = vmatprep.mubr.bf16.mxu0 %v1475_v0 }
  0x4d   :  { %805 = vmatprep.mubr.bf16.mxu1 %v1477_v1 }
  0x53   :  { %709 = vmatmul.mubr.bf16.gmra.mrb[24].mxu0 %v1479_v2 }
  0x54   :  { %806 = vmatmul.mubr.bf16.gmra.mrb[24].mxu1 %v1480_v3  ;;  %716 = vmatprep.mubr.bf16.mxu0 %v1482_v4 }
  0x55   :  { %813 = vmatprep.mubr.bf16.mxu1 %v1484_v5 }
  0x5b   :  { %717 = vmatmul.mubr.bf16.gmra.mrb[28].mxu0 %v1486_v6 }
  0x5c   :  { %814 = vmatmul.mubr.bf16.gmra.mrb[28].mxu1 %v1487_v7  ;;  %1368 = vmatprep.mubr.bf16.mxu0 %v1489_v8 }
  0x5d   :  { %1376 = vmatprep.mubr.bf16.mxu1 %v1490_v9 }
  0x63   :  { %1369 = vmatmul.mubr.bf16.vlgmr.msra.gmra.mrb[32].mxu0 %v1491_v10 }
  0x64   :  { %1377 = vmatmul.mubr.bf16.vlgmr.msra.gmra.mrb[32].mxu1 %v1492_v11  ;;  %1372 = vmatprep.mubr.bf16.mxu0 %v1493_v12 }
  0x65   :  { %1380 = vmatprep.mubr.bf16.mxu1 %v1494_v13 }
  0x6b   :  { %1373 = vmatmul.mubr.bf16.gmra.mrb[36].mxu0 %v1495_v14 }
  0x6c   :  { %1381 = vmatmul.mubr.bf16.gmra.mrb[36].mxu1 %v1496_v15 }
  0xf6   :  { %v1224_v17 = vpop.f32.mrb[0].mxu0 }
  0xf7   :  { %v1288_v18 = vpop.f32.mrb[0].mxu1  ;;  %v1225_v19 = vpop.f32.mrb[1].mxu0 }
  0xf8   :  { %v1226_v20 = vadd.f32 %v1225_v19, %v1224_v17  ;;  %v1289_v21 = vpop.f32.mrb[1].mxu1  ;;  %v1227_v22 = vpop.f32.mrb[2].mxu0 }
  0xf9   :  { %v1290_v23 = vadd.f32 %v1289_v21, %v1288_v18  ;;  %v1291_v24 = vpop.f32.mrb[2].mxu1  ;;  %v1228_v25 = vpop.f32.mrb[3].mxu0 }
  0xfa   :  { %v1229_v26 = vadd.f32 %v1228_v25, %v1227_v22  ;;  %v1292_v27 = vpop.f32.mrb[3].mxu1 }
  0xfb   :  { %v1293_v28 = vadd.f32 %v1292_v27, %v1291_v24  ;;  %v1774_v29 = vadd.f32 %v1290_v23, %v1226_v20 }
  0xfd   :  { %v1776_v30 = vadd.f32 %v1293_v28, %v1229_v26 }
  0xfe   :  { %v1230_v31 = vpop.f32.mrb[4].mxu0 }
  0xff   :  { %v1294_v32 = vpop.f32.mrb[4].mxu1  ;;  %v1231_v33 = vpop.f32.mrb[5].mxu0 }
 0x100   :  { %v1232_v34 = vadd.f32 %v1231_v33, %v1230_v31  ;;  %v1295_v35 = vpop.f32.mrb[5].mxu1  ;;  %v1233_v36 = vpop.f32.mrb[6].mxu0 }
 0x101   :  { %v1296_v37 = vadd.f32 %v1295_v35, %v1294_v32  ;;  %v1297_v38 = vpop.f32.mrb[6].mxu1  ;;  %v1234_v39 = vpop.f32.mrb[7].mxu0 }
 0x102   :  { %v1235_v40 = vadd.f32 %v1234_v39, %v1233_v36  ;;  %v1298_v41 = vpop.f32.mrb[7].mxu1 }
 0x103   :  { %v1299_v42 = vadd.f32 %v1298_v41, %v1297_v38  ;;  %v1778_v43 = vadd.f32 %v1296_v37, %v1232_v34 }
 0x105   :  { %v1780_v44 = vadd.f32 %v1299_v42, %v1235_v40 }
 0x106   :  { %v1236_v45 = vpop.f32.mrb[8].mxu0 }
 0x107   :  { %v1300_v46 = vpop.f32.mrb[8].mxu1  ;;  %v1237_v47 = vpop.f32.mrb[9].mxu0 }
 0x108   :  { %v1238_v48 = vadd.f32 %v1237_v47, %v1236_v45  ;;  %v1301_v49 = vpop.f32.mrb[9].mxu1  ;;  %v1239_v50 = vpop.f32.mrb[10].mxu0 }
 0x109   :  { %v1302_v51 = vadd.f32 %v1301_v49, %v1300_v46  ;;  %v1303_v52 = vpop.f32.mrb[10].mxu1  ;;  %v1240_v53 = vpop.f32.mrb[11].mxu0 }
 0x10a   :  { %v1241_v54 = vadd.f32 %v1240_v53, %v1239_v50  ;;  %v1304_v55 = vpop.f32.mrb[11].mxu1 }
 0x10b   :  { %v1305_v56 = vadd.f32 %v1304_v55, %v1303_v52  ;;  %v1782_v57 = vadd.f32 %v1302_v51, %v1238_v48 }
 0x10d   :  { %v1784_v58 = vadd.f32 %v1305_v56, %v1241_v54 }
 0x10e   :  { %v1242_v59 = vpop.f32.mrb[12].mxu0 }
 0x10f   :  { %v1306_v60 = vpop.f32.mrb[12].mxu1  ;;  %v1243_v61 = vpop.f32.mrb[13].mxu0 }
 0x110   :  { %v1244_v62 = vadd.f32 %v1243_v61, %v1242_v59  ;;  %v1307_v63 = vpop.f32.mrb[13].mxu1  ;;  %v1245_v0 = vpop.f32.mrb[14].mxu0 }
 0x111   :  { %v1308_v1 = vadd.f32 %v1307_v63, %v1306_v60  ;;  %v1309_v2 = vpop.f32.mrb[14].mxu1  ;;  %v1246_v3 = vpop.f32.mrb[15].mxu0 }
 0x112   :  { %v1247_v4 = vadd.f32 %v1246_v3, %v1245_v0  ;;  %v1310_v5 = vpop.f32.mrb[15].mxu1 }
 0x113   :  { %v1311_v6 = vadd.f32 %v1310_v5, %v1309_v2  ;;  %v1786_v7 = vadd.f32 %v1308_v1, %v1244_v62 }
 0x115   :  { %v1788_v8 = vadd.f32 %v1311_v6, %v1247_v4 }
 0x116   :  { %v1248_v9 = vpop.f32.mrb[16].mxu0 }
 0x117   :  { %v1312_v10 = vpop.f32.mrb[16].mxu1  ;;  %v1249_v11 = vpop.f32.mrb[17].mxu0 }
 0x118   :  { %v1250_v12 = vadd.f32 %v1249_v11, %v1248_v9  ;;  %v1313_v13 = vpop.f32.mrb[17].mxu1  ;;  %v1251_v14 = vpop.f32.mrb[18].mxu0  ;;  %v38_v9 = vld [vmem:[#allocation2 + $0x10] sm:$0xff] }
 0x119   :  { %v1314_v15 = vadd.f32 %v1313_v13, %v1312_v10  ;;  %v1315_v16 = vpop.f32.mrb[18].mxu1  ;;  %v1252_v17 = vpop.f32.mrb[19].mxu0 }
 0x11a   :  { %v1253_v18 = vadd.f32 %v1252_v17, %v1251_v14  ;;  %v1316_v19 = vpop.f32.mrb[19].mxu1  ;;  %v36_v14 = vld [vmem:[#allocation2] sm:$0xff] }
 0x11b   :  { %v1317_v20 = vadd.f32 %v1316_v19, %v1315_v16  ;;  %v792_v21 = vadd.f32 %v1314_v15, %v1250_v12  ;;  %v46_v12 = vld [vmem:[#allocation2 + $0x50] sm:$0xff] }
 0x11d   :  { %v1790_v22 = vadd.f32 %v1317_v20, %v1253_v18  ;;  %v44_v18 = vld [vmem:[#allocation2 + $0x40] sm:$0xff]  ;;  %v39_v20 = vld [vmem:[#allocation2 + $0x18] sm:$0xff] }
 0x11e   :  { %v1254_v23 = vpop.f32.mrb[20].mxu0 }
 0x11f   :  { %v1318_v24 = vpop.f32.mrb[20].mxu1  ;;  %v1255_v25 = vpop.f32.mrb[21].mxu0 }
 0x120   :  { %v1256_v26 = vadd.f32 %v1255_v25, %v1254_v23  ;;  %v1319_v27 = vpop.f32.mrb[21].mxu1  ;;  %v1257_v28 = vpop.f32.mrb[22].mxu0 }
 0x121   :  { %v1320_v31 = vadd.f32 %v1319_v27, %v1318_v24  ;;  %v1321_v32 = vpop.f32.mrb[22].mxu1  ;;  %v1258_v33 = vpop.f32.mrb[23].mxu0  ;;  %v47_v27 = vld [vmem:[#allocation2 + $0x58] sm:$0xff] }
 0x122   :  { %v1259_v34 = vadd.f32 %v1258_v33, %v1257_v28  ;;  %v1322_v35 = vpop.f32.mrb[23].mxu1 }
 0x123   :  { %v1323_v36 = vadd.f32 %v1322_v35, %v1321_v32  ;;  %v800_v37 = vadd.f32 %v1320_v31, %v1256_v26  ;;  %v37_v31 = vld [vmem:[#allocation2 + $0x8] sm:$0xff] }
 0x125   :  { %v803_v38 = vadd.f32 %v1323_v36, %v1259_v34  ;;  %v45_v36 = vld [vmem:[#allocation2 + $0x48] sm:$0xff] }
 0x126   :  { %v1260_v39 = vpop.f32.mrb[24].mxu0 }
 0x127   :  { %v1324_v40 = vpop.f32.mrb[24].mxu1  ;;  %v1261_v41 = vpop.f32.mrb[25].mxu0 }
 0x128   :  { %v1262_v42 = vadd.f32 %v1261_v41, %v1260_v39  ;;  %v1325_v45 = vpop.f32.mrb[25].mxu1  ;;  %v1263_v46 = vpop.f32.mrb[26].mxu0 }
 0x129   :  { %v1326_v47 = vadd.f32 %v1325_v45, %v1324_v40  ;;  %v1327_v48 = vpop.f32.mrb[26].mxu1  ;;  %v1264_v49 = vpop.f32.mrb[27].mxu0 }
 0x12a   :  { %v1265_v50 = vadd.f32 %v1264_v49, %v1263_v46  ;;  %v1328_v51 = vpop.f32.mrb[27].mxu1  ;;  %v40_v46 = vld [vmem:[#allocation2 + $0x20] sm:$0xff] }
 0x12b   :  { %v1329_v52 = vadd.f32 %v1328_v51, %v1327_v48  ;;  %v1792_v53 = vadd.f32 %v1326_v47, %v1262_v42  ;;  %v50_v42 = vld [vmem:[#allocation2 + $0x70] sm:$0xff]  ;;  %v1815_v48 = vld [vmem:[%s1913_s2] ss:$0 sm:$0xff] }
 0x12c   :  { %v48_v51 = vld [vmem:[#allocation2 + $0x60] sm:$0xff] }
 0x12d   :  { %v1794_v54 = vadd.f32 %v1329_v52, %v1265_v50 }
 0x12e   :  { %v1266_v55 = vpop.f32.mrb[28].mxu0 }
 0x12f   :  { %v1330_v56 = vpop.f32.mrb[28].mxu1  ;;  %v1267_v59 = vpop.f32.mrb[29].mxu0 }
 0x130   :  { %v1268_v60 = vadd.f32 %v1267_v59, %v1266_v55  ;;  %v1331_v61 = vpop.f32.mrb[29].mxu1  ;;  %v1269_v62 = vpop.f32.mrb[30].mxu0  ;;  %v43_v55 = vld [vmem:[#allocation2 + $0x38] sm:$0xff] }
 0x131   :  { %v1332_v63 = vadd.f32 %v1331_v61, %v1330_v56  ;;  %v1333_v0 = vpop.f32.mrb[30].mxu1  ;;  %v1270_v1 = vpop.f32.mrb[31].mxu0  ;;  %v51_v61 = vld [vmem:[#allocation2 + $0x78] sm:$0xff] }
 0x132   :  { %v1271_v2 = vadd.f32 %v1270_v1, %v1269_v62  ;;  %v1334_v3 = vpop.f32.mrb[31].mxu1 }
 0x133   :  { %v1335_v4 = vadd.f32 %v1334_v3, %v1333_v0  ;;  %v816_v5 = vadd.f32 %v1332_v63, %v1268_v60  ;;  %v41_v63 = vld [vmem:[#allocation2 + $0x28] sm:$0xff] }
 0x135   :  { %v1796_v6 = vadd.f32 %v1335_v4, %v1271_v2 }
 0x136   :  { %v1370_v10 = vpop.f32.mrb[32].mxu0 }
 0x137   :  { %v865_v11 = vadd.f32 %v1370_v10, %v1778_v43  ;;  %v1378_v13 = vpop.f32.mrb[32].mxu1  ;;  %v856_v15 = vpop.f32.mrb[33].mxu0 }
 0x138   :  { %v897_v16 = vadd.f32 %v1378_v13, %v800_v37  ;;  %v857_v17 = vadd.f32 %v856_v15, %v1774_v29  ;;  %v888_v19 = vpop.f32.mrb[33].mxu1  ;;  %v1371_v23 = vpop.f32.mrb[34].mxu0 }
 0x139   :  { %v921_v24 = vadd.f32 %v865_v11, %v38_v9  ;;  %v889_v25 = vadd.f32 %v888_v19, %v792_v21  ;;  %v868_v26 = vadd.f32 %v1371_v23, %v1780_v44  ;;  %v1379_v28 = vpop.f32.mrb[34].mxu1  ;;  %v859_v32 = vpop.f32.mrb[35].mxu0 }
 0x13a   :  { %v929_v43 = vadd.f32 %v897_v16, %v46_v12  ;;  %v919_v33 = vadd.f32 %v857_v17, %v36_v14  ;;  %v900_v34 = vadd.f32 %v1379_v28, %v803_v38  ;;  %v860_v35 = vadd.f32 %v859_v32, %v1776_v30  ;;  %v891_v37 = vpop.f32.mrb[35].mxu1  ;;  %v42_v30 = vld [vmem:[#allocation2 + $0x30] sm:$0xff] }
 0x13b   :  { %938 = vst.msk [vmem:[#allocation2 + $0x10] sm:$0xff] %vm19_vm0, %v921_v24  ;;  %v927_v29 = vadd.f32 %v889_v25, %v44_v18  ;;  %v922_v39 = vadd.f32 %v868_v26, %v39_v20  ;;  %v892_v40 = vadd.f32 %v891_v37, %v1790_v22 }
 0x13c   :  { %946 = vst.msk [vmem:[#allocation2 + $0x50] sm:$0xff] %vm19_vm0, %v929_v43  ;;  %936 = vst.msk [vmem:[#allocation2] sm:$0xff] %vm19_vm0, %v919_v33  ;;  %v930_v44 = vadd.f32 %v900_v34, %v47_v27  ;;  %v920_v21 = vadd.f32 %v860_v35, %v37_v31 }
 0x13d   :  { %944 = vst.msk [vmem:[#allocation2 + $0x40] sm:$0xff] %vm19_vm0, %v927_v29  ;;  %939 = vst.msk [vmem:[#allocation2 + $0x18] sm:$0xff] %vm19_vm0, %v922_v39  ;;  %v928_v38 = vadd.f32 %v892_v40, %v45_v36 }
 0x13e   :  { %947 = vst.msk [vmem:[#allocation2 + $0x58] sm:$0xff] %vm19_vm0, %v930_v44  ;;  %937 = vst.msk [vmem:[#allocation2 + $0x8] sm:$0xff] %vm19_vm0, %v920_v21  ;;  %v1374_v41 = vpop.f32.mrb[36].mxu0 }
 0x13f   :  { %945 = vst.msk [vmem:[#allocation2 + $0x48] sm:$0xff] %vm19_vm0, %v928_v38  ;;  %v881_v22 = vadd.f32 %v1374_v41, %v1786_v7  ;;  %v1382_v45 = vpop.f32.mrb[36].mxu1  ;;  %v872_v47 = vpop.f32.mrb[37].mxu0 }
 0x140   :  { %v913_v49 = vadd.f32 %v1382_v45, %v816_v5  ;;  %v873_v50 = vadd.f32 %v872_v47, %v1782_v57  ;;  %v904_v52 = vpop.f32.mrb[37].mxu1  ;;  %v1375_v56 = vpop.f32.mrb[38].mxu0  ;;  %v49_v5 = vld [vmem:[#allocation2 + $0x68] sm:$0xff] }
 0x141   :  { %v925_v59 = vadd.f32 %v881_v22, %v42_v30  ;;  %v905_v7 = vadd.f32 %v904_v52, %v1792_v53  ;;  %v884_v60 = vadd.f32 %v1375_v56, %v1788_v8  ;;  %v1383_v62 = vpop.f32.mrb[38].mxu1  ;;  %v875_v0 = vpop.f32.mrb[39].mxu0 }
 0x142   :  { %v957_v1 = vld [vmem:[#allocation2 + $0x10] sm:$0xff]  ;;  %v933_v2 = vadd.f32 %v913_v49, %v50_v42  ;;  %v923_v3 = vadd.f32 %v873_v50, %v40_v46  ;;  %v916_v4 = vadd.f32 %v1383_v62, %v1796_v6  ;;  %v876_v57 = vadd.f32 %v875_v0, %v1784_v58  ;;  %v907_v9 = vpop.f32.mrb[39].mxu1 }
 0x143   :  { %v980_v10 = vadd.f32 %v1815_v48, %v957_v1  ;;  %v965_v11 = vld [vmem:[#allocation2 + $0x50] sm:$0xff]  ;;  %v955_v12 = vld [vmem:[#allocation2] sm:$0xff]  ;;  %942 = vst.msk [vmem:[#allocation2 + $0x30] sm:$0xff] %vm19_vm0, %v925_v59  ;;  %v931_v8 = vadd.f32 %v905_v7, %v48_v51  ;;  %v926_v53 = vadd.f32 %v884_v60, %v43_v55  ;;  %v908_v13 = vadd.f32 %v907_v9, %v1794_v54 }
 0x144   :  { %v988_v14 = vadd.f32 %v1815_v48, %v965_v11  ;;  %v978_v15 = vadd.f32 %v1815_v48, %v955_v12  ;;  %v963_v16 = vld [vmem:[#allocation2 + $0x40] sm:$0xff]  ;;  %v958_v6 = vld [vmem:[#allocation2 + $0x18] sm:$0xff]  ;;  %950 = vst.msk [vmem:[#allocation2 + $0x70] sm:$0xff] %vm19_vm0, %v933_v2  ;;  %940 = vst.msk [vmem:[#allocation2 + $0x20] sm:$0xff] %vm19_vm0, %v923_v3  ;;  %v934_v58 = vadd.f32 %v916_v4, %v51_v61 }
 0x145   :  { %v924_v17 = vadd.f32 %v876_v57, %v41_v63  ;;  %v996_v18 = vmax.f32 %v980_v10, 0.0  ;;  %v986_v19 = vadd.f32 %v1815_v48, %v963_v16  ;;  %v981_v20 = vadd.f32 %v1815_v48, %v958_v6  ;;  %v966_v23 = vld [vmem:[#allocation2 + $0x58] sm:$0xff]  ;;  %v956_v24 = vld [vmem:[#allocation2 + $0x8] sm:$0xff]  ;;  %948 = vst.msk [vmem:[#allocation2 + $0x60] sm:$0xff] %vm19_vm0, %v931_v8  ;;  %943 = vst.msk [vmem:[#allocation2 + $0x38] sm:$0xff] %vm19_vm0, %v926_v53 }
 0x146   :  { %v932_v54 = vadd.f32 %v908_v13, %v49_v5  ;;  %v1004_v25 = vmax.f32 %v988_v14, 0.0  ;;  %v994_v26 = vmax.f32 %v978_v15, 0.0  ;;  %v989_v27 = vadd.f32 %v1815_v48, %v966_v23  ;;  %v964_v31 = vld [vmem:[#allocation2 + $0x48] sm:$0xff]  ;;  %951 = vst.msk [vmem:[#allocation2 + $0x78] sm:$0xff] %vm19_vm0, %v934_v58 }
 0x147   :  { %v979_v28 = vadd.f32 %v1815_v48, %v956_v24  ;;  %941 = vst.msk [vmem:[#allocation2 + $0x28] sm:$0xff] %vm19_vm0, %v924_v17  ;;  %v1194_v32 = vpack.c.bf16 %v996_v18, %v996_v18  ;;  %v1002_v43 = vmax.f32 %v986_v19, 0.0  ;;  %v997_v33 = vmax.f32 %v981_v20, 0.0 }
 0x148   :  { %v987_v34 = vadd.f32 %v1815_v48, %v964_v31  ;;  %949 = vst.msk [vmem:[#allocation2 + $0x68] sm:$0xff] %vm19_vm0, %v932_v54  ;;  %v1202_v35 = vpack.c.bf16 %v1004_v25, %v1004_v25  ;;  %v1192_v36 = vpack.c.bf16 %v994_v26, %v994_v26  ;;  %v1005_v37 = vmax.f32 %v989_v27, 0.0 }
 0x149   :  { %v995_v29 = vmax.f32 %v979_v28, 0.0  ;;  %1077 = vst.msk [vmem:[%s1914_s3 + $0x8] sm:$0xf] %vm1074_vm1, %v1194_v32  ;;  %v1200_v39 = vpack.c.bf16 %v1002_v43, %v1002_v43  ;;  %v1195_v40 = vpack.c.bf16 %v997_v33, %v997_v33 }
 0x14a   :  { %v1003_v44 = vmax.f32 %v987_v34, 0.0  ;;  %1085 = vst.msk [vmem:[%s1914_s3 + $0x28] sm:$0xf] %vm1074_vm1, %v1202_v35  ;;  %1075 = vst.msk [vmem:[%s1914_s3] sm:$0xf] %vm1074_vm1, %v1192_v36  ;;  %v1203_v21 = vpack.c.bf16 %v1005_v37, %v1005_v37  ;;  %v961_v30 = vld [vmem:[#allocation2 + $0x30] sm:$0xff] }
 0x14b   :  { %v1193_v38 = vpack.c.bf16 %v995_v29, %v995_v29  ;;  %1083 = vst.msk [vmem:[%s1914_s3 + $0x20] sm:$0xf] %vm1074_vm1, %v1200_v39  ;;  %1078 = vst.msk [vmem:[%s1914_s3 + $0xc] sm:$0xf] %vm1074_vm1, %v1195_v40  ;;  %v984_v22 = vadd.f32 %v1815_v48, %v961_v30  ;;  %v969_v42 = vld [vmem:[#allocation2 + $0x70] sm:$0xff]  ;;  %v959_v45 = vld [vmem:[#allocation2 + $0x20] sm:$0xff] }
 0x14c   :  { %v1201_v41 = vpack.c.bf16 %v1003_v44, %v1003_v44  ;;  %1086 = vst.msk [vmem:[%s1914_s3 + $0x2c] sm:$0xf] %vm1074_vm1, %v1203_v21  ;;  %v992_v46 = vadd.f32 %v1815_v48, %v969_v42  ;;  %v982_v47 = vadd.f32 %v1815_v48, %v959_v45  ;;  %v967_v49 = vld [vmem:[#allocation2 + $0x60] sm:$0xff]  ;;  %v962_v50 = vld [vmem:[#allocation2 + $0x38] sm:$0xff] }
 0x14d   :  { %1076 = vst.msk [vmem:[%s1914_s3 + $0x4] sm:$0xf] %vm1074_vm1, %v1193_v38  ;;  %v1000_v51 = vmax.f32 %v984_v22, 0.0  ;;  %v990_v52 = vadd.f32 %v1815_v48, %v967_v49  ;;  %v985_v55 = vadd.f32 %v1815_v48, %v962_v50  ;;  %v970_v56 = vld [vmem:[#allocation2 + $0x78] sm:$0xff] }
 0x14e   :  { %1084 = vst.msk [vmem:[%s1914_s3 + $0x24] sm:$0xf] %vm1074_vm1, %v1201_v41  ;;  %v960_v59 = vld [vmem:[#allocation2 + $0x28] sm:$0xff]  ;;  %v1008_v7 = vmax.f32 %v992_v46, 0.0  ;;  %v998_v60 = vmax.f32 %v982_v47, 0.0  ;;  %v993_v61 = vadd.f32 %v1815_v48, %v970_v56 }
 0x14f   :  { %v983_v62 = vadd.f32 %v1815_v48, %v960_v59  ;;  %v968_v63 = vld [vmem:[#allocation2 + $0x68] sm:$0xff]  ;;  %v1198_v0 = vpack.c.bf16 %v1000_v51, %v1000_v51  ;;  %v1006_v1 = vmax.f32 %v990_v52, 0.0  ;;  %v1001_v2 = vmax.f32 %v985_v55, 0.0 }
 0x150   :  { %v991_v3 = vadd.f32 %v1815_v48, %v968_v63  ;;  %v1206_v4 = vpack.c.bf16 %v1008_v7, %v1008_v7  ;;  %v1196_v57 = vpack.c.bf16 %v998_v60, %v998_v60  ;;  %v1009_v5 = vmax.f32 %v993_v61, 0.0 }
 0x151   :  { %v999_v9 = vmax.f32 %v983_v62, 0.0  ;;  %1081 = vst.msk [vmem:[%s1914_s3 + $0x18] sm:$0xf] %vm1074_vm1, %v1198_v0  ;;  %v1204_v10 = vpack.c.bf16 %v1006_v1, %v1006_v1  ;;  %v1199_v11 = vpack.c.bf16 %v1001_v2, %v1001_v2 }
 0x152   :  { %v1007_v12 = vmax.f32 %v991_v3, 0.0  ;;  %1089 = vst.msk [vmem:[%s1914_s3 + $0x38] sm:$0xf] %vm1074_vm1, %v1206_v4  ;;  %1079 = vst.msk [vmem:[%s1914_s3 + $0x10] sm:$0xf] %vm1074_vm1, %v1196_v57  ;;  %v1207_v48 = vpack.c.bf16 %v1009_v5, %v1009_v5 }
 0x153   :  { %v1197_v8 = vpack.c.bf16 %v999_v9, %v999_v9  ;;  %1087 = vst.msk [vmem:[%s1914_s3 + $0x30] sm:$0xf] %vm1074_vm1, %v1204_v10  ;;  %1082 = vst.msk [vmem:[%s1914_s3 + $0x1c] sm:$0xf] %vm1074_vm1, %v1199_v11 }
 0x154   :  { %v1205_v53 = vpack.c.bf16 %v1007_v12, %v1007_v12  ;;  %1090 = vst.msk [vmem:[%s1914_s3 + $0x3c] sm:$0xf] %vm1074_vm1, %v1207_v48 }
 0x155   :  { %1080 = vst.msk [vmem:[%s1914_s3 + $0x14] sm:$0xf] %vm1074_vm1, %v1197_v8 }
 0x156   :  { %1088 = vst.msk [vmem:[%s1914_s3 + $0x34] sm:$0xf] %vm1074_vm1, %v1205_v53 }

// kernel: resnet34_forward.44
= control target key start
LH: loop header
LB: loop body
LE: loop exit
PB: predicated region body
PF: predicated region fallthrough
CT: control target
= control target key end

     0   :  { %s1001_s1 = inlined_call_operand.vmem [shape: bf16[640,128], index: 1, kind: input, shape index: {}]   ;;  %s1002_s0 = inlined_call_operand.vmem [shape: bf16[32,640], index: 0, kind: input, shape index: {}]   ;;  %s1003_s2 = inlined_call_operand.vmem [shape: f32[1,128], index: 2, kind: input, shape index: {}]   ;;  %s1004_s3 = inlined_call_operand.vmem [shape: bf16[32,128], index: 3, kind: output, shape index: {}]  }
   0x1   :  { %v768_v0 = vld [vmem:[%s1001_s1 + $0x40] sm:$0xff]   ;;  %v772_v4 = vld [vmem:[%s1001_s1 + $0x48] sm:$0xff]   ;;  %v776_v8 = vld [vmem:[%s1001_s1 + $0x50] sm:$0xff]  }
   0x2   :  { %v769_v1 = vld [vmem:[%s1001_s1 + $0xc0] sm:$0xff]   ;;  %682 = vmatprep.subr.bf16.mxu0 %v768_v0  ;;  %v773_v5 = vld [vmem:[%s1001_s1 + $0xc8] sm:$0xff]   ;;  %v777_v9 = vld [vmem:[%s1001_s1 + $0xd0] sm:$0xff]  }
   0x3   :  { %v770_v2 = vld [vmem:[%s1001_s1] sm:$0xff]   ;;  %710 = vmatprep.subr.bf16.mxu1 %v769_v1  ;;  %v774_v6 = vld [vmem:[%s1001_s1 + $0x8] sm:$0xff]   ;;  %v778_v10 = vld [vmem:[%s1001_s1 + $0x10] sm:$0xff]  }
   0x4   :  { %v771_v3 = vld [vmem:[%s1001_s1 + $0x80] sm:$0xff]   ;;  %683 = vmatpush3.bf16.msra.mxu0 %v770_v2  ;;  %v775_v7 = vld [vmem:[%s1001_s1 + $0x88] sm:$0xff]   ;;  %v779_v11 = vld [vmem:[%s1001_s1 + $0x90] sm:$0xff]  }
   0x5   :  { %711 = vmatpush3.bf16.msra.mxu1 %v771_v3  ;;  %684 = vmatprep.subr.bf16.mxu0 %v772_v4  ;;  %v780_v12 = vld [vmem:[%s1001_s1 + $0x58] sm:$0xff]   ;;  %v784_v16 = vld [vmem:[%s1001_s1 + $0x60] sm:$0xff]   ;;  %v788_v20 = vld [vmem:[%s1001_s1 + $0x68] sm:$0xff]  }
   0x6   :  { %712 = vmatprep.subr.bf16.mxu1 %v773_v5  ;;  %v781_v13 = vld [vmem:[%s1001_s1 + $0xd8] sm:$0xff]   ;;  %v785_v17 = vld [vmem:[%s1001_s1 + $0xe0] sm:$0xff]   ;;  %v789_v21 = vld [vmem:[%s1001_s1 + $0xe8] sm:$0xff]  }
   0x7   :  { %v782_v14 = vld [vmem:[%s1001_s1 + $0x18] sm:$0xff]   ;;  %v786_v18 = vld [vmem:[%s1001_s1 + $0x20] sm:$0xff]   ;;  %v790_v22 = vld [vmem:[%s1001_s1 + $0x28] sm:$0xff]  }
   0x8   :  { %685 = vmatpush3.bf16.msra.mxu0 %v774_v6  ;;  %v783_v15 = vld [vmem:[%s1001_s1 + $0x98] sm:$0xff]   ;;  %v787_v19 = vld [vmem:[%s1001_s1 + $0xa0] sm:$0xff]   ;;  %v791_v23 = vld [vmem:[%s1001_s1 + $0xa8] sm:$0xff]  }
   0x9   :  { %713 = vmatpush3.bf16.msra.mxu1 %v775_v7  ;;  %686 = vmatprep.subr.bf16.mxu0 %v776_v8  ;;  %v792_v24 = vld [vmem:[%s1001_s1 + $0x70] sm:$0xff]   ;;  %v796_v28 = vld [vmem:[%s1001_s1 + $0x78] sm:$0xff]   ;;  %v805_v35 = vld [vmem:[%s1002_s0 + $0xc] ss:$20 sps:$4 sm:$0xff]  }
   0xa   :  { %714 = vmatprep.subr.bf16.mxu1 %v777_v9  ;;  %v793_v25 = vld [vmem:[%s1001_s1 + $0xf0] sm:$0xff]   ;;  %v797_v29 = vld [vmem:[%s1001_s1 + $0xf8] sm:$0xff]   ;;  %v806_v36 = vld [vmem:[%s1001_s1 + $0x100] sm:$0xff]   ;;  %492 = vmatprep.mubr.bf16.mxu1 %v805_v35 }
   0xb   :  { %v794_v26 = vld [vmem:[%s1001_s1 + $0x30] sm:$0xff]   ;;  %v798_v30 = vld [vmem:[%s1001_s1 + $0x38] sm:$0xff]   ;;  %v807_v37 = vld [vmem:[%s1001_s1 + $0x108] sm:$0xff]  }
   0xc   :  { %687 = vmatpush3.bf16.msra.mxu0 %v778_v10  ;;  %v795_v27 = vld [vmem:[%s1001_s1 + $0xb0] sm:$0xff]   ;;  %v799_v31 = vld [vmem:[%s1001_s1 + $0xb8] sm:$0xff]   ;;  %v811_v39 = vld [vmem:[%s1002_s0 + $0x2c] ss:$20 sps:$4 sm:$0xff]  }
   0xd   :  { %715 = vmatpush3.bf16.msra.mxu1 %v779_v11  ;;  %688 = vmatprep.subr.bf16.mxu0 %v780_v12  ;;  %v800_v32 = vld [vmem:[%s1002_s0] ss:$20 sps:$4 sm:$0xff]   ;;  %v802_v33 = vld [vmem:[%s1002_s0 + $0x4] ss:$20 sps:$4 sm:$0xff]   ;;  %v803_v34 = vld [vmem:[%s1002_s0 + $0x8] ss:$20 sps:$4 sm:$0xff]  }
   0xe   :  { %716 = vmatprep.subr.bf16.mxu1 %v781_v13  ;;  %443 = vmatprep.mubr.bf16.mxu0 %v802_v33  ;;  %v808_v38 = vld [vmem:[%s1001_s1 + $0x110] sm:$0xff]   ;;  %v809_v41 = vld [vmem:[%s1001_s1 + $0x118] sm:$0xff]   ;;  %v810_v45 = vld [vmem:[%s1001_s1 + $0x120] sm:$0xff]  }
   0xf   :  { %v813_v40 = vld [vmem:[%s1002_s0 + $0x34] ss:$20 sps:$4 sm:$0xff]   ;;  %v817_v43 = vld [vmem:[%s1002_s0 + $0x30] ss:$20 sps:$4 sm:$0xff]   ;;  %v819_v48 = vld [vmem:[%s1001_s1 + $0x138] sm:$0xff]  }
  0x10   :  { %689 = vmatpush3.bf16.msra.mxu0 %v782_v14  ;;  %v816_v42 = vld [vmem:[%s1002_s0 + $0x28] ss:$20 sps:$4 sm:$0xff]   ;;  %v820_v44 = vld [vmem:[%s1002_s0 + $0x10] ss:$20 sps:$4 sm:$0xff]   ;;  %v821_v49 = vld [vmem:[%s1002_s0 + $0x38] ss:$20 sps:$4 sm:$0xff]  }
  0x11   :  { %717 = vmatpush3.bf16.msra.mxu1 %v783_v15  ;;  %690 = vmatprep.subr.bf16.mxu0 %v784_v16  ;;  %v815_v46 = vld [vmem:[%s1001_s1 + $0x128] sm:$0xff]   ;;  %v818_v47 = vld [vmem:[%s1001_s1 + $0x130] sm:$0xff]   ;;  %v662_v15 = vld [vmem:[%s1003_s2] ss:$0 sm:$0xff] }
  0x12   :  { %718 = vmatprep.subr.bf16.mxu1 %v785_v17 }
  0x14   :  { %691 = vmatpush3.bf16.msra.mxu0 %v786_v18 }
  0x15   :  { %719 = vmatpush3.bf16.msra.mxu1 %v787_v19  ;;  %692 = vmatprep.subr.bf16.mxu0 %v788_v20 }
  0x16   :  { %720 = vmatprep.subr.bf16.mxu1 %v789_v21 }
  0x18   :  { %693 = vmatpush3.bf16.msra.mxu0 %v790_v22 }
  0x19   :  { %721 = vmatpush3.bf16.msra.mxu1 %v791_v23  ;;  %694 = vmatprep.subr.bf16.mxu0 %v792_v24 }
  0x1a   :  { %722 = vmatprep.subr.bf16.mxu1 %v793_v25 }
  0x1c   :  { %695 = vmatpush3.bf16.msra.mxu0 %v794_v26 }
  0x1d   :  { %723 = vmatpush3.bf16.msra.mxu1 %v795_v27  ;;  %696 = vmatprep.subr.bf16.mxu0 %v796_v28 }
  0x1e   :  { %724 = vmatprep.subr.bf16.mxu1 %v797_v29 }
  0x20   :  { %697 = vmatpush3.bf16.msra.mxu0 %v798_v30 }
  0x21   :  { %725 = vmatpush3.bf16.msra.mxu1 %v799_v31  ;;  %748 = vmatprep.subr.bf16.mxu0 %v806_v36 }
  0x23   :  { %444 = vmatmul.mubr.bf16.vlgmr.msra.gmra.mrb[0].mxu0 %v800_v32 }
  0x24   :  { %493 = vmatmul.mubr.bf16.vlgmr.msra.gmra.mrb[0].mxu1 %v803_v34  ;;  %749 = vmatpush3.bf16.msra.mxu0 %v806_v36 }
  0x25   :  { %750 = vmatprep.subr.bf16.mxu0 %v807_v37  ;;  %451 = vmatprep.mubr.bf16.mxu0 %v811_v39 }
  0x26   :  { %500 = vmatprep.mubr.bf16.mxu1 %v813_v40 }
  0x28   :  { %751 = vmatpush3.bf16.msra.mxu0 %v807_v37 }
  0x29   :  { %752 = vmatprep.subr.bf16.mxu0 %v808_v38 }
  0x2b   :  { %452 = vmatmul.mubr.bf16.gmra.mrb[4].mxu0 %v816_v42 }
  0x2c   :  { %501 = vmatmul.mubr.bf16.gmra.mrb[4].mxu1 %v817_v43  ;;  %753 = vmatpush3.bf16.msra.mxu0 %v808_v38 }
  0x2d   :  { %754 = vmatprep.subr.bf16.mxu0 %v809_v41  ;;  %764 = vmatprep.mubr.bf16.mxu0 %v820_v44 }
  0x30   :  { %755 = vmatpush3.bf16.msra.mxu0 %v809_v41 }
  0x31   :  { %756 = vmatprep.subr.bf16.mxu0 %v810_v45 }
  0x34   :  { %757 = vmatpush3.bf16.msra.mxu0 %v810_v45 }
  0x35   :  { %758 = vmatprep.subr.bf16.mxu0 %v815_v46 }
  0x38   :  { %759 = vmatpush3.bf16.msra.mxu0 %v815_v46 }
  0x39   :  { %760 = vmatprep.subr.bf16.mxu0 %v818_v47 }
  0x3c   :  { %761 = vmatpush3.bf16.msra.mxu0 %v818_v47 }
  0x3d   :  { %762 = vmatprep.subr.bf16.mxu0 %v819_v48 }
  0x40   :  { %763 = vmatpush3.bf16.msra.mxu0 %v819_v48 }
  0x43   :  { %765 = vmatmul.mubr.bf16.vlgmr.msra.gmra.mrb[8].mxu0 %v821_v49 }
  0xf6   :  { %v698_v50 = vpop.f32.mrb[0].mxu0 }
  0xf7   :  { %v726_v51 = vpop.f32.mrb[0].mxu1  ;;  %v699_v52 = vpop.f32.mrb[1].mxu0 }
  0xf8   :  { %v700_v53 = vadd.f32 %v699_v52, %v698_v50  ;;  %v727_v54 = vpop.f32.mrb[1].mxu1  ;;  %v701_v55 = vpop.f32.mrb[2].mxu0 }
  0xf9   :  { %v728_v56 = vadd.f32 %v727_v54, %v726_v51  ;;  %v729_v57 = vpop.f32.mrb[2].mxu1  ;;  %v702_v58 = vpop.f32.mrb[3].mxu0 }
  0xfa   :  { %v703_v59 = vadd.f32 %v702_v58, %v701_v55  ;;  %v730_v60 = vpop.f32.mrb[3].mxu1 }
  0xfb   :  { %v731_v61 = vadd.f32 %v730_v60, %v729_v57  ;;  %v495_v62 = vadd.f32 %v728_v56, %v700_v53 }
  0xfd   :  { %v498_v63 = vadd.f32 %v731_v61, %v703_v59 }
  0xfe   :  { %v704_v0 = vpop.f32.mrb[4].mxu0 }
  0xff   :  { %v732_v1 = vpop.f32.mrb[4].mxu1  ;;  %v705_v2 = vpop.f32.mrb[5].mxu0 }
 0x100   :  { %v706_v3 = vadd.f32 %v705_v2, %v704_v0  ;;  %v733_v4 = vpop.f32.mrb[5].mxu1  ;;  %v707_v5 = vpop.f32.mrb[6].mxu0 }
 0x101   :  { %v734_v6 = vadd.f32 %v733_v4, %v732_v1  ;;  %v735_v7 = vpop.f32.mrb[6].mxu1  ;;  %v708_v8 = vpop.f32.mrb[7].mxu0 }
 0x102   :  { %v709_v9 = vadd.f32 %v708_v8, %v707_v5  ;;  %v736_v10 = vpop.f32.mrb[7].mxu1 }
 0x103   :  { %v737_v11 = vadd.f32 %v736_v10, %v735_v7  ;;  %v503_v12 = vadd.f32 %v734_v6, %v706_v3 }
 0x105   :  { %v506_v13 = vadd.f32 %v737_v11, %v709_v9 }
 0x116   :  { %v766_v14 = vpop.f32.mrb[8].mxu0 }
 0x117   :  { %v552_v16 = vadd.f32 %v766_v14, %v503_v12  ;;  %v543_v17 = vpop.f32.mrb[9].mxu0 }
 0x118   :  { %v544_v18 = vadd.f32 %v543_v17, %v495_v62  ;;  %v767_v19 = vpop.f32.mrb[10].mxu0 }
 0x119   :  { %v582_v20 = vadd.f32 %v662_v15, %v552_v16  ;;  %v555_v21 = vadd.f32 %v767_v19, %v506_v13  ;;  %v546_v22 = vpop.f32.mrb[11].mxu0 }
 0x11a   :  { %v580_v23 = vadd.f32 %v662_v15, %v544_v18  ;;  %v547_v24 = vadd.f32 %v546_v22, %v498_v63 }
 0x11b   :  { %v583_v25 = vadd.f32 %v662_v15, %v555_v21  ;;  %v586_v27 = vmax.f32 %v582_v20, 0.0 }
 0x11c   :  { %v581_v26 = vadd.f32 %v662_v15, %v547_v24  ;;  %v584_v29 = vmax.f32 %v580_v23, 0.0 }
 0x11d   :  { %v587_v28 = vmax.f32 %v583_v25, 0.0 }
 0x11e   :  { %v585_v30 = vmax.f32 %v581_v26, 0.0 }
 0x11f   :  { %v679_v31 = vpack.c.bf16 %v587_v28, %v586_v27 }
 0x120   :  { %v674_v32 = vpack.c.bf16 %v585_v30, %v584_v29 }
 0x121   :  { %681 = vst [vmem:[%s1004_s3 + $0x8] sm:$0xff] %v679_v31  }
 0x122   :  { %675 = vst [vmem:[%s1004_s3] sm:$0xff] %v674_v32  }

// kernel: resnet34_forward.45
= control target key start
LH: loop header
LB: loop body
LE: loop exit
PB: predicated region body
PF: predicated region fallthrough
CT: control target
= control target key end

     0   :  { %s335_s1 = inlined_call_operand.vmem [shape: bf16[128,128], index: 1, kind: input, shape index: {}]   ;;  %s336_s0 = inlined_call_operand.vmem [shape: bf16[32,128], index: 0, kind: input, shape index: {}]   ;;  %s337_s2 = inlined_call_operand.vmem [shape: f32[1,128], index: 2, kind: input, shape index: {}]   ;;  %s338_s3 = inlined_call_operand.vmem [shape: bf16[32,128], index: 3, kind: output, shape index: {}]  }
   0x1   :  { %v266_v0 = vld [vmem:[%s335_s1] sm:$0xff]   ;;  %v267_v1 = vld [vmem:[%s335_s1 + $0x8] sm:$0xff]   ;;  %v268_v2 = vld [vmem:[%s335_s1 + $0x10] sm:$0xff]  }
   0x2   :  { %246 = vmatprep.subr.bf16.mxu0 %v266_v0  ;;  %v269_v3 = vld [vmem:[%s335_s1 + $0x18] sm:$0xff]   ;;  %v274_v4 = vld [vmem:[%s336_s0] sm:$0xff]   ;;  %v271_v6 = vld [vmem:[%s335_s1 + $0x28] sm:$0xff]  }
   0x3   :  { %247 = vmatpush3.bf16.msra.mxu0 %v266_v0  ;;  %262 = vmatprep.mubr.bf16.mxu0 %v274_v4  ;;  %v270_v5 = vld [vmem:[%s335_s1 + $0x20] sm:$0xff]   ;;  %v272_v7 = vld [vmem:[%s335_s1 + $0x30] sm:$0xff]   ;;  %v273_v8 = vld [vmem:[%s335_s1 + $0x38] sm:$0xff]  }
   0x4   :  { %248 = vmatprep.subr.bf16.mxu0 %v267_v1  ;;  %v275_v9 = vld [vmem:[%s336_s0 + $0x8] sm:$0xff]   ;;  %v216_v11 = vld [vmem:[%s337_s2] ss:$0 sm:$0xff] }
   0x7   :  { %249 = vmatpush3.bf16.msra.mxu0 %v267_v1 }
   0x8   :  { %250 = vmatprep.subr.bf16.mxu0 %v268_v2 }
   0xb   :  { %251 = vmatpush3.bf16.msra.mxu0 %v268_v2 }
   0xc   :  { %252 = vmatprep.subr.bf16.mxu0 %v269_v3 }
   0xf   :  { %253 = vmatpush3.bf16.msra.mxu0 %v269_v3 }
  0x10   :  { %254 = vmatprep.subr.bf16.mxu0 %v270_v5 }
  0x13   :  { %255 = vmatpush3.bf16.msra.mxu0 %v270_v5 }
  0x14   :  { %256 = vmatprep.subr.bf16.mxu0 %v271_v6 }
  0x17   :  { %257 = vmatpush3.bf16.msra.mxu0 %v271_v6 }
  0x18   :  { %258 = vmatprep.subr.bf16.mxu0 %v272_v7 }
  0x1b   :  { %259 = vmatpush3.bf16.msra.mxu0 %v272_v7 }
  0x1c   :  { %260 = vmatprep.subr.bf16.mxu0 %v273_v8 }
  0x1f   :  { %261 = vmatpush3.bf16.msra.mxu0 %v273_v8 }
  0x22   :  { %263 = vmatmul.mubr.bf16.vlgmr.msra.gmra.mrb[0].mxu0 %v275_v9 }
  0xf5   :  { %v264_v10 = vpop.f32.mrb[0].mxu0 }
  0xf6   :  { %v141_v12 = vpop.f32.mrb[1].mxu0  ;;  %v180_v14 = vadd.f32 %v264_v10, %v216_v11 }
  0xf7   :  { %v265_v13 = vpop.f32.mrb[2].mxu0  ;;  %v178_v17 = vadd.f32 %v216_v11, %v141_v12 }
  0xf8   :  { %v181_v15 = vadd.f32 %v265_v13, %v216_v11  ;;  %v144_v16 = vpop.f32.mrb[3].mxu0 }
  0xf9   :  { %v179_v18 = vadd.f32 %v216_v11, %v144_v16 }
  0xfa   :  { %v233_v19 = vpack.c.bf16 %v181_v15, %v180_v14 }
  0xfb   :  { %v228_v20 = vpack.c.bf16 %v179_v18, %v178_v17 }
  0xfc   :  { %235 = vst [vmem:[%s338_s3 + $0x8] sm:$0xff] %v233_v19  }
  0xfd   :  { %229 = vst [vmem:[%s338_s3] sm:$0xff] %v228_v20  }

// kernel: resnet34_forward.46
= control target key start
LH: loop header
LB: loop body
LE: loop exit
PB: predicated region body
PF: predicated region fallthrough
CT: control target
= control target key end

     0   :  { %s1176_s15 = smov 0   ;;  %s1178_s16 = smov 0   ;;  %s1292_s0 = inlined_call_operand.vmem [shape: bf16[32,1152], index: 0, kind: input, shape index: {}]   ;;  %s1293_s1 = inlined_call_operand.vmem [shape: bf16[1152,128], index: 1, kind: input, shape index: {}]   ;;  %s1294_s2 = inlined_call_operand.vmem [shape: f32[1,128], index: 2, kind: input, shape index: {}]   ;;  %s1295_s3 = inlined_call_operand.vmem [shape: bf16[32,128], index: 3, kind: input, shape index: {}]   ;;  %s1296_s4 = inlined_call_operand.vmem [shape: bf16[32,128], index: 4, kind: output, shape index: {}]  }
   0x1   :  { %s1180_s17 = smov 0   ;;  %s1182_s18 = smov 0  }
   0x2   :  { %s1184_s19 = smov 0  }
   0x3 LB: > { %s26_s20 = sadd.s32 1, %s1144_s18  ;;  %p49_p1 = scmp.ne.s32.totalorder %s1136_s16, %s1132_s15  ;;  %s1148_s19 = sphi %s1184_s19, %s14_s19   ;;  %s1144_s18 = sphi %s1182_s18, %s1300_s18   ;;  %s1140_s17 = sphi %s1180_s17, %s1299_s17   ;;  %s1136_s16 = sphi %s1178_s16, %s1298_s16   ;;  %s1132_s15 = sphi %s1176_s15, %s1297_s15  }
   0x4   : > { %p27_p0 = scmp.ge.s32.totalorder %s26_s20, 3  ;;  %p50_p2 = scmp.eq.s32.totalorder %s1148_s19, 0 }
   0x5   : > { %s42_s22 = sadd.s32 1, %s1136_s16  ;;  %p899_p5 = scmp.ge.s32.totalorder %s1148_s19, 3 }
   0x6   : > { %s1302_s20 = smov (%p27_p0, %s26_s20), 0  ;;  %p51_p3 = por %p50_p2, %p49_p1 }
   0x7   : > { %s38_s21 = ssub.s32 %s1144_s18, %s1302_s20  ;;  %203 = sbr.rel (%p899_p5) target bundleno = 23 (0x17), region = 24 }
   0x8   : > { %p40_p4 = scmp.eq.s32.totalorder %s38_s21, 0 }
   0xa   : > { %s1211_s23 = scalar_select %p40_p4, %s1136_s16, %s42_s22  }
   0xe   : > { %206 = sbr.rel (!%p51_p3) target bundleno = 23 (0x17), region = 28  ;;  %s208_s24 = sand.u32 (%p51_p3), 1, %s1136_s16  }
   0xf   : > { %s952_s25 = smul.u32 (%p51_p3), 12, %s1144_s18 }
  0x10   : > { %s1035_s26 = smul.u32 (%p51_p3), 48, %s208_s24 }
  0x11   : > { %s216_s29 = scalar_lea.vmem (%p51_p3), %s1292_s0, %s952_s25 }
  0x12   : > { %v231_v0 = vld [vmem:[%s216_s29] sm:$0xff] (%p51_p3)  ;;  %v235_v2 = vld [vmem:[%s216_s29 + $0x48] sm:$0xff] (%p51_p3)  ;;  %s210_s30 = scalar_lea.vmem (%p51_p3), [#allocation3], %s1035_s26  ;;  %v905_v6 = vld [vmem:[%s216_s29 + $0x50] sm:$0xf] (%p51_p3) }
  0x13   : > { %v233_v1 = vld [vmem:[%s216_s29 + $0x24] sm:$0xff] (%p51_p3)  ;;  %232 = vst [vmem:[%s210_s30] sm:$0xff] (%p51_p3), %v231_v0  ;;  %236 = vst [vmem:[%s210_s30 + $0x18] sm:$0xff] (%p51_p3), %v235_v2  ;;  %v237_v3 = vld [vmem:[%s216_s29 + $0x6c] sm:$0xff] (%p51_p3) }
  0x14   : > { %234 = vst [vmem:[%s210_s30 + $0xc] sm:$0xff] (%p51_p3), %v233_v1  ;;  %v901_v4 = vld [vmem:[%s216_s29 + $0x8] sm:$0xf] (%p51_p3)  ;;  %v903_v5 = vld [vmem:[%s216_s29 + $0x2c] sm:$0xf] (%p51_p3)  ;;  %238 = vst [vmem:[%s210_s30 + $0x24] sm:$0xff] (%p51_p3), %v237_v3 }
  0x15   : > { %902 = vst [vmem:[%s210_s30 + $0x8] sm:$0xf] %v901_v4  ;;  %904 = vst [vmem:[%s210_s30 + $0x14] sm:$0xf] %v903_v5  ;;  %v907_v7 = vld [vmem:[%s216_s29 + $0x74] sm:$0xf] }
  0x16   : > { %906 = vst [vmem:[%s210_s30 + $0x20] sm:$0xf] %v905_v6  ;;  %908 = vst [vmem:[%s210_s30 + $0x2c] sm:$0xf] %v907_v7 }
  0x17 PF: > { %p909_p6 = scmp.ge.s32.totalorder %s1148_s19, 1  ;;  %p270_p7 = scmp.lt.s32.totalorder %s1148_s19, 4 }
  0x19   : > { %p271_p8 = pnand %p909_p6, %p270_p7 }
  0x1a   : > { %s277_s5 = sand.u32 (!%p271_p8), 1, %s1132_s15   ;;  %s326_s6 = smul.u32 (!%p271_p8), 48, %s1140_s17 }
  0x1b   : > { %274 = sbr.rel (%p271_p8) target bundleno = 320 (0x140), region = 58  ;;  %p911_p10 = scmp.ne.s32.totalorder (!%p271_p8), %s1140_s17, 0 }
  0x1c   : > { %s1036_s7 = smul.u32 (!%p271_p8), 48, %s277_s5  ;;  %p327_p9 = scmp.lt.s32.totalorder (!%p271_p8), %s326_s6, 143 }
  0x1e   : > { %s1228_s12 = scalar_lea.vmem (!%p271_p8), [#allocation3], %s1036_s7 }
  0x22   : > { %s1304_s6 = smov (!%p327_p9, %s326_s6), 143  ;;  %360 = sbr.rel (%p911_p10) target bundleno = 41 (0x29), region = 66 }
  0x23   : > { %s910_s8 = sshll.u32 %s1304_s6, 2  ;;  %v1150_v8 = vmov (!%p911_p10), 0.0  }
  0x24   : > { %s1226_s11 = scalar_lea.vmem %s1293_s1, %s910_s8  ;;  %361 = vst [vmem:[#allocation2] sm:$0xff] (!%p911_p10), %v1150_v8  ;;  %362 = vst [vmem:[#allocation2 + $0x8] sm:$0xff] (!%p911_p10), %v1150_v8 }
  0x25   : > { %363 = vst [vmem:[#allocation2 + $0x10] sm:$0xff] (!%p911_p10), %v1150_v8  ;;  %364 = vst [vmem:[#allocation2 + $0x18] sm:$0xff] (!%p911_p10), %v1150_v8 }
  0x29 PF: > { %v1078_v9 = vld [vmem:[%s1226_s11 + $0x40] sm:$0xff]   ;;  %v1081_v12 = vld [vmem:[%s1226_s11 + $0x48] sm:$0xff]   ;;  %v1084_v15 = vld [vmem:[%s1226_s11 + $0x50] sm:$0xff]   ;;  %p942_p11 = scmp.ne.s32.totalorder %s1140_s17, 2 }
  0x2a   : > { %v1079_v10 = vld [vmem:[%s1226_s11] sm:$0xff]   ;;  %977 = vmatprep.subr.bf16.mxu0 %v1078_v9  ;;  %v1082_v13 = vld [vmem:[%s1226_s11 + $0x8] sm:$0xff]   ;;  %v1085_v16 = vld [vmem:[%s1226_s11 + $0x10] sm:$0xff]  }
  0x2b   : > { %v1080_v11 = vld [vmem:[%s1226_s11 + $0x80] sm:$0xff]   ;;  %978 = vmatpush3.bf16.msra.mxu0 %v1079_v10  ;;  %v1083_v14 = vld [vmem:[%s1226_s11 + $0x88] sm:$0xff]   ;;  %v1086_v17 = vld [vmem:[%s1226_s11 + $0x90] sm:$0xff]  }
  0x2c   : > { %1015 = vmatprep.subr.bf16.mxu1 %v1080_v11  ;;  %979 = vmatprep.subr.bf16.mxu0 %v1081_v12  ;;  %v1087_v18 = vld [vmem:[%s1226_s11 + $0x58] sm:$0xff]   ;;  %v1090_v21 = vld [vmem:[%s1226_s11 + $0x60] sm:$0xff]   ;;  %v1093_v24 = vld [vmem:[%s1226_s11 + $0x68] sm:$0xff]  }
  0x2d   : > { %1016 = vmatpush3.bf16.msra.mxu1 %v1080_v11  ;;  %v1088_v19 = vld [vmem:[%s1226_s11 + $0x18] sm:$0xff]   ;;  %v1092_v22 = vld [vmem:[%s1226_s11 + $0xa0] sm:$0xff]   ;;  %v1095_v25 = vld [vmem:[%s1226_s11 + $0xa8] sm:$0xff]  }
  0x2e   : > { %1017 = vmatprep.subr.bf16.mxu1 %v1083_v14  ;;  %v1089_v20 = vld [vmem:[%s1226_s11 + $0x98] sm:$0xff]   ;;  %v1091_v23 = vld [vmem:[%s1226_s11 + $0x20] sm:$0xff]   ;;  %v1094_v26 = vld [vmem:[%s1226_s11 + $0x28] sm:$0xff]  }
  0x2f   : > { %980 = vmatpush3.bf16.msra.mxu0 %v1082_v13  ;;  %v1096_v27 = vld [vmem:[%s1226_s11 + $0x70] sm:$0xff]   ;;  %v1099_v30 = vld [vmem:[%s1226_s11 + $0x78] sm:$0xff]   ;;  %v365_v45 = vld [vmem:[#allocation2] sm:$0xff] }
  0x30   : > { %981 = vmatprep.subr.bf16.mxu0 %v1084_v15  ;;  %v1097_v28 = vld [vmem:[%s1226_s11 + $0x30] sm:$0xff]   ;;  %v1101_v31 = vld [vmem:[%s1226_s11 + $0xb8] sm:$0xff]   ;;  %v366_v50 = vld [vmem:[#allocation2 + $0x8] sm:$0xff] }
  0x31   : > { %1018 = vmatpush3.bf16.msra.mxu1 %v1083_v14  ;;  %v1098_v29 = vld [vmem:[%s1226_s11 + $0xb0] sm:$0xff]   ;;  %v1100_v34 = vld [vmem:[%s1226_s11 + $0x38] sm:$0xff]   ;;  %v943_v5 = vld [vmem:[%s1294_s2] ss:$0 sm:$0xff] (!%p942_p11) }
  0x32   : > { %1019 = vmatprep.subr.bf16.mxu1 %v1086_v17  ;;  %v1104_v32 = vld [vmem:[%s1228_s12 + $0x4] ss:$12 sps:$4 sm:$0xff]   ;;  %v1105_v33 = vld [vmem:[%s1228_s12 + $0x8] ss:$12 sps:$4 sm:$0xff]   ;;  %v1102_v35 = vld [vmem:[%s1228_s12] ss:$12 sps:$4 sm:$0xff]  }
  0x33   : > { %982 = vmatpush3.bf16.msra.mxu0 %v1085_v16  ;;  %633 = vmatprep.mubr.bf16.mxu0 %v1104_v32  ;;  %v1107_v36 = vld [vmem:[%s1228_s12 + $0x1c] ss:$12 sps:$4 sm:$0xff]   ;;  %v1106_v37 = vld [vmem:[%s1228_s12 + $0x20] ss:$12 sps:$4 sm:$0xff]   ;;  %v1109_v38 = vld [vmem:[%s1228_s12 + $0x18] ss:$12 sps:$4 sm:$0xff]  }
  0x34   : > { %983 = vmatprep.subr.bf16.mxu0 %v1087_v18  ;;  %1031 = vmatprep.mubr.bf16.mxu1 %v1105_v33  ;;  %v367_v59 = vld [vmem:[#allocation2 + $0x10] sm:$0xff]  ;;  %v368_v63 = vld [vmem:[#allocation2 + $0x18] sm:$0xff]  ;;  %v958_v8 = vld [vmem:[%s1295_s3] sm:$0xff] (!%p942_p11)  }
  0x35   : > { %1020 = vmatpush3.bf16.msra.mxu1 %v1086_v17  ;;  %v959_v11 = vunpack.c.l.bf16 (!%p942_p11), %v958_v8  ;;  %v960_v12 = vunpack.c.h.bf16 (!%p942_p11), %v958_v8  ;;  %v975_v15 = vld [vmem:[%s1295_s3 + $0x8] sm:$0xff] (!%p942_p11)  }
  0x36   : > { %1021 = vmatprep.subr.bf16.mxu1 %v1089_v20  ;;  %v963_v16 = vunpack.c.l.bf16 (!%p942_p11), %v975_v15  ;;  %v964_v17 = vunpack.c.h.bf16 (!%p942_p11), %v975_v15 }
  0x37   : > { %984 = vmatpush3.bf16.msra.mxu0 %v1088_v19 }
  0x38   : > { %985 = vmatprep.subr.bf16.mxu0 %v1090_v21 }
  0x39   : > { %1022 = vmatpush3.bf16.msra.mxu1 %v1089_v20 }
  0x3a   : > { %1023 = vmatprep.subr.bf16.mxu1 %v1092_v22 }
  0x3b   : > { %986 = vmatpush3.bf16.msra.mxu0 %v1091_v23 }
  0x3c   : > { %987 = vmatprep.subr.bf16.mxu0 %v1093_v24 }
  0x3d   : > { %1024 = vmatpush3.bf16.msra.mxu1 %v1092_v22 }
  0x3e   : > { %1025 = vmatprep.subr.bf16.mxu1 %v1095_v25 }
  0x3f   : > { %988 = vmatpush3.bf16.msra.mxu0 %v1094_v26 }
  0x40   : > { %989 = vmatprep.subr.bf16.mxu0 %v1096_v27 }
  0x41   : > { %1026 = vmatpush3.bf16.msra.mxu1 %v1095_v25 }
  0x42   : > { %1027 = vmatprep.subr.bf16.mxu1 %v1098_v29 }
  0x43   : > { %990 = vmatpush3.bf16.msra.mxu0 %v1097_v28 }
  0x44   : > { %991 = vmatprep.subr.bf16.mxu0 %v1099_v30 }
  0x45   : > { %1028 = vmatpush3.bf16.msra.mxu1 %v1098_v29 }
  0x46   : > { %1029 = vmatprep.subr.bf16.mxu1 %v1101_v31 }
  0x47   : > { %992 = vmatpush3.bf16.msra.mxu0 %v1100_v34 }
  0x49   : > { %1030 = vmatpush3.bf16.msra.mxu1 %v1101_v31 }
  0x4a   : > { %634 = vmatmul.mubr.bf16.vlgmr.msra.gmra.mrb[0].mxu0 %v1102_v35 }
  0x4b   : > { %641 = vmatprep.mubr.bf16.mxu0 %v1107_v36 }
  0x4c   : > { %1032 = vmatmul.mubr.bf16.vlgmr.msra.gmra.mrb[0].mxu1 %v1106_v37 }
  0x52   : > { %642 = vmatmul.mubr.bf16.gmra.mrb[4].mxu0 %v1109_v38 }
 0x11d   : > { %v993_v39 = vpop.f32.mrb[0].mxu0 }
 0x11e   : > { %v994_v40 = vpop.f32.mrb[1].mxu0 }
 0x11f   : > { %v995_v41 = vadd.f32 %v994_v40, %v993_v39  ;;  %v996_v42 = vpop.f32.mrb[2].mxu0  ;;  %v1033_v43 = vpop.f32.mrb[0].mxu1 }
 0x120   : > { %v997_v44 = vpop.f32.mrb[3].mxu0  ;;  %v684_v46 = vpop.f32.mrb[1].mxu1 }
 0x121   : > { %v998_v47 = vadd.f32 %v997_v44, %v996_v42  ;;  %v685_v48 = vadd.f32 %v995_v41, %v684_v46  ;;  %v1034_v49 = vpop.f32.mrb[2].mxu1 }
 0x122   : > { %v687_v51 = vpop.f32.mrb[3].mxu1 }
 0x123   : > { %v699_v52 = vadd.f32 %v685_v48, %v365_v45  ;;  %v688_v53 = vadd.f32 %v998_v47, %v687_v51 }
 0x125   : > { %703 = vst [vmem:[#allocation2] sm:$0xff] %v699_v52  ;;  %v700_v54 = vadd.f32 %v688_v53, %v366_v50  ;;  %v999_v55 = vpop.f32.mrb[4].mxu0 }
 0x126   : > { %v1000_v56 = vpop.f32.mrb[5].mxu0 }
 0x127   : > { %704 = vst [vmem:[#allocation2 + $0x8] sm:$0xff] %v700_v54  ;;  %v1001_v57 = vadd.f32 %v1000_v56, %v999_v55  ;;  %v1002_v58 = vpop.f32.mrb[6].mxu0 }
 0x128   : > { %v1003_v60 = vpop.f32.mrb[7].mxu0 }
 0x129   : > { %v693_v61 = vadd.f32 %v1033_v43, %v1001_v57  ;;  %v1004_v62 = vadd.f32 %v1003_v60, %v1002_v58  ;;  %710 = sbr.rel (%p942_p11) target bundleno = 320 (0x140), region = 70 }
 0x12b   : > { %v701_v0 = vadd.f32 %v693_v61, %v367_v59  ;;  %v696_v1 = vadd.f32 %v1034_v49, %v1004_v62 }
 0x12c   : > { %v711_v3 = vld [vmem:[#allocation2] sm:$0xff] (!%p942_p11) }
 0x12d   : > { %705 = vst [vmem:[#allocation2 + $0x10] sm:$0xff] %v701_v0  ;;  %v702_v2 = vadd.f32 %v696_v1, %v368_v63  ;;  %v722_v6 = vadd.f32 (!%p942_p11), %v943_v5, %v711_v3 }
 0x12e   : > { %v712_v4 = vld [vmem:[#allocation2 + $0x8] sm:$0xff] (!%p942_p11) }
 0x12f   : > { %706 = vst [vmem:[#allocation2 + $0x18] sm:$0xff] %v702_v2  ;;  %v723_v7 = vadd.f32 (!%p942_p11), %v943_v5, %v712_v4  ;;  %v734_v18 = vadd.f32 (!%p942_p11), %v959_v11, %v722_v6 }
 0x131   : > { %v735_v19 = vadd.f32 %v960_v12, %v723_v7  ;;  %v738_v22 = vmax.f32 %v734_v18, 0.0 }
 0x133   : > { %v739_v23 = vmax.f32 %v735_v19, 0.0 }
 0x134   : > { %v713_v9 = vld [vmem:[#allocation2 + $0x10] sm:$0xff] }
 0x135   : > { %v724_v13 = vadd.f32 %v943_v5, %v713_v9  ;;  %v968_v26 = vpack.c.bf16 %v739_v23, %v738_v22 }
 0x136   : > { %v714_v10 = vld [vmem:[#allocation2 + $0x18] sm:$0xff] }
 0x137   : > { %v725_v14 = vadd.f32 %v943_v5, %v714_v10  ;;  %v736_v20 = vadd.f32 %v963_v16, %v724_v13  ;;  %969 = vst [vmem:[%s1296_s4] sm:$0xff] %v968_v26  }
 0x139   : > { %v737_v21 = vadd.f32 %v964_v17, %v725_v14  ;;  %v740_v24 = vmax.f32 %v736_v20, 0.0 }
 0x13b   : > { %v741_v25 = vmax.f32 %v737_v21, 0.0 }
 0x13d   : > { %v973_v27 = vpack.c.bf16 %v741_v25, %v740_v24 }
 0x13f   : > { %976 = vst [vmem:[%s1296_s4 + $0x8] sm:$0xff] %v973_v27  }
 0x140 PF: > { %s14_s19 = sadd.s32 1, %s1148_s19   ;;  %s1297_s15 = smov %s1136_s16 }
 0x141   : > { %p11_p12 = scmp.ge.s32.totalorder %s14_s19, 5   ;;  %s1298_s16 = smov %s1211_s23 }
 0x142   : > { %s1299_s17 = smov %s1144_s18  ;;  %s1300_s18 = smov %s1302_s20 }
 0x143   :  { %13 = sbr.rel (!%p11_p12) target bundleno = 3 (0x3), region = 120 }

// kernel: resnet34_forward.47
= control target key start
LH: loop header
LB: loop body
LE: loop exit
PB: predicated region body
PF: predicated region fallthrough
CT: control target
= control target key end

     0   :  { %s1071_s12 = smov 0   ;;  %s1073_s13 = smov 0   ;;  %s1181_s0 = inlined_call_operand.vmem [shape: bf16[32,1152], index: 0, kind: input, shape index: {}]   ;;  %s1182_s1 = inlined_call_operand.vmem [shape: bf16[1152,128], index: 1, kind: input, shape index: {}]   ;;  %s1183_s2 = inlined_call_operand.vmem [shape: f32[1,128], index: 2, kind: input, shape index: {}]   ;;  %s1184_s3 = inlined_call_operand.vmem [shape: bf16[32,128], index: 3, kind: output, shape index: {}]  }
   0x1   :  { %s1075_s14 = smov 0   ;;  %s1077_s15 = smov 0  }
   0x2   :  { %s1079_s16 = smov 0  }
   0x3 LB: > { %s25_s17 = sadd.s32 1, %s1044_s15  ;;  %p48_p1 = scmp.ne.s32.totalorder %s1036_s13, %s1032_s12  ;;  %s1048_s16 = sphi %s1079_s16, %s13_s16   ;;  %s1044_s15 = sphi %s1077_s15, %s1188_s15   ;;  %s1040_s14 = sphi %s1075_s14, %s1187_s14   ;;  %s1036_s13 = sphi %s1073_s13, %s1186_s13   ;;  %s1032_s12 = sphi %s1071_s12, %s1185_s12  }
   0x4   : > { %p26_p0 = scmp.ge.s32.totalorder %s25_s17, 3  ;;  %p49_p2 = scmp.eq.s32.totalorder %s1048_s16, 0 }
   0x5   : > { %s41_s19 = sadd.s32 1, %s1036_s13  ;;  %p808_p5 = scmp.ge.s32.totalorder %s1048_s16, 3 }
   0x6   : > { %s1190_s17 = smov (%p26_p0, %s25_s17), 0  ;;  %p50_p3 = por %p49_p2, %p48_p1 }
   0x7   : > { %s37_s18 = ssub.s32 %s1044_s15, %s1190_s17  ;;  %162 = sbr.rel (%p808_p5) target bundleno = 23 (0x17), region = 20 }
   0x8   : > { %p39_p4 = scmp.eq.s32.totalorder %s37_s18, 0 }
   0xa   : > { %s1106_s20 = scalar_select %p39_p4, %s1036_s13, %s41_s19  }
   0xe   : > { %165 = sbr.rel (!%p50_p3) target bundleno = 23 (0x17), region = 24  ;;  %s167_s21 = sand.u32 (%p50_p3), 1, %s1036_s13  }
   0xf   : > { %s861_s22 = smul.u32 (%p50_p3), 12, %s1044_s15 }
  0x10   : > { %s935_s23 = smul.u32 (%p50_p3), 48, %s167_s21 }
  0x11   : > { %s175_s26 = scalar_lea.vmem (%p50_p3), %s1181_s0, %s861_s22 }
  0x12   : > { %v190_v0 = vld [vmem:[%s175_s26] sm:$0xff] (%p50_p3)  ;;  %v194_v2 = vld [vmem:[%s175_s26 + $0x48] sm:$0xff] (%p50_p3)  ;;  %s169_s27 = scalar_lea.vmem (%p50_p3), [#allocation3], %s935_s23  ;;  %v814_v6 = vld [vmem:[%s175_s26 + $0x50] sm:$0xf] (%p50_p3) }
  0x13   : > { %v192_v1 = vld [vmem:[%s175_s26 + $0x24] sm:$0xff] (%p50_p3)  ;;  %191 = vst [vmem:[%s169_s27] sm:$0xff] (%p50_p3), %v190_v0  ;;  %195 = vst [vmem:[%s169_s27 + $0x18] sm:$0xff] (%p50_p3), %v194_v2  ;;  %v196_v3 = vld [vmem:[%s175_s26 + $0x6c] sm:$0xff] (%p50_p3) }
  0x14   : > { %193 = vst [vmem:[%s169_s27 + $0xc] sm:$0xff] (%p50_p3), %v192_v1  ;;  %v810_v4 = vld [vmem:[%s175_s26 + $0x8] sm:$0xf] (%p50_p3)  ;;  %v812_v5 = vld [vmem:[%s175_s26 + $0x2c] sm:$0xf] (%p50_p3)  ;;  %197 = vst [vmem:[%s169_s27 + $0x24] sm:$0xff] (%p50_p3), %v196_v3 }
  0x15   : > { %811 = vst [vmem:[%s169_s27 + $0x8] sm:$0xf] %v810_v4  ;;  %813 = vst [vmem:[%s169_s27 + $0x14] sm:$0xf] %v812_v5  ;;  %v816_v7 = vld [vmem:[%s175_s26 + $0x74] sm:$0xf] }
  0x16   : > { %815 = vst [vmem:[%s169_s27 + $0x20] sm:$0xf] %v814_v6  ;;  %817 = vst [vmem:[%s169_s27 + $0x2c] sm:$0xf] %v816_v7 }
  0x17 PF: > { %p818_p6 = scmp.ge.s32.totalorder %s1048_s16, 1  ;;  %p229_p7 = scmp.lt.s32.totalorder %s1048_s16, 4 }
  0x19   : > { %p230_p8 = pnand %p818_p6, %p229_p7 }
  0x1a   : > { %s236_s28 = sand.u32 (!%p230_p8), 1, %s1032_s12   ;;  %s275_s29 = smul.u32 (!%p230_p8), 48, %s1040_s14 }
  0x1b   : > { %233 = sbr.rel (%p230_p8) target bundleno = 318 (0x13e), region = 54  ;;  %p820_p10 = scmp.ne.s32.totalorder (!%p230_p8), %s1040_s14, 0 }
  0x1c   : > { %s936_s30 = smul.u32 (!%p230_p8), 48, %s236_s28  ;;  %p276_p9 = scmp.lt.s32.totalorder (!%p230_p8), %s275_s29, 143 }
  0x1e   : > { %s1123_s8 = scalar_lea.vmem (!%p230_p8), [#allocation3], %s936_s30 }
  0x22   : > { %s1192_s29 = smov (!%p276_p9, %s275_s29), 143  ;;  %300 = sbr.rel (%p820_p10) target bundleno = 41 (0x29), region = 62 }
  0x23   : > { %s819_s4 = sshll.u32 %s1192_s29, 2  ;;  %v1050_v8 = vmov (!%p820_p10), 0.0  }
  0x24   : > { %s1121_s7 = scalar_lea.vmem %s1182_s1, %s819_s4  ;;  %301 = vst [vmem:[#allocation2] sm:$0xff] (!%p820_p10), %v1050_v8  ;;  %302 = vst [vmem:[#allocation2 + $0x8] sm:$0xff] (!%p820_p10), %v1050_v8 }
  0x25   : > { %303 = vst [vmem:[#allocation2 + $0x10] sm:$0xff] (!%p820_p10), %v1050_v8  ;;  %304 = vst [vmem:[#allocation2 + $0x18] sm:$0xff] (!%p820_p10), %v1050_v8 }
  0x29 PF: > { %v978_v9 = vld [vmem:[%s1121_s7 + $0x40] sm:$0xff]   ;;  %v981_v12 = vld [vmem:[%s1121_s7 + $0x48] sm:$0xff]   ;;  %v984_v15 = vld [vmem:[%s1121_s7 + $0x50] sm:$0xff]   ;;  %p851_p11 = scmp.ne.s32.totalorder %s1040_s14, 2 }
  0x2a   : > { %v979_v10 = vld [vmem:[%s1121_s7] sm:$0xff]   ;;  %877 = vmatprep.subr.bf16.mxu0 %v978_v9  ;;  %v982_v13 = vld [vmem:[%s1121_s7 + $0x8] sm:$0xff]   ;;  %v985_v16 = vld [vmem:[%s1121_s7 + $0x10] sm:$0xff]  }
  0x2b   : > { %v980_v11 = vld [vmem:[%s1121_s7 + $0x80] sm:$0xff]   ;;  %878 = vmatpush3.bf16.msra.mxu0 %v979_v10  ;;  %v983_v14 = vld [vmem:[%s1121_s7 + $0x88] sm:$0xff]   ;;  %v986_v17 = vld [vmem:[%s1121_s7 + $0x90] sm:$0xff]  }
  0x2c   : > { %915 = vmatprep.subr.bf16.mxu1 %v980_v11  ;;  %879 = vmatprep.subr.bf16.mxu0 %v981_v12  ;;  %v987_v18 = vld [vmem:[%s1121_s7 + $0x58] sm:$0xff]   ;;  %v990_v21 = vld [vmem:[%s1121_s7 + $0x60] sm:$0xff]   ;;  %v993_v24 = vld [vmem:[%s1121_s7 + $0x68] sm:$0xff]  }
  0x2d   : > { %916 = vmatpush3.bf16.msra.mxu1 %v980_v11  ;;  %v988_v19 = vld [vmem:[%s1121_s7 + $0x18] sm:$0xff]   ;;  %v992_v22 = vld [vmem:[%s1121_s7 + $0xa0] sm:$0xff]   ;;  %v995_v25 = vld [vmem:[%s1121_s7 + $0xa8] sm:$0xff]  }
  0x2e   : > { %917 = vmatprep.subr.bf16.mxu1 %v983_v14  ;;  %v989_v20 = vld [vmem:[%s1121_s7 + $0x98] sm:$0xff]   ;;  %v991_v23 = vld [vmem:[%s1121_s7 + $0x20] sm:$0xff]   ;;  %v994_v26 = vld [vmem:[%s1121_s7 + $0x28] sm:$0xff]  }
  0x2f   : > { %880 = vmatpush3.bf16.msra.mxu0 %v982_v13  ;;  %v996_v27 = vld [vmem:[%s1121_s7 + $0x70] sm:$0xff]   ;;  %v999_v30 = vld [vmem:[%s1121_s7 + $0x78] sm:$0xff]   ;;  %v305_v45 = vld [vmem:[#allocation2] sm:$0xff] }
  0x30   : > { %881 = vmatprep.subr.bf16.mxu0 %v984_v15  ;;  %v997_v28 = vld [vmem:[%s1121_s7 + $0x30] sm:$0xff]   ;;  %v1001_v31 = vld [vmem:[%s1121_s7 + $0xb8] sm:$0xff]   ;;  %v306_v50 = vld [vmem:[#allocation2 + $0x8] sm:$0xff] }
  0x31   : > { %918 = vmatpush3.bf16.msra.mxu1 %v983_v14  ;;  %v998_v29 = vld [vmem:[%s1121_s7 + $0xb0] sm:$0xff]   ;;  %v1000_v34 = vld [vmem:[%s1121_s7 + $0x38] sm:$0xff]   ;;  %v852_v5 = vld [vmem:[%s1183_s2] ss:$0 sm:$0xff] (!%p851_p11) }
  0x32   : > { %919 = vmatprep.subr.bf16.mxu1 %v986_v17  ;;  %v1004_v32 = vld [vmem:[%s1123_s8 + $0x4] ss:$12 sps:$4 sm:$0xff]   ;;  %v1005_v33 = vld [vmem:[%s1123_s8 + $0x8] ss:$12 sps:$4 sm:$0xff]   ;;  %v1002_v35 = vld [vmem:[%s1123_s8] ss:$12 sps:$4 sm:$0xff]  }
  0x33   : > { %882 = vmatpush3.bf16.msra.mxu0 %v985_v16  ;;  %573 = vmatprep.mubr.bf16.mxu0 %v1004_v32  ;;  %v1007_v36 = vld [vmem:[%s1123_s8 + $0x1c] ss:$12 sps:$4 sm:$0xff]   ;;  %v1006_v37 = vld [vmem:[%s1123_s8 + $0x20] ss:$12 sps:$4 sm:$0xff]   ;;  %v1009_v38 = vld [vmem:[%s1123_s8 + $0x18] ss:$12 sps:$4 sm:$0xff]  }
  0x34   : > { %883 = vmatprep.subr.bf16.mxu0 %v987_v18  ;;  %931 = vmatprep.mubr.bf16.mxu1 %v1005_v33  ;;  %v307_v59 = vld [vmem:[#allocation2 + $0x10] sm:$0xff]  ;;  %v308_v63 = vld [vmem:[#allocation2 + $0x18] sm:$0xff] }
  0x35   : > { %920 = vmatpush3.bf16.msra.mxu1 %v986_v17 }
  0x36   : > { %921 = vmatprep.subr.bf16.mxu1 %v989_v20 }
  0x37   : > { %884 = vmatpush3.bf16.msra.mxu0 %v988_v19 }
  0x38   : > { %885 = vmatprep.subr.bf16.mxu0 %v990_v21 }
  0x39   : > { %922 = vmatpush3.bf16.msra.mxu1 %v989_v20 }
  0x3a   : > { %923 = vmatprep.subr.bf16.mxu1 %v992_v22 }
  0x3b   : > { %886 = vmatpush3.bf16.msra.mxu0 %v991_v23 }
  0x3c   : > { %887 = vmatprep.subr.bf16.mxu0 %v993_v24 }
  0x3d   : > { %924 = vmatpush3.bf16.msra.mxu1 %v992_v22 }
  0x3e   : > { %925 = vmatprep.subr.bf16.mxu1 %v995_v25 }
  0x3f   : > { %888 = vmatpush3.bf16.msra.mxu0 %v994_v26 }
  0x40   : > { %889 = vmatprep.subr.bf16.mxu0 %v996_v27 }
  0x41   : > { %926 = vmatpush3.bf16.msra.mxu1 %v995_v25 }
  0x42   : > { %927 = vmatprep.subr.bf16.mxu1 %v998_v29 }
  0x43   : > { %890 = vmatpush3.bf16.msra.mxu0 %v997_v28 }
  0x44   : > { %891 = vmatprep.subr.bf16.mxu0 %v999_v30 }
  0x45   : > { %928 = vmatpush3.bf16.msra.mxu1 %v998_v29 }
  0x46   : > { %929 = vmatprep.subr.bf16.mxu1 %v1001_v31 }
  0x47   : > { %892 = vmatpush3.bf16.msra.mxu0 %v1000_v34 }
  0x49   : > { %930 = vmatpush3.bf16.msra.mxu1 %v1001_v31 }
  0x4a   : > { %574 = vmatmul.mubr.bf16.vlgmr.msra.gmra.mrb[0].mxu0 %v1002_v35 }
  0x4b   : > { %581 = vmatprep.mubr.bf16.mxu0 %v1007_v36 }
  0x4c   : > { %932 = vmatmul.mubr.bf16.vlgmr.msra.gmra.mrb[0].mxu1 %v1006_v37 }
  0x52   : > { %582 = vmatmul.mubr.bf16.gmra.mrb[4].mxu0 %v1009_v38 }
 0x11d   : > { %v893_v39 = vpop.f32.mrb[0].mxu0 }
 0x11e   : > { %v894_v40 = vpop.f32.mrb[1].mxu0 }
 0x11f   : > { %v895_v41 = vadd.f32 %v894_v40, %v893_v39  ;;  %v896_v42 = vpop.f32.mrb[2].mxu0  ;;  %v933_v43 = vpop.f32.mrb[0].mxu1 }
 0x120   : > { %v897_v44 = vpop.f32.mrb[3].mxu0  ;;  %v624_v46 = vpop.f32.mrb[1].mxu1 }
 0x121   : > { %v898_v47 = vadd.f32 %v897_v44, %v896_v42  ;;  %v625_v48 = vadd.f32 %v895_v41, %v624_v46  ;;  %v934_v49 = vpop.f32.mrb[2].mxu1 }
 0x122   : > { %v627_v51 = vpop.f32.mrb[3].mxu1 }
 0x123   : > { %v639_v52 = vadd.f32 %v625_v48, %v305_v45  ;;  %v628_v53 = vadd.f32 %v898_v47, %v627_v51 }
 0x125   : > { %643 = vst [vmem:[#allocation2] sm:$0xff] %v639_v52  ;;  %v640_v54 = vadd.f32 %v628_v53, %v306_v50  ;;  %v899_v55 = vpop.f32.mrb[4].mxu0 }
 0x126   : > { %v900_v56 = vpop.f32.mrb[5].mxu0 }
 0x127   : > { %644 = vst [vmem:[#allocation2 + $0x8] sm:$0xff] %v640_v54  ;;  %v901_v57 = vadd.f32 %v900_v56, %v899_v55  ;;  %v902_v58 = vpop.f32.mrb[6].mxu0 }
 0x128   : > { %v903_v60 = vpop.f32.mrb[7].mxu0 }
 0x129   : > { %v633_v61 = vadd.f32 %v933_v43, %v901_v57  ;;  %v904_v62 = vadd.f32 %v903_v60, %v902_v58  ;;  %650 = sbr.rel (%p851_p11) target bundleno = 318 (0x13e), region = 66 }
 0x12b   : > { %v641_v0 = vadd.f32 %v633_v61, %v307_v59  ;;  %v636_v1 = vadd.f32 %v934_v49, %v904_v62 }
 0x12c   : > { %v651_v3 = vld [vmem:[#allocation2] sm:$0xff] (!%p851_p11) }
 0x12d   : > { %645 = vst [vmem:[#allocation2 + $0x10] sm:$0xff] %v641_v0  ;;  %v642_v2 = vadd.f32 %v636_v1, %v308_v63  ;;  %v662_v6 = vadd.f32 (!%p851_p11), %v852_v5, %v651_v3 }
 0x12e   : > { %v652_v4 = vld [vmem:[#allocation2 + $0x8] sm:$0xff] (!%p851_p11) }
 0x12f   : > { %646 = vst [vmem:[#allocation2 + $0x18] sm:$0xff] %v642_v2  ;;  %v663_v7 = vadd.f32 (!%p851_p11), %v852_v5, %v652_v4  ;;  %v666_v12 = vmax.f32 (!%p851_p11), %v662_v6, 0.0 }
 0x131   : > { %v667_v13 = vmax.f32 %v663_v7, 0.0 }
 0x133   : > { %v869_v16 = vpack.c.bf16 %v667_v13, %v666_v12 }
 0x134   : > { %v653_v8 = vld [vmem:[#allocation2 + $0x10] sm:$0xff] }
 0x135   : > { %v664_v10 = vadd.f32 %v852_v5, %v653_v8  ;;  %870 = vst [vmem:[%s1184_s3] sm:$0xff] %v869_v16  }
 0x136   : > { %v654_v9 = vld [vmem:[#allocation2 + $0x18] sm:$0xff] }
 0x137   : > { %v665_v11 = vadd.f32 %v852_v5, %v654_v9  ;;  %v668_v14 = vmax.f32 %v664_v10, 0.0 }
 0x139   : > { %v669_v15 = vmax.f32 %v665_v11, 0.0 }
 0x13b   : > { %v874_v17 = vpack.c.bf16 %v669_v15, %v668_v14 }
 0x13d   : > { %876 = vst [vmem:[%s1184_s3 + $0x8] sm:$0xff] %v874_v17  }
 0x13e PF: > { %s13_s16 = sadd.s32 1, %s1048_s16   ;;  %s1185_s12 = smov %s1036_s13 }
 0x13f   : > { %p10_p12 = scmp.ge.s32.totalorder %s13_s16, 5   ;;  %s1186_s13 = smov %s1106_s20 }
 0x140   : > { %s1187_s14 = smov %s1044_s15  ;;  %s1188_s15 = smov %s1190_s17 }
 0x141   :  { %12 = sbr.rel (!%p10_p12) target bundleno = 3 (0x3), region = 113 }

// kernel: resnet34_forward.53
= control target key start
LH: loop header
LB: loop body
LE: loop exit
PB: predicated region body
PF: predicated region fallthrough
CT: control target
= control target key end

     0   :  { %s1036_s12 = smov 0   ;;  %s1038_s13 = smov 0   ;;  %s1135_s0 = inlined_call_operand.vmem [shape: bf16[8,1152], index: 0, kind: input, shape index: {}]   ;;  %s1136_s1 = inlined_call_operand.vmem [shape: bf16[1152,256], index: 1, kind: input, shape index: {}]   ;;  %s1137_s2 = inlined_call_operand.vmem [shape: f32[1,256], index: 2, kind: input, shape index: {}]   ;;  %s1138_s3 = inlined_call_operand.vmem [shape: bf16[8,256], index: 3, kind: output, shape index: {}]  }
   0x1   :  { %s1040_s14 = smov 0  }
   0x2 LB: > { %s25_s15 = sadd.s32 1, %s1008_s13  ;;  %p825_p0 = scmp.ge.s32.totalorder %s1012_s14, 1  ;;  %s1012_s14 = sphi %s1040_s14, %s13_s14   ;;  %s1008_s13 = sphi %s1038_s13, %s1140_s13   ;;  %s1004_s12 = sphi %s1036_s12, %s1139_s12  }
   0x3   : > { %p26_p1 = scmp.ge.s32.totalorder %s25_s15, 3  ;;  %p194_p2 = scmp.lt.s32.totalorder %s1012_s14, 4 }
   0x5   : > { %s1142_s15 = smov (%p26_p1, %s25_s15), 0  ;;  %p195_p3 = pnand %p825_p0, %p194_p2 }
   0x6   : > { %s240_s16 = smul.u32 (!%p195_p3), 3, %s1004_s12  ;;  %p829_p6 = scmp.ne.s32.totalorder (!%p195_p3), %s1004_s12, 0 }
   0x7   : > { %198 = sbr.rel (%p195_p3) target bundleno = 321 (0x141), region = 32 }
   0x8   : > { %s250_s17 = smul.u32 (!%p195_p3), 48, %s1004_s12  ;;  %p243_p4 = scmp.lt.s32.totalorder (!%p195_p3), %s240_s16, 8 }
   0xa   : > { %p252_p5 = scmp.lt.s32.totalorder (!%p195_p3), %s250_s17, 143 }
   0xe   : > { %s1144_s16 = smov (!%p243_p4, %s240_s16), 8  ;;  %s1146_s17 = smov (!%p252_p5, %s250_s17), 143 }
   0xf   : > { %s826_s18 = sshll.u32 %s1144_s16, 2  ;;  %s887_s22 = sshll.u32 %s1146_s17, 3  ;;  %v1014_v0 = vmov (!%p829_p6), 0.0  }
  0x10   : > { %s1061_s21 = scalar_lea.vmem %s1135_s0, %s826_s18  ;;  %s1066_s25 = scalar_lea.vmem %s1136_s1, %s887_s22  ;;  %282 = vst [vmem:[#allocation2] sm:$0xff] (!%p829_p6), %v1014_v0  ;;  %283 = vst [vmem:[#allocation2 + $0x8] sm:$0xff] (!%p829_p6), %v1014_v0 }
  0x11   : > { %281 = sbr.rel (%p829_p6) target bundleno = 24 (0x18), region = 36 }
  0x18 PF: > { %v915_v1 = vld [vmem:[%s1066_s25 + $0x4] ss:$8 sps:$4 sm:$0xff]   ;;  %v917_v2 = vld [vmem:[%s1066_s25] ss:$8 sps:$4 sm:$0xff]   ;;  %v1015_v3 = vmov 0   ;;  %p881_p7 = scmp.ne.s32.totalorder %s1004_s12, 2 }
  0x19   : > { %660 = vmatprep.mubr.bf16.mxu1 %v1015_v3  ;;  %587 = vmatprep.subr.bf16.mxu0 %v915_v1  ;;  %v918_v4 = vld [vmem:[%s1066_s25 + $0x14] ss:$8 sps:$4 sm:$0xff]   ;;  %v920_v5 = vld [vmem:[%s1066_s25 + $0x10] ss:$8 sps:$4 sm:$0xff]   ;;  %v921_v6 = vld [vmem:[%s1066_s25 + $0x24] ss:$8 sps:$4 sm:$0xff]  }
  0x1a   : > { %588 = vmatpush1.bf16.msra.mxu0 %v917_v2  ;;  %v923_v7 = vld [vmem:[%s1066_s25 + $0x20] ss:$8 sps:$4 sm:$0xff]   ;;  %v924_v8 = vld [vmem:[%s1066_s25 + $0x34] ss:$8 sps:$4 sm:$0xff]   ;;  %v926_v9 = vld [vmem:[%s1066_s25 + $0x30] ss:$8 sps:$4 sm:$0xff]  }
  0x1b   : > { %589 = vmatprep.subr.bf16.mxu0 %v918_v4  ;;  %v939_v10 = vld [vmem:[%s1066_s25 + $0x104] ss:$8 sps:$4 sm:$0xff]   ;;  %v941_v11 = vld [vmem:[%s1066_s25 + $0x100] ss:$8 sps:$4 sm:$0xff]   ;;  %v945_v13 = vld [vmem:[%s1066_s25 + $0x114] ss:$8 sps:$4 sm:$0xff]   ;;  %v681_v4 = vlaneseq (!%p881_p7) }
  0x1c   : > { %v927_v12 = vld [vmem:[%s1066_s25 + $0x44] ss:$8 sps:$4 sm:$0xff]   ;;  %628 = vmatprep.subr.bf16.mxu1 %v939_v10  ;;  %v947_v14 = vld [vmem:[%s1066_s25 + $0x110] ss:$8 sps:$4 sm:$0xff]   ;;  %v929_v15 = vld [vmem:[%s1066_s25 + $0x40] ss:$8 sps:$4 sm:$0xff]  }
  0x1d   : > { %629 = vmatpush1.bf16.msra.mxu1 %v941_v11  ;;  %v930_v16 = vld [vmem:[%s1066_s25 + $0x54] ss:$8 sps:$4 sm:$0xff]   ;;  %v951_v17 = vld [vmem:[%s1066_s25 + $0x124] ss:$8 sps:$4 sm:$0xff]   ;;  %v953_v18 = vld [vmem:[%s1066_s25 + $0x120] ss:$8 sps:$4 sm:$0xff]  }
  0x1e   : > { %590 = vmatpush1.bf16.msra.mxu0 %v920_v5  ;;  %630 = vmatprep.subr.bf16.mxu1 %v945_v13  ;;  %v932_v19 = vld [vmem:[%s1066_s25 + $0x50] ss:$8 sps:$4 sm:$0xff]   ;;  %v957_v20 = vld [vmem:[%s1066_s25 + $0x134] ss:$8 sps:$4 sm:$0xff]   ;;  %v933_v21 = vld [vmem:[%s1066_s25 + $0x64] ss:$8 sps:$4 sm:$0xff]  }
  0x1f   : > { %591 = vmatprep.subr.bf16.mxu0 %v921_v6  ;;  %v959_v22 = vld [vmem:[%s1066_s25 + $0x130] ss:$8 sps:$4 sm:$0xff]   ;;  %v935_v23 = vld [vmem:[%s1066_s25 + $0x60] ss:$8 sps:$4 sm:$0xff]   ;;  %v963_v24 = vld [vmem:[%s1066_s25 + $0x144] ss:$8 sps:$4 sm:$0xff]  }
  0x20   : > { %v936_v25 = vld [vmem:[%s1066_s25 + $0x74] ss:$8 sps:$4 sm:$0xff]   ;;  %v965_v26 = vld [vmem:[%s1066_s25 + $0x140] ss:$8 sps:$4 sm:$0xff]   ;;  %v938_v27 = vld [vmem:[%s1066_s25 + $0x70] ss:$8 sps:$4 sm:$0xff]  }
  0x21   : > { %631 = vmatpush1.bf16.msra.mxu1 %v947_v14  ;;  %v969_v28 = vld [vmem:[%s1066_s25 + $0x154] ss:$8 sps:$4 sm:$0xff]   ;;  %v942_v29 = vld [vmem:[%s1066_s25 + $0x84] ss:$8 sps:$4 sm:$0xff]   ;;  %v971_v30 = vld [vmem:[%s1066_s25 + $0x150] ss:$8 sps:$4 sm:$0xff]  }
  0x22   : > { %592 = vmatpush1.bf16.msra.mxu0 %v923_v7  ;;  %632 = vmatprep.subr.bf16.mxu1 %v951_v17  ;;  %v944_v31 = vld [vmem:[%s1066_s25 + $0x80] ss:$8 sps:$4 sm:$0xff]   ;;  %v975_v32 = vld [vmem:[%s1066_s25 + $0x164] ss:$8 sps:$4 sm:$0xff]   ;;  %v948_v33 = vld [vmem:[%s1066_s25 + $0x94] ss:$8 sps:$4 sm:$0xff]  }
  0x23   : > { %593 = vmatprep.subr.bf16.mxu0 %v924_v8  ;;  %v286_v34 = vld [vmem:[%s1061_s21] sm:$0xff]  ;;  %v950_v37 = vld [vmem:[%s1066_s25 + $0x90] ss:$8 sps:$4 sm:$0xff]   ;;  %v981_v38 = vld [vmem:[%s1066_s25 + $0x174] ss:$8 sps:$4 sm:$0xff]   ;;  %v682_v5 = vshrl.u32 (!%p881_p7), %v681_v4, 7 }
  0x24   : > { %v831_v35 = vcombine.high %v286_v34, %v286_v34  ;;  %v977_v36 = vld [vmem:[%s1066_s25 + $0x160] ss:$8 sps:$4 sm:$0xff]   ;;  %v954_v39 = vld [vmem:[%s1066_s25 + $0xa4] ss:$8 sps:$4 sm:$0xff]   ;;  %v983_v40 = vld [vmem:[%s1066_s25 + $0x170] ss:$8 sps:$4 sm:$0xff]   ;;  %v830_v53 = vcombine.low %v286_v34, %v286_v34 }
  0x25   : > { %633 = vmatpush1.bf16.msra.mxu1 %v953_v18  ;;  %v956_v41 = vld [vmem:[%s1066_s25 + $0xa0] ss:$8 sps:$4 sm:$0xff]   ;;  %v960_v42 = vld [vmem:[%s1066_s25 + $0xb4] ss:$8 sps:$4 sm:$0xff]   ;;  %v962_v44 = vld [vmem:[%s1066_s25 + $0xb0] ss:$8 sps:$4 sm:$0xff]  }
  0x26   : > { %594 = vmatpush1.bf16.msra.mxu0 %v926_v9  ;;  %634 = vmatprep.subr.bf16.mxu1 %v957_v20  ;;  %v987_v43 = vld [vmem:[%s1061_s21 + $0x8] ss:$0 sps:$4 sm:$0xff]   ;;  %v966_v45 = vld [vmem:[%s1066_s25 + $0xc4] ss:$8 sps:$4 sm:$0xff]   ;;  %v972_v47 = vld [vmem:[%s1066_s25 + $0xd4] ss:$8 sps:$4 sm:$0xff]  }
  0x27   : > { %595 = vmatprep.subr.bf16.mxu0 %v927_v12  ;;  %619 = vmatprep.mubr.bf16.mxu0 %v831_v35  ;;  %v968_v46 = vld [vmem:[%s1066_s25 + $0xc0] ss:$8 sps:$4 sm:$0xff]   ;;  %v974_v48 = vld [vmem:[%s1066_s25 + $0xd0] ss:$8 sps:$4 sm:$0xff]   ;;  %v978_v49 = vld [vmem:[%s1066_s25 + $0xe4] ss:$8 sps:$4 sm:$0xff]  }
  0x28   : > { %v980_v50 = vld [vmem:[%s1066_s25 + $0xe0] ss:$8 sps:$4 sm:$0xff]   ;;  %v984_v51 = vld [vmem:[%s1066_s25 + $0xf4] ss:$8 sps:$4 sm:$0xff]   ;;  %v986_v52 = vld [vmem:[%s1066_s25 + $0xf0] ss:$8 sps:$4 sm:$0xff]  }
  0x29   : > { %635 = vmatpush1.bf16.msra.mxu1 %v959_v22  ;;  %v284_v58 = vld [vmem:[#allocation2] sm:$0xff]  ;;  %v285_v61 = vld [vmem:[#allocation2 + $0x8] sm:$0xff]  ;;  %v683_v7 = vsub.s32 (!%p881_p7), 0, %v682_v5  ;;  %v687_v8 = vsub.s32 (!%p881_p7), 1, %v682_v5 }
  0x2a   : > { %596 = vmatpush1.bf16.msra.mxu0 %v929_v15  ;;  %636 = vmatprep.subr.bf16.mxu1 %v963_v24  ;;  %v679_v6 = vld [vmem:[%s1137_s2] sm:$0x3] (!%p881_p7) }
  0x2b   : > { %597 = vmatprep.subr.bf16.mxu0 %v930_v16  ;;  %v684_v11 = vrot.slane (!%p881_p7), %v679_v6, %v683_v7  ;;  %v688_v12 = vrot.slane (!%p881_p7), %v679_v6, %v687_v8 }
  0x2d   : > { %637 = vmatpush1.bf16.msra.mxu1 %v965_v26 }
  0x2e   : > { %598 = vmatpush1.bf16.msra.mxu0 %v932_v19  ;;  %638 = vmatprep.subr.bf16.mxu1 %v969_v28 }
  0x2f   : > { %599 = vmatprep.subr.bf16.mxu0 %v933_v21 }
  0x31   : > { %639 = vmatpush1.bf16.msra.mxu1 %v971_v30 }
  0x32   : > { %600 = vmatpush1.bf16.msra.mxu0 %v935_v23  ;;  %640 = vmatprep.subr.bf16.mxu1 %v975_v32 }
  0x33   : > { %601 = vmatprep.subr.bf16.mxu0 %v936_v25 }
  0x35   : > { %641 = vmatpush1.bf16.msra.mxu1 %v977_v36 }
  0x36   : > { %602 = vmatpush1.bf16.msra.mxu0 %v938_v27  ;;  %642 = vmatprep.subr.bf16.mxu1 %v981_v38 }
  0x37   : > { %603 = vmatprep.subr.bf16.mxu0 %v942_v29 }
  0x39   : > { %643 = vmatpush1.bf16.msra.mxu1 %v983_v40 }
  0x3a   : > { %604 = vmatpush1.bf16.msra.mxu0 %v944_v31 }
  0x3b   : > { %605 = vmatprep.subr.bf16.mxu0 %v948_v33 }
  0x3c   : > { %661 = vmatmul.mubr.bf16.vlgmr.msra.gmra.mrb[0].mxu1 %v987_v43 }
  0x3e   : > { %606 = vmatpush1.bf16.msra.mxu0 %v950_v37 }
  0x3f   : > { %607 = vmatprep.subr.bf16.mxu0 %v954_v39 }
  0x42   : > { %608 = vmatpush1.bf16.msra.mxu0 %v956_v41 }
  0x43   : > { %609 = vmatprep.subr.bf16.mxu0 %v960_v42 }
  0x46   : > { %610 = vmatpush1.bf16.msra.mxu0 %v962_v44 }
  0x47   : > { %611 = vmatprep.subr.bf16.mxu0 %v966_v45 }
  0x4a   : > { %612 = vmatpush1.bf16.msra.mxu0 %v968_v46 }
  0x4b   : > { %613 = vmatprep.subr.bf16.mxu0 %v972_v47 }
  0x4e   : > { %614 = vmatpush1.bf16.msra.mxu0 %v974_v48 }
  0x4f   : > { %615 = vmatprep.subr.bf16.mxu0 %v978_v49 }
  0x52   : > { %616 = vmatpush1.bf16.msra.mxu0 %v980_v50 }
  0x53   : > { %617 = vmatprep.subr.bf16.mxu0 %v984_v51 }
  0x56   : > { %618 = vmatpush1.bf16.msra.mxu0 %v986_v52 }
  0x59   : > { %620 = vmatmul.mubr.bf16.vlgmr.msra.gmra.mrb[0].mxu0 %v830_v53 }
 0x10f   : > { %v662_v54 = vpop.f32.mrb[0].mxu1 }
 0x110   : > { %v664_v55 = vpop.f32.mrb[1].mxu1 }
 0x111   : > { %v666_v56 = vpop.f32.mrb[2].mxu1 }
 0x112   : > { %v667_v57 = vpop.f32.mrb[3].mxu1 }
 0x12c   : > { %v621_v59 = vpop.f32.mrb[0].mxu0  ;;  %676 = sbr.rel (%p881_p7) target bundleno = 321 (0x141), region = 40 }
 0x12d   : > { %v663_v60 = vadd.f32 %v662_v54, %v621_v59  ;;  %v623_v62 = vpop.f32.mrb[1].mxu0 }
 0x12e   : > { %v665_v63 = vadd.f32 %v664_v55, %v623_v62  ;;  %v625_v0 = vpop.f32.mrb[2].mxu0 }
 0x12f   : > { %v669_v1 = vadd.f32 %v663_v60, %v284_v58  ;;  %v626_v2 = vpop.f32.mrb[3].mxu0 }
 0x130   : > { %v670_v3 = vadd.f32 %v665_v63, %v285_v61 }
 0x131   : > { %671 = vst [vmem:[#allocation2] sm:$0xff] %v669_v1 }
 0x132   : > { %672 = vst [vmem:[#allocation2 + $0x8] sm:$0xff] %v670_v3 }
 0x138   : > { %v677_v9 = vld [vmem:[#allocation2] sm:$0xff] }
 0x139   : > { %v678_v10 = vld [vmem:[#allocation2 + $0x8] sm:$0xff]  ;;  %v691_v13 = vadd.f32 %v684_v11, %v677_v9 }
 0x13a   : > { %v692_v14 = vadd.f32 %v688_v12, %v678_v10 }
 0x13b   : > { %v693_v15 = vmax.f32 %v691_v13, 0.0 }
 0x13c   : > { %v694_v16 = vmax.f32 %v692_v14, 0.0 }
 0x13e   : > { %v888_v17 = vpack.c.bf16 %v694_v16, %v693_v15 }
 0x140   : > { %703 = vst [vmem:[%s1138_s3] sm:$0xff] %v888_v17 }
 0x141 PF: > { %s13_s14 = sadd.s32 1, %s1012_s14   ;;  %s1139_s12 = smov %s1008_s13 }
 0x142   : > { %p10_p8 = scmp.ge.s32.totalorder %s13_s14, 5   ;;  %s1140_s13 = smov %s1142_s15 }
 0x144   :  { %12 = sbr.rel (!%p10_p8) target bundleno = 2 (0x2), region = 76 }

// kernel: resnet34_forward.54
= control target key start
LH: loop header
LB: loop body
LE: loop exit
PB: predicated region body
PF: predicated region fallthrough
CT: control target
= control target key end

     0   :  { %v240_v1 = vmov 0   ;;  %v172_v18 = vlaneseq  ;;  %s318_s1 = inlined_call_operand.vmem [shape: bf16[128,256], index: 1, kind: input, shape index: {}]   ;;  %s319_s0 = inlined_call_operand.vmem [shape: bf16[8,128], index: 0, kind: input, shape index: {}]   ;;  %s320_s2 = inlined_call_operand.vmem [shape: f32[1,256], index: 2, kind: input, shape index: {}]   ;;  %s321_s3 = inlined_call_operand.vmem [shape: bf16[8,256], index: 3, kind: output, shape index: {}]  }
   0x1   :  { %v216_v0 = vld [vmem:[%s318_s1 + $0x4] ss:$8 sps:$4 sm:$0xff]   ;;  %152 = vmatprep.mubr.bf16.mxu0 %v240_v1  ;;  %v218_v2 = vld [vmem:[%s318_s1] ss:$8 sps:$4 sm:$0xff]   ;;  %v219_v3 = vld [vmem:[%s318_s1 + $0x14] ss:$8 sps:$4 sm:$0xff]  }
   0x2   :  { %120 = vmatprep.subr.bf16.mxu0 %v216_v0  ;;  %v221_v4 = vld [vmem:[%s318_s1 + $0x10] ss:$8 sps:$4 sm:$0xff]   ;;  %v222_v5 = vld [vmem:[%s318_s1 + $0x24] ss:$8 sps:$4 sm:$0xff]   ;;  %v224_v6 = vld [vmem:[%s318_s1 + $0x20] ss:$8 sps:$4 sm:$0xff]  }
   0x3   :  { %121 = vmatpush1.bf16.msra.mxu0 %v218_v2  ;;  %v225_v7 = vld [vmem:[%s318_s1 + $0x34] ss:$8 sps:$4 sm:$0xff]   ;;  %v227_v8 = vld [vmem:[%s318_s1 + $0x30] ss:$8 sps:$4 sm:$0xff]   ;;  %v228_v9 = vld [vmem:[%s318_s1 + $0x44] ss:$8 sps:$4 sm:$0xff]  }
   0x4   :  { %122 = vmatprep.subr.bf16.mxu0 %v219_v3  ;;  %v230_v10 = vld [vmem:[%s318_s1 + $0x40] ss:$8 sps:$4 sm:$0xff]   ;;  %v231_v11 = vld [vmem:[%s318_s1 + $0x54] ss:$8 sps:$4 sm:$0xff]   ;;  %v233_v12 = vld [vmem:[%s318_s1 + $0x50] ss:$8 sps:$4 sm:$0xff]  }
   0x5   :  { %v234_v13 = vld [vmem:[%s318_s1 + $0x64] ss:$8 sps:$4 sm:$0xff]   ;;  %v236_v14 = vld [vmem:[%s318_s1 + $0x60] ss:$8 sps:$4 sm:$0xff]   ;;  %v237_v15 = vld [vmem:[%s318_s1 + $0x74] ss:$8 sps:$4 sm:$0xff]  }
   0x6   :  { %v239_v16 = vld [vmem:[%s318_s1 + $0x70] ss:$8 sps:$4 sm:$0xff]   ;;  %v23_v17 = vld [vmem:[%s319_s0] sm:$0xf]  ;;  %v173_v19 = vshrl.u32 %v172_v18, 7 }
   0x7   :  { %123 = vmatpush1.bf16.msra.mxu0 %v221_v4  ;;  %v170_v21 = vld [vmem:[%s320_s2] sm:$0x3] }
   0x8   :  { %124 = vmatprep.subr.bf16.mxu0 %v222_v5  ;;  %v174_v20 = vsub.s32 0, %v173_v19  ;;  %v178_v22 = vsub.s32 1, %v173_v19 }
   0xa   :  { %v175_v23 = vrot.slane %v170_v21, %v174_v20  ;;  %v179_v24 = vrot.slane %v170_v21, %v178_v22 }
   0xb   :  { %125 = vmatpush1.bf16.msra.mxu0 %v224_v6 }
   0xc   :  { %126 = vmatprep.subr.bf16.mxu0 %v225_v7 }
   0xf   :  { %127 = vmatpush1.bf16.msra.mxu0 %v227_v8 }
  0x10   :  { %128 = vmatprep.subr.bf16.mxu0 %v228_v9 }
  0x13   :  { %129 = vmatpush1.bf16.msra.mxu0 %v230_v10 }
  0x14   :  { %130 = vmatprep.subr.bf16.mxu0 %v231_v11 }
  0x17   :  { %131 = vmatpush1.bf16.msra.mxu0 %v233_v12 }
  0x18   :  { %132 = vmatprep.subr.bf16.mxu0 %v234_v13 }
  0x1b   :  { %133 = vmatpush1.bf16.msra.mxu0 %v236_v14 }
  0x1c   :  { %134 = vmatprep.subr.bf16.mxu0 %v237_v15 }
  0x1f   :  { %135 = vmatpush1.bf16.msra.mxu0 %v239_v16 }
  0x22   :  { %153 = vmatmul.mubr.bf16.vlgmr.msra.gmra.mrb[0].mxu0 %v23_v17 }
  0xf5   :  { %v154_v25 = vpop.f32.mrb[0].mxu0 }
  0xf6   :  { %v182_v26 = vadd.f32 %v175_v23, %v154_v25  ;;  %v156_v27 = vpop.f32.mrb[1].mxu0 }
  0xf7   :  { %v183_v28 = vadd.f32 %v179_v24, %v156_v27  ;;  %v158_v29 = vpop.f32.mrb[2].mxu0 }
  0xf8   :  { %v159_v30 = vpop.f32.mrb[3].mxu0 }
  0xf9   :  { %v214_v31 = vpack.c.bf16 %v183_v28, %v182_v26 }
  0xfb   :  { %192 = vst [vmem:[%s321_s3] sm:$0xff] %v214_v31 }

// kernel: resnet34_forward.56
= control target key start
LH: loop header
LB: loop body
LE: loop exit
PB: predicated region body
PF: predicated region fallthrough
CT: control target
= control target key end

     0   :  { %s1036_s12 = smov 0   ;;  %s1038_s13 = smov 0   ;;  %s1135_s0 = inlined_call_operand.vmem [shape: bf16[8,2304], index: 0, kind: input, shape index: {}]   ;;  %s1136_s1 = inlined_call_operand.vmem [shape: bf16[2304,256], index: 1, kind: input, shape index: {}]   ;;  %s1137_s2 = inlined_call_operand.vmem [shape: f32[1,256], index: 2, kind: input, shape index: {}]   ;;  %s1138_s3 = inlined_call_operand.vmem [shape: bf16[8,256], index: 3, kind: output, shape index: {}]  }
   0x1   :  { %s1040_s14 = smov 0  }
   0x2 LB: > { %s25_s15 = sadd.s32 1, %s1008_s13  ;;  %p825_p0 = scmp.ge.s32.totalorder %s1012_s14, 1  ;;  %s1012_s14 = sphi %s1040_s14, %s13_s14   ;;  %s1008_s13 = sphi %s1038_s13, %s1140_s13   ;;  %s1004_s12 = sphi %s1036_s12, %s1139_s12  }
   0x3   : > { %p26_p1 = scmp.ge.s32.totalorder %s25_s15, 6  ;;  %p194_p2 = scmp.lt.s32.totalorder %s1012_s14, 7 }
   0x5   : > { %s1142_s15 = smov (%p26_p1, %s25_s15), 0  ;;  %p195_p3 = pnand %p825_p0, %p194_p2 }
   0x6   : > { %s240_s16 = smul.u32 (!%p195_p3), 3, %s1004_s12  ;;  %p829_p6 = scmp.ne.s32.totalorder (!%p195_p3), %s1004_s12, 0 }
   0x7   : > { %198 = sbr.rel (%p195_p3) target bundleno = 321 (0x141), region = 32 }
   0x8   : > { %s250_s17 = smul.u32 (!%p195_p3), 48, %s1004_s12  ;;  %p243_p4 = scmp.lt.s32.totalorder (!%p195_p3), %s240_s16, 17 }
   0xa   : > { %p252_p5 = scmp.lt.s32.totalorder (!%p195_p3), %s250_s17, 287 }
   0xe   : > { %s1144_s16 = smov (!%p243_p4, %s240_s16), 17  ;;  %s1146_s17 = smov (!%p252_p5, %s250_s17), 287 }
   0xf   : > { %s826_s18 = sshll.u32 %s1144_s16, 2  ;;  %s887_s22 = sshll.u32 %s1146_s17, 3  ;;  %v1014_v0 = vmov (!%p829_p6), 0.0  }
  0x10   : > { %s1061_s21 = scalar_lea.vmem %s1135_s0, %s826_s18  ;;  %s1066_s25 = scalar_lea.vmem %s1136_s1, %s887_s22  ;;  %282 = vst [vmem:[#allocation2] sm:$0xff] (!%p829_p6), %v1014_v0  ;;  %283 = vst [vmem:[#allocation2 + $0x8] sm:$0xff] (!%p829_p6), %v1014_v0 }
  0x11   : > { %281 = sbr.rel (%p829_p6) target bundleno = 24 (0x18), region = 36 }
  0x18 PF: > { %v915_v1 = vld [vmem:[%s1066_s25 + $0x4] ss:$8 sps:$4 sm:$0xff]   ;;  %v917_v2 = vld [vmem:[%s1066_s25] ss:$8 sps:$4 sm:$0xff]   ;;  %v1015_v3 = vmov 0   ;;  %p881_p7 = scmp.ne.s32.totalorder %s1004_s12, 5 }
  0x19   : > { %660 = vmatprep.mubr.bf16.mxu1 %v1015_v3  ;;  %587 = vmatprep.subr.bf16.mxu0 %v915_v1  ;;  %v918_v4 = vld [vmem:[%s1066_s25 + $0x14] ss:$8 sps:$4 sm:$0xff]   ;;  %v920_v5 = vld [vmem:[%s1066_s25 + $0x10] ss:$8 sps:$4 sm:$0xff]   ;;  %v921_v6 = vld [vmem:[%s1066_s25 + $0x24] ss:$8 sps:$4 sm:$0xff]  }
  0x1a   : > { %588 = vmatpush1.bf16.msra.mxu0 %v917_v2  ;;  %v923_v7 = vld [vmem:[%s1066_s25 + $0x20] ss:$8 sps:$4 sm:$0xff]   ;;  %v924_v8 = vld [vmem:[%s1066_s25 + $0x34] ss:$8 sps:$4 sm:$0xff]   ;;  %v926_v9 = vld [vmem:[%s1066_s25 + $0x30] ss:$8 sps:$4 sm:$0xff]  }
  0x1b   : > { %589 = vmatprep.subr.bf16.mxu0 %v918_v4  ;;  %v939_v10 = vld [vmem:[%s1066_s25 + $0x104] ss:$8 sps:$4 sm:$0xff]   ;;  %v941_v11 = vld [vmem:[%s1066_s25 + $0x100] ss:$8 sps:$4 sm:$0xff]   ;;  %v945_v13 = vld [vmem:[%s1066_s25 + $0x114] ss:$8 sps:$4 sm:$0xff]   ;;  %v681_v4 = vlaneseq (!%p881_p7) }
  0x1c   : > { %v927_v12 = vld [vmem:[%s1066_s25 + $0x44] ss:$8 sps:$4 sm:$0xff]   ;;  %628 = vmatprep.subr.bf16.mxu1 %v939_v10  ;;  %v947_v14 = vld [vmem:[%s1066_s25 + $0x110] ss:$8 sps:$4 sm:$0xff]   ;;  %v929_v15 = vld [vmem:[%s1066_s25 + $0x40] ss:$8 sps:$4 sm:$0xff]  }
  0x1d   : > { %629 = vmatpush1.bf16.msra.mxu1 %v941_v11  ;;  %v930_v16 = vld [vmem:[%s1066_s25 + $0x54] ss:$8 sps:$4 sm:$0xff]   ;;  %v951_v17 = vld [vmem:[%s1066_s25 + $0x124] ss:$8 sps:$4 sm:$0xff]   ;;  %v953_v18 = vld [vmem:[%s1066_s25 + $0x120] ss:$8 sps:$4 sm:$0xff]  }
  0x1e   : > { %590 = vmatpush1.bf16.msra.mxu0 %v920_v5  ;;  %630 = vmatprep.subr.bf16.mxu1 %v945_v13  ;;  %v932_v19 = vld [vmem:[%s1066_s25 + $0x50] ss:$8 sps:$4 sm:$0xff]   ;;  %v957_v20 = vld [vmem:[%s1066_s25 + $0x134] ss:$8 sps:$4 sm:$0xff]   ;;  %v933_v21 = vld [vmem:[%s1066_s25 + $0x64] ss:$8 sps:$4 sm:$0xff]  }
  0x1f   : > { %591 = vmatprep.subr.bf16.mxu0 %v921_v6  ;;  %v959_v22 = vld [vmem:[%s1066_s25 + $0x130] ss:$8 sps:$4 sm:$0xff]   ;;  %v935_v23 = vld [vmem:[%s1066_s25 + $0x60] ss:$8 sps:$4 sm:$0xff]   ;;  %v963_v24 = vld [vmem:[%s1066_s25 + $0x144] ss:$8 sps:$4 sm:$0xff]  }
  0x20   : > { %v936_v25 = vld [vmem:[%s1066_s25 + $0x74] ss:$8 sps:$4 sm:$0xff]   ;;  %v965_v26 = vld [vmem:[%s1066_s25 + $0x140] ss:$8 sps:$4 sm:$0xff]   ;;  %v938_v27 = vld [vmem:[%s1066_s25 + $0x70] ss:$8 sps:$4 sm:$0xff]  }
  0x21   : > { %631 = vmatpush1.bf16.msra.mxu1 %v947_v14  ;;  %v969_v28 = vld [vmem:[%s1066_s25 + $0x154] ss:$8 sps:$4 sm:$0xff]   ;;  %v942_v29 = vld [vmem:[%s1066_s25 + $0x84] ss:$8 sps:$4 sm:$0xff]   ;;  %v971_v30 = vld [vmem:[%s1066_s25 + $0x150] ss:$8 sps:$4 sm:$0xff]  }
  0x22   : > { %592 = vmatpush1.bf16.msra.mxu0 %v923_v7  ;;  %632 = vmatprep.subr.bf16.mxu1 %v951_v17  ;;  %v944_v31 = vld [vmem:[%s1066_s25 + $0x80] ss:$8 sps:$4 sm:$0xff]   ;;  %v975_v32 = vld [vmem:[%s1066_s25 + $0x164] ss:$8 sps:$4 sm:$0xff]   ;;  %v948_v33 = vld [vmem:[%s1066_s25 + $0x94] ss:$8 sps:$4 sm:$0xff]  }
  0x23   : > { %593 = vmatprep.subr.bf16.mxu0 %v924_v8  ;;  %v286_v34 = vld [vmem:[%s1061_s21] sm:$0xff]  ;;  %v950_v37 = vld [vmem:[%s1066_s25 + $0x90] ss:$8 sps:$4 sm:$0xff]   ;;  %v981_v38 = vld [vmem:[%s1066_s25 + $0x174] ss:$8 sps:$4 sm:$0xff]   ;;  %v682_v5 = vshrl.u32 (!%p881_p7), %v681_v4, 7 }
  0x24   : > { %v831_v35 = vcombine.high %v286_v34, %v286_v34  ;;  %v977_v36 = vld [vmem:[%s1066_s25 + $0x160] ss:$8 sps:$4 sm:$0xff]   ;;  %v954_v39 = vld [vmem:[%s1066_s25 + $0xa4] ss:$8 sps:$4 sm:$0xff]   ;;  %v983_v40 = vld [vmem:[%s1066_s25 + $0x170] ss:$8 sps:$4 sm:$0xff]   ;;  %v830_v53 = vcombine.low %v286_v34, %v286_v34 }
  0x25   : > { %633 = vmatpush1.bf16.msra.mxu1 %v953_v18  ;;  %v956_v41 = vld [vmem:[%s1066_s25 + $0xa0] ss:$8 sps:$4 sm:$0xff]   ;;  %v960_v42 = vld [vmem:[%s1066_s25 + $0xb4] ss:$8 sps:$4 sm:$0xff]   ;;  %v962_v44 = vld [vmem:[%s1066_s25 + $0xb0] ss:$8 sps:$4 sm:$0xff]  }
  0x26   : > { %594 = vmatpush1.bf16.msra.mxu0 %v926_v9  ;;  %634 = vmatprep.subr.bf16.mxu1 %v957_v20  ;;  %v987_v43 = vld [vmem:[%s1061_s21 + $0x8] ss:$0 sps:$4 sm:$0xff]   ;;  %v966_v45 = vld [vmem:[%s1066_s25 + $0xc4] ss:$8 sps:$4 sm:$0xff]   ;;  %v972_v47 = vld [vmem:[%s1066_s25 + $0xd4] ss:$8 sps:$4 sm:$0xff]  }
  0x27   : > { %595 = vmatprep.subr.bf16.mxu0 %v927_v12  ;;  %619 = vmatprep.mubr.bf16.mxu0 %v831_v35  ;;  %v968_v46 = vld [vmem:[%s1066_s25 + $0xc0] ss:$8 sps:$4 sm:$0xff]   ;;  %v974_v48 = vld [vmem:[%s1066_s25 + $0xd0] ss:$8 sps:$4 sm:$0xff]   ;;  %v978_v49 = vld [vmem:[%s1066_s25 + $0xe4] ss:$8 sps:$4 sm:$0xff]  }
  0x28   : > { %v980_v50 = vld [vmem:[%s1066_s25 + $0xe0] ss:$8 sps:$4 sm:$0xff]   ;;  %v984_v51 = vld [vmem:[%s1066_s25 + $0xf4] ss:$8 sps:$4 sm:$0xff]   ;;  %v986_v52 = vld [vmem:[%s1066_s25 + $0xf0] ss:$8 sps:$4 sm:$0xff]  }
  0x29   : > { %635 = vmatpush1.bf16.msra.mxu1 %v959_v22  ;;  %v284_v58 = vld [vmem:[#allocation2] sm:$0xff]  ;;  %v285_v61 = vld [vmem:[#allocation2 + $0x8] sm:$0xff]  ;;  %v683_v7 = vsub.s32 (!%p881_p7), 0, %v682_v5  ;;  %v687_v8 = vsub.s32 (!%p881_p7), 1, %v682_v5 }
  0x2a   : > { %596 = vmatpush1.bf16.msra.mxu0 %v929_v15  ;;  %636 = vmatprep.subr.bf16.mxu1 %v963_v24  ;;  %v679_v6 = vld [vmem:[%s1137_s2] sm:$0x3] (!%p881_p7) }
  0x2b   : > { %597 = vmatprep.subr.bf16.mxu0 %v930_v16  ;;  %v684_v11 = vrot.slane (!%p881_p7), %v679_v6, %v683_v7  ;;  %v688_v12 = vrot.slane (!%p881_p7), %v679_v6, %v687_v8 }
  0x2d   : > { %637 = vmatpush1.bf16.msra.mxu1 %v965_v26 }
  0x2e   : > { %598 = vmatpush1.bf16.msra.mxu0 %v932_v19  ;;  %638 = vmatprep.subr.bf16.mxu1 %v969_v28 }
  0x2f   : > { %599 = vmatprep.subr.bf16.mxu0 %v933_v21 }
  0x31   : > { %639 = vmatpush1.bf16.msra.mxu1 %v971_v30 }
  0x32   : > { %600 = vmatpush1.bf16.msra.mxu0 %v935_v23  ;;  %640 = vmatprep.subr.bf16.mxu1 %v975_v32 }
  0x33   : > { %601 = vmatprep.subr.bf16.mxu0 %v936_v25 }
  0x35   : > { %641 = vmatpush1.bf16.msra.mxu1 %v977_v36 }
  0x36   : > { %602 = vmatpush1.bf16.msra.mxu0 %v938_v27  ;;  %642 = vmatprep.subr.bf16.mxu1 %v981_v38 }
  0x37   : > { %603 = vmatprep.subr.bf16.mxu0 %v942_v29 }
  0x39   : > { %643 = vmatpush1.bf16.msra.mxu1 %v983_v40 }
  0x3a   : > { %604 = vmatpush1.bf16.msra.mxu0 %v944_v31 }
  0x3b   : > { %605 = vmatprep.subr.bf16.mxu0 %v948_v33 }
  0x3c   : > { %661 = vmatmul.mubr.bf16.vlgmr.msra.gmra.mrb[0].mxu1 %v987_v43 }
  0x3e   : > { %606 = vmatpush1.bf16.msra.mxu0 %v950_v37 }
  0x3f   : > { %607 = vmatprep.subr.bf16.mxu0 %v954_v39 }
  0x42   : > { %608 = vmatpush1.bf16.msra.mxu0 %v956_v41 }
  0x43   : > { %609 = vmatprep.subr.bf16.mxu0 %v960_v42 }
  0x46   : > { %610 = vmatpush1.bf16.msra.mxu0 %v962_v44 }
  0x47   : > { %611 = vmatprep.subr.bf16.mxu0 %v966_v45 }
  0x4a   : > { %612 = vmatpush1.bf16.msra.mxu0 %v968_v46 }
  0x4b   : > { %613 = vmatprep.subr.bf16.mxu0 %v972_v47 }
  0x4e   : > { %614 = vmatpush1.bf16.msra.mxu0 %v974_v48 }
  0x4f   : > { %615 = vmatprep.subr.bf16.mxu0 %v978_v49 }
  0x52   : > { %616 = vmatpush1.bf16.msra.mxu0 %v980_v50 }
  0x53   : > { %617 = vmatprep.subr.bf16.mxu0 %v984_v51 }
  0x56   : > { %618 = vmatpush1.bf16.msra.mxu0 %v986_v52 }
  0x59   : > { %620 = vmatmul.mubr.bf16.vlgmr.msra.gmra.mrb[0].mxu0 %v830_v53 }
 0x10f   : > { %v662_v54 = vpop.f32.mrb[0].mxu1 }
 0x110   : > { %v664_v55 = vpop.f32.mrb[1].mxu1 }
 0x111   : > { %v666_v56 = vpop.f32.mrb[2].mxu1 }
 0x112   : > { %v667_v57 = vpop.f32.mrb[3].mxu1 }
 0x12c   : > { %v621_v59 = vpop.f32.mrb[0].mxu0  ;;  %676 = sbr.rel (%p881_p7) target bundleno = 321 (0x141), region = 40 }
 0x12d   : > { %v663_v60 = vadd.f32 %v662_v54, %v621_v59  ;;  %v623_v62 = vpop.f32.mrb[1].mxu0 }
 0x12e   : > { %v665_v63 = vadd.f32 %v664_v55, %v623_v62  ;;  %v625_v0 = vpop.f32.mrb[2].mxu0 }
 0x12f   : > { %v669_v1 = vadd.f32 %v663_v60, %v284_v58  ;;  %v626_v2 = vpop.f32.mrb[3].mxu0 }
 0x130   : > { %v670_v3 = vadd.f32 %v665_v63, %v285_v61 }
 0x131   : > { %671 = vst [vmem:[#allocation2] sm:$0xff] %v669_v1 }
 0x132   : > { %672 = vst [vmem:[#allocation2 + $0x8] sm:$0xff] %v670_v3 }
 0x138   : > { %v677_v9 = vld [vmem:[#allocation2] sm:$0xff] }
 0x139   : > { %v678_v10 = vld [vmem:[#allocation2 + $0x8] sm:$0xff]  ;;  %v691_v13 = vadd.f32 %v684_v11, %v677_v9 }
 0x13a   : > { %v692_v14 = vadd.f32 %v688_v12, %v678_v10 }
 0x13b   : > { %v693_v15 = vmax.f32 %v691_v13, 0.0 }
 0x13c   : > { %v694_v16 = vmax.f32 %v692_v14, 0.0 }
 0x13e   : > { %v888_v17 = vpack.c.bf16 %v694_v16, %v693_v15 }
 0x140   : > { %703 = vst [vmem:[%s1138_s3] sm:$0xff] %v888_v17 }
 0x141 PF: > { %s13_s14 = sadd.s32 1, %s1012_s14   ;;  %s1139_s12 = smov %s1008_s13 }
 0x142   : > { %p10_p8 = scmp.ge.s32.totalorder %s13_s14, 8   ;;  %s1140_s13 = smov %s1142_s15 }
 0x144   :  { %12 = sbr.rel (!%p10_p8) target bundleno = 2 (0x2), region = 76 }

// kernel: resnet34_forward.55
= control target key start
LH: loop header
LB: loop body
LE: loop exit
PB: predicated region body
PF: predicated region fallthrough
CT: control target
= control target key end

     0   :  { %s1131_s15 = smov 0   ;;  %s1133_s16 = smov 0   ;;  %s1233_s0 = inlined_call_operand.vmem [shape: bf16[8,2304], index: 0, kind: input, shape index: {}]   ;;  %s1234_s1 = inlined_call_operand.vmem [shape: bf16[2304,256], index: 1, kind: input, shape index: {}]   ;;  %s1235_s2 = inlined_call_operand.vmem [shape: f32[1,256], index: 2, kind: input, shape index: {}]   ;;  %s1236_s3 = inlined_call_operand.vmem [shape: bf16[8,256], index: 3, kind: input, shape index: {}]   ;;  %s1237_s4 = inlined_call_operand.vmem [shape: bf16[8,256], index: 4, kind: output, shape index: {}]  }
   0x1   :  { %s1135_s17 = smov 0  }
   0x2 LB: > { %s26_s18 = sadd.s32 1, %s1098_s16  ;;  %p915_p0 = scmp.ge.s32.totalorder %s1102_s17, 1  ;;  %s1102_s17 = sphi %s1135_s17, %s14_s17   ;;  %s1098_s16 = sphi %s1133_s16, %s1239_s16   ;;  %s1094_s15 = sphi %s1131_s15, %s1238_s15  }
   0x3   : > { %p27_p1 = scmp.ge.s32.totalorder %s26_s18, 6  ;;  %p236_p2 = scmp.lt.s32.totalorder %s1102_s17, 7 }
   0x5   : > { %s1241_s18 = smov (%p27_p1, %s26_s18), 0  ;;  %p237_p3 = pnand %p915_p0, %p236_p2 }
   0x6   : > { %s293_s19 = smul.u32 (!%p237_p3), 3, %s1094_s15  ;;  %p919_p6 = scmp.ne.s32.totalorder (!%p237_p3), %s1094_s15, 0 }
   0x7   : > { %240 = sbr.rel (%p237_p3) target bundleno = 323 (0x143), region = 36 }
   0x8   : > { %s303_s20 = smul.u32 (!%p237_p3), 48, %s1094_s15  ;;  %p296_p4 = scmp.lt.s32.totalorder (!%p237_p3), %s293_s19, 17 }
   0xa   : > { %p305_p5 = scmp.lt.s32.totalorder (!%p237_p3), %s303_s20, 287 }
   0xe   : > { %s1243_s19 = smov (!%p296_p4, %s293_s19), 17  ;;  %s1245_s20 = smov (!%p305_p5, %s303_s20), 287 }
   0xf   : > { %s916_s21 = sshll.u32 %s1243_s19, 2  ;;  %s977_s25 = sshll.u32 %s1245_s20, 3  ;;  %v1104_v0 = vmov (!%p919_p6), 0.0  }
  0x10   : > { %s1156_s24 = scalar_lea.vmem %s1233_s0, %s916_s21  ;;  %s1161_s28 = scalar_lea.vmem %s1234_s1, %s977_s25  ;;  %345 = vst [vmem:[#allocation2] sm:$0xff] (!%p919_p6), %v1104_v0  ;;  %346 = vst [vmem:[#allocation2 + $0x8] sm:$0xff] (!%p919_p6), %v1104_v0 }
  0x11   : > { %344 = sbr.rel (%p919_p6) target bundleno = 24 (0x18), region = 40 }
  0x18 PF: > { %v1005_v1 = vld [vmem:[%s1161_s28 + $0x4] ss:$8 sps:$4 sm:$0xff]   ;;  %v1007_v2 = vld [vmem:[%s1161_s28] ss:$8 sps:$4 sm:$0xff]   ;;  %v1105_v3 = vmov 0   ;;  %p971_p7 = scmp.ne.s32.totalorder %s1094_s15, 5 }
  0x19   : > { %723 = vmatprep.mubr.bf16.mxu1 %v1105_v3  ;;  %650 = vmatprep.subr.bf16.mxu0 %v1005_v1  ;;  %v1008_v4 = vld [vmem:[%s1161_s28 + $0x14] ss:$8 sps:$4 sm:$0xff]   ;;  %v1010_v5 = vld [vmem:[%s1161_s28 + $0x10] ss:$8 sps:$4 sm:$0xff]   ;;  %v1011_v6 = vld [vmem:[%s1161_s28 + $0x24] ss:$8 sps:$4 sm:$0xff]  }
  0x1a   : > { %651 = vmatpush1.bf16.msra.mxu0 %v1007_v2  ;;  %v1013_v7 = vld [vmem:[%s1161_s28 + $0x20] ss:$8 sps:$4 sm:$0xff]   ;;  %v1014_v8 = vld [vmem:[%s1161_s28 + $0x34] ss:$8 sps:$4 sm:$0xff]   ;;  %v1016_v9 = vld [vmem:[%s1161_s28 + $0x30] ss:$8 sps:$4 sm:$0xff]  }
  0x1b   : > { %652 = vmatprep.subr.bf16.mxu0 %v1008_v4  ;;  %v1029_v10 = vld [vmem:[%s1161_s28 + $0x104] ss:$8 sps:$4 sm:$0xff]   ;;  %v1031_v11 = vld [vmem:[%s1161_s28 + $0x100] ss:$8 sps:$4 sm:$0xff]   ;;  %v1035_v13 = vld [vmem:[%s1161_s28 + $0x114] ss:$8 sps:$4 sm:$0xff]   ;;  %v744_v4 = vlaneseq (!%p971_p7) }
  0x1c   : > { %v1017_v12 = vld [vmem:[%s1161_s28 + $0x44] ss:$8 sps:$4 sm:$0xff]   ;;  %691 = vmatprep.subr.bf16.mxu1 %v1029_v10  ;;  %v1037_v14 = vld [vmem:[%s1161_s28 + $0x110] ss:$8 sps:$4 sm:$0xff]   ;;  %v1019_v15 = vld [vmem:[%s1161_s28 + $0x40] ss:$8 sps:$4 sm:$0xff]  }
  0x1d   : > { %692 = vmatpush1.bf16.msra.mxu1 %v1031_v11  ;;  %v1020_v16 = vld [vmem:[%s1161_s28 + $0x54] ss:$8 sps:$4 sm:$0xff]   ;;  %v1041_v17 = vld [vmem:[%s1161_s28 + $0x124] ss:$8 sps:$4 sm:$0xff]   ;;  %v1043_v18 = vld [vmem:[%s1161_s28 + $0x120] ss:$8 sps:$4 sm:$0xff]  }
  0x1e   : > { %653 = vmatpush1.bf16.msra.mxu0 %v1010_v5  ;;  %693 = vmatprep.subr.bf16.mxu1 %v1035_v13  ;;  %v1022_v19 = vld [vmem:[%s1161_s28 + $0x50] ss:$8 sps:$4 sm:$0xff]   ;;  %v1047_v20 = vld [vmem:[%s1161_s28 + $0x134] ss:$8 sps:$4 sm:$0xff]   ;;  %v1023_v21 = vld [vmem:[%s1161_s28 + $0x64] ss:$8 sps:$4 sm:$0xff]  }
  0x1f   : > { %654 = vmatprep.subr.bf16.mxu0 %v1011_v6  ;;  %v1049_v22 = vld [vmem:[%s1161_s28 + $0x130] ss:$8 sps:$4 sm:$0xff]   ;;  %v1025_v23 = vld [vmem:[%s1161_s28 + $0x60] ss:$8 sps:$4 sm:$0xff]   ;;  %v1053_v24 = vld [vmem:[%s1161_s28 + $0x144] ss:$8 sps:$4 sm:$0xff]  }
  0x20   : > { %v1026_v25 = vld [vmem:[%s1161_s28 + $0x74] ss:$8 sps:$4 sm:$0xff]   ;;  %v1055_v26 = vld [vmem:[%s1161_s28 + $0x140] ss:$8 sps:$4 sm:$0xff]   ;;  %v1028_v27 = vld [vmem:[%s1161_s28 + $0x70] ss:$8 sps:$4 sm:$0xff]  }
  0x21   : > { %694 = vmatpush1.bf16.msra.mxu1 %v1037_v14  ;;  %v1059_v28 = vld [vmem:[%s1161_s28 + $0x154] ss:$8 sps:$4 sm:$0xff]   ;;  %v1032_v29 = vld [vmem:[%s1161_s28 + $0x84] ss:$8 sps:$4 sm:$0xff]   ;;  %v1061_v30 = vld [vmem:[%s1161_s28 + $0x150] ss:$8 sps:$4 sm:$0xff]  }
  0x22   : > { %655 = vmatpush1.bf16.msra.mxu0 %v1013_v7  ;;  %695 = vmatprep.subr.bf16.mxu1 %v1041_v17  ;;  %v1034_v31 = vld [vmem:[%s1161_s28 + $0x80] ss:$8 sps:$4 sm:$0xff]   ;;  %v1065_v32 = vld [vmem:[%s1161_s28 + $0x164] ss:$8 sps:$4 sm:$0xff]   ;;  %v1038_v33 = vld [vmem:[%s1161_s28 + $0x94] ss:$8 sps:$4 sm:$0xff]  }
  0x23   : > { %656 = vmatprep.subr.bf16.mxu0 %v1014_v8  ;;  %v349_v34 = vld [vmem:[%s1156_s24] sm:$0xff]  ;;  %v1040_v37 = vld [vmem:[%s1161_s28 + $0x90] ss:$8 sps:$4 sm:$0xff]   ;;  %v1071_v38 = vld [vmem:[%s1161_s28 + $0x174] ss:$8 sps:$4 sm:$0xff]   ;;  %v745_v5 = vshrl.u32 (!%p971_p7), %v744_v4, 7 }
  0x24   : > { %v921_v35 = vcombine.high %v349_v34, %v349_v34  ;;  %v1067_v36 = vld [vmem:[%s1161_s28 + $0x160] ss:$8 sps:$4 sm:$0xff]   ;;  %v1044_v39 = vld [vmem:[%s1161_s28 + $0xa4] ss:$8 sps:$4 sm:$0xff]   ;;  %v1073_v40 = vld [vmem:[%s1161_s28 + $0x170] ss:$8 sps:$4 sm:$0xff]   ;;  %v920_v53 = vcombine.low %v349_v34, %v349_v34 }
  0x25   : > { %696 = vmatpush1.bf16.msra.mxu1 %v1043_v18  ;;  %v1046_v41 = vld [vmem:[%s1161_s28 + $0xa0] ss:$8 sps:$4 sm:$0xff]   ;;  %v1050_v42 = vld [vmem:[%s1161_s28 + $0xb4] ss:$8 sps:$4 sm:$0xff]   ;;  %v1052_v44 = vld [vmem:[%s1161_s28 + $0xb0] ss:$8 sps:$4 sm:$0xff]  }
  0x26   : > { %657 = vmatpush1.bf16.msra.mxu0 %v1016_v9  ;;  %697 = vmatprep.subr.bf16.mxu1 %v1047_v20  ;;  %v1077_v43 = vld [vmem:[%s1156_s24 + $0x8] ss:$0 sps:$4 sm:$0xff]   ;;  %v1056_v45 = vld [vmem:[%s1161_s28 + $0xc4] ss:$8 sps:$4 sm:$0xff]   ;;  %v1062_v47 = vld [vmem:[%s1161_s28 + $0xd4] ss:$8 sps:$4 sm:$0xff]  }
  0x27   : > { %658 = vmatprep.subr.bf16.mxu0 %v1017_v12  ;;  %682 = vmatprep.mubr.bf16.mxu0 %v921_v35  ;;  %v1058_v46 = vld [vmem:[%s1161_s28 + $0xc0] ss:$8 sps:$4 sm:$0xff]   ;;  %v1064_v48 = vld [vmem:[%s1161_s28 + $0xd0] ss:$8 sps:$4 sm:$0xff]   ;;  %v1068_v49 = vld [vmem:[%s1161_s28 + $0xe4] ss:$8 sps:$4 sm:$0xff]  }
  0x28   : > { %v1070_v50 = vld [vmem:[%s1161_s28 + $0xe0] ss:$8 sps:$4 sm:$0xff]   ;;  %v1074_v51 = vld [vmem:[%s1161_s28 + $0xf4] ss:$8 sps:$4 sm:$0xff]   ;;  %v1076_v52 = vld [vmem:[%s1161_s28 + $0xf0] ss:$8 sps:$4 sm:$0xff]  }
  0x29   : > { %698 = vmatpush1.bf16.msra.mxu1 %v1049_v22  ;;  %v347_v58 = vld [vmem:[#allocation2] sm:$0xff]  ;;  %v348_v61 = vld [vmem:[#allocation2 + $0x8] sm:$0xff]  ;;  %v746_v8 = vsub.s32 (!%p971_p7), 0, %v745_v5  ;;  %v750_v9 = vsub.s32 (!%p971_p7), 1, %v745_v5 }
  0x2a   : > { %659 = vmatpush1.bf16.msra.mxu0 %v1019_v15  ;;  %699 = vmatprep.subr.bf16.mxu1 %v1053_v24  ;;  %v742_v6 = vld [vmem:[%s1235_s2] sm:$0x3] (!%p971_p7) }
  0x2b   : > { %660 = vmatprep.subr.bf16.mxu0 %v1020_v16  ;;  %v756_v7 = vld [vmem:[%s1236_s3] sm:$0xff] (!%p971_p7)  ;;  %v747_v12 = vrot.slane (!%p971_p7), %v742_v6, %v746_v8  ;;  %v751_v13 = vrot.slane (!%p971_p7), %v742_v6, %v750_v9 }
  0x2c   : > { %v757_v14 = vunpack.c.l.bf16 (!%p971_p7), %v756_v7  ;;  %v758_v15 = vunpack.c.h.bf16 (!%p971_p7), %v756_v7 }
  0x2d   : > { %700 = vmatpush1.bf16.msra.mxu1 %v1055_v26 }
  0x2e   : > { %661 = vmatpush1.bf16.msra.mxu0 %v1022_v19  ;;  %701 = vmatprep.subr.bf16.mxu1 %v1059_v28 }
  0x2f   : > { %662 = vmatprep.subr.bf16.mxu0 %v1023_v21 }
  0x31   : > { %702 = vmatpush1.bf16.msra.mxu1 %v1061_v30 }
  0x32   : > { %663 = vmatpush1.bf16.msra.mxu0 %v1025_v23  ;;  %703 = vmatprep.subr.bf16.mxu1 %v1065_v32 }
  0x33   : > { %664 = vmatprep.subr.bf16.mxu0 %v1026_v25 }
  0x35   : > { %704 = vmatpush1.bf16.msra.mxu1 %v1067_v36 }
  0x36   : > { %665 = vmatpush1.bf16.msra.mxu0 %v1028_v27  ;;  %705 = vmatprep.subr.bf16.mxu1 %v1071_v38 }
  0x37   : > { %666 = vmatprep.subr.bf16.mxu0 %v1032_v29 }
  0x39   : > { %706 = vmatpush1.bf16.msra.mxu1 %v1073_v40 }
  0x3a   : > { %667 = vmatpush1.bf16.msra.mxu0 %v1034_v31 }
  0x3b   : > { %668 = vmatprep.subr.bf16.mxu0 %v1038_v33 }
  0x3c   : > { %724 = vmatmul.mubr.bf16.vlgmr.msra.gmra.mrb[0].mxu1 %v1077_v43 }
  0x3e   : > { %669 = vmatpush1.bf16.msra.mxu0 %v1040_v37 }
  0x3f   : > { %670 = vmatprep.subr.bf16.mxu0 %v1044_v39 }
  0x42   : > { %671 = vmatpush1.bf16.msra.mxu0 %v1046_v41 }
  0x43   : > { %672 = vmatprep.subr.bf16.mxu0 %v1050_v42 }
  0x46   : > { %673 = vmatpush1.bf16.msra.mxu0 %v1052_v44 }
  0x47   : > { %674 = vmatprep.subr.bf16.mxu0 %v1056_v45 }
  0x4a   : > { %675 = vmatpush1.bf16.msra.mxu0 %v1058_v46 }
  0x4b   : > { %676 = vmatprep.subr.bf16.mxu0 %v1062_v47 }
  0x4e   : > { %677 = vmatpush1.bf16.msra.mxu0 %v1064_v48 }
  0x4f   : > { %678 = vmatprep.subr.bf16.mxu0 %v1068_v49 }
  0x52   : > { %679 = vmatpush1.bf16.msra.mxu0 %v1070_v50 }
  0x53   : > { %680 = vmatprep.subr.bf16.mxu0 %v1074_v51 }
  0x56   : > { %681 = vmatpush1.bf16.msra.mxu0 %v1076_v52 }
  0x59   : > { %683 = vmatmul.mubr.bf16.vlgmr.msra.gmra.mrb[0].mxu0 %v920_v53 }
 0x10f   : > { %v725_v54 = vpop.f32.mrb[0].mxu1 }
 0x110   : > { %v727_v55 = vpop.f32.mrb[1].mxu1 }
 0x111   : > { %v729_v56 = vpop.f32.mrb[2].mxu1 }
 0x112   : > { %v730_v57 = vpop.f32.mrb[3].mxu1 }
 0x12c   : > { %v684_v59 = vpop.f32.mrb[0].mxu0  ;;  %739 = sbr.rel (%p971_p7) target bundleno = 323 (0x143), region = 44 }
 0x12d   : > { %v726_v60 = vadd.f32 %v725_v54, %v684_v59  ;;  %v686_v62 = vpop.f32.mrb[1].mxu0 }
 0x12e   : > { %v728_v63 = vadd.f32 %v727_v55, %v686_v62  ;;  %v688_v0 = vpop.f32.mrb[2].mxu0 }
 0x12f   : > { %v732_v1 = vadd.f32 %v726_v60, %v347_v58  ;;  %v689_v2 = vpop.f32.mrb[3].mxu0 }
 0x130   : > { %v733_v3 = vadd.f32 %v728_v63, %v348_v61 }
 0x131   : > { %734 = vst [vmem:[#allocation2] sm:$0xff] %v732_v1 }
 0x132   : > { %735 = vst [vmem:[#allocation2 + $0x8] sm:$0xff] %v733_v3 }
 0x138   : > { %v740_v10 = vld [vmem:[#allocation2] sm:$0xff] }
 0x139   : > { %v741_v11 = vld [vmem:[#allocation2 + $0x8] sm:$0xff]  ;;  %v754_v16 = vadd.f32 %v747_v12, %v740_v10 }
 0x13a   : > { %v755_v17 = vadd.f32 %v751_v13, %v741_v11 }
 0x13b   : > { %v759_v18 = vadd.f32 %v757_v14, %v754_v16 }
 0x13c   : > { %v760_v19 = vadd.f32 %v758_v15, %v755_v17 }
 0x13d   : > { %v761_v20 = vmax.f32 %v759_v18, 0.0 }
 0x13e   : > { %v762_v21 = vmax.f32 %v760_v19, 0.0 }
 0x140   : > { %v978_v22 = vpack.c.bf16 %v762_v21, %v761_v20 }
 0x142   : > { %771 = vst [vmem:[%s1237_s4] sm:$0xff] %v978_v22 }
 0x143 PF: > { %s14_s17 = sadd.s32 1, %s1102_s17   ;;  %s1238_s15 = smov %s1098_s16 }
 0x144   : > { %p11_p8 = scmp.ge.s32.totalorder %s14_s17, 8   ;;  %s1239_s16 = smov %s1241_s18 }
 0x146   :  { %13 = sbr.rel (!%p11_p8) target bundleno = 2 (0x2), region = 83 }

// kernel: resnet34_forward.66
= control target key start
LH: loop header
LB: loop body
LE: loop exit
PB: predicated region body
PF: predicated region fallthrough
CT: control target
= control target key end

     0   :  { %s1319_s12 = smov 0   ;;  %s1321_s13 = smov 0   ;;  %s1582_s0 = inlined_call_operand.vmem [shape: bf16[8,2304], index: 0, kind: input, shape index: {}]   ;;  %s1583_s1 = inlined_call_operand.vmem [shape: bf16[2304,512], index: 1, kind: input, shape index: {}]   ;;  %s1584_s2 = inlined_call_operand.vmem [shape: f32[1,512], index: 2, kind: input, shape index: {}]   ;;  %s1585_s3 = inlined_call_operand.vmem [shape: bf16[8,512], index: 3, kind: output, shape index: {}]  }
   0x1   :  { %s1323_s14 = smov 0   ;;  %s1325_s15 = smov 0  }
   0x2   :  { %s1327_s16 = smov 0   ;;  %s1329_s17 = smov 0  }
   0x3   :  { %s1331_s18 = smov 0  }
   0x4 LB: > { %s25_s19 = sadd.s32 1, %s1287_s16  ;;  %s28_s20 = sadd.s32 1, %s1291_s17  ;;  %s1295_s18 = sphi %s1331_s18, %s13_s18   ;;  %s1291_s17 = sphi %s1329_s17, %s1591_s17   ;;  %s1287_s16 = sphi %s1327_s16, %s1590_s16   ;;  %s1283_s15 = sphi %s1325_s15, %s1589_s15   ;;  %s1279_s14 = sphi %s1323_s14, %s1588_s14   ;;  %s1275_s13 = sphi %s1321_s13, %s1587_s13   ;;  %s1271_s12 = sphi %s1319_s12, %s1586_s12  }
   0x5   : > { %p26_p0 = scmp.ge.s32.totalorder %s25_s19, 6  ;;  %p76_p1 = scmp.ne.s32.totalorder %s1275_s13, %s1271_s12 }
   0x6   : > { %p77_p2 = scmp.eq.s32.totalorder %s1295_s18, 0  ;;  %s69_s24 = sadd.s32 1, %s1275_s13 }
   0x7   : > { %s1593_s19 = smov (%p26_p0, %s25_s19), 0  ;;  %s1595_s20 = smov (!%p26_p0, %s28_s20), %s1291_s17 }
   0x8   : > { %p78_p3 = por %p77_p2, %p76_p1  ;;  %p30_p4 = scmp.ge.s32.totalorder %s1595_s20, 2 }
   0x9   : > { %s64_s21 = ssub.s32 %s1287_s16, %s1593_s19  ;;  %p1039_p6 = scmp.ge.s32.totalorder %s1295_s18, 12 }
   0xa   : > { %s1597_s20 = smov (%p30_p4, %s1595_s20), 0 }
   0xb   : > { %s65_s22 = ssub.s32 %s1291_s17, %s1597_s20  ;;  %156 = sbr.rel (%p1039_p6) target bundleno = 50 (0x32), region = 16 }
   0xc   : > { %s66_s23 = sor.u32 %s65_s22, %s64_s21 }
   0xd   : > { %p67_p5 = scmp.eq.s32.totalorder %s66_s23, 0 }
   0xf   : > { %s1370_s25 = scalar_select %p67_p5, %s1275_s13, %s69_s24  }
  0x12   : > { %172 = sbr.rel (!%p78_p3) target bundleno = 50 (0x32), region = 24  ;;  %s174_s26 = sand.u32 (%p78_p3), 1, %s1275_s13  }
  0x13   : > { %s1106_s27 = smul.u32 (%p78_p3), 384, %s174_s26  ;;  %s1040_s28 = sshll.u32 (%p78_p3), %s1291_s17, 1 }
  0x14   : > { %s1104_s29 = smul.u32 (%p78_p3), 192, %s1287_s16 }
  0x15   : > { %s1384_s8 = scalar_lea.vmem (%p78_p3), [#allocation3], %s1106_s27 }
  0x16   : > { %s180_s30 = sadd.s32 (%p78_p3), %s1104_s29, %s1040_s28 }
  0x17   : > { %s1042_s4 = sshll.u32 (%p78_p3), %s180_s30, 2 }
  0x18   : > { %s1379_s7 = scalar_lea.vmem (%p78_p3), %s1583_s1, %s1042_s4 }
  0x19   : > { %v304_v0 = vld [vmem:[%s1379_s7] sm:$0xff]  ;;  %v306_v1 = vld [vmem:[%s1379_s7 + $0x10] sm:$0xff] }
  0x1a   : > { %v308_v2 = vld [vmem:[%s1379_s7 + $0x20] sm:$0xff]  ;;  %305 = vst [vmem:[%s1384_s8] sm:$0xff] %v304_v0  ;;  %307 = vst [vmem:[%s1384_s8 + $0x8] sm:$0xff] %v306_v1  ;;  %v310_v3 = vld [vmem:[%s1379_s7 + $0x30] sm:$0xff] }
  0x1b   : > { %309 = vst [vmem:[%s1384_s8 + $0x10] sm:$0xff] %v308_v2  ;;  %v312_v4 = vld [vmem:[%s1379_s7 + $0x40] sm:$0xff]  ;;  %v314_v5 = vld [vmem:[%s1379_s7 + $0x50] sm:$0xff]  ;;  %311 = vst [vmem:[%s1384_s8 + $0x18] sm:$0xff] %v310_v3 }
  0x1c   : > { %313 = vst [vmem:[%s1384_s8 + $0x20] sm:$0xff] %v312_v4  ;;  %315 = vst [vmem:[%s1384_s8 + $0x28] sm:$0xff] %v314_v5  ;;  %v316_v6 = vld [vmem:[%s1379_s7 + $0x60] sm:$0xff]  ;;  %v318_v7 = vld [vmem:[%s1379_s7 + $0x70] sm:$0xff] }
  0x1d   : > { %v320_v8 = vld [vmem:[%s1379_s7 + $0x80] sm:$0xff]  ;;  %317 = vst [vmem:[%s1384_s8 + $0x30] sm:$0xff] %v316_v6  ;;  %319 = vst [vmem:[%s1384_s8 + $0x38] sm:$0xff] %v318_v7  ;;  %v322_v9 = vld [vmem:[%s1379_s7 + $0x90] sm:$0xff] }
  0x1e   : > { %321 = vst [vmem:[%s1384_s8 + $0x40] sm:$0xff] %v320_v8  ;;  %v324_v10 = vld [vmem:[%s1379_s7 + $0xa0] sm:$0xff]  ;;  %v326_v11 = vld [vmem:[%s1379_s7 + $0xb0] sm:$0xff]  ;;  %323 = vst [vmem:[%s1384_s8 + $0x48] sm:$0xff] %v322_v9 }
  0x1f   : > { %325 = vst [vmem:[%s1384_s8 + $0x50] sm:$0xff] %v324_v10  ;;  %327 = vst [vmem:[%s1384_s8 + $0x58] sm:$0xff] %v326_v11  ;;  %v328_v12 = vld [vmem:[%s1379_s7 + $0xc0] sm:$0xff]  ;;  %v330_v13 = vld [vmem:[%s1379_s7 + $0xd0] sm:$0xff] }
  0x20   : > { %v332_v14 = vld [vmem:[%s1379_s7 + $0xe0] sm:$0xff]  ;;  %329 = vst [vmem:[%s1384_s8 + $0x60] sm:$0xff] %v328_v12  ;;  %331 = vst [vmem:[%s1384_s8 + $0x68] sm:$0xff] %v330_v13  ;;  %v334_v15 = vld [vmem:[%s1379_s7 + $0xf0] sm:$0xff] }
  0x21   : > { %333 = vst [vmem:[%s1384_s8 + $0x70] sm:$0xff] %v332_v14  ;;  %v336_v16 = vld [vmem:[%s1379_s7 + $0x100] sm:$0xff]  ;;  %v338_v17 = vld [vmem:[%s1379_s7 + $0x110] sm:$0xff]  ;;  %335 = vst [vmem:[%s1384_s8 + $0x78] sm:$0xff] %v334_v15 }
  0x22   : > { %337 = vst [vmem:[%s1384_s8 + $0x80] sm:$0xff] %v336_v16  ;;  %339 = vst [vmem:[%s1384_s8 + $0x88] sm:$0xff] %v338_v17  ;;  %v340_v18 = vld [vmem:[%s1379_s7 + $0x120] sm:$0xff]  ;;  %v342_v19 = vld [vmem:[%s1379_s7 + $0x130] sm:$0xff] }
  0x23   : > { %v344_v20 = vld [vmem:[%s1379_s7 + $0x140] sm:$0xff]  ;;  %341 = vst [vmem:[%s1384_s8 + $0x90] sm:$0xff] %v340_v18  ;;  %343 = vst [vmem:[%s1384_s8 + $0x98] sm:$0xff] %v342_v19  ;;  %v346_v21 = vld [vmem:[%s1379_s7 + $0x150] sm:$0xff] }
  0x24   : > { %345 = vst [vmem:[%s1384_s8 + $0xa0] sm:$0xff] %v344_v20  ;;  %v348_v22 = vld [vmem:[%s1379_s7 + $0x160] sm:$0xff]  ;;  %v350_v23 = vld [vmem:[%s1379_s7 + $0x170] sm:$0xff]  ;;  %347 = vst [vmem:[%s1384_s8 + $0xa8] sm:$0xff] %v346_v21 }
  0x25   : > { %349 = vst [vmem:[%s1384_s8 + $0xb0] sm:$0xff] %v348_v22  ;;  %351 = vst [vmem:[%s1384_s8 + $0xb8] sm:$0xff] %v350_v23  ;;  %v352_v24 = vld [vmem:[%s1379_s7 + $0x180] sm:$0xff]  ;;  %v354_v25 = vld [vmem:[%s1379_s7 + $0x190] sm:$0xff] }
  0x26   : > { %v356_v26 = vld [vmem:[%s1379_s7 + $0x1a0] sm:$0xff]  ;;  %353 = vst [vmem:[%s1384_s8 + $0xc0] sm:$0xff] %v352_v24  ;;  %355 = vst [vmem:[%s1384_s8 + $0xc8] sm:$0xff] %v354_v25  ;;  %v358_v27 = vld [vmem:[%s1379_s7 + $0x1b0] sm:$0xff] }
  0x27   : > { %357 = vst [vmem:[%s1384_s8 + $0xd0] sm:$0xff] %v356_v26  ;;  %v360_v28 = vld [vmem:[%s1379_s7 + $0x1c0] sm:$0xff]  ;;  %v362_v29 = vld [vmem:[%s1379_s7 + $0x1d0] sm:$0xff]  ;;  %359 = vst [vmem:[%s1384_s8 + $0xd8] sm:$0xff] %v358_v27 }
  0x28   : > { %361 = vst [vmem:[%s1384_s8 + $0xe0] sm:$0xff] %v360_v28  ;;  %363 = vst [vmem:[%s1384_s8 + $0xe8] sm:$0xff] %v362_v29  ;;  %v364_v30 = vld [vmem:[%s1379_s7 + $0x1e0] sm:$0xff]  ;;  %v366_v31 = vld [vmem:[%s1379_s7 + $0x1f0] sm:$0xff] }
  0x29   : > { %v368_v32 = vld [vmem:[%s1379_s7 + $0x200] sm:$0xff]  ;;  %365 = vst [vmem:[%s1384_s8 + $0xf0] sm:$0xff] %v364_v30  ;;  %367 = vst [vmem:[%s1384_s8 + $0xf8] sm:$0xff] %v366_v31  ;;  %v370_v33 = vld [vmem:[%s1379_s7 + $0x210] sm:$0xff] }
  0x2a   : > { %369 = vst [vmem:[%s1384_s8 + $0x100] sm:$0xff] %v368_v32  ;;  %v372_v34 = vld [vmem:[%s1379_s7 + $0x220] sm:$0xff]  ;;  %v374_v35 = vld [vmem:[%s1379_s7 + $0x230] sm:$0xff]  ;;  %371 = vst [vmem:[%s1384_s8 + $0x108] sm:$0xff] %v370_v33 }
  0x2b   : > { %373 = vst [vmem:[%s1384_s8 + $0x110] sm:$0xff] %v372_v34  ;;  %375 = vst [vmem:[%s1384_s8 + $0x118] sm:$0xff] %v374_v35  ;;  %v376_v36 = vld [vmem:[%s1379_s7 + $0x240] sm:$0xff]  ;;  %v378_v37 = vld [vmem:[%s1379_s7 + $0x250] sm:$0xff] }
  0x2c   : > { %v380_v38 = vld [vmem:[%s1379_s7 + $0x260] sm:$0xff]  ;;  %377 = vst [vmem:[%s1384_s8 + $0x120] sm:$0xff] %v376_v36  ;;  %379 = vst [vmem:[%s1384_s8 + $0x128] sm:$0xff] %v378_v37  ;;  %v382_v39 = vld [vmem:[%s1379_s7 + $0x270] sm:$0xff] }
  0x2d   : > { %381 = vst [vmem:[%s1384_s8 + $0x130] sm:$0xff] %v380_v38  ;;  %v384_v40 = vld [vmem:[%s1379_s7 + $0x280] sm:$0xff]  ;;  %v386_v41 = vld [vmem:[%s1379_s7 + $0x290] sm:$0xff]  ;;  %383 = vst [vmem:[%s1384_s8 + $0x138] sm:$0xff] %v382_v39 }
  0x2e   : > { %385 = vst [vmem:[%s1384_s8 + $0x140] sm:$0xff] %v384_v40  ;;  %387 = vst [vmem:[%s1384_s8 + $0x148] sm:$0xff] %v386_v41  ;;  %v388_v42 = vld [vmem:[%s1379_s7 + $0x2a0] sm:$0xff]  ;;  %v390_v43 = vld [vmem:[%s1379_s7 + $0x2b0] sm:$0xff] }
  0x2f   : > { %v392_v44 = vld [vmem:[%s1379_s7 + $0x2c0] sm:$0xff]  ;;  %389 = vst [vmem:[%s1384_s8 + $0x150] sm:$0xff] %v388_v42  ;;  %391 = vst [vmem:[%s1384_s8 + $0x158] sm:$0xff] %v390_v43  ;;  %v394_v45 = vld [vmem:[%s1379_s7 + $0x2d0] sm:$0xff] }
  0x30   : > { %393 = vst [vmem:[%s1384_s8 + $0x160] sm:$0xff] %v392_v44  ;;  %v396_v46 = vld [vmem:[%s1379_s7 + $0x2e0] sm:$0xff]  ;;  %v398_v47 = vld [vmem:[%s1379_s7 + $0x2f0] sm:$0xff]  ;;  %395 = vst [vmem:[%s1384_s8 + $0x168] sm:$0xff] %v394_v45 }
  0x31   : > { %397 = vst [vmem:[%s1384_s8 + $0x170] sm:$0xff] %v396_v46  ;;  %399 = vst [vmem:[%s1384_s8 + $0x178] sm:$0xff] %v398_v47 }
  0x32 PF: > { %p1043_p7 = scmp.ge.s32.totalorder %s1295_s18, 1  ;;  %p412_p8 = scmp.lt.s32.totalorder %s1295_s18, 13 }
  0x34   : > { %p413_p9 = pnand %p1043_p7, %p412_p8 }
  0x35   : > { %s419_s9 = sand.u32 (!%p413_p9), 1, %s1271_s12   ;;  %s459_s10 = smul.u32 (!%p413_p9), 3, %s1279_s14 }
  0x36   : > { %416 = sbr.rel (%p413_p9) target bundleno = 368 (0x170), region = 66  ;;  %s1045_s21 = sshll.u32 (!%p413_p9), %s1283_s15, 1 }
  0x37   : > { %s1107_s11 = smul.u32 (!%p413_p9), 384, %s419_s9  ;;  %p462_p10 = scmp.lt.s32.totalorder (!%p413_p9), %s459_s10, 17 }
  0x38   : > { %p472_p11 = scmp.lt.s32.totalorder (!%p413_p9), %s1045_s21, 3  ;;  %p1048_p12 = scmp.ne.s32.totalorder (!%p413_p9), %s1279_s14, 0 }
  0x39   : > { %s1501_s5 = scalar_lea.vmem (!%p413_p9), [#allocation3], %s1107_s11 }
  0x3d   : > { %s1599_s10 = smov (!%p462_p10, %s459_s10), 17  ;;  %s1601_s21 = smov (!%p472_p11, %s1045_s21), 3 }
  0x3e   : > { %s1044_s22 = sshll.u32 %s1599_s10, 2  ;;  %s474_s12 = scalar_lea.vmem %s1584_s2, %s1601_s21  ;;  %v1297_v48 = vmov (!%p1048_p12), 0.0  }
  0x3f   : > { %s1489_s26 = scalar_lea.vmem %s1582_s0, %s1044_s22  ;;  %s1047_s29 = sshll.u32 %s1601_s21, 2  ;;  %491 = vst [vmem:[#allocation2] sm:$0xff] (!%p1048_p12), %v1297_v48  ;;  %492 = vst [vmem:[#allocation2 + $0x8] sm:$0xff] (!%p1048_p12), %v1297_v48 }
  0x40   : > { %s1499_s4 = scalar_lea.vmem %s1585_s3, %s1047_s29  ;;  %490 = sbr.rel (%p1048_p12) target bundleno = 71 (0x47), region = 74 }
  0x47 PF: > { %v1166_v49 = vld [vmem:[%s1501_s5 + $0x4] ss:$8 sps:$4 sm:$0xff]   ;;  %v1168_v50 = vld [vmem:[%s1501_s5] ss:$8 sps:$4 sm:$0xff]   ;;  %v1298_v51 = vmov 0   ;;  %v495_v18 = vld [vmem:[%s1489_s26] sm:$0xff] }
  0x48   : > { %869 = vmatprep.mubr.bf16.mxu1 %v1298_v51  ;;  %796 = vmatprep.subr.bf16.mxu0 %v1166_v49  ;;  %v1169_v52 = vld [vmem:[%s1501_s5 + $0x14] ss:$8 sps:$4 sm:$0xff]   ;;  %v1171_v53 = vld [vmem:[%s1501_s5 + $0x10] ss:$8 sps:$4 sm:$0xff]   ;;  %v1172_v54 = vld [vmem:[%s1501_s5 + $0x24] ss:$8 sps:$4 sm:$0xff]   ;;  %v1050_v19 = vcombine.high %v495_v18, %v495_v18  ;;  %v1049_v37 = vcombine.low %v495_v18, %v495_v18 }
  0x49   : > { %797 = vmatpush1.bf16.msra.mxu0 %v1168_v50  ;;  %v1174_v55 = vld [vmem:[%s1501_s5 + $0x20] ss:$8 sps:$4 sm:$0xff]   ;;  %v1175_v56 = vld [vmem:[%s1501_s5 + $0x34] ss:$8 sps:$4 sm:$0xff]   ;;  %v1177_v57 = vld [vmem:[%s1501_s5 + $0x30] ss:$8 sps:$4 sm:$0xff]  }
  0x4a   : > { %798 = vmatprep.subr.bf16.mxu0 %v1169_v52  ;;  %v1190_v58 = vld [vmem:[%s1501_s5 + $0x104] ss:$8 sps:$4 sm:$0xff]   ;;  %v1192_v59 = vld [vmem:[%s1501_s5 + $0x100] ss:$8 sps:$4 sm:$0xff]   ;;  %v1196_v61 = vld [vmem:[%s1501_s5 + $0x114] ss:$8 sps:$4 sm:$0xff]   ;;  %828 = vmatprep.mubr.bf16.mxu0 %v1050_v19 }
  0x4b   : > { %v1178_v60 = vld [vmem:[%s1501_s5 + $0x44] ss:$8 sps:$4 sm:$0xff]   ;;  %837 = vmatprep.subr.bf16.mxu1 %v1190_v58  ;;  %v1198_v62 = vld [vmem:[%s1501_s5 + $0x110] ss:$8 sps:$4 sm:$0xff]   ;;  %v1180_v63 = vld [vmem:[%s1501_s5 + $0x40] ss:$8 sps:$4 sm:$0xff]  }
  0x4c   : > { %838 = vmatpush1.bf16.msra.mxu1 %v1192_v59  ;;  %v1181_v0 = vld [vmem:[%s1501_s5 + $0x54] ss:$8 sps:$4 sm:$0xff]   ;;  %v1202_v1 = vld [vmem:[%s1501_s5 + $0x124] ss:$8 sps:$4 sm:$0xff]   ;;  %v1204_v2 = vld [vmem:[%s1501_s5 + $0x120] ss:$8 sps:$4 sm:$0xff]  }
  0x4d   : > { %799 = vmatpush1.bf16.msra.mxu0 %v1171_v53  ;;  %839 = vmatprep.subr.bf16.mxu1 %v1196_v61  ;;  %v1183_v3 = vld [vmem:[%s1501_s5 + $0x50] ss:$8 sps:$4 sm:$0xff]   ;;  %v1208_v4 = vld [vmem:[%s1501_s5 + $0x134] ss:$8 sps:$4 sm:$0xff]   ;;  %v1184_v5 = vld [vmem:[%s1501_s5 + $0x64] ss:$8 sps:$4 sm:$0xff]  }
  0x4e   : > { %800 = vmatprep.subr.bf16.mxu0 %v1172_v54  ;;  %v1210_v6 = vld [vmem:[%s1501_s5 + $0x130] ss:$8 sps:$4 sm:$0xff]   ;;  %v1186_v7 = vld [vmem:[%s1501_s5 + $0x60] ss:$8 sps:$4 sm:$0xff]   ;;  %v1214_v8 = vld [vmem:[%s1501_s5 + $0x144] ss:$8 sps:$4 sm:$0xff]  }
  0x4f   : > { %v1187_v9 = vld [vmem:[%s1501_s5 + $0x74] ss:$8 sps:$4 sm:$0xff]   ;;  %v1216_v10 = vld [vmem:[%s1501_s5 + $0x140] ss:$8 sps:$4 sm:$0xff]   ;;  %v1189_v11 = vld [vmem:[%s1501_s5 + $0x70] ss:$8 sps:$4 sm:$0xff]  }
  0x50   : > { %840 = vmatpush1.bf16.msra.mxu1 %v1198_v62  ;;  %v1220_v12 = vld [vmem:[%s1501_s5 + $0x154] ss:$8 sps:$4 sm:$0xff]   ;;  %v1193_v13 = vld [vmem:[%s1501_s5 + $0x84] ss:$8 sps:$4 sm:$0xff]   ;;  %v1222_v14 = vld [vmem:[%s1501_s5 + $0x150] ss:$8 sps:$4 sm:$0xff]  }
  0x51   : > { %801 = vmatpush1.bf16.msra.mxu0 %v1174_v55  ;;  %841 = vmatprep.subr.bf16.mxu1 %v1202_v1  ;;  %v1195_v15 = vld [vmem:[%s1501_s5 + $0x80] ss:$8 sps:$4 sm:$0xff]   ;;  %v1226_v16 = vld [vmem:[%s1501_s5 + $0x164] ss:$8 sps:$4 sm:$0xff]   ;;  %v1199_v17 = vld [vmem:[%s1501_s5 + $0x94] ss:$8 sps:$4 sm:$0xff]  }
  0x52   : > { %802 = vmatprep.subr.bf16.mxu0 %v1175_v56  ;;  %v1228_v20 = vld [vmem:[%s1501_s5 + $0x160] ss:$8 sps:$4 sm:$0xff]   ;;  %v1201_v21 = vld [vmem:[%s1501_s5 + $0x90] ss:$8 sps:$4 sm:$0xff]   ;;  %v1232_v22 = vld [vmem:[%s1501_s5 + $0x174] ss:$8 sps:$4 sm:$0xff]  }
  0x53   : > { %v1205_v23 = vld [vmem:[%s1501_s5 + $0xa4] ss:$8 sps:$4 sm:$0xff]   ;;  %v1234_v24 = vld [vmem:[%s1501_s5 + $0x170] ss:$8 sps:$4 sm:$0xff]   ;;  %v1207_v25 = vld [vmem:[%s1501_s5 + $0xa0] ss:$8 sps:$4 sm:$0xff]  }
  0x54   : > { %842 = vmatpush1.bf16.msra.mxu1 %v1204_v2  ;;  %v1211_v26 = vld [vmem:[%s1501_s5 + $0xb4] ss:$8 sps:$4 sm:$0xff]   ;;  %v1238_v27 = vld [vmem:[%s1489_s26 + $0x8] ss:$0 sps:$4 sm:$0xff]   ;;  %v1217_v29 = vld [vmem:[%s1501_s5 + $0xc4] ss:$8 sps:$4 sm:$0xff]  }
  0x55   : > { %803 = vmatpush1.bf16.msra.mxu0 %v1177_v57  ;;  %843 = vmatprep.subr.bf16.mxu1 %v1208_v4  ;;  %v1213_v28 = vld [vmem:[%s1501_s5 + $0xb0] ss:$8 sps:$4 sm:$0xff]   ;;  %v1219_v30 = vld [vmem:[%s1501_s5 + $0xc0] ss:$8 sps:$4 sm:$0xff]   ;;  %v1223_v31 = vld [vmem:[%s1501_s5 + $0xd4] ss:$8 sps:$4 sm:$0xff]  }
  0x56   : > { %804 = vmatprep.subr.bf16.mxu0 %v1178_v60  ;;  %v1225_v32 = vld [vmem:[%s1501_s5 + $0xd0] ss:$8 sps:$4 sm:$0xff]   ;;  %v1229_v33 = vld [vmem:[%s1501_s5 + $0xe4] ss:$8 sps:$4 sm:$0xff]   ;;  %v1231_v34 = vld [vmem:[%s1501_s5 + $0xe0] ss:$8 sps:$4 sm:$0xff]  }
  0x57   : > { %v1235_v35 = vld [vmem:[%s1501_s5 + $0xf4] ss:$8 sps:$4 sm:$0xff]   ;;  %v1237_v36 = vld [vmem:[%s1501_s5 + $0xf0] ss:$8 sps:$4 sm:$0xff]   ;;  %p1100_p13 = scmp.ne.s32.totalorder %s1279_s14, 5 }
  0x58   : > { %844 = vmatpush1.bf16.msra.mxu1 %v1210_v6  ;;  %v493_v42 = vld [vmem:[#allocation2] sm:$0xff]  ;;  %v494_v45 = vld [vmem:[#allocation2 + $0x8] sm:$0xff]  ;;  %v890_v52 = vlaneseq (!%p1100_p13) }
  0x59   : > { %805 = vmatpush1.bf16.msra.mxu0 %v1180_v63  ;;  %845 = vmatprep.subr.bf16.mxu1 %v1214_v8  ;;  %v888_v54 = vld [vmem:[%s474_s12] sm:$0x3] (!%p1100_p13) }
  0x5a   : > { %806 = vmatprep.subr.bf16.mxu0 %v1181_v0  ;;  %v891_v53 = vshrl.u32 (!%p1100_p13), %v890_v52, 7 }
  0x5c   : > { %846 = vmatpush1.bf16.msra.mxu1 %v1216_v10  ;;  %v892_v55 = vsub.s32 (!%p1100_p13), 0, %v891_v53  ;;  %v896_v56 = vsub.s32 (!%p1100_p13), 1, %v891_v53 }
  0x5d   : > { %807 = vmatpush1.bf16.msra.mxu0 %v1183_v3  ;;  %847 = vmatprep.subr.bf16.mxu1 %v1220_v12 }
  0x5e   : > { %808 = vmatprep.subr.bf16.mxu0 %v1184_v5  ;;  %v893_v59 = vrot.slane (!%p1100_p13), %v888_v54, %v892_v55  ;;  %v897_v60 = vrot.slane (!%p1100_p13), %v888_v54, %v896_v56 }
  0x60   : > { %848 = vmatpush1.bf16.msra.mxu1 %v1222_v14 }
  0x61   : > { %809 = vmatpush1.bf16.msra.mxu0 %v1186_v7  ;;  %849 = vmatprep.subr.bf16.mxu1 %v1226_v16 }
  0x62   : > { %810 = vmatprep.subr.bf16.mxu0 %v1187_v9 }
  0x64   : > { %850 = vmatpush1.bf16.msra.mxu1 %v1228_v20 }
  0x65   : > { %811 = vmatpush1.bf16.msra.mxu0 %v1189_v11  ;;  %851 = vmatprep.subr.bf16.mxu1 %v1232_v22 }
  0x66   : > { %812 = vmatprep.subr.bf16.mxu0 %v1193_v13 }
  0x68   : > { %852 = vmatpush1.bf16.msra.mxu1 %v1234_v24 }
  0x69   : > { %813 = vmatpush1.bf16.msra.mxu0 %v1195_v15 }
  0x6a   : > { %814 = vmatprep.subr.bf16.mxu0 %v1199_v17 }
  0x6b   : > { %870 = vmatmul.mubr.bf16.vlgmr.msra.gmra.mrb[0].mxu1 %v1238_v27 }
  0x6d   : > { %815 = vmatpush1.bf16.msra.mxu0 %v1201_v21 }
  0x6e   : > { %816 = vmatprep.subr.bf16.mxu0 %v1205_v23 }
  0x71   : > { %817 = vmatpush1.bf16.msra.mxu0 %v1207_v25 }
  0x72   : > { %818 = vmatprep.subr.bf16.mxu0 %v1211_v26 }
  0x75   : > { %819 = vmatpush1.bf16.msra.mxu0 %v1213_v28 }
  0x76   : > { %820 = vmatprep.subr.bf16.mxu0 %v1217_v29 }
  0x79   : > { %821 = vmatpush1.bf16.msra.mxu0 %v1219_v30 }
  0x7a   : > { %822 = vmatprep.subr.bf16.mxu0 %v1223_v31 }
  0x7d   : > { %823 = vmatpush1.bf16.msra.mxu0 %v1225_v32 }
  0x7e   : > { %824 = vmatprep.subr.bf16.mxu0 %v1229_v33 }
  0x81   : > { %825 = vmatpush1.bf16.msra.mxu0 %v1231_v34 }
  0x82   : > { %826 = vmatprep.subr.bf16.mxu0 %v1235_v35 }
  0x85   : > { %827 = vmatpush1.bf16.msra.mxu0 %v1237_v36 }
  0x88   : > { %829 = vmatmul.mubr.bf16.vlgmr.msra.gmra.mrb[0].mxu0 %v1049_v37 }
 0x13e   : > { %v871_v38 = vpop.f32.mrb[0].mxu1 }
 0x13f   : > { %v873_v39 = vpop.f32.mrb[1].mxu1 }
 0x140   : > { %v875_v40 = vpop.f32.mrb[2].mxu1 }
 0x141   : > { %v876_v41 = vpop.f32.mrb[3].mxu1 }
 0x15b   : > { %v830_v43 = vpop.f32.mrb[0].mxu0  ;;  %885 = sbr.rel (%p1100_p13) target bundleno = 368 (0x170), region = 78 }
 0x15c   : > { %v872_v44 = vadd.f32 %v871_v38, %v830_v43  ;;  %v832_v46 = vpop.f32.mrb[1].mxu0 }
 0x15d   : > { %v874_v47 = vadd.f32 %v873_v39, %v832_v46  ;;  %v834_v48 = vpop.f32.mrb[2].mxu0 }
 0x15e   : > { %v878_v49 = vadd.f32 %v872_v44, %v493_v42  ;;  %v835_v50 = vpop.f32.mrb[3].mxu0 }
 0x15f   : > { %v879_v51 = vadd.f32 %v874_v47, %v494_v45 }
 0x160   : > { %880 = vst [vmem:[#allocation2] sm:$0xff] %v878_v49 }
 0x161   : > { %881 = vst [vmem:[#allocation2 + $0x8] sm:$0xff] %v879_v51 }
 0x167   : > { %v886_v57 = vld [vmem:[#allocation2] sm:$0xff] }
 0x168   : > { %v887_v58 = vld [vmem:[#allocation2 + $0x8] sm:$0xff]  ;;  %v900_v61 = vadd.f32 %v893_v59, %v886_v57 }
 0x169   : > { %v901_v62 = vadd.f32 %v897_v60, %v887_v58 }
 0x16a   : > { %v902_v63 = vmax.f32 %v900_v61, 0.0 }
 0x16b   : > { %v903_v0 = vmax.f32 %v901_v62, 0.0 }
 0x16d   : > { %v1105_v1 = vpack.c.bf16 %v903_v0, %v902_v63 }
 0x16f   : > { %912 = vst [vmem:[%s1499_s4] sm:$0xff] %v1105_v1 }
 0x170 PF: > { %s13_s18 = sadd.s32 1, %s1295_s18   ;;  %s1586_s12 = smov %s1275_s13 }
 0x171   : > { %p10_p0 = scmp.ge.s32.totalorder %s13_s18, 14   ;;  %s1587_s13 = smov %s1370_s25 }
 0x172   : > { %s1588_s14 = smov %s1287_s16  ;;  %s1589_s15 = smov %s1291_s17 }
 0x173   : > { %s1590_s16 = smov %s1593_s19  ;;  %s1591_s17 = smov %s1597_s20 }
 0x174   :  { %12 = sbr.rel (!%p10_p0) target bundleno = 4 (0x4), region = 119 }

// kernel: resnet34_forward.68
= control target key start
LH: loop header
LB: loop body
LE: loop exit
PB: predicated region body
PF: predicated region fallthrough
CT: control target
= control target key end

     0   :  { %s1616_s15 = smov 0   ;;  %s1618_s16 = smov 0   ;;  %s1933_s0 = inlined_call_operand.vmem [shape: bf16[8,4608], index: 0, kind: input, shape index: {}]   ;;  %s1934_s1 = inlined_call_operand.vmem [shape: bf16[4608,512], index: 1, kind: input, shape index: {}]   ;;  %s1935_s2 = inlined_call_operand.vmem [shape: f32[1,512], index: 2, kind: input, shape index: {}]   ;;  %s1936_s3 = inlined_call_operand.vmem [shape: bf16[8,512], index: 3, kind: input, shape index: {}]   ;;  %s1937_s4 = inlined_call_operand.vmem [shape: bf16[8,512], index: 4, kind: output, shape index: {}]  }
   0x1   :  { %s1620_s17 = smov 0   ;;  %s1622_s18 = smov 0  }
   0x2   :  { %s1624_s19 = smov 0   ;;  %s1626_s20 = smov 0  }
   0x3   :  { %s1628_s21 = smov 0  }
   0x4 LB: > { %s26_s22 = sadd.s32 1, %s1580_s19  ;;  %s29_s23 = sadd.s32 1, %s1584_s20  ;;  %s1588_s21 = sphi %s1628_s21, %s14_s21   ;;  %s1584_s20 = sphi %s1626_s20, %s1943_s20   ;;  %s1580_s19 = sphi %s1624_s19, %s1942_s19   ;;  %s1576_s18 = sphi %s1622_s18, %s1941_s18   ;;  %s1572_s17 = sphi %s1620_s17, %s1940_s17   ;;  %s1568_s16 = sphi %s1618_s16, %s1939_s16   ;;  %s1564_s15 = sphi %s1616_s15, %s1938_s15  }
   0x5   : > { %p27_p0 = scmp.ge.s32.totalorder %s26_s22, 9  ;;  %p77_p1 = scmp.ne.s32.totalorder %s1568_s16, %s1564_s15 }
   0x6   : > { %p78_p2 = scmp.eq.s32.totalorder %s1588_s21, 0  ;;  %s70_s27 = sadd.s32 1, %s1568_s16 }
   0x7   : > { %s1945_s22 = smov (%p27_p0, %s26_s22), 0  ;;  %s1947_s23 = smov (!%p27_p0, %s29_s23), %s1584_s20 }
   0x8   : > { %p79_p3 = por %p78_p2, %p77_p1  ;;  %p31_p4 = scmp.ge.s32.totalorder %s1947_s23, 2 }
   0x9   : > { %s65_s24 = ssub.s32 %s1580_s19, %s1945_s22  ;;  %p1287_p6 = scmp.ge.s32.totalorder %s1588_s21, 18 }
   0xa   : > { %s1949_s23 = smov (%p31_p4, %s1947_s23), 0 }
   0xb   : > { %s66_s25 = ssub.s32 %s1584_s20, %s1949_s23  ;;  %185 = sbr.rel (%p1287_p6) target bundleno = 57 (0x39), region = 16 }
   0xc   : > { %s67_s26 = sor.u32 %s66_s25, %s65_s24 }
   0xd   : > { %p68_p5 = scmp.eq.s32.totalorder %s67_s26, 0 }
   0xf   : > { %s1667_s28 = scalar_select %p68_p5, %s1568_s16, %s70_s27  }
  0x12   : > { %201 = sbr.rel (!%p79_p3) target bundleno = 57 (0x39), region = 24  ;;  %s203_s29 = sand.u32 (%p79_p3), 1, %s1568_s16  }
  0x13   : > { %s1290_s30 = sshll.u32 (%p79_p3), %s1584_s20, 1  ;;  %s1288_s5 = sshll.u32 (%p79_p3), %s203_s29, 9 }
  0x14   : > { %s1375_s6 = sshll.u32 (%p79_p3), %s1580_s19, 8  ;;  %s1681_s12 = scalar_lea.vmem (%p79_p3), [#allocation3], %s1288_s5 }
  0x15   : > { %s209_s7 = sadd.s32 (%p79_p3), %s1375_s6, %s1290_s30 }
  0x16   : > { %s1292_s8 = sshll.u32 (%p79_p3), %s209_s7, 2 }
  0x17   : > { %s1676_s11 = scalar_lea.vmem (%p79_p3), %s1934_s1, %s1292_s8 }
  0x18   : > { %v365_v0 = vld [vmem:[%s1676_s11] sm:$0xff] (%p79_p3)  ;;  %v367_v1 = vld [vmem:[%s1676_s11 + $0x10] sm:$0xff] (%p79_p3) }
  0x19   : > { %v369_v2 = vld [vmem:[%s1676_s11 + $0x20] sm:$0xff]  ;;  %366 = vst [vmem:[%s1681_s12] sm:$0xff] %v365_v0  ;;  %368 = vst [vmem:[%s1681_s12 + $0x8] sm:$0xff] %v367_v1  ;;  %v371_v3 = vld [vmem:[%s1676_s11 + $0x30] sm:$0xff] }
  0x1a   : > { %370 = vst [vmem:[%s1681_s12 + $0x10] sm:$0xff] %v369_v2  ;;  %v373_v4 = vld [vmem:[%s1676_s11 + $0x40] sm:$0xff]  ;;  %v375_v5 = vld [vmem:[%s1676_s11 + $0x50] sm:$0xff]  ;;  %372 = vst [vmem:[%s1681_s12 + $0x18] sm:$0xff] %v371_v3 }
  0x1b   : > { %374 = vst [vmem:[%s1681_s12 + $0x20] sm:$0xff] %v373_v4  ;;  %376 = vst [vmem:[%s1681_s12 + $0x28] sm:$0xff] %v375_v5  ;;  %v377_v6 = vld [vmem:[%s1676_s11 + $0x60] sm:$0xff]  ;;  %v379_v7 = vld [vmem:[%s1676_s11 + $0x70] sm:$0xff] }
  0x1c   : > { %v381_v8 = vld [vmem:[%s1676_s11 + $0x80] sm:$0xff]  ;;  %378 = vst [vmem:[%s1681_s12 + $0x30] sm:$0xff] %v377_v6  ;;  %380 = vst [vmem:[%s1681_s12 + $0x38] sm:$0xff] %v379_v7  ;;  %v383_v9 = vld [vmem:[%s1676_s11 + $0x90] sm:$0xff] }
  0x1d   : > { %382 = vst [vmem:[%s1681_s12 + $0x40] sm:$0xff] %v381_v8  ;;  %v385_v10 = vld [vmem:[%s1676_s11 + $0xa0] sm:$0xff]  ;;  %v387_v11 = vld [vmem:[%s1676_s11 + $0xb0] sm:$0xff]  ;;  %384 = vst [vmem:[%s1681_s12 + $0x48] sm:$0xff] %v383_v9 }
  0x1e   : > { %386 = vst [vmem:[%s1681_s12 + $0x50] sm:$0xff] %v385_v10  ;;  %388 = vst [vmem:[%s1681_s12 + $0x58] sm:$0xff] %v387_v11  ;;  %v389_v12 = vld [vmem:[%s1676_s11 + $0xc0] sm:$0xff]  ;;  %v391_v13 = vld [vmem:[%s1676_s11 + $0xd0] sm:$0xff] }
  0x1f   : > { %v393_v14 = vld [vmem:[%s1676_s11 + $0xe0] sm:$0xff]  ;;  %390 = vst [vmem:[%s1681_s12 + $0x60] sm:$0xff] %v389_v12  ;;  %392 = vst [vmem:[%s1681_s12 + $0x68] sm:$0xff] %v391_v13  ;;  %v395_v15 = vld [vmem:[%s1676_s11 + $0xf0] sm:$0xff] }
  0x20   : > { %394 = vst [vmem:[%s1681_s12 + $0x70] sm:$0xff] %v393_v14  ;;  %v397_v16 = vld [vmem:[%s1676_s11 + $0x100] sm:$0xff]  ;;  %v399_v17 = vld [vmem:[%s1676_s11 + $0x110] sm:$0xff]  ;;  %396 = vst [vmem:[%s1681_s12 + $0x78] sm:$0xff] %v395_v15 }
  0x21   : > { %398 = vst [vmem:[%s1681_s12 + $0x80] sm:$0xff] %v397_v16  ;;  %400 = vst [vmem:[%s1681_s12 + $0x88] sm:$0xff] %v399_v17  ;;  %v401_v18 = vld [vmem:[%s1676_s11 + $0x120] sm:$0xff]  ;;  %v403_v19 = vld [vmem:[%s1676_s11 + $0x130] sm:$0xff] }
  0x22   : > { %v405_v20 = vld [vmem:[%s1676_s11 + $0x140] sm:$0xff]  ;;  %402 = vst [vmem:[%s1681_s12 + $0x90] sm:$0xff] %v401_v18  ;;  %404 = vst [vmem:[%s1681_s12 + $0x98] sm:$0xff] %v403_v19  ;;  %v407_v21 = vld [vmem:[%s1676_s11 + $0x150] sm:$0xff] }
  0x23   : > { %406 = vst [vmem:[%s1681_s12 + $0xa0] sm:$0xff] %v405_v20  ;;  %v409_v22 = vld [vmem:[%s1676_s11 + $0x160] sm:$0xff]  ;;  %v411_v23 = vld [vmem:[%s1676_s11 + $0x170] sm:$0xff]  ;;  %408 = vst [vmem:[%s1681_s12 + $0xa8] sm:$0xff] %v407_v21 }
  0x24   : > { %410 = vst [vmem:[%s1681_s12 + $0xb0] sm:$0xff] %v409_v22  ;;  %412 = vst [vmem:[%s1681_s12 + $0xb8] sm:$0xff] %v411_v23  ;;  %v413_v24 = vld [vmem:[%s1676_s11 + $0x180] sm:$0xff]  ;;  %v415_v25 = vld [vmem:[%s1676_s11 + $0x190] sm:$0xff] }
  0x25   : > { %v417_v26 = vld [vmem:[%s1676_s11 + $0x1a0] sm:$0xff]  ;;  %414 = vst [vmem:[%s1681_s12 + $0xc0] sm:$0xff] %v413_v24  ;;  %416 = vst [vmem:[%s1681_s12 + $0xc8] sm:$0xff] %v415_v25  ;;  %v419_v27 = vld [vmem:[%s1676_s11 + $0x1b0] sm:$0xff] }
  0x26   : > { %418 = vst [vmem:[%s1681_s12 + $0xd0] sm:$0xff] %v417_v26  ;;  %v421_v28 = vld [vmem:[%s1676_s11 + $0x1c0] sm:$0xff]  ;;  %v423_v29 = vld [vmem:[%s1676_s11 + $0x1d0] sm:$0xff]  ;;  %420 = vst [vmem:[%s1681_s12 + $0xd8] sm:$0xff] %v419_v27 }
  0x27   : > { %422 = vst [vmem:[%s1681_s12 + $0xe0] sm:$0xff] %v421_v28  ;;  %424 = vst [vmem:[%s1681_s12 + $0xe8] sm:$0xff] %v423_v29  ;;  %v425_v30 = vld [vmem:[%s1676_s11 + $0x1e0] sm:$0xff]  ;;  %v427_v31 = vld [vmem:[%s1676_s11 + $0x1f0] sm:$0xff] }
  0x28   : > { %v429_v32 = vld [vmem:[%s1676_s11 + $0x200] sm:$0xff]  ;;  %426 = vst [vmem:[%s1681_s12 + $0xf0] sm:$0xff] %v425_v30  ;;  %428 = vst [vmem:[%s1681_s12 + $0xf8] sm:$0xff] %v427_v31  ;;  %v431_v33 = vld [vmem:[%s1676_s11 + $0x210] sm:$0xff] }
  0x29   : > { %430 = vst [vmem:[%s1681_s12 + $0x100] sm:$0xff] %v429_v32  ;;  %v433_v34 = vld [vmem:[%s1676_s11 + $0x220] sm:$0xff]  ;;  %v435_v35 = vld [vmem:[%s1676_s11 + $0x230] sm:$0xff]  ;;  %432 = vst [vmem:[%s1681_s12 + $0x108] sm:$0xff] %v431_v33 }
  0x2a   : > { %434 = vst [vmem:[%s1681_s12 + $0x110] sm:$0xff] %v433_v34  ;;  %436 = vst [vmem:[%s1681_s12 + $0x118] sm:$0xff] %v435_v35  ;;  %v437_v36 = vld [vmem:[%s1676_s11 + $0x240] sm:$0xff]  ;;  %v439_v37 = vld [vmem:[%s1676_s11 + $0x250] sm:$0xff] }
  0x2b   : > { %v441_v38 = vld [vmem:[%s1676_s11 + $0x260] sm:$0xff]  ;;  %438 = vst [vmem:[%s1681_s12 + $0x120] sm:$0xff] %v437_v36  ;;  %440 = vst [vmem:[%s1681_s12 + $0x128] sm:$0xff] %v439_v37  ;;  %v443_v39 = vld [vmem:[%s1676_s11 + $0x270] sm:$0xff] }
  0x2c   : > { %442 = vst [vmem:[%s1681_s12 + $0x130] sm:$0xff] %v441_v38  ;;  %v445_v40 = vld [vmem:[%s1676_s11 + $0x280] sm:$0xff]  ;;  %v447_v41 = vld [vmem:[%s1676_s11 + $0x290] sm:$0xff]  ;;  %444 = vst [vmem:[%s1681_s12 + $0x138] sm:$0xff] %v443_v39 }
  0x2d   : > { %446 = vst [vmem:[%s1681_s12 + $0x140] sm:$0xff] %v445_v40  ;;  %448 = vst [vmem:[%s1681_s12 + $0x148] sm:$0xff] %v447_v41  ;;  %v449_v42 = vld [vmem:[%s1676_s11 + $0x2a0] sm:$0xff]  ;;  %v451_v43 = vld [vmem:[%s1676_s11 + $0x2b0] sm:$0xff] }
  0x2e   : > { %v453_v44 = vld [vmem:[%s1676_s11 + $0x2c0] sm:$0xff]  ;;  %450 = vst [vmem:[%s1681_s12 + $0x150] sm:$0xff] %v449_v42  ;;  %452 = vst [vmem:[%s1681_s12 + $0x158] sm:$0xff] %v451_v43  ;;  %v455_v45 = vld [vmem:[%s1676_s11 + $0x2d0] sm:$0xff] }
  0x2f   : > { %454 = vst [vmem:[%s1681_s12 + $0x160] sm:$0xff] %v453_v44  ;;  %v457_v46 = vld [vmem:[%s1676_s11 + $0x2e0] sm:$0xff]  ;;  %v459_v47 = vld [vmem:[%s1676_s11 + $0x2f0] sm:$0xff]  ;;  %456 = vst [vmem:[%s1681_s12 + $0x168] sm:$0xff] %v455_v45 }
  0x30   : > { %458 = vst [vmem:[%s1681_s12 + $0x170] sm:$0xff] %v457_v46  ;;  %460 = vst [vmem:[%s1681_s12 + $0x178] sm:$0xff] %v459_v47  ;;  %v461_v48 = vld [vmem:[%s1676_s11 + $0x300] sm:$0xff]  ;;  %v463_v49 = vld [vmem:[%s1676_s11 + $0x310] sm:$0xff] }
  0x31   : > { %v465_v50 = vld [vmem:[%s1676_s11 + $0x320] sm:$0xff]  ;;  %462 = vst [vmem:[%s1681_s12 + $0x180] sm:$0xff] %v461_v48  ;;  %464 = vst [vmem:[%s1681_s12 + $0x188] sm:$0xff] %v463_v49  ;;  %v467_v51 = vld [vmem:[%s1676_s11 + $0x330] sm:$0xff] }
  0x32   : > { %466 = vst [vmem:[%s1681_s12 + $0x190] sm:$0xff] %v465_v50  ;;  %v469_v52 = vld [vmem:[%s1676_s11 + $0x340] sm:$0xff]  ;;  %v471_v53 = vld [vmem:[%s1676_s11 + $0x350] sm:$0xff]  ;;  %468 = vst [vmem:[%s1681_s12 + $0x198] sm:$0xff] %v467_v51 }
  0x33   : > { %470 = vst [vmem:[%s1681_s12 + $0x1a0] sm:$0xff] %v469_v52  ;;  %472 = vst [vmem:[%s1681_s12 + $0x1a8] sm:$0xff] %v471_v53  ;;  %v473_v54 = vld [vmem:[%s1676_s11 + $0x360] sm:$0xff]  ;;  %v475_v55 = vld [vmem:[%s1676_s11 + $0x370] sm:$0xff] }
  0x34   : > { %v477_v56 = vld [vmem:[%s1676_s11 + $0x380] sm:$0xff]  ;;  %474 = vst [vmem:[%s1681_s12 + $0x1b0] sm:$0xff] %v473_v54  ;;  %476 = vst [vmem:[%s1681_s12 + $0x1b8] sm:$0xff] %v475_v55  ;;  %v479_v57 = vld [vmem:[%s1676_s11 + $0x390] sm:$0xff] }
  0x35   : > { %478 = vst [vmem:[%s1681_s12 + $0x1c0] sm:$0xff] %v477_v56  ;;  %v481_v58 = vld [vmem:[%s1676_s11 + $0x3a0] sm:$0xff]  ;;  %v483_v59 = vld [vmem:[%s1676_s11 + $0x3b0] sm:$0xff]  ;;  %480 = vst [vmem:[%s1681_s12 + $0x1c8] sm:$0xff] %v479_v57 }
  0x36   : > { %482 = vst [vmem:[%s1681_s12 + $0x1d0] sm:$0xff] %v481_v58  ;;  %484 = vst [vmem:[%s1681_s12 + $0x1d8] sm:$0xff] %v483_v59  ;;  %v485_v60 = vld [vmem:[%s1676_s11 + $0x3c0] sm:$0xff]  ;;  %v487_v61 = vld [vmem:[%s1676_s11 + $0x3d0] sm:$0xff] }
  0x37   : > { %v489_v62 = vld [vmem:[%s1676_s11 + $0x3e0] sm:$0xff]  ;;  %486 = vst [vmem:[%s1681_s12 + $0x1e0] sm:$0xff] %v485_v60  ;;  %488 = vst [vmem:[%s1681_s12 + $0x1e8] sm:$0xff] %v487_v61  ;;  %v491_v63 = vld [vmem:[%s1676_s11 + $0x3f0] sm:$0xff] }
  0x38   : > { %490 = vst [vmem:[%s1681_s12 + $0x1f0] sm:$0xff] %v489_v62  ;;  %492 = vst [vmem:[%s1681_s12 + $0x1f8] sm:$0xff] %v491_v63 }
  0x39 PF: > { %p1293_p7 = scmp.ge.s32.totalorder %s1588_s21, 1  ;;  %p518_p8 = scmp.lt.s32.totalorder %s1588_s21, 19 }
  0x3b   : > { %p519_p9 = pnand %p1293_p7, %p518_p8 }
  0x3c   : > { %s525_s13 = sand.u32 (!%p519_p9), 1, %s1564_s15   ;;  %s1295_s14 = sshll.u32 (!%p519_p9), %s1572_s17, 2 }
  0x3d   : > { %522 = sbr.rel (%p519_p9) target bundleno = 379 (0x17b), region = 70  ;;  %s1294_s24 = sshll.u32 (!%p519_p9), %s525_s13, 9 }
  0x3e   : > { %p579_p10 = scmp.lt.s32.totalorder (!%p519_p9), %s1295_s14, 35  ;;  %s1297_s25 = sshll.u32 (!%p519_p9), %s1576_s18, 1 }
  0x3f   : > { %p589_p11 = scmp.lt.s32.totalorder (!%p519_p9), %s1297_s25, 3  ;;  %s1835_s13 = scalar_lea.vmem (!%p519_p9), [#allocation3], %s1294_s24 }
  0x40   : > { %p1302_p12 = scmp.ne.s32.totalorder (!%p519_p9), %s1572_s17, 0 }
  0x44   : > { %s1951_s14 = smov (!%p579_p10, %s1295_s14), 35  ;;  %s1953_s25 = smov (!%p589_p11, %s1297_s25), 3 }
  0x45   : > { %s1296_s26 = sshll.u32 %s1951_s14, 2  ;;  %s591_s15 = scalar_lea.vmem %s1935_s2, %s1953_s25  ;;  %v1590_v0 = vmov (!%p1302_p12), 0.0  }
  0x46   : > { %s1816_s30 = scalar_lea.vmem %s1933_s0, %s1296_s26  ;;  %s1299_s7 = sshll.u32 %s1953_s25, 2  ;;  %617 = vst [vmem:[#allocation2] sm:$0xff] (!%p1302_p12), %v1590_v0  ;;  %618 = vst [vmem:[#allocation2 + $0x8] sm:$0xff] (!%p1302_p12), %v1590_v0 }
  0x47   : > { %s1828_s18 = scalar_lea.vmem %s1936_s3, %s1299_s7  ;;  %s1833_s12 = scalar_lea.vmem %s1937_s4, %s1299_s7 }
  0x48   : > { %616 = sbr.rel (%p1302_p12) target bundleno = 79 (0x4f), region = 78 }
  0x4f PF: > { %v1434_v1 = vld [vmem:[%s1835_s13 + $0x4] ss:$8 sps:$4 sm:$0xff]   ;;  %v1438_v3 = vld [vmem:[%s1835_s13] ss:$8 sps:$4 sm:$0xff]   ;;  %v1440_v5 = vld [vmem:[%s1835_s13 + $0x14] ss:$8 sps:$4 sm:$0xff]  }
  0x50   : > { %v1436_v2 = vld [vmem:[%s1835_s13 + $0x104] ss:$8 sps:$4 sm:$0xff]   ;;  %1021 = vmatprep.subr.bf16.mxu0 %v1434_v1  ;;  %v1439_v4 = vld [vmem:[%s1835_s13 + $0x100] ss:$8 sps:$4 sm:$0xff]   ;;  %v1442_v6 = vld [vmem:[%s1835_s13 + $0x114] ss:$8 sps:$4 sm:$0xff]  }
  0x51   : > { %1062 = vmatprep.subr.bf16.mxu1 %v1436_v2  ;;  %1022 = vmatpush1.bf16.msra.mxu0 %v1438_v3  ;;  %v1444_v7 = vld [vmem:[%s1835_s13 + $0x10] ss:$8 sps:$4 sm:$0xff]   ;;  %v1446_v9 = vld [vmem:[%s1835_s13 + $0x24] ss:$8 sps:$4 sm:$0xff]   ;;  %v1450_v11 = vld [vmem:[%s1835_s13 + $0x20] ss:$8 sps:$4 sm:$0xff]  }
  0x52   : > { %1063 = vmatpush1.bf16.msra.mxu1 %v1439_v4  ;;  %1023 = vmatprep.subr.bf16.mxu0 %v1440_v5  ;;  %v1445_v8 = vld [vmem:[%s1835_s13 + $0x110] ss:$8 sps:$4 sm:$0xff]   ;;  %v1448_v10 = vld [vmem:[%s1835_s13 + $0x124] ss:$8 sps:$4 sm:$0xff]   ;;  %v1451_v12 = vld [vmem:[%s1835_s13 + $0x120] ss:$8 sps:$4 sm:$0xff]  }
  0x53   : > { %1064 = vmatprep.subr.bf16.mxu1 %v1442_v6  ;;  %v1452_v13 = vld [vmem:[%s1835_s13 + $0x34] ss:$8 sps:$4 sm:$0xff]   ;;  %v1456_v15 = vld [vmem:[%s1835_s13 + $0x30] ss:$8 sps:$4 sm:$0xff]   ;;  %v1458_v17 = vld [vmem:[%s1835_s13 + $0x44] ss:$8 sps:$4 sm:$0xff]  }
  0x54   : > { %v1454_v14 = vld [vmem:[%s1835_s13 + $0x134] ss:$8 sps:$4 sm:$0xff]   ;;  %v1457_v16 = vld [vmem:[%s1835_s13 + $0x130] ss:$8 sps:$4 sm:$0xff]   ;;  %v1460_v18 = vld [vmem:[%s1835_s13 + $0x144] ss:$8 sps:$4 sm:$0xff]  }
  0x55   : > { %1024 = vmatpush1.bf16.msra.mxu0 %v1444_v7  ;;  %v1462_v19 = vld [vmem:[%s1835_s13 + $0x40] ss:$8 sps:$4 sm:$0xff]   ;;  %v1464_v21 = vld [vmem:[%s1835_s13 + $0x54] ss:$8 sps:$4 sm:$0xff]   ;;  %v1468_v23 = vld [vmem:[%s1835_s13 + $0x50] ss:$8 sps:$4 sm:$0xff]  }
  0x56   : > { %1065 = vmatpush1.bf16.msra.mxu1 %v1445_v8  ;;  %1025 = vmatprep.subr.bf16.mxu0 %v1446_v9  ;;  %v1463_v20 = vld [vmem:[%s1835_s13 + $0x140] ss:$8 sps:$4 sm:$0xff]   ;;  %v1466_v22 = vld [vmem:[%s1835_s13 + $0x154] ss:$8 sps:$4 sm:$0xff]   ;;  %v1469_v24 = vld [vmem:[%s1835_s13 + $0x150] ss:$8 sps:$4 sm:$0xff]  }
  0x57   : > { %1066 = vmatprep.subr.bf16.mxu1 %v1448_v10  ;;  %v1470_v25 = vld [vmem:[%s1835_s13 + $0x64] ss:$8 sps:$4 sm:$0xff]   ;;  %v1474_v27 = vld [vmem:[%s1835_s13 + $0x60] ss:$8 sps:$4 sm:$0xff]   ;;  %v1476_v29 = vld [vmem:[%s1835_s13 + $0x74] ss:$8 sps:$4 sm:$0xff]  }
  0x58   : > { %v1472_v26 = vld [vmem:[%s1835_s13 + $0x164] ss:$8 sps:$4 sm:$0xff]   ;;  %v1475_v28 = vld [vmem:[%s1835_s13 + $0x160] ss:$8 sps:$4 sm:$0xff]   ;;  %v1478_v30 = vld [vmem:[%s1835_s13 + $0x174] ss:$8 sps:$4 sm:$0xff]  }
  0x59   : > { %1026 = vmatpush1.bf16.msra.mxu0 %v1450_v11  ;;  %v1480_v31 = vld [vmem:[%s1835_s13 + $0x70] ss:$8 sps:$4 sm:$0xff]   ;;  %v1482_v33 = vld [vmem:[%s1835_s13 + $0x84] ss:$8 sps:$4 sm:$0xff]   ;;  %v1486_v35 = vld [vmem:[%s1835_s13 + $0x80] ss:$8 sps:$4 sm:$0xff]  }
  0x5a   : > { %1067 = vmatpush1.bf16.msra.mxu1 %v1451_v12  ;;  %1027 = vmatprep.subr.bf16.mxu0 %v1452_v13  ;;  %v1481_v32 = vld [vmem:[%s1835_s13 + $0x170] ss:$8 sps:$4 sm:$0xff]   ;;  %v1484_v34 = vld [vmem:[%s1835_s13 + $0x184] ss:$8 sps:$4 sm:$0xff]   ;;  %v1487_v36 = vld [vmem:[%s1835_s13 + $0x180] ss:$8 sps:$4 sm:$0xff]  }
  0x5b   : > { %1068 = vmatprep.subr.bf16.mxu1 %v1454_v14  ;;  %v1488_v37 = vld [vmem:[%s1835_s13 + $0x94] ss:$8 sps:$4 sm:$0xff]   ;;  %v1492_v39 = vld [vmem:[%s1835_s13 + $0x90] ss:$8 sps:$4 sm:$0xff]   ;;  %v1494_v41 = vld [vmem:[%s1835_s13 + $0xa4] ss:$8 sps:$4 sm:$0xff]  }
  0x5c   : > { %v1490_v38 = vld [vmem:[%s1835_s13 + $0x194] ss:$8 sps:$4 sm:$0xff]   ;;  %v1493_v40 = vld [vmem:[%s1835_s13 + $0x190] ss:$8 sps:$4 sm:$0xff]   ;;  %v1496_v42 = vld [vmem:[%s1835_s13 + $0x1a4] ss:$8 sps:$4 sm:$0xff]  }
  0x5d   : > { %1028 = vmatpush1.bf16.msra.mxu0 %v1456_v15  ;;  %v1498_v43 = vld [vmem:[%s1835_s13 + $0xa0] ss:$8 sps:$4 sm:$0xff]   ;;  %v1500_v45 = vld [vmem:[%s1835_s13 + $0xb4] ss:$8 sps:$4 sm:$0xff]   ;;  %v1504_v50 = vld [vmem:[%s1835_s13 + $0xb0] ss:$8 sps:$4 sm:$0xff]  }
  0x5e   : > { %1069 = vmatpush1.bf16.msra.mxu1 %v1457_v16  ;;  %1029 = vmatprep.subr.bf16.mxu0 %v1458_v17  ;;  %v1499_v44 = vld [vmem:[%s1835_s13 + $0x1a0] ss:$8 sps:$4 sm:$0xff]   ;;  %v1502_v46 = vld [vmem:[%s1835_s13 + $0x1b4] ss:$8 sps:$4 sm:$0xff]   ;;  %v1505_v51 = vld [vmem:[%s1835_s13 + $0x1b0] ss:$8 sps:$4 sm:$0xff]  }
  0x5f   : > { %1070 = vmatprep.subr.bf16.mxu1 %v1460_v18  ;;  %v621_v47 = vld [vmem:[%s1816_s30] sm:$0xff]  ;;  %v622_v49 = vld [vmem:[%s1816_s30 + $0x8] sm:$0xff]  ;;  %v1506_v53 = vld [vmem:[%s1835_s13 + $0xc4] ss:$8 sps:$4 sm:$0xff]   ;;  %p1371_p13 = scmp.ne.s32.totalorder %s1572_s17, 8 }
  0x60   : > { %v1304_v48 = vcombine.high %v621_v47, %v621_v47  ;;  %v1306_v52 = vcombine.high %v622_v49, %v622_v49  ;;  %v1508_v54 = vld [vmem:[%s1835_s13 + $0x1c4] ss:$8 sps:$4 sm:$0xff]   ;;  %v1510_v55 = vld [vmem:[%s1835_s13 + $0xc0] ss:$8 sps:$4 sm:$0xff]   ;;  %v1512_v57 = vld [vmem:[%s1835_s13 + $0xd4] ss:$8 sps:$4 sm:$0xff]   ;;  %v1303_v5 = vcombine.low %v621_v47, %v621_v47  ;;  %v1305_v6 = vcombine.low %v622_v49, %v622_v49 }
  0x61   : > { %1030 = vmatpush1.bf16.msra.mxu0 %v1462_v19  ;;  %v1511_v56 = vld [vmem:[%s1835_s13 + $0x1c0] ss:$8 sps:$4 sm:$0xff]   ;;  %v1514_v58 = vld [vmem:[%s1835_s13 + $0x1d4] ss:$8 sps:$4 sm:$0xff]   ;;  %v1516_v59 = vld [vmem:[%s1835_s13 + $0xd0] ss:$8 sps:$4 sm:$0xff]  }
  0x62   : > { %1071 = vmatpush1.bf16.msra.mxu1 %v1463_v20  ;;  %1031 = vmatprep.subr.bf16.mxu0 %v1464_v21  ;;  %v1517_v60 = vld [vmem:[%s1835_s13 + $0x1d0] ss:$8 sps:$4 sm:$0xff]   ;;  %v1518_v61 = vld [vmem:[%s1835_s13 + $0xe4] ss:$8 sps:$4 sm:$0xff]   ;;  %v1522_v63 = vld [vmem:[%s1835_s13 + $0xe0] ss:$8 sps:$4 sm:$0xff]   ;;  %v1115_v21 = vlaneseq (!%p1371_p13) }
  0x63   : > { %1072 = vmatprep.subr.bf16.mxu1 %v1466_v22  ;;  %1053 = vmatprep.mubr.bf16.mxu0 %v1304_v48  ;;  %v1520_v62 = vld [vmem:[%s1835_s13 + $0x1e4] ss:$8 sps:$4 sm:$0xff]   ;;  %v1523_v0 = vld [vmem:[%s1835_s13 + $0x1e0] ss:$8 sps:$4 sm:$0xff]   ;;  %v1524_v1 = vld [vmem:[%s1835_s13 + $0xf4] ss:$8 sps:$4 sm:$0xff]  }
  0x64   : > { %1094 = vmatprep.mubr.bf16.mxu1 %v1306_v52  ;;  %v1526_v2 = vld [vmem:[%s1835_s13 + $0x1f4] ss:$8 sps:$4 sm:$0xff]   ;;  %v1528_v3 = vld [vmem:[%s1835_s13 + $0xf0] ss:$8 sps:$4 sm:$0xff]   ;;  %v1116_v22 = vshrl.u32 (!%p1371_p13), %v1115_v21, 7 }
  0x65   : > { %1032 = vmatpush1.bf16.msra.mxu0 %v1468_v23  ;;  %v1529_v4 = vld [vmem:[%s1835_s13 + $0x1f0] ss:$8 sps:$4 sm:$0xff]  }
  0x66   : > { %1073 = vmatpush1.bf16.msra.mxu1 %v1469_v24  ;;  %1033 = vmatprep.subr.bf16.mxu0 %v1470_v25  ;;  %v619_v8 = vld [vmem:[#allocation2] sm:$0xff]  ;;  %v620_v12 = vld [vmem:[#allocation2 + $0x8] sm:$0xff]  ;;  %v1117_v25 = vsub.s32 (!%p1371_p13), 0, %v1116_v22 }
  0x67   : > { %1074 = vmatprep.subr.bf16.mxu1 %v1472_v26  ;;  %v1113_v23 = vld [vmem:[%s591_s15] sm:$0x3] (!%p1371_p13)  ;;  %v1121_v26 = vsub.s32 (!%p1371_p13), 1, %v1116_v22 }
  0x68   : > { %v1127_v24 = vld [vmem:[%s1828_s18] sm:$0xff] (!%p1371_p13) }
  0x69   : > { %1034 = vmatpush1.bf16.msra.mxu0 %v1474_v27 }
  0x6a   : > { %1075 = vmatpush1.bf16.msra.mxu1 %v1475_v28  ;;  %1035 = vmatprep.subr.bf16.mxu0 %v1476_v29  ;;  %v1118_v29 = vrot.slane (!%p1371_p13), %v1113_v23, %v1117_v25 }
  0x6b   : > { %1076 = vmatprep.subr.bf16.mxu1 %v1478_v30  ;;  %v1122_v30 = vrot.slane (!%p1371_p13), %v1113_v23, %v1121_v26 }
  0x6d   : > { %1036 = vmatpush1.bf16.msra.mxu0 %v1480_v31  ;;  %v1128_v31 = vunpack.c.l.bf16 (!%p1371_p13), %v1127_v24 }
  0x6e   : > { %1077 = vmatpush1.bf16.msra.mxu1 %v1481_v32  ;;  %1037 = vmatprep.subr.bf16.mxu0 %v1482_v33  ;;  %v1129_v32 = vunpack.c.h.bf16 (!%p1371_p13), %v1127_v24 }
  0x6f   : > { %1078 = vmatprep.subr.bf16.mxu1 %v1484_v34 }
  0x71   : > { %1038 = vmatpush1.bf16.msra.mxu0 %v1486_v35 }
  0x72   : > { %1079 = vmatpush1.bf16.msra.mxu1 %v1487_v36  ;;  %1039 = vmatprep.subr.bf16.mxu0 %v1488_v37 }
  0x73   : > { %1080 = vmatprep.subr.bf16.mxu1 %v1490_v38 }
  0x75   : > { %1040 = vmatpush1.bf16.msra.mxu0 %v1492_v39 }
  0x76   : > { %1081 = vmatpush1.bf16.msra.mxu1 %v1493_v40  ;;  %1041 = vmatprep.subr.bf16.mxu0 %v1494_v41 }
  0x77   : > { %1082 = vmatprep.subr.bf16.mxu1 %v1496_v42 }
  0x79   : > { %1042 = vmatpush1.bf16.msra.mxu0 %v1498_v43 }
  0x7a   : > { %1083 = vmatpush1.bf16.msra.mxu1 %v1499_v44  ;;  %1043 = vmatprep.subr.bf16.mxu0 %v1500_v45 }
  0x7b   : > { %1084 = vmatprep.subr.bf16.mxu1 %v1502_v46 }
  0x7d   : > { %1044 = vmatpush1.bf16.msra.mxu0 %v1504_v50 }
  0x7e   : > { %1085 = vmatpush1.bf16.msra.mxu1 %v1505_v51  ;;  %1045 = vmatprep.subr.bf16.mxu0 %v1506_v53 }
  0x7f   : > { %1086 = vmatprep.subr.bf16.mxu1 %v1508_v54 }
  0x81   : > { %1046 = vmatpush1.bf16.msra.mxu0 %v1510_v55 }
  0x82   : > { %1087 = vmatpush1.bf16.msra.mxu1 %v1511_v56  ;;  %1047 = vmatprep.subr.bf16.mxu0 %v1512_v57 }
  0x83   : > { %1088 = vmatprep.subr.bf16.mxu1 %v1514_v58 }
  0x85   : > { %1048 = vmatpush1.bf16.msra.mxu0 %v1516_v59 }
  0x86   : > { %1089 = vmatpush1.bf16.msra.mxu1 %v1517_v60  ;;  %1049 = vmatprep.subr.bf16.mxu0 %v1518_v61 }
  0x87   : > { %1090 = vmatprep.subr.bf16.mxu1 %v1520_v62 }
  0x89   : > { %1050 = vmatpush1.bf16.msra.mxu0 %v1522_v63 }
  0x8a   : > { %1091 = vmatpush1.bf16.msra.mxu1 %v1523_v0  ;;  %1051 = vmatprep.subr.bf16.mxu0 %v1524_v1 }
  0x8b   : > { %1092 = vmatprep.subr.bf16.mxu1 %v1526_v2 }
  0x8d   : > { %1052 = vmatpush1.bf16.msra.mxu0 %v1528_v3 }
  0x8e   : > { %1093 = vmatpush1.bf16.msra.mxu1 %v1529_v4 }
  0x90   : > { %1054 = vmatmul.mubr.bf16.vlgmr.msra.gmra.mrb[0].mxu0 %v1303_v5 }
  0x91   : > { %1095 = vmatmul.mubr.bf16.vlgmr.msra.gmra.mrb[0].mxu1 %v1305_v6 }
 0x163   : > { %v1055_v7 = vpop.f32.mrb[0].mxu0 }
 0x164   : > { %v1096_v9 = vpop.f32.mrb[0].mxu1  ;;  %v1057_v11 = vpop.f32.mrb[1].mxu0  ;;  %1110 = sbr.rel (%p1371_p13) target bundleno = 379 (0x17b), region = 82 }
 0x165   : > { %v1097_v10 = vadd.f32 %v1096_v9, %v1055_v7  ;;  %v1098_v13 = vpop.f32.mrb[1].mxu1  ;;  %v1059_v15 = vpop.f32.mrb[2].mxu0 }
 0x166   : > { %v1099_v14 = vadd.f32 %v1098_v13, %v1057_v11  ;;  %v1100_v16 = vpop.f32.mrb[2].mxu1  ;;  %v1060_v18 = vpop.f32.mrb[3].mxu0 }
 0x167   : > { %v1103_v17 = vadd.f32 %v1097_v10, %v619_v8  ;;  %v1101_v19 = vpop.f32.mrb[3].mxu1 }
 0x168   : > { %v1104_v20 = vadd.f32 %v1099_v14, %v620_v12 }
 0x169   : > { %1105 = vst [vmem:[#allocation2] sm:$0xff] %v1103_v17 }
 0x16a   : > { %1106 = vst [vmem:[#allocation2 + $0x8] sm:$0xff] %v1104_v20 }
 0x170   : > { %v1111_v27 = vld [vmem:[#allocation2] sm:$0xff] }
 0x171   : > { %v1112_v28 = vld [vmem:[#allocation2 + $0x8] sm:$0xff]  ;;  %v1125_v33 = vadd.f32 %v1118_v29, %v1111_v27 }
 0x172   : > { %v1126_v34 = vadd.f32 %v1122_v30, %v1112_v28 }
 0x173   : > { %v1130_v35 = vadd.f32 %v1128_v31, %v1125_v33 }
 0x174   : > { %v1131_v36 = vadd.f32 %v1129_v32, %v1126_v34 }
 0x175   : > { %v1132_v37 = vmax.f32 %v1130_v35, 0.0 }
 0x176   : > { %v1133_v38 = vmax.f32 %v1131_v36, 0.0 }
 0x178   : > { %v1376_v39 = vpack.c.bf16 %v1133_v38, %v1132_v37 }
 0x17a   : > { %1142 = vst [vmem:[%s1833_s12] sm:$0xff] %v1376_v39 }
 0x17b PF: > { %s14_s21 = sadd.s32 1, %s1588_s21   ;;  %s1938_s15 = smov %s1568_s16 }
 0x17c   : > { %p11_p0 = scmp.ge.s32.totalorder %s14_s21, 20   ;;  %s1939_s16 = smov %s1667_s28 }
 0x17d   : > { %s1940_s17 = smov %s1580_s19  ;;  %s1941_s18 = smov %s1584_s20 }
 0x17e   : > { %s1942_s19 = smov %s1945_s22  ;;  %s1943_s20 = smov %s1949_s23 }
 0x17f   :  { %13 = sbr.rel (!%p11_p0) target bundleno = 4 (0x4), region = 126 }

// kernel: resnet34_forward.67
= control target key start
LH: loop header
LB: loop body
LE: loop exit
PB: predicated region body
PF: predicated region fallthrough
CT: control target
= control target key end

     0   :  { %s1028_s12 = smov 0   ;;  %s1030_s13 = smov 0   ;;  %s1207_s0 = inlined_call_operand.vmem [shape: bf16[8,256], index: 0, kind: input, shape index: {}]   ;;  %s1208_s1 = inlined_call_operand.vmem [shape: bf16[256,512], index: 1, kind: input, shape index: {}]   ;;  %s1209_s2 = inlined_call_operand.vmem [shape: f32[1,512], index: 2, kind: input, shape index: {}]   ;;  %s1210_s3 = inlined_call_operand.vmem [shape: bf16[8,512], index: 3, kind: output, shape index: {}]  }
   0x1   :  { %s1032_s14 = smov 0   ;;  %s1034_s15 = smov 0  }
   0x2   :  { %s1036_s16 = smov 0  }
   0x3 LB: > { %s28_s17 = sadd.s32 1, %s1002_s15  ;;  %p76_p1 = scmp.ne.s32.totalorder %s994_s13, %s990_s12  ;;  %s1006_s16 = sphi %s1036_s16, %s13_s16   ;;  %s1002_s15 = sphi %s1034_s15, %s1214_s15   ;;  %s998_s14 = sphi %s1032_s14, %s1213_s14   ;;  %s994_s13 = sphi %s1030_s13, %s1212_s13   ;;  %s990_s12 = sphi %s1028_s12, %s1211_s12  }
   0x4   : > { %p30_p0 = scmp.ge.s32.totalorder %s28_s17, 2  ;;  %p77_p2 = scmp.eq.s32.totalorder %s1006_s16, 0 }
   0x5   : > { %s69_s19 = sadd.s32 1, %s994_s13  ;;  %p830_p5 = scmp.ge.s32.totalorder %s1006_s16, 2 }
   0x6   : > { %s1216_s17 = smov (%p30_p0, %s28_s17), 0  ;;  %p78_p3 = por %p77_p2, %p76_p1 }
   0x7   : > { %s65_s18 = ssub.s32 %s1002_s15, %s1216_s17  ;;  %169 = sbr.rel (%p830_p5) target bundleno = 34 (0x22), region = 20 }
   0x8   : > { %p67_p4 = scmp.eq.s32.totalorder %s65_s18, 0 }
   0xa   : > { %s1063_s20 = scalar_select %p67_p4, %s994_s13, %s69_s19  }
   0xe   : > { %172 = sbr.rel (!%p78_p3) target bundleno = 34 (0x22), region = 24  ;;  %s174_s21 = sand.u32 (%p78_p3), 1, %s994_s13  }
   0xf   : > { %s876_s22 = sshll.u32 (%p78_p3), %s1002_s15, 3  ;;  %s831_s23 = sshll.u32 (%p78_p3), %s174_s21, 8 }
  0x10   : > { %s1071_s26 = scalar_lea.vmem (%p78_p3), %s1208_s1, %s876_s22  ;;  %s1076_s27 = scalar_lea.vmem (%p78_p3), [#allocation3], %s831_s23 }
  0x11   : > { %v272_v0 = vld [vmem:[%s1071_s26] sm:$0xff] (%p78_p3)  ;;  %v274_v1 = vld [vmem:[%s1071_s26 + $0x10] sm:$0xff] (%p78_p3) }
  0x12   : > { %v276_v2 = vld [vmem:[%s1071_s26 + $0x20] sm:$0xff] (%p78_p3)  ;;  %273 = vst [vmem:[%s1076_s27] sm:$0xff] (%p78_p3), %v272_v0  ;;  %275 = vst [vmem:[%s1076_s27 + $0x8] sm:$0xff] (%p78_p3), %v274_v1  ;;  %v278_v3 = vld [vmem:[%s1071_s26 + $0x30] sm:$0xff] (%p78_p3) }
  0x13   : > { %277 = vst [vmem:[%s1076_s27 + $0x10] sm:$0xff] (%p78_p3), %v276_v2  ;;  %v280_v4 = vld [vmem:[%s1071_s26 + $0x40] sm:$0xff] (%p78_p3)  ;;  %v282_v5 = vld [vmem:[%s1071_s26 + $0x50] sm:$0xff] (%p78_p3)  ;;  %279 = vst [vmem:[%s1076_s27 + $0x18] sm:$0xff] (%p78_p3), %v278_v3 }
  0x14   : > { %281 = vst [vmem:[%s1076_s27 + $0x20] sm:$0xff] (%p78_p3), %v280_v4  ;;  %283 = vst [vmem:[%s1076_s27 + $0x28] sm:$0xff] (%p78_p3), %v282_v5  ;;  %v284_v6 = vld [vmem:[%s1071_s26 + $0x60] sm:$0xff] (%p78_p3)  ;;  %v286_v7 = vld [vmem:[%s1071_s26 + $0x70] sm:$0xff] (%p78_p3) }
  0x15   : > { %v288_v8 = vld [vmem:[%s1071_s26 + $0x80] sm:$0xff]  ;;  %285 = vst [vmem:[%s1076_s27 + $0x30] sm:$0xff] %v284_v6  ;;  %287 = vst [vmem:[%s1076_s27 + $0x38] sm:$0xff] %v286_v7  ;;  %v290_v9 = vld [vmem:[%s1071_s26 + $0x90] sm:$0xff] }
  0x16   : > { %289 = vst [vmem:[%s1076_s27 + $0x40] sm:$0xff] %v288_v8  ;;  %v292_v10 = vld [vmem:[%s1071_s26 + $0xa0] sm:$0xff]  ;;  %v294_v11 = vld [vmem:[%s1071_s26 + $0xb0] sm:$0xff]  ;;  %291 = vst [vmem:[%s1076_s27 + $0x48] sm:$0xff] %v290_v9 }
  0x17   : > { %293 = vst [vmem:[%s1076_s27 + $0x50] sm:$0xff] %v292_v10  ;;  %295 = vst [vmem:[%s1076_s27 + $0x58] sm:$0xff] %v294_v11  ;;  %v296_v12 = vld [vmem:[%s1071_s26 + $0xc0] sm:$0xff]  ;;  %v298_v13 = vld [vmem:[%s1071_s26 + $0xd0] sm:$0xff] }
  0x18   : > { %v300_v14 = vld [vmem:[%s1071_s26 + $0xe0] sm:$0xff]  ;;  %297 = vst [vmem:[%s1076_s27 + $0x60] sm:$0xff] %v296_v12  ;;  %299 = vst [vmem:[%s1076_s27 + $0x68] sm:$0xff] %v298_v13  ;;  %v302_v15 = vld [vmem:[%s1071_s26 + $0xf0] sm:$0xff] }
  0x19   : > { %301 = vst [vmem:[%s1076_s27 + $0x70] sm:$0xff] %v300_v14  ;;  %v304_v16 = vld [vmem:[%s1071_s26 + $0x100] sm:$0xff]  ;;  %v306_v17 = vld [vmem:[%s1071_s26 + $0x110] sm:$0xff]  ;;  %303 = vst [vmem:[%s1076_s27 + $0x78] sm:$0xff] %v302_v15 }
  0x1a   : > { %305 = vst [vmem:[%s1076_s27 + $0x80] sm:$0xff] %v304_v16  ;;  %307 = vst [vmem:[%s1076_s27 + $0x88] sm:$0xff] %v306_v17  ;;  %v308_v18 = vld [vmem:[%s1071_s26 + $0x120] sm:$0xff]  ;;  %v310_v19 = vld [vmem:[%s1071_s26 + $0x130] sm:$0xff] }
  0x1b   : > { %v312_v20 = vld [vmem:[%s1071_s26 + $0x140] sm:$0xff]  ;;  %309 = vst [vmem:[%s1076_s27 + $0x90] sm:$0xff] %v308_v18  ;;  %311 = vst [vmem:[%s1076_s27 + $0x98] sm:$0xff] %v310_v19  ;;  %v314_v21 = vld [vmem:[%s1071_s26 + $0x150] sm:$0xff] }
  0x1c   : > { %313 = vst [vmem:[%s1076_s27 + $0xa0] sm:$0xff] %v312_v20  ;;  %v316_v22 = vld [vmem:[%s1071_s26 + $0x160] sm:$0xff]  ;;  %v318_v23 = vld [vmem:[%s1071_s26 + $0x170] sm:$0xff]  ;;  %315 = vst [vmem:[%s1076_s27 + $0xa8] sm:$0xff] %v314_v21 }
  0x1d   : > { %317 = vst [vmem:[%s1076_s27 + $0xb0] sm:$0xff] %v316_v22  ;;  %319 = vst [vmem:[%s1076_s27 + $0xb8] sm:$0xff] %v318_v23  ;;  %v320_v24 = vld [vmem:[%s1071_s26 + $0x180] sm:$0xff]  ;;  %v322_v25 = vld [vmem:[%s1071_s26 + $0x190] sm:$0xff] }
  0x1e   : > { %v324_v26 = vld [vmem:[%s1071_s26 + $0x1a0] sm:$0xff]  ;;  %321 = vst [vmem:[%s1076_s27 + $0xc0] sm:$0xff] %v320_v24  ;;  %323 = vst [vmem:[%s1076_s27 + $0xc8] sm:$0xff] %v322_v25  ;;  %v326_v27 = vld [vmem:[%s1071_s26 + $0x1b0] sm:$0xff] }
  0x1f   : > { %325 = vst [vmem:[%s1076_s27 + $0xd0] sm:$0xff] %v324_v26  ;;  %v328_v28 = vld [vmem:[%s1071_s26 + $0x1c0] sm:$0xff]  ;;  %v330_v29 = vld [vmem:[%s1071_s26 + $0x1d0] sm:$0xff]  ;;  %327 = vst [vmem:[%s1076_s27 + $0xd8] sm:$0xff] %v326_v27 }
  0x20   : > { %329 = vst [vmem:[%s1076_s27 + $0xe0] sm:$0xff] %v328_v28  ;;  %331 = vst [vmem:[%s1076_s27 + $0xe8] sm:$0xff] %v330_v29  ;;  %v332_v30 = vld [vmem:[%s1071_s26 + $0x1e0] sm:$0xff]  ;;  %v334_v31 = vld [vmem:[%s1071_s26 + $0x1f0] sm:$0xff] }
  0x21   : > { %333 = vst [vmem:[%s1076_s27 + $0xf0] sm:$0xff] %v332_v30  ;;  %335 = vst [vmem:[%s1076_s27 + $0xf8] sm:$0xff] %v334_v31 }
  0x22 PF: > { %p834_p6 = scmp.ge.s32.totalorder %s1006_s16, 1  ;;  %p348_p7 = scmp.lt.s32.totalorder %s1006_s16, 3 }
  0x24   : > { %p349_p8 = pnand %p834_p6, %p348_p7 }
  0x25   : > { %s355_s28 = sand.u32 (!%p349_p8), 1, %s990_s12   ;;  %v1145_v32 = vld [vmem:[%s1207_s0] sm:$0xff] (!%p349_p8)  ;;  %s836_s6 = sshll.u32 (!%p349_p8), %s998_s14, 1  ;;  %v682_v3 = vlaneseq (!%p349_p8) }
  0x26   : > { %352 = sbr.rel (%p349_p8) target bundleno = 323 (0x143), region = 66  ;;  %s835_s4 = sshll.u32 (!%p349_p8), %s355_s28, 8  ;;  %v840_v33 = vcombine.high (!%p349_p8), %v1145_v32, %v1145_v32  ;;  %v839_v2 = vcombine.low (!%p349_p8), %v1145_v32, %v1145_v32 }
  0x27   : > { %s1149_s5 = scalar_lea.vmem (!%p349_p8), [#allocation3], %s835_s4  ;;  %p408_p9 = scmp.lt.s32.totalorder (!%p349_p8), %s836_s6, 3  ;;  %v683_v4 = vshrl.u32 (!%p349_p8), %v682_v3, 7 }
  0x28   : > { %v918_v34 = vld [vmem:[%s1149_s5 + $0x4] ss:$8 sps:$4 sm:$0xff] (!%p349_p8)   ;;  %662 = vmatprep.mubr.bf16.mxu0 (!%p349_p8), %v840_v33  ;;  %v920_v35 = vld [vmem:[%s1149_s5] ss:$8 sps:$4 sm:$0xff] (!%p349_p8)   ;;  %v921_v36 = vld [vmem:[%s1149_s5 + $0x14] ss:$8 sps:$4 sm:$0xff] (!%p349_p8)  }
  0x29   : > { %630 = vmatprep.subr.bf16.mxu0 (!%p349_p8), %v918_v34  ;;  %v923_v37 = vld [vmem:[%s1149_s5 + $0x10] ss:$8 sps:$4 sm:$0xff] (!%p349_p8)   ;;  %v924_v38 = vld [vmem:[%s1149_s5 + $0x24] ss:$8 sps:$4 sm:$0xff] (!%p349_p8)   ;;  %v926_v39 = vld [vmem:[%s1149_s5 + $0x20] ss:$8 sps:$4 sm:$0xff] (!%p349_p8)  }
  0x2a   : > { %631 = vmatpush1.bf16.msra.mxu0 (!%p349_p8), %v920_v35  ;;  %v927_v40 = vld [vmem:[%s1149_s5 + $0x34] ss:$8 sps:$4 sm:$0xff] (!%p349_p8)   ;;  %v929_v41 = vld [vmem:[%s1149_s5 + $0x30] ss:$8 sps:$4 sm:$0xff] (!%p349_p8)   ;;  %v930_v42 = vld [vmem:[%s1149_s5 + $0x44] ss:$8 sps:$4 sm:$0xff] (!%p349_p8)  }
  0x2b   : > { %632 = vmatprep.subr.bf16.mxu0 (!%p349_p8), %v921_v36  ;;  %v932_v43 = vld [vmem:[%s1149_s5 + $0x40] ss:$8 sps:$4 sm:$0xff] (!%p349_p8)   ;;  %v933_v44 = vld [vmem:[%s1149_s5 + $0x54] ss:$8 sps:$4 sm:$0xff] (!%p349_p8)   ;;  %v935_v45 = vld [vmem:[%s1149_s5 + $0x50] ss:$8 sps:$4 sm:$0xff] (!%p349_p8)  }
  0x2c   : > { %v936_v46 = vld [vmem:[%s1149_s5 + $0x64] ss:$8 sps:$4 sm:$0xff] (!%p349_p8)   ;;  %v938_v47 = vld [vmem:[%s1149_s5 + $0x60] ss:$8 sps:$4 sm:$0xff] (!%p349_p8)   ;;  %v939_v48 = vld [vmem:[%s1149_s5 + $0x74] ss:$8 sps:$4 sm:$0xff] (!%p349_p8)  }
  0x2d   : > { %v941_v49 = vld [vmem:[%s1149_s5 + $0x70] ss:$8 sps:$4 sm:$0xff]   ;;  %v942_v50 = vld [vmem:[%s1149_s5 + $0x84] ss:$8 sps:$4 sm:$0xff]   ;;  %v944_v51 = vld [vmem:[%s1149_s5 + $0x80] ss:$8 sps:$4 sm:$0xff]  }
  0x2e   : > { %633 = vmatpush1.bf16.msra.mxu0 %v923_v37  ;;  %v945_v52 = vld [vmem:[%s1149_s5 + $0x94] ss:$8 sps:$4 sm:$0xff]   ;;  %v947_v53 = vld [vmem:[%s1149_s5 + $0x90] ss:$8 sps:$4 sm:$0xff]   ;;  %v948_v54 = vld [vmem:[%s1149_s5 + $0xa4] ss:$8 sps:$4 sm:$0xff]  }
  0x2f   : > { %634 = vmatprep.subr.bf16.mxu0 %v924_v38  ;;  %v950_v55 = vld [vmem:[%s1149_s5 + $0xa0] ss:$8 sps:$4 sm:$0xff]   ;;  %v951_v56 = vld [vmem:[%s1149_s5 + $0xb4] ss:$8 sps:$4 sm:$0xff]   ;;  %v953_v57 = vld [vmem:[%s1149_s5 + $0xb0] ss:$8 sps:$4 sm:$0xff]  }
  0x30   : > { %v954_v58 = vld [vmem:[%s1149_s5 + $0xc4] ss:$8 sps:$4 sm:$0xff]   ;;  %v956_v59 = vld [vmem:[%s1149_s5 + $0xc0] ss:$8 sps:$4 sm:$0xff]   ;;  %v957_v60 = vld [vmem:[%s1149_s5 + $0xd4] ss:$8 sps:$4 sm:$0xff]  }
  0x31   : > { %v959_v61 = vld [vmem:[%s1149_s5 + $0xd0] ss:$8 sps:$4 sm:$0xff]   ;;  %v960_v62 = vld [vmem:[%s1149_s5 + $0xe4] ss:$8 sps:$4 sm:$0xff]   ;;  %v962_v63 = vld [vmem:[%s1149_s5 + $0xe0] ss:$8 sps:$4 sm:$0xff]  }
  0x32   : > { %635 = vmatpush1.bf16.msra.mxu0 %v926_v39  ;;  %v963_v0 = vld [vmem:[%s1149_s5 + $0xf4] ss:$8 sps:$4 sm:$0xff]   ;;  %v965_v1 = vld [vmem:[%s1149_s5 + $0xf0] ss:$8 sps:$4 sm:$0xff]   ;;  %s1218_s6 = smov (!%p408_p9, %s836_s6), 3  ;;  %v684_v5 = vsub.s32 0, %v683_v4 }
  0x33   : > { %636 = vmatprep.subr.bf16.mxu0 %v927_v40  ;;  %s410_s9 = scalar_lea.vmem %s1209_s2, %s1218_s6  ;;  %v688_v7 = vsub.s32 1, %v683_v4  ;;  %s838_s10 = sshll.u32 %s1218_s6, 2 }
  0x34   : > { %v680_v6 = vld [vmem:[%s410_s9] sm:$0x3]  ;;  %s420_s14 = scalar_lea.vmem %s1210_s3, %s838_s10 }
  0x35   : > { %v685_v8 = vrot.slane %v680_v6, %v684_v5  ;;  %v689_v9 = vrot.slane %v680_v6, %v688_v7 }
  0x36   : > { %637 = vmatpush1.bf16.msra.mxu0 %v929_v41 }
  0x37   : > { %638 = vmatprep.subr.bf16.mxu0 %v930_v42 }
  0x3a   : > { %639 = vmatpush1.bf16.msra.mxu0 %v932_v43 }
  0x3b   : > { %640 = vmatprep.subr.bf16.mxu0 %v933_v44 }
  0x3e   : > { %641 = vmatpush1.bf16.msra.mxu0 %v935_v45 }
  0x3f   : > { %642 = vmatprep.subr.bf16.mxu0 %v936_v46 }
  0x42   : > { %643 = vmatpush1.bf16.msra.mxu0 %v938_v47 }
  0x43   : > { %644 = vmatprep.subr.bf16.mxu0 %v939_v48 }
  0x46   : > { %645 = vmatpush1.bf16.msra.mxu0 %v941_v49 }
  0x47   : > { %646 = vmatprep.subr.bf16.mxu0 %v942_v50 }
  0x4a   : > { %647 = vmatpush1.bf16.msra.mxu0 %v944_v51 }
  0x4b   : > { %648 = vmatprep.subr.bf16.mxu0 %v945_v52 }
  0x4e   : > { %649 = vmatpush1.bf16.msra.mxu0 %v947_v53 }
  0x4f   : > { %650 = vmatprep.subr.bf16.mxu0 %v948_v54 }
  0x52   : > { %651 = vmatpush1.bf16.msra.mxu0 %v950_v55 }
  0x53   : > { %652 = vmatprep.subr.bf16.mxu0 %v951_v56 }
  0x56   : > { %653 = vmatpush1.bf16.msra.mxu0 %v953_v57 }
  0x57   : > { %654 = vmatprep.subr.bf16.mxu0 %v954_v58 }
  0x5a   : > { %655 = vmatpush1.bf16.msra.mxu0 %v956_v59 }
  0x5b   : > { %656 = vmatprep.subr.bf16.mxu0 %v957_v60 }
  0x5e   : > { %657 = vmatpush1.bf16.msra.mxu0 %v959_v61 }
  0x5f   : > { %658 = vmatprep.subr.bf16.mxu0 %v960_v62 }
  0x62   : > { %659 = vmatpush1.bf16.msra.mxu0 %v962_v63 }
  0x63   : > { %660 = vmatprep.subr.bf16.mxu0 %v963_v0 }
  0x66   : > { %661 = vmatpush1.bf16.msra.mxu0 %v965_v1 }
  0x69   : > { %663 = vmatmul.mubr.bf16.vlgmr.msra.gmra.mrb[0].mxu0 %v839_v2 }
 0x13c   : > { %v664_v10 = vpop.f32.mrb[0].mxu0 }
 0x13d   : > { %v692_v11 = vadd.f32 %v685_v8, %v664_v10  ;;  %v666_v12 = vpop.f32.mrb[1].mxu0 }
 0x13e   : > { %v693_v13 = vadd.f32 %v689_v9, %v666_v12  ;;  %v668_v14 = vpop.f32.mrb[2].mxu0 }
 0x13f   : > { %v669_v15 = vpop.f32.mrb[3].mxu0 }
 0x140   : > { %v877_v16 = vpack.c.bf16 %v693_v13, %v692_v11 }
 0x142   : > { %702 = vst [vmem:[%s420_s14] sm:$0xff] %v877_v16 }
 0x143 PF: > { %s13_s16 = sadd.s32 1, %s1006_s16   ;;  %s1211_s12 = smov %s994_s13 }
 0x144   : > { %p10_p10 = scmp.ge.s32.totalorder %s13_s16, 4   ;;  %s1212_s13 = smov %s1063_s20 }
 0x145   : > { %s1213_s14 = smov %s1002_s15  ;;  %s1214_s15 = smov %s1216_s17 }
 0x146   :  { %12 = sbr.rel (!%p10_p10) target bundleno = 3 (0x3), region = 119 }

// kernel: resnet34_forward.69
= control target key start
LH: loop header
LB: loop body
LE: loop exit
PB: predicated region body
PF: predicated region fallthrough
CT: control target
= control target key end

     0   :  { %s1523_s12 = smov 0   ;;  %s1525_s13 = smov 0   ;;  %s1834_s0 = inlined_call_operand.vmem [shape: bf16[8,4608], index: 0, kind: input, shape index: {}]   ;;  %s1835_s1 = inlined_call_operand.vmem [shape: bf16[4608,512], index: 1, kind: input, shape index: {}]   ;;  %s1836_s2 = inlined_call_operand.vmem [shape: f32[1,512], index: 2, kind: input, shape index: {}]   ;;  %s1837_s3 = inlined_call_operand.vmem [shape: bf16[8,512], index: 3, kind: output, shape index: {}]  }
   0x1   :  { %s1527_s14 = smov 0   ;;  %s1529_s15 = smov 0  }
   0x2   :  { %s1531_s16 = smov 0   ;;  %s1533_s17 = smov 0  }
   0x3   :  { %s1535_s18 = smov 0  }
   0x4 LB: > { %s25_s19 = sadd.s32 1, %s1492_s16  ;;  %s28_s20 = sadd.s32 1, %s1496_s17  ;;  %s1500_s18 = sphi %s1535_s18, %s13_s18   ;;  %s1496_s17 = sphi %s1533_s17, %s1843_s17   ;;  %s1492_s16 = sphi %s1531_s16, %s1842_s16   ;;  %s1488_s15 = sphi %s1529_s15, %s1841_s15   ;;  %s1484_s14 = sphi %s1527_s14, %s1840_s14   ;;  %s1480_s13 = sphi %s1525_s13, %s1839_s13   ;;  %s1476_s12 = sphi %s1523_s12, %s1838_s12  }
   0x5   : > { %p26_p0 = scmp.ge.s32.totalorder %s25_s19, 9  ;;  %p76_p1 = scmp.ne.s32.totalorder %s1480_s13, %s1476_s12 }
   0x6   : > { %p77_p2 = scmp.eq.s32.totalorder %s1500_s18, 0  ;;  %s69_s24 = sadd.s32 1, %s1480_s13 }
   0x7   : > { %s1845_s19 = smov (%p26_p0, %s25_s19), 0  ;;  %s1847_s20 = smov (!%p26_p0, %s28_s20), %s1496_s17 }
   0x8   : > { %p78_p3 = por %p77_p2, %p76_p1  ;;  %p30_p4 = scmp.ge.s32.totalorder %s1847_s20, 2 }
   0x9   : > { %s64_s21 = ssub.s32 %s1492_s16, %s1845_s19  ;;  %p1201_p6 = scmp.ge.s32.totalorder %s1500_s18, 18 }
   0xa   : > { %s1849_s20 = smov (%p30_p4, %s1847_s20), 0 }
   0xb   : > { %s65_s22 = ssub.s32 %s1496_s17, %s1849_s20  ;;  %156 = sbr.rel (%p1201_p6) target bundleno = 57 (0x39), region = 16 }
   0xc   : > { %s66_s23 = sor.u32 %s65_s22, %s64_s21 }
   0xd   : > { %p67_p5 = scmp.eq.s32.totalorder %s66_s23, 0 }
   0xf   : > { %s1574_s25 = scalar_select %p67_p5, %s1480_s13, %s69_s24  }
  0x12   : > { %172 = sbr.rel (!%p78_p3) target bundleno = 57 (0x39), region = 24  ;;  %s174_s26 = sand.u32 (%p78_p3), 1, %s1480_s13  }
  0x13   : > { %s1204_s27 = sshll.u32 (%p78_p3), %s1496_s17, 1  ;;  %s1202_s28 = sshll.u32 (%p78_p3), %s174_s26, 9 }
  0x14   : > { %s1287_s29 = sshll.u32 (%p78_p3), %s1492_s16, 8  ;;  %s1588_s8 = scalar_lea.vmem (%p78_p3), [#allocation3], %s1202_s28 }
  0x15   : > { %s180_s30 = sadd.s32 (%p78_p3), %s1287_s29, %s1204_s27 }
  0x16   : > { %s1206_s4 = sshll.u32 (%p78_p3), %s180_s30, 2 }
  0x17   : > { %s1583_s7 = scalar_lea.vmem (%p78_p3), %s1835_s1, %s1206_s4 }
  0x18   : > { %v336_v0 = vld [vmem:[%s1583_s7] sm:$0xff] (%p78_p3)  ;;  %v338_v1 = vld [vmem:[%s1583_s7 + $0x10] sm:$0xff] (%p78_p3) }
  0x19   : > { %v340_v2 = vld [vmem:[%s1583_s7 + $0x20] sm:$0xff]  ;;  %337 = vst [vmem:[%s1588_s8] sm:$0xff] %v336_v0  ;;  %339 = vst [vmem:[%s1588_s8 + $0x8] sm:$0xff] %v338_v1  ;;  %v342_v3 = vld [vmem:[%s1583_s7 + $0x30] sm:$0xff] }
  0x1a   : > { %341 = vst [vmem:[%s1588_s8 + $0x10] sm:$0xff] %v340_v2  ;;  %v344_v4 = vld [vmem:[%s1583_s7 + $0x40] sm:$0xff]  ;;  %v346_v5 = vld [vmem:[%s1583_s7 + $0x50] sm:$0xff]  ;;  %343 = vst [vmem:[%s1588_s8 + $0x18] sm:$0xff] %v342_v3 }
  0x1b   : > { %345 = vst [vmem:[%s1588_s8 + $0x20] sm:$0xff] %v344_v4  ;;  %347 = vst [vmem:[%s1588_s8 + $0x28] sm:$0xff] %v346_v5  ;;  %v348_v6 = vld [vmem:[%s1583_s7 + $0x60] sm:$0xff]  ;;  %v350_v7 = vld [vmem:[%s1583_s7 + $0x70] sm:$0xff] }
  0x1c   : > { %v352_v8 = vld [vmem:[%s1583_s7 + $0x80] sm:$0xff]  ;;  %349 = vst [vmem:[%s1588_s8 + $0x30] sm:$0xff] %v348_v6  ;;  %351 = vst [vmem:[%s1588_s8 + $0x38] sm:$0xff] %v350_v7  ;;  %v354_v9 = vld [vmem:[%s1583_s7 + $0x90] sm:$0xff] }
  0x1d   : > { %353 = vst [vmem:[%s1588_s8 + $0x40] sm:$0xff] %v352_v8  ;;  %v356_v10 = vld [vmem:[%s1583_s7 + $0xa0] sm:$0xff]  ;;  %v358_v11 = vld [vmem:[%s1583_s7 + $0xb0] sm:$0xff]  ;;  %355 = vst [vmem:[%s1588_s8 + $0x48] sm:$0xff] %v354_v9 }
  0x1e   : > { %357 = vst [vmem:[%s1588_s8 + $0x50] sm:$0xff] %v356_v10  ;;  %359 = vst [vmem:[%s1588_s8 + $0x58] sm:$0xff] %v358_v11  ;;  %v360_v12 = vld [vmem:[%s1583_s7 + $0xc0] sm:$0xff]  ;;  %v362_v13 = vld [vmem:[%s1583_s7 + $0xd0] sm:$0xff] }
  0x1f   : > { %v364_v14 = vld [vmem:[%s1583_s7 + $0xe0] sm:$0xff]  ;;  %361 = vst [vmem:[%s1588_s8 + $0x60] sm:$0xff] %v360_v12  ;;  %363 = vst [vmem:[%s1588_s8 + $0x68] sm:$0xff] %v362_v13  ;;  %v366_v15 = vld [vmem:[%s1583_s7 + $0xf0] sm:$0xff] }
  0x20   : > { %365 = vst [vmem:[%s1588_s8 + $0x70] sm:$0xff] %v364_v14  ;;  %v368_v16 = vld [vmem:[%s1583_s7 + $0x100] sm:$0xff]  ;;  %v370_v17 = vld [vmem:[%s1583_s7 + $0x110] sm:$0xff]  ;;  %367 = vst [vmem:[%s1588_s8 + $0x78] sm:$0xff] %v366_v15 }
  0x21   : > { %369 = vst [vmem:[%s1588_s8 + $0x80] sm:$0xff] %v368_v16  ;;  %371 = vst [vmem:[%s1588_s8 + $0x88] sm:$0xff] %v370_v17  ;;  %v372_v18 = vld [vmem:[%s1583_s7 + $0x120] sm:$0xff]  ;;  %v374_v19 = vld [vmem:[%s1583_s7 + $0x130] sm:$0xff] }
  0x22   : > { %v376_v20 = vld [vmem:[%s1583_s7 + $0x140] sm:$0xff]  ;;  %373 = vst [vmem:[%s1588_s8 + $0x90] sm:$0xff] %v372_v18  ;;  %375 = vst [vmem:[%s1588_s8 + $0x98] sm:$0xff] %v374_v19  ;;  %v378_v21 = vld [vmem:[%s1583_s7 + $0x150] sm:$0xff] }
  0x23   : > { %377 = vst [vmem:[%s1588_s8 + $0xa0] sm:$0xff] %v376_v20  ;;  %v380_v22 = vld [vmem:[%s1583_s7 + $0x160] sm:$0xff]  ;;  %v382_v23 = vld [vmem:[%s1583_s7 + $0x170] sm:$0xff]  ;;  %379 = vst [vmem:[%s1588_s8 + $0xa8] sm:$0xff] %v378_v21 }
  0x24   : > { %381 = vst [vmem:[%s1588_s8 + $0xb0] sm:$0xff] %v380_v22  ;;  %383 = vst [vmem:[%s1588_s8 + $0xb8] sm:$0xff] %v382_v23  ;;  %v384_v24 = vld [vmem:[%s1583_s7 + $0x180] sm:$0xff]  ;;  %v386_v25 = vld [vmem:[%s1583_s7 + $0x190] sm:$0xff] }
  0x25   : > { %v388_v26 = vld [vmem:[%s1583_s7 + $0x1a0] sm:$0xff]  ;;  %385 = vst [vmem:[%s1588_s8 + $0xc0] sm:$0xff] %v384_v24  ;;  %387 = vst [vmem:[%s1588_s8 + $0xc8] sm:$0xff] %v386_v25  ;;  %v390_v27 = vld [vmem:[%s1583_s7 + $0x1b0] sm:$0xff] }
  0x26   : > { %389 = vst [vmem:[%s1588_s8 + $0xd0] sm:$0xff] %v388_v26  ;;  %v392_v28 = vld [vmem:[%s1583_s7 + $0x1c0] sm:$0xff]  ;;  %v394_v29 = vld [vmem:[%s1583_s7 + $0x1d0] sm:$0xff]  ;;  %391 = vst [vmem:[%s1588_s8 + $0xd8] sm:$0xff] %v390_v27 }
  0x27   : > { %393 = vst [vmem:[%s1588_s8 + $0xe0] sm:$0xff] %v392_v28  ;;  %395 = vst [vmem:[%s1588_s8 + $0xe8] sm:$0xff] %v394_v29  ;;  %v396_v30 = vld [vmem:[%s1583_s7 + $0x1e0] sm:$0xff]  ;;  %v398_v31 = vld [vmem:[%s1583_s7 + $0x1f0] sm:$0xff] }
  0x28   : > { %v400_v32 = vld [vmem:[%s1583_s7 + $0x200] sm:$0xff]  ;;  %397 = vst [vmem:[%s1588_s8 + $0xf0] sm:$0xff] %v396_v30  ;;  %399 = vst [vmem:[%s1588_s8 + $0xf8] sm:$0xff] %v398_v31  ;;  %v402_v33 = vld [vmem:[%s1583_s7 + $0x210] sm:$0xff] }
  0x29   : > { %401 = vst [vmem:[%s1588_s8 + $0x100] sm:$0xff] %v400_v32  ;;  %v404_v34 = vld [vmem:[%s1583_s7 + $0x220] sm:$0xff]  ;;  %v406_v35 = vld [vmem:[%s1583_s7 + $0x230] sm:$0xff]  ;;  %403 = vst [vmem:[%s1588_s8 + $0x108] sm:$0xff] %v402_v33 }
  0x2a   : > { %405 = vst [vmem:[%s1588_s8 + $0x110] sm:$0xff] %v404_v34  ;;  %407 = vst [vmem:[%s1588_s8 + $0x118] sm:$0xff] %v406_v35  ;;  %v408_v36 = vld [vmem:[%s1583_s7 + $0x240] sm:$0xff]  ;;  %v410_v37 = vld [vmem:[%s1583_s7 + $0x250] sm:$0xff] }
  0x2b   : > { %v412_v38 = vld [vmem:[%s1583_s7 + $0x260] sm:$0xff]  ;;  %409 = vst [vmem:[%s1588_s8 + $0x120] sm:$0xff] %v408_v36  ;;  %411 = vst [vmem:[%s1588_s8 + $0x128] sm:$0xff] %v410_v37  ;;  %v414_v39 = vld [vmem:[%s1583_s7 + $0x270] sm:$0xff] }
  0x2c   : > { %413 = vst [vmem:[%s1588_s8 + $0x130] sm:$0xff] %v412_v38  ;;  %v416_v40 = vld [vmem:[%s1583_s7 + $0x280] sm:$0xff]  ;;  %v418_v41 = vld [vmem:[%s1583_s7 + $0x290] sm:$0xff]  ;;  %415 = vst [vmem:[%s1588_s8 + $0x138] sm:$0xff] %v414_v39 }
  0x2d   : > { %417 = vst [vmem:[%s1588_s8 + $0x140] sm:$0xff] %v416_v40  ;;  %419 = vst [vmem:[%s1588_s8 + $0x148] sm:$0xff] %v418_v41  ;;  %v420_v42 = vld [vmem:[%s1583_s7 + $0x2a0] sm:$0xff]  ;;  %v422_v43 = vld [vmem:[%s1583_s7 + $0x2b0] sm:$0xff] }
  0x2e   : > { %v424_v44 = vld [vmem:[%s1583_s7 + $0x2c0] sm:$0xff]  ;;  %421 = vst [vmem:[%s1588_s8 + $0x150] sm:$0xff] %v420_v42  ;;  %423 = vst [vmem:[%s1588_s8 + $0x158] sm:$0xff] %v422_v43  ;;  %v426_v45 = vld [vmem:[%s1583_s7 + $0x2d0] sm:$0xff] }
  0x2f   : > { %425 = vst [vmem:[%s1588_s8 + $0x160] sm:$0xff] %v424_v44  ;;  %v428_v46 = vld [vmem:[%s1583_s7 + $0x2e0] sm:$0xff]  ;;  %v430_v47 = vld [vmem:[%s1583_s7 + $0x2f0] sm:$0xff]  ;;  %427 = vst [vmem:[%s1588_s8 + $0x168] sm:$0xff] %v426_v45 }
  0x30   : > { %429 = vst [vmem:[%s1588_s8 + $0x170] sm:$0xff] %v428_v46  ;;  %431 = vst [vmem:[%s1588_s8 + $0x178] sm:$0xff] %v430_v47  ;;  %v432_v48 = vld [vmem:[%s1583_s7 + $0x300] sm:$0xff]  ;;  %v434_v49 = vld [vmem:[%s1583_s7 + $0x310] sm:$0xff] }
  0x31   : > { %v436_v50 = vld [vmem:[%s1583_s7 + $0x320] sm:$0xff]  ;;  %433 = vst [vmem:[%s1588_s8 + $0x180] sm:$0xff] %v432_v48  ;;  %435 = vst [vmem:[%s1588_s8 + $0x188] sm:$0xff] %v434_v49  ;;  %v438_v51 = vld [vmem:[%s1583_s7 + $0x330] sm:$0xff] }
  0x32   : > { %437 = vst [vmem:[%s1588_s8 + $0x190] sm:$0xff] %v436_v50  ;;  %v440_v52 = vld [vmem:[%s1583_s7 + $0x340] sm:$0xff]  ;;  %v442_v53 = vld [vmem:[%s1583_s7 + $0x350] sm:$0xff]  ;;  %439 = vst [vmem:[%s1588_s8 + $0x198] sm:$0xff] %v438_v51 }
  0x33   : > { %441 = vst [vmem:[%s1588_s8 + $0x1a0] sm:$0xff] %v440_v52  ;;  %443 = vst [vmem:[%s1588_s8 + $0x1a8] sm:$0xff] %v442_v53  ;;  %v444_v54 = vld [vmem:[%s1583_s7 + $0x360] sm:$0xff]  ;;  %v446_v55 = vld [vmem:[%s1583_s7 + $0x370] sm:$0xff] }
  0x34   : > { %v448_v56 = vld [vmem:[%s1583_s7 + $0x380] sm:$0xff]  ;;  %445 = vst [vmem:[%s1588_s8 + $0x1b0] sm:$0xff] %v444_v54  ;;  %447 = vst [vmem:[%s1588_s8 + $0x1b8] sm:$0xff] %v446_v55  ;;  %v450_v57 = vld [vmem:[%s1583_s7 + $0x390] sm:$0xff] }
  0x35   : > { %449 = vst [vmem:[%s1588_s8 + $0x1c0] sm:$0xff] %v448_v56  ;;  %v452_v58 = vld [vmem:[%s1583_s7 + $0x3a0] sm:$0xff]  ;;  %v454_v59 = vld [vmem:[%s1583_s7 + $0x3b0] sm:$0xff]  ;;  %451 = vst [vmem:[%s1588_s8 + $0x1c8] sm:$0xff] %v450_v57 }
  0x36   : > { %453 = vst [vmem:[%s1588_s8 + $0x1d0] sm:$0xff] %v452_v58  ;;  %455 = vst [vmem:[%s1588_s8 + $0x1d8] sm:$0xff] %v454_v59  ;;  %v456_v60 = vld [vmem:[%s1583_s7 + $0x3c0] sm:$0xff]  ;;  %v458_v61 = vld [vmem:[%s1583_s7 + $0x3d0] sm:$0xff] }
  0x37   : > { %v460_v62 = vld [vmem:[%s1583_s7 + $0x3e0] sm:$0xff]  ;;  %457 = vst [vmem:[%s1588_s8 + $0x1e0] sm:$0xff] %v456_v60  ;;  %459 = vst [vmem:[%s1588_s8 + $0x1e8] sm:$0xff] %v458_v61  ;;  %v462_v63 = vld [vmem:[%s1583_s7 + $0x3f0] sm:$0xff] }
  0x38   : > { %461 = vst [vmem:[%s1588_s8 + $0x1f0] sm:$0xff] %v460_v62  ;;  %463 = vst [vmem:[%s1588_s8 + $0x1f8] sm:$0xff] %v462_v63 }
  0x39 PF: > { %p1207_p7 = scmp.ge.s32.totalorder %s1500_s18, 1  ;;  %p476_p8 = scmp.lt.s32.totalorder %s1500_s18, 19 }
  0x3b   : > { %p477_p9 = pnand %p1207_p7, %p476_p8 }
  0x3c   : > { %s483_s9 = sand.u32 (!%p477_p9), 1, %s1476_s12   ;;  %s1209_s10 = sshll.u32 (!%p477_p9), %s1484_s14, 2 }
  0x3d   : > { %480 = sbr.rel (%p477_p9) target bundleno = 376 (0x178), region = 66  ;;  %s1208_s11 = sshll.u32 (!%p477_p9), %s483_s9, 9 }
  0x3e   : > { %p526_p10 = scmp.lt.s32.totalorder (!%p477_p9), %s1209_s10, 35  ;;  %s1211_s21 = sshll.u32 (!%p477_p9), %s1488_s15, 1 }
  0x3f   : > { %p536_p11 = scmp.lt.s32.totalorder (!%p477_p9), %s1211_s21, 3  ;;  %s1737_s5 = scalar_lea.vmem (!%p477_p9), [#allocation3], %s1208_s11 }
  0x40   : > { %p1214_p12 = scmp.ne.s32.totalorder (!%p477_p9), %s1484_s14, 0 }
  0x44   : > { %s1851_s10 = smov (!%p526_p10, %s1209_s10), 35  ;;  %s1853_s21 = smov (!%p536_p11, %s1211_s21), 3 }
  0x45   : > { %s1210_s22 = sshll.u32 %s1851_s10, 2  ;;  %s538_s12 = scalar_lea.vmem %s1836_s2, %s1853_s21  ;;  %v1502_v0 = vmov (!%p1214_p12), 0.0  }
  0x46   : > { %s1723_s26 = scalar_lea.vmem %s1834_s0, %s1210_s22  ;;  %s1213_s29 = sshll.u32 %s1853_s21, 2  ;;  %554 = vst [vmem:[#allocation2] sm:$0xff] (!%p1214_p12), %v1502_v0  ;;  %555 = vst [vmem:[#allocation2 + $0x8] sm:$0xff] (!%p1214_p12), %v1502_v0 }
  0x47   : > { %s1735_s15 = scalar_lea.vmem %s1837_s3, %s1213_s29  ;;  %553 = sbr.rel (%p1214_p12) target bundleno = 78 (0x4e), region = 74 }
  0x4e PF: > { %v1346_v1 = vld [vmem:[%s1737_s5 + $0x4] ss:$8 sps:$4 sm:$0xff]   ;;  %v1350_v3 = vld [vmem:[%s1737_s5] ss:$8 sps:$4 sm:$0xff]   ;;  %v1352_v5 = vld [vmem:[%s1737_s5 + $0x14] ss:$8 sps:$4 sm:$0xff]  }
  0x4f   : > { %v1348_v2 = vld [vmem:[%s1737_s5 + $0x104] ss:$8 sps:$4 sm:$0xff]   ;;  %958 = vmatprep.subr.bf16.mxu0 %v1346_v1  ;;  %v1351_v4 = vld [vmem:[%s1737_s5 + $0x100] ss:$8 sps:$4 sm:$0xff]   ;;  %v1354_v6 = vld [vmem:[%s1737_s5 + $0x114] ss:$8 sps:$4 sm:$0xff]  }
  0x50   : > { %999 = vmatprep.subr.bf16.mxu1 %v1348_v2  ;;  %959 = vmatpush1.bf16.msra.mxu0 %v1350_v3  ;;  %v1356_v7 = vld [vmem:[%s1737_s5 + $0x10] ss:$8 sps:$4 sm:$0xff]   ;;  %v1358_v9 = vld [vmem:[%s1737_s5 + $0x24] ss:$8 sps:$4 sm:$0xff]   ;;  %v1362_v11 = vld [vmem:[%s1737_s5 + $0x20] ss:$8 sps:$4 sm:$0xff]  }
  0x51   : > { %1000 = vmatpush1.bf16.msra.mxu1 %v1351_v4  ;;  %960 = vmatprep.subr.bf16.mxu0 %v1352_v5  ;;  %v1357_v8 = vld [vmem:[%s1737_s5 + $0x110] ss:$8 sps:$4 sm:$0xff]   ;;  %v1360_v10 = vld [vmem:[%s1737_s5 + $0x124] ss:$8 sps:$4 sm:$0xff]   ;;  %v1363_v12 = vld [vmem:[%s1737_s5 + $0x120] ss:$8 sps:$4 sm:$0xff]  }
  0x52   : > { %1001 = vmatprep.subr.bf16.mxu1 %v1354_v6  ;;  %v1364_v13 = vld [vmem:[%s1737_s5 + $0x34] ss:$8 sps:$4 sm:$0xff]   ;;  %v1368_v15 = vld [vmem:[%s1737_s5 + $0x30] ss:$8 sps:$4 sm:$0xff]   ;;  %v1370_v17 = vld [vmem:[%s1737_s5 + $0x44] ss:$8 sps:$4 sm:$0xff]  }
  0x53   : > { %v1366_v14 = vld [vmem:[%s1737_s5 + $0x134] ss:$8 sps:$4 sm:$0xff]   ;;  %v1369_v16 = vld [vmem:[%s1737_s5 + $0x130] ss:$8 sps:$4 sm:$0xff]   ;;  %v1372_v18 = vld [vmem:[%s1737_s5 + $0x144] ss:$8 sps:$4 sm:$0xff]  }
  0x54   : > { %961 = vmatpush1.bf16.msra.mxu0 %v1356_v7  ;;  %v1374_v19 = vld [vmem:[%s1737_s5 + $0x40] ss:$8 sps:$4 sm:$0xff]   ;;  %v1376_v21 = vld [vmem:[%s1737_s5 + $0x54] ss:$8 sps:$4 sm:$0xff]   ;;  %v1380_v23 = vld [vmem:[%s1737_s5 + $0x50] ss:$8 sps:$4 sm:$0xff]  }
  0x55   : > { %1002 = vmatpush1.bf16.msra.mxu1 %v1357_v8  ;;  %962 = vmatprep.subr.bf16.mxu0 %v1358_v9  ;;  %v1375_v20 = vld [vmem:[%s1737_s5 + $0x140] ss:$8 sps:$4 sm:$0xff]   ;;  %v1378_v22 = vld [vmem:[%s1737_s5 + $0x154] ss:$8 sps:$4 sm:$0xff]   ;;  %v1381_v24 = vld [vmem:[%s1737_s5 + $0x150] ss:$8 sps:$4 sm:$0xff]  }
  0x56   : > { %1003 = vmatprep.subr.bf16.mxu1 %v1360_v10  ;;  %v1382_v25 = vld [vmem:[%s1737_s5 + $0x64] ss:$8 sps:$4 sm:$0xff]   ;;  %v1386_v27 = vld [vmem:[%s1737_s5 + $0x60] ss:$8 sps:$4 sm:$0xff]   ;;  %v1388_v29 = vld [vmem:[%s1737_s5 + $0x74] ss:$8 sps:$4 sm:$0xff]  }
  0x57   : > { %v1384_v26 = vld [vmem:[%s1737_s5 + $0x164] ss:$8 sps:$4 sm:$0xff]   ;;  %v1387_v28 = vld [vmem:[%s1737_s5 + $0x160] ss:$8 sps:$4 sm:$0xff]   ;;  %v1390_v30 = vld [vmem:[%s1737_s5 + $0x174] ss:$8 sps:$4 sm:$0xff]  }
  0x58   : > { %963 = vmatpush1.bf16.msra.mxu0 %v1362_v11  ;;  %v1392_v31 = vld [vmem:[%s1737_s5 + $0x70] ss:$8 sps:$4 sm:$0xff]   ;;  %v1394_v33 = vld [vmem:[%s1737_s5 + $0x84] ss:$8 sps:$4 sm:$0xff]   ;;  %v1398_v35 = vld [vmem:[%s1737_s5 + $0x80] ss:$8 sps:$4 sm:$0xff]  }
  0x59   : > { %1004 = vmatpush1.bf16.msra.mxu1 %v1363_v12  ;;  %964 = vmatprep.subr.bf16.mxu0 %v1364_v13  ;;  %v1393_v32 = vld [vmem:[%s1737_s5 + $0x170] ss:$8 sps:$4 sm:$0xff]   ;;  %v1396_v34 = vld [vmem:[%s1737_s5 + $0x184] ss:$8 sps:$4 sm:$0xff]   ;;  %v1399_v36 = vld [vmem:[%s1737_s5 + $0x180] ss:$8 sps:$4 sm:$0xff]  }
  0x5a   : > { %1005 = vmatprep.subr.bf16.mxu1 %v1366_v14  ;;  %v1400_v37 = vld [vmem:[%s1737_s5 + $0x94] ss:$8 sps:$4 sm:$0xff]   ;;  %v1404_v39 = vld [vmem:[%s1737_s5 + $0x90] ss:$8 sps:$4 sm:$0xff]   ;;  %v1406_v41 = vld [vmem:[%s1737_s5 + $0xa4] ss:$8 sps:$4 sm:$0xff]  }
  0x5b   : > { %v1402_v38 = vld [vmem:[%s1737_s5 + $0x194] ss:$8 sps:$4 sm:$0xff]   ;;  %v1405_v40 = vld [vmem:[%s1737_s5 + $0x190] ss:$8 sps:$4 sm:$0xff]   ;;  %v1408_v42 = vld [vmem:[%s1737_s5 + $0x1a4] ss:$8 sps:$4 sm:$0xff]  }
  0x5c   : > { %965 = vmatpush1.bf16.msra.mxu0 %v1368_v15  ;;  %v1410_v43 = vld [vmem:[%s1737_s5 + $0xa0] ss:$8 sps:$4 sm:$0xff]   ;;  %v1412_v45 = vld [vmem:[%s1737_s5 + $0xb4] ss:$8 sps:$4 sm:$0xff]   ;;  %v1416_v50 = vld [vmem:[%s1737_s5 + $0xb0] ss:$8 sps:$4 sm:$0xff]  }
  0x5d   : > { %1006 = vmatpush1.bf16.msra.mxu1 %v1369_v16  ;;  %966 = vmatprep.subr.bf16.mxu0 %v1370_v17  ;;  %v1411_v44 = vld [vmem:[%s1737_s5 + $0x1a0] ss:$8 sps:$4 sm:$0xff]   ;;  %v1414_v46 = vld [vmem:[%s1737_s5 + $0x1b4] ss:$8 sps:$4 sm:$0xff]   ;;  %v1417_v51 = vld [vmem:[%s1737_s5 + $0x1b0] ss:$8 sps:$4 sm:$0xff]  }
  0x5e   : > { %1007 = vmatprep.subr.bf16.mxu1 %v1372_v18  ;;  %v558_v47 = vld [vmem:[%s1723_s26] sm:$0xff]  ;;  %v559_v49 = vld [vmem:[%s1723_s26 + $0x8] sm:$0xff]  ;;  %v1418_v53 = vld [vmem:[%s1737_s5 + $0xc4] ss:$8 sps:$4 sm:$0xff]   ;;  %p1283_p13 = scmp.ne.s32.totalorder %s1484_s14, 8 }
  0x5f   : > { %v1216_v48 = vcombine.high %v558_v47, %v558_v47  ;;  %v1218_v52 = vcombine.high %v559_v49, %v559_v49  ;;  %v1420_v54 = vld [vmem:[%s1737_s5 + $0x1c4] ss:$8 sps:$4 sm:$0xff]   ;;  %v1422_v55 = vld [vmem:[%s1737_s5 + $0xc0] ss:$8 sps:$4 sm:$0xff]   ;;  %v1424_v57 = vld [vmem:[%s1737_s5 + $0xd4] ss:$8 sps:$4 sm:$0xff]   ;;  %v1215_v5 = vcombine.low %v558_v47, %v558_v47  ;;  %v1217_v6 = vcombine.low %v559_v49, %v559_v49 }
  0x60   : > { %967 = vmatpush1.bf16.msra.mxu0 %v1374_v19  ;;  %v1423_v56 = vld [vmem:[%s1737_s5 + $0x1c0] ss:$8 sps:$4 sm:$0xff]   ;;  %v1426_v58 = vld [vmem:[%s1737_s5 + $0x1d4] ss:$8 sps:$4 sm:$0xff]   ;;  %v1428_v59 = vld [vmem:[%s1737_s5 + $0xd0] ss:$8 sps:$4 sm:$0xff]  }
  0x61   : > { %1008 = vmatpush1.bf16.msra.mxu1 %v1375_v20  ;;  %968 = vmatprep.subr.bf16.mxu0 %v1376_v21  ;;  %v1429_v60 = vld [vmem:[%s1737_s5 + $0x1d0] ss:$8 sps:$4 sm:$0xff]   ;;  %v1430_v61 = vld [vmem:[%s1737_s5 + $0xe4] ss:$8 sps:$4 sm:$0xff]   ;;  %v1434_v63 = vld [vmem:[%s1737_s5 + $0xe0] ss:$8 sps:$4 sm:$0xff]   ;;  %v1052_v21 = vlaneseq (!%p1283_p13) }
  0x62   : > { %1009 = vmatprep.subr.bf16.mxu1 %v1378_v22  ;;  %990 = vmatprep.mubr.bf16.mxu0 %v1216_v48  ;;  %v1432_v62 = vld [vmem:[%s1737_s5 + $0x1e4] ss:$8 sps:$4 sm:$0xff]   ;;  %v1435_v0 = vld [vmem:[%s1737_s5 + $0x1e0] ss:$8 sps:$4 sm:$0xff]   ;;  %v1436_v1 = vld [vmem:[%s1737_s5 + $0xf4] ss:$8 sps:$4 sm:$0xff]  }
  0x63   : > { %1031 = vmatprep.mubr.bf16.mxu1 %v1218_v52  ;;  %v1438_v2 = vld [vmem:[%s1737_s5 + $0x1f4] ss:$8 sps:$4 sm:$0xff]   ;;  %v1440_v3 = vld [vmem:[%s1737_s5 + $0xf0] ss:$8 sps:$4 sm:$0xff]   ;;  %v1053_v22 = vshrl.u32 (!%p1283_p13), %v1052_v21, 7 }
  0x64   : > { %969 = vmatpush1.bf16.msra.mxu0 %v1380_v23  ;;  %v1441_v4 = vld [vmem:[%s1737_s5 + $0x1f0] ss:$8 sps:$4 sm:$0xff]  }
  0x65   : > { %1010 = vmatpush1.bf16.msra.mxu1 %v1381_v24  ;;  %970 = vmatprep.subr.bf16.mxu0 %v1382_v25  ;;  %v556_v8 = vld [vmem:[#allocation2] sm:$0xff]  ;;  %v557_v12 = vld [vmem:[#allocation2 + $0x8] sm:$0xff]  ;;  %v1054_v24 = vsub.s32 (!%p1283_p13), 0, %v1053_v22  ;;  %v1058_v25 = vsub.s32 (!%p1283_p13), 1, %v1053_v22 }
  0x66   : > { %1011 = vmatprep.subr.bf16.mxu1 %v1384_v26  ;;  %v1050_v23 = vld [vmem:[%s538_s12] sm:$0x3] (!%p1283_p13) }
  0x68   : > { %971 = vmatpush1.bf16.msra.mxu0 %v1386_v27 }
  0x69   : > { %1012 = vmatpush1.bf16.msra.mxu1 %v1387_v28  ;;  %972 = vmatprep.subr.bf16.mxu0 %v1388_v29  ;;  %v1055_v28 = vrot.slane (!%p1283_p13), %v1050_v23, %v1054_v24  ;;  %v1059_v29 = vrot.slane (!%p1283_p13), %v1050_v23, %v1058_v25 }
  0x6a   : > { %1013 = vmatprep.subr.bf16.mxu1 %v1390_v30 }
  0x6c   : > { %973 = vmatpush1.bf16.msra.mxu0 %v1392_v31 }
  0x6d   : > { %1014 = vmatpush1.bf16.msra.mxu1 %v1393_v32  ;;  %974 = vmatprep.subr.bf16.mxu0 %v1394_v33 }
  0x6e   : > { %1015 = vmatprep.subr.bf16.mxu1 %v1396_v34 }
  0x70   : > { %975 = vmatpush1.bf16.msra.mxu0 %v1398_v35 }
  0x71   : > { %1016 = vmatpush1.bf16.msra.mxu1 %v1399_v36  ;;  %976 = vmatprep.subr.bf16.mxu0 %v1400_v37 }
  0x72   : > { %1017 = vmatprep.subr.bf16.mxu1 %v1402_v38 }
  0x74   : > { %977 = vmatpush1.bf16.msra.mxu0 %v1404_v39 }
  0x75   : > { %1018 = vmatpush1.bf16.msra.mxu1 %v1405_v40  ;;  %978 = vmatprep.subr.bf16.mxu0 %v1406_v41 }
  0x76   : > { %1019 = vmatprep.subr.bf16.mxu1 %v1408_v42 }
  0x78   : > { %979 = vmatpush1.bf16.msra.mxu0 %v1410_v43 }
  0x79   : > { %1020 = vmatpush1.bf16.msra.mxu1 %v1411_v44  ;;  %980 = vmatprep.subr.bf16.mxu0 %v1412_v45 }
  0x7a   : > { %1021 = vmatprep.subr.bf16.mxu1 %v1414_v46 }
  0x7c   : > { %981 = vmatpush1.bf16.msra.mxu0 %v1416_v50 }
  0x7d   : > { %1022 = vmatpush1.bf16.msra.mxu1 %v1417_v51  ;;  %982 = vmatprep.subr.bf16.mxu0 %v1418_v53 }
  0x7e   : > { %1023 = vmatprep.subr.bf16.mxu1 %v1420_v54 }
  0x80   : > { %983 = vmatpush1.bf16.msra.mxu0 %v1422_v55 }
  0x81   : > { %1024 = vmatpush1.bf16.msra.mxu1 %v1423_v56  ;;  %984 = vmatprep.subr.bf16.mxu0 %v1424_v57 }
  0x82   : > { %1025 = vmatprep.subr.bf16.mxu1 %v1426_v58 }
  0x84   : > { %985 = vmatpush1.bf16.msra.mxu0 %v1428_v59 }
  0x85   : > { %1026 = vmatpush1.bf16.msra.mxu1 %v1429_v60  ;;  %986 = vmatprep.subr.bf16.mxu0 %v1430_v61 }
  0x86   : > { %1027 = vmatprep.subr.bf16.mxu1 %v1432_v62 }
  0x88   : > { %987 = vmatpush1.bf16.msra.mxu0 %v1434_v63 }
  0x89   : > { %1028 = vmatpush1.bf16.msra.mxu1 %v1435_v0  ;;  %988 = vmatprep.subr.bf16.mxu0 %v1436_v1 }
  0x8a   : > { %1029 = vmatprep.subr.bf16.mxu1 %v1438_v2 }
  0x8c   : > { %989 = vmatpush1.bf16.msra.mxu0 %v1440_v3 }
  0x8d   : > { %1030 = vmatpush1.bf16.msra.mxu1 %v1441_v4 }
  0x8f   : > { %991 = vmatmul.mubr.bf16.vlgmr.msra.gmra.mrb[0].mxu0 %v1215_v5 }
  0x90   : > { %1032 = vmatmul.mubr.bf16.vlgmr.msra.gmra.mrb[0].mxu1 %v1217_v6 }
 0x162   : > { %v992_v7 = vpop.f32.mrb[0].mxu0 }
 0x163   : > { %v1033_v9 = vpop.f32.mrb[0].mxu1  ;;  %v994_v11 = vpop.f32.mrb[1].mxu0  ;;  %1047 = sbr.rel (%p1283_p13) target bundleno = 376 (0x178), region = 78 }
 0x164   : > { %v1034_v10 = vadd.f32 %v1033_v9, %v992_v7  ;;  %v1035_v13 = vpop.f32.mrb[1].mxu1  ;;  %v996_v15 = vpop.f32.mrb[2].mxu0 }
 0x165   : > { %v1036_v14 = vadd.f32 %v1035_v13, %v994_v11  ;;  %v1037_v16 = vpop.f32.mrb[2].mxu1  ;;  %v997_v18 = vpop.f32.mrb[3].mxu0 }
 0x166   : > { %v1040_v17 = vadd.f32 %v1034_v10, %v556_v8  ;;  %v1038_v19 = vpop.f32.mrb[3].mxu1 }
 0x167   : > { %v1041_v20 = vadd.f32 %v1036_v14, %v557_v12 }
 0x168   : > { %1042 = vst [vmem:[#allocation2] sm:$0xff] %v1040_v17 }
 0x169   : > { %1043 = vst [vmem:[#allocation2 + $0x8] sm:$0xff] %v1041_v20 }
 0x16f   : > { %v1048_v26 = vld [vmem:[#allocation2] sm:$0xff] }
 0x170   : > { %v1049_v27 = vld [vmem:[#allocation2 + $0x8] sm:$0xff]  ;;  %v1062_v30 = vadd.f32 %v1055_v28, %v1048_v26 }
 0x171   : > { %v1063_v31 = vadd.f32 %v1059_v29, %v1049_v27 }
 0x172   : > { %v1064_v32 = vmax.f32 %v1062_v30, 0.0 }
 0x173   : > { %v1065_v33 = vmax.f32 %v1063_v31, 0.0 }
 0x175   : > { %v1288_v34 = vpack.c.bf16 %v1065_v33, %v1064_v32 }
 0x177   : > { %1074 = vst [vmem:[%s1735_s15] sm:$0xff] %v1288_v34 }
 0x178 PF: > { %s13_s18 = sadd.s32 1, %s1500_s18   ;;  %s1838_s12 = smov %s1480_s13 }
 0x179   : > { %p10_p0 = scmp.ge.s32.totalorder %s13_s18, 20   ;;  %s1839_s13 = smov %s1574_s25 }
 0x17a   : > { %s1840_s14 = smov %s1492_s16  ;;  %s1841_s15 = smov %s1496_s17 }
 0x17b   : > { %s1842_s16 = smov %s1845_s19  ;;  %s1843_s17 = smov %s1849_s20 }
 0x17c   :  { %12 = sbr.rel (!%p10_p0) target bundleno = 4 (0x4), region = 119 }

// kernel: resnet34_forward.73
= control target key start
LH: loop header
LB: loop body
LE: loop exit
PB: predicated region body
PF: predicated region fallthrough
CT: control target
= control target key end

     0   :  { %s1472_s12 = smov 0   ;;  %s1474_s13 = smov 0   ;;  %s1756_s0 = inlined_call_operand.vmem [shape: bf16[8,512], index: 0, kind: input, shape index: {}]   ;;  %s1757_s1 = inlined_call_operand.vmem [shape: bf16[512,2048], index: 1, kind: input, shape index: {}]   ;;  %s1758_s2 = inlined_call_operand.vmem [shape: f32[1,2048], index: 2, kind: input, shape index: {}]   ;;  %s1759_s3 = inlined_call_operand.vmem [shape: f32[8,2048], index: 3, kind: output, shape index: {}]  }
   0x1   :  { %s1476_s14 = smov 0   ;;  %s1478_s15 = smov 0  }
   0x2   :  { %s1480_s16 = smov 0  }
   0x3 LB: > { %s28_s17 = sadd.s32 1, %s1446_s15  ;;  %p76_p1 = scmp.ne.s32.totalorder %s1438_s13, %s1434_s12  ;;  %s1450_s16 = sphi %s1480_s16, %s13_s16   ;;  %s1446_s15 = sphi %s1478_s15, %s1763_s15   ;;  %s1442_s14 = sphi %s1476_s14, %s1762_s14   ;;  %s1438_s13 = sphi %s1474_s13, %s1761_s13   ;;  %s1434_s12 = sphi %s1472_s12, %s1760_s12  }
   0x4   : > { %p30_p0 = scmp.ge.s32.totalorder %s28_s17, 8  ;;  %p77_p2 = scmp.eq.s32.totalorder %s1450_s16, 0 }
   0x5   : > { %s69_s19 = sadd.s32 1, %s1438_s13  ;;  %p1192_p5 = scmp.ge.s32.totalorder %s1450_s16, 8 }
   0x6   : > { %s1765_s17 = smov (%p30_p0, %s28_s17), 0  ;;  %p78_p3 = por %p77_p2, %p76_p1 }
   0x7   : > { %s65_s18 = ssub.s32 %s1446_s15, %s1765_s17  ;;  %169 = sbr.rel (%p1192_p5) target bundleno = 82 (0x52), region = 20 }
   0x8   : > { %p67_p4 = scmp.eq.s32.totalorder %s65_s18, 0 }
   0xa   : > { %s1507_s20 = scalar_select %p67_p4, %s1438_s13, %s69_s19  }
   0xe   : > { %172 = sbr.rel (!%p78_p3) target bundleno = 82 (0x52), region = 24  ;;  %s174_s21 = sand.u32 (%p78_p3), 1, %s1438_s13  }
   0xf   : > { %s1271_s22 = sshll.u32 (%p78_p3), %s1446_s15, 3  ;;  %s1193_s23 = sshll.u32 (%p78_p3), %s174_s21, 9 }
  0x10   : > { %s1515_s26 = scalar_lea.vmem (%p78_p3), %s1757_s1, %s1271_s22  ;;  %s1520_s27 = scalar_lea.vmem (%p78_p3), [#allocation3], %s1193_s23 }
  0x11   : > { %v336_v0 = vld [vmem:[%s1515_s26] sm:$0xff] (%p78_p3) }
  0x12   : > { %v338_v1 = vld [vmem:[%s1515_s26 + $0x40] sm:$0xff] (%p78_p3)  ;;  %337 = vst [vmem:[%s1520_s27] sm:$0xff] (%p78_p3), %v336_v0 }
  0x13   : > { %v340_v2 = vld [vmem:[%s1515_s26 + $0x80] sm:$0xff] (%p78_p3)  ;;  %339 = vst [vmem:[%s1520_s27 + $0x8] sm:$0xff] (%p78_p3), %v338_v1 }
  0x14   : > { %341 = vst [vmem:[%s1520_s27 + $0x10] sm:$0xff] (%p78_p3), %v340_v2  ;;  %v342_v3 = vld [vmem:[%s1515_s26 + $0xc0] sm:$0xff] (%p78_p3) }
  0x15   : > { %v344_v4 = vld [vmem:[%s1515_s26 + $0x100] sm:$0xff]  ;;  %343 = vst [vmem:[%s1520_s27 + $0x18] sm:$0xff] %v342_v3 }
  0x16   : > { %v346_v5 = vld [vmem:[%s1515_s26 + $0x140] sm:$0xff]  ;;  %345 = vst [vmem:[%s1520_s27 + $0x20] sm:$0xff] %v344_v4 }
  0x17   : > { %347 = vst [vmem:[%s1520_s27 + $0x28] sm:$0xff] %v346_v5  ;;  %v348_v6 = vld [vmem:[%s1515_s26 + $0x180] sm:$0xff] }
  0x18   : > { %v350_v7 = vld [vmem:[%s1515_s26 + $0x1c0] sm:$0xff]  ;;  %349 = vst [vmem:[%s1520_s27 + $0x30] sm:$0xff] %v348_v6 }
  0x19   : > { %v352_v8 = vld [vmem:[%s1515_s26 + $0x200] sm:$0xff]  ;;  %351 = vst [vmem:[%s1520_s27 + $0x38] sm:$0xff] %v350_v7 }
  0x1a   : > { %353 = vst [vmem:[%s1520_s27 + $0x40] sm:$0xff] %v352_v8  ;;  %v354_v9 = vld [vmem:[%s1515_s26 + $0x240] sm:$0xff] }
  0x1b   : > { %v356_v10 = vld [vmem:[%s1515_s26 + $0x280] sm:$0xff]  ;;  %355 = vst [vmem:[%s1520_s27 + $0x48] sm:$0xff] %v354_v9 }
  0x1c   : > { %v358_v11 = vld [vmem:[%s1515_s26 + $0x2c0] sm:$0xff]  ;;  %357 = vst [vmem:[%s1520_s27 + $0x50] sm:$0xff] %v356_v10 }
  0x1d   : > { %359 = vst [vmem:[%s1520_s27 + $0x58] sm:$0xff] %v358_v11  ;;  %v360_v12 = vld [vmem:[%s1515_s26 + $0x300] sm:$0xff] }
  0x1e   : > { %v362_v13 = vld [vmem:[%s1515_s26 + $0x340] sm:$0xff]  ;;  %361 = vst [vmem:[%s1520_s27 + $0x60] sm:$0xff] %v360_v12 }
  0x1f   : > { %v364_v14 = vld [vmem:[%s1515_s26 + $0x380] sm:$0xff]  ;;  %363 = vst [vmem:[%s1520_s27 + $0x68] sm:$0xff] %v362_v13 }
  0x20   : > { %365 = vst [vmem:[%s1520_s27 + $0x70] sm:$0xff] %v364_v14  ;;  %v366_v15 = vld [vmem:[%s1515_s26 + $0x3c0] sm:$0xff] }
  0x21   : > { %v368_v16 = vld [vmem:[%s1515_s26 + $0x400] sm:$0xff]  ;;  %367 = vst [vmem:[%s1520_s27 + $0x78] sm:$0xff] %v366_v15 }
  0x22   : > { %v370_v17 = vld [vmem:[%s1515_s26 + $0x440] sm:$0xff]  ;;  %369 = vst [vmem:[%s1520_s27 + $0x80] sm:$0xff] %v368_v16 }
  0x23   : > { %371 = vst [vmem:[%s1520_s27 + $0x88] sm:$0xff] %v370_v17  ;;  %v372_v18 = vld [vmem:[%s1515_s26 + $0x480] sm:$0xff] }
  0x24   : > { %v374_v19 = vld [vmem:[%s1515_s26 + $0x4c0] sm:$0xff]  ;;  %373 = vst [vmem:[%s1520_s27 + $0x90] sm:$0xff] %v372_v18 }
  0x25   : > { %v376_v20 = vld [vmem:[%s1515_s26 + $0x500] sm:$0xff]  ;;  %375 = vst [vmem:[%s1520_s27 + $0x98] sm:$0xff] %v374_v19 }
  0x26   : > { %377 = vst [vmem:[%s1520_s27 + $0xa0] sm:$0xff] %v376_v20  ;;  %v378_v21 = vld [vmem:[%s1515_s26 + $0x540] sm:$0xff] }
  0x27   : > { %v380_v22 = vld [vmem:[%s1515_s26 + $0x580] sm:$0xff]  ;;  %379 = vst [vmem:[%s1520_s27 + $0xa8] sm:$0xff] %v378_v21 }
  0x28   : > { %v382_v23 = vld [vmem:[%s1515_s26 + $0x5c0] sm:$0xff]  ;;  %381 = vst [vmem:[%s1520_s27 + $0xb0] sm:$0xff] %v380_v22 }
  0x29   : > { %383 = vst [vmem:[%s1520_s27 + $0xb8] sm:$0xff] %v382_v23  ;;  %v384_v24 = vld [vmem:[%s1515_s26 + $0x600] sm:$0xff] }
  0x2a   : > { %v386_v25 = vld [vmem:[%s1515_s26 + $0x640] sm:$0xff]  ;;  %385 = vst [vmem:[%s1520_s27 + $0xc0] sm:$0xff] %v384_v24 }
  0x2b   : > { %v388_v26 = vld [vmem:[%s1515_s26 + $0x680] sm:$0xff]  ;;  %387 = vst [vmem:[%s1520_s27 + $0xc8] sm:$0xff] %v386_v25 }
  0x2c   : > { %389 = vst [vmem:[%s1520_s27 + $0xd0] sm:$0xff] %v388_v26  ;;  %v390_v27 = vld [vmem:[%s1515_s26 + $0x6c0] sm:$0xff] }
  0x2d   : > { %v392_v28 = vld [vmem:[%s1515_s26 + $0x700] sm:$0xff]  ;;  %391 = vst [vmem:[%s1520_s27 + $0xd8] sm:$0xff] %v390_v27 }
  0x2e   : > { %v394_v29 = vld [vmem:[%s1515_s26 + $0x740] sm:$0xff]  ;;  %393 = vst [vmem:[%s1520_s27 + $0xe0] sm:$0xff] %v392_v28 }
  0x2f   : > { %395 = vst [vmem:[%s1520_s27 + $0xe8] sm:$0xff] %v394_v29  ;;  %v396_v30 = vld [vmem:[%s1515_s26 + $0x780] sm:$0xff] }
  0x30   : > { %v398_v31 = vld [vmem:[%s1515_s26 + $0x7c0] sm:$0xff]  ;;  %397 = vst [vmem:[%s1520_s27 + $0xf0] sm:$0xff] %v396_v30 }
  0x31   : > { %v400_v32 = vld [vmem:[%s1515_s26 + $0x800] sm:$0xff]  ;;  %399 = vst [vmem:[%s1520_s27 + $0xf8] sm:$0xff] %v398_v31 }
  0x32   : > { %401 = vst [vmem:[%s1520_s27 + $0x100] sm:$0xff] %v400_v32  ;;  %v402_v33 = vld [vmem:[%s1515_s26 + $0x840] sm:$0xff] }
  0x33   : > { %v404_v34 = vld [vmem:[%s1515_s26 + $0x880] sm:$0xff]  ;;  %403 = vst [vmem:[%s1520_s27 + $0x108] sm:$0xff] %v402_v33 }
  0x34   : > { %v406_v35 = vld [vmem:[%s1515_s26 + $0x8c0] sm:$0xff]  ;;  %405 = vst [vmem:[%s1520_s27 + $0x110] sm:$0xff] %v404_v34 }
  0x35   : > { %407 = vst [vmem:[%s1520_s27 + $0x118] sm:$0xff] %v406_v35  ;;  %v408_v36 = vld [vmem:[%s1515_s26 + $0x900] sm:$0xff] }
  0x36   : > { %v410_v37 = vld [vmem:[%s1515_s26 + $0x940] sm:$0xff]  ;;  %409 = vst [vmem:[%s1520_s27 + $0x120] sm:$0xff] %v408_v36 }
  0x37   : > { %v412_v38 = vld [vmem:[%s1515_s26 + $0x980] sm:$0xff]  ;;  %411 = vst [vmem:[%s1520_s27 + $0x128] sm:$0xff] %v410_v37 }
  0x38   : > { %413 = vst [vmem:[%s1520_s27 + $0x130] sm:$0xff] %v412_v38  ;;  %v414_v39 = vld [vmem:[%s1515_s26 + $0x9c0] sm:$0xff] }
  0x39   : > { %v416_v40 = vld [vmem:[%s1515_s26 + $0xa00] sm:$0xff]  ;;  %415 = vst [vmem:[%s1520_s27 + $0x138] sm:$0xff] %v414_v39 }
  0x3a   : > { %v418_v41 = vld [vmem:[%s1515_s26 + $0xa40] sm:$0xff]  ;;  %417 = vst [vmem:[%s1520_s27 + $0x140] sm:$0xff] %v416_v40 }
  0x3b   : > { %419 = vst [vmem:[%s1520_s27 + $0x148] sm:$0xff] %v418_v41  ;;  %v420_v42 = vld [vmem:[%s1515_s26 + $0xa80] sm:$0xff] }
  0x3c   : > { %v422_v43 = vld [vmem:[%s1515_s26 + $0xac0] sm:$0xff]  ;;  %421 = vst [vmem:[%s1520_s27 + $0x150] sm:$0xff] %v420_v42 }
  0x3d   : > { %v424_v44 = vld [vmem:[%s1515_s26 + $0xb00] sm:$0xff]  ;;  %423 = vst [vmem:[%s1520_s27 + $0x158] sm:$0xff] %v422_v43 }
  0x3e   : > { %425 = vst [vmem:[%s1520_s27 + $0x160] sm:$0xff] %v424_v44  ;;  %v426_v45 = vld [vmem:[%s1515_s26 + $0xb40] sm:$0xff] }
  0x3f   : > { %v428_v46 = vld [vmem:[%s1515_s26 + $0xb80] sm:$0xff]  ;;  %427 = vst [vmem:[%s1520_s27 + $0x168] sm:$0xff] %v426_v45 }
  0x40   : > { %v430_v47 = vld [vmem:[%s1515_s26 + $0xbc0] sm:$0xff]  ;;  %429 = vst [vmem:[%s1520_s27 + $0x170] sm:$0xff] %v428_v46 }
  0x41   : > { %431 = vst [vmem:[%s1520_s27 + $0x178] sm:$0xff] %v430_v47  ;;  %v432_v48 = vld [vmem:[%s1515_s26 + $0xc00] sm:$0xff] }
  0x42   : > { %v434_v49 = vld [vmem:[%s1515_s26 + $0xc40] sm:$0xff]  ;;  %433 = vst [vmem:[%s1520_s27 + $0x180] sm:$0xff] %v432_v48 }
  0x43   : > { %v436_v50 = vld [vmem:[%s1515_s26 + $0xc80] sm:$0xff]  ;;  %435 = vst [vmem:[%s1520_s27 + $0x188] sm:$0xff] %v434_v49 }
  0x44   : > { %437 = vst [vmem:[%s1520_s27 + $0x190] sm:$0xff] %v436_v50  ;;  %v438_v51 = vld [vmem:[%s1515_s26 + $0xcc0] sm:$0xff] }
  0x45   : > { %v440_v52 = vld [vmem:[%s1515_s26 + $0xd00] sm:$0xff]  ;;  %439 = vst [vmem:[%s1520_s27 + $0x198] sm:$0xff] %v438_v51 }
  0x46   : > { %v442_v53 = vld [vmem:[%s1515_s26 + $0xd40] sm:$0xff]  ;;  %441 = vst [vmem:[%s1520_s27 + $0x1a0] sm:$0xff] %v440_v52 }
  0x47   : > { %443 = vst [vmem:[%s1520_s27 + $0x1a8] sm:$0xff] %v442_v53  ;;  %v444_v54 = vld [vmem:[%s1515_s26 + $0xd80] sm:$0xff] }
  0x48   : > { %v446_v55 = vld [vmem:[%s1515_s26 + $0xdc0] sm:$0xff]  ;;  %445 = vst [vmem:[%s1520_s27 + $0x1b0] sm:$0xff] %v444_v54 }
  0x49   : > { %v448_v56 = vld [vmem:[%s1515_s26 + $0xe00] sm:$0xff]  ;;  %447 = vst [vmem:[%s1520_s27 + $0x1b8] sm:$0xff] %v446_v55 }
  0x4a   : > { %449 = vst [vmem:[%s1520_s27 + $0x1c0] sm:$0xff] %v448_v56  ;;  %v450_v57 = vld [vmem:[%s1515_s26 + $0xe40] sm:$0xff] }
  0x4b   : > { %v452_v58 = vld [vmem:[%s1515_s26 + $0xe80] sm:$0xff]  ;;  %451 = vst [vmem:[%s1520_s27 + $0x1c8] sm:$0xff] %v450_v57 }
  0x4c   : > { %v454_v59 = vld [vmem:[%s1515_s26 + $0xec0] sm:$0xff]  ;;  %453 = vst [vmem:[%s1520_s27 + $0x1d0] sm:$0xff] %v452_v58 }
  0x4d   : > { %455 = vst [vmem:[%s1520_s27 + $0x1d8] sm:$0xff] %v454_v59  ;;  %v456_v60 = vld [vmem:[%s1515_s26 + $0xf00] sm:$0xff] }
  0x4e   : > { %v458_v61 = vld [vmem:[%s1515_s26 + $0xf40] sm:$0xff]  ;;  %457 = vst [vmem:[%s1520_s27 + $0x1e0] sm:$0xff] %v456_v60 }
  0x4f   : > { %v460_v62 = vld [vmem:[%s1515_s26 + $0xf80] sm:$0xff]  ;;  %459 = vst [vmem:[%s1520_s27 + $0x1e8] sm:$0xff] %v458_v61 }
  0x50   : > { %461 = vst [vmem:[%s1520_s27 + $0x1f0] sm:$0xff] %v460_v62  ;;  %v462_v63 = vld [vmem:[%s1515_s26 + $0xfc0] sm:$0xff] }
  0x51   : > { %463 = vst [vmem:[%s1520_s27 + $0x1f8] sm:$0xff] %v462_v63 }
  0x52 PF: > { %p1196_p6 = scmp.ge.s32.totalorder %s1450_s16, 1  ;;  %p476_p7 = scmp.lt.s32.totalorder %s1450_s16, 9 }
  0x54   : > { %p477_p8 = pnand %p1196_p6, %p476_p7 }
  0x55   : > { %s483_s28 = sand.u32 (!%p477_p8), 1, %s1434_s12   ;;  %v1653_v0 = vld [vmem:[%s1756_s0] sm:$0xff] (!%p477_p8)  ;;  %v1658_v1 = vld [vmem:[%s1756_s0 + $0x8] sm:$0xff] (!%p477_p8)  ;;  %s1198_s8 = sshll.u32 (!%p477_p8), %s1442_s14, 1 }
  0x56   : > { %480 = sbr.rel (%p477_p8) target bundleno = 372 (0x174), region = 66  ;;  %s1197_s6 = sshll.u32 (!%p477_p8), %s483_s28, 9  ;;  %v1202_v2 = vcombine.high (!%p477_p8), %v1653_v0, %v1653_v0  ;;  %v1204_v3 = vcombine.high (!%p477_p8), %v1658_v1, %v1658_v1 }
  0x57   : > { %s1664_s7 = scalar_lea.vmem (!%p477_p8), [#allocation3], %s1197_s6  ;;  %p536_p9 = scmp.lt.s32.totalorder (!%p477_p8), %s1198_s8, 15 }
  0x58   : > { %v1312_v4 = vld [vmem:[%s1664_s7 + $0x4] ss:$8 sps:$4 sm:$0xff] (!%p477_p8)   ;;  %990 = vmatprep.mubr.bf16.mxu0 (!%p477_p8), %v1202_v2  ;;  %1031 = vmatprep.mubr.bf16.mxu1 (!%p477_p8), %v1204_v3  ;;  %v1316_v6 = vld [vmem:[%s1664_s7] ss:$8 sps:$4 sm:$0xff] (!%p477_p8)   ;;  %v1318_v8 = vld [vmem:[%s1664_s7 + $0x14] ss:$8 sps:$4 sm:$0xff] (!%p477_p8)  }
  0x59   : > { %v1314_v5 = vld [vmem:[%s1664_s7 + $0x104] ss:$8 sps:$4 sm:$0xff] (!%p477_p8)   ;;  %958 = vmatprep.subr.bf16.mxu0 (!%p477_p8), %v1312_v4  ;;  %v1317_v7 = vld [vmem:[%s1664_s7 + $0x100] ss:$8 sps:$4 sm:$0xff] (!%p477_p8)   ;;  %v1320_v9 = vld [vmem:[%s1664_s7 + $0x114] ss:$8 sps:$4 sm:$0xff] (!%p477_p8)  }
  0x5a   : > { %999 = vmatprep.subr.bf16.mxu1 (!%p477_p8), %v1314_v5  ;;  %959 = vmatpush1.bf16.msra.mxu0 (!%p477_p8), %v1316_v6  ;;  %v1322_v10 = vld [vmem:[%s1664_s7 + $0x10] ss:$8 sps:$4 sm:$0xff] (!%p477_p8)   ;;  %v1324_v12 = vld [vmem:[%s1664_s7 + $0x24] ss:$8 sps:$4 sm:$0xff] (!%p477_p8)   ;;  %v1328_v14 = vld [vmem:[%s1664_s7 + $0x20] ss:$8 sps:$4 sm:$0xff] (!%p477_p8)   ;;  %v1201_v6 = vcombine.low (!%p477_p8), %v1653_v0, %v1653_v0 }
  0x5b   : > { %1000 = vmatpush1.bf16.msra.mxu1 (!%p477_p8), %v1317_v7  ;;  %960 = vmatprep.subr.bf16.mxu0 (!%p477_p8), %v1318_v8  ;;  %v1323_v11 = vld [vmem:[%s1664_s7 + $0x110] ss:$8 sps:$4 sm:$0xff] (!%p477_p8)   ;;  %v1326_v13 = vld [vmem:[%s1664_s7 + $0x124] ss:$8 sps:$4 sm:$0xff] (!%p477_p8)   ;;  %v1329_v15 = vld [vmem:[%s1664_s7 + $0x120] ss:$8 sps:$4 sm:$0xff] (!%p477_p8)   ;;  %v1203_v7 = vcombine.low (!%p477_p8), %v1658_v1, %v1658_v1  ;;  %v1051_v8 = vlaneseq (!%p477_p8) }
  0x5c   : > { %1001 = vmatprep.subr.bf16.mxu1 (!%p477_p8), %v1320_v9  ;;  %v1330_v16 = vld [vmem:[%s1664_s7 + $0x34] ss:$8 sps:$4 sm:$0xff] (!%p477_p8)   ;;  %v1334_v18 = vld [vmem:[%s1664_s7 + $0x30] ss:$8 sps:$4 sm:$0xff] (!%p477_p8)   ;;  %v1336_v20 = vld [vmem:[%s1664_s7 + $0x44] ss:$8 sps:$4 sm:$0xff] (!%p477_p8)  }
  0x5d   : > { %v1332_v17 = vld [vmem:[%s1664_s7 + $0x134] ss:$8 sps:$4 sm:$0xff]   ;;  %v1335_v19 = vld [vmem:[%s1664_s7 + $0x130] ss:$8 sps:$4 sm:$0xff]   ;;  %v1338_v21 = vld [vmem:[%s1664_s7 + $0x144] ss:$8 sps:$4 sm:$0xff]  }
  0x5e   : > { %961 = vmatpush1.bf16.msra.mxu0 %v1322_v10  ;;  %v1340_v22 = vld [vmem:[%s1664_s7 + $0x40] ss:$8 sps:$4 sm:$0xff]   ;;  %v1342_v24 = vld [vmem:[%s1664_s7 + $0x54] ss:$8 sps:$4 sm:$0xff]   ;;  %v1346_v26 = vld [vmem:[%s1664_s7 + $0x50] ss:$8 sps:$4 sm:$0xff]  }
  0x5f   : > { %1002 = vmatpush1.bf16.msra.mxu1 %v1323_v11  ;;  %962 = vmatprep.subr.bf16.mxu0 %v1324_v12  ;;  %v1341_v23 = vld [vmem:[%s1664_s7 + $0x140] ss:$8 sps:$4 sm:$0xff]   ;;  %v1344_v25 = vld [vmem:[%s1664_s7 + $0x154] ss:$8 sps:$4 sm:$0xff]   ;;  %v1347_v27 = vld [vmem:[%s1664_s7 + $0x150] ss:$8 sps:$4 sm:$0xff]  }
  0x60   : > { %1003 = vmatprep.subr.bf16.mxu1 %v1326_v13  ;;  %v1348_v28 = vld [vmem:[%s1664_s7 + $0x64] ss:$8 sps:$4 sm:$0xff]   ;;  %v1352_v30 = vld [vmem:[%s1664_s7 + $0x60] ss:$8 sps:$4 sm:$0xff]   ;;  %v1354_v32 = vld [vmem:[%s1664_s7 + $0x74] ss:$8 sps:$4 sm:$0xff]  }
  0x61   : > { %v1350_v29 = vld [vmem:[%s1664_s7 + $0x164] ss:$8 sps:$4 sm:$0xff]   ;;  %v1353_v31 = vld [vmem:[%s1664_s7 + $0x160] ss:$8 sps:$4 sm:$0xff]   ;;  %v1356_v33 = vld [vmem:[%s1664_s7 + $0x174] ss:$8 sps:$4 sm:$0xff]  }
  0x62   : > { %963 = vmatpush1.bf16.msra.mxu0 %v1328_v14  ;;  %v1358_v34 = vld [vmem:[%s1664_s7 + $0x70] ss:$8 sps:$4 sm:$0xff]   ;;  %v1360_v36 = vld [vmem:[%s1664_s7 + $0x84] ss:$8 sps:$4 sm:$0xff]   ;;  %v1364_v38 = vld [vmem:[%s1664_s7 + $0x80] ss:$8 sps:$4 sm:$0xff]  }
  0x63   : > { %1004 = vmatpush1.bf16.msra.mxu1 %v1329_v15  ;;  %964 = vmatprep.subr.bf16.mxu0 %v1330_v16  ;;  %v1359_v35 = vld [vmem:[%s1664_s7 + $0x170] ss:$8 sps:$4 sm:$0xff]   ;;  %v1362_v37 = vld [vmem:[%s1664_s7 + $0x184] ss:$8 sps:$4 sm:$0xff]   ;;  %v1365_v39 = vld [vmem:[%s1664_s7 + $0x180] ss:$8 sps:$4 sm:$0xff]  }
  0x64   : > { %1005 = vmatprep.subr.bf16.mxu1 %v1332_v17  ;;  %v1366_v40 = vld [vmem:[%s1664_s7 + $0x94] ss:$8 sps:$4 sm:$0xff]   ;;  %v1370_v42 = vld [vmem:[%s1664_s7 + $0x90] ss:$8 sps:$4 sm:$0xff]   ;;  %v1372_v44 = vld [vmem:[%s1664_s7 + $0xa4] ss:$8 sps:$4 sm:$0xff]  }
  0x65   : > { %v1368_v41 = vld [vmem:[%s1664_s7 + $0x194] ss:$8 sps:$4 sm:$0xff]   ;;  %v1371_v43 = vld [vmem:[%s1664_s7 + $0x190] ss:$8 sps:$4 sm:$0xff]   ;;  %v1374_v45 = vld [vmem:[%s1664_s7 + $0x1a4] ss:$8 sps:$4 sm:$0xff]  }
  0x66   : > { %965 = vmatpush1.bf16.msra.mxu0 %v1334_v18  ;;  %v1376_v46 = vld [vmem:[%s1664_s7 + $0xa0] ss:$8 sps:$4 sm:$0xff]   ;;  %v1378_v48 = vld [vmem:[%s1664_s7 + $0xb4] ss:$8 sps:$4 sm:$0xff]   ;;  %v1382_v50 = vld [vmem:[%s1664_s7 + $0xb0] ss:$8 sps:$4 sm:$0xff]  }
  0x67   : > { %1006 = vmatpush1.bf16.msra.mxu1 %v1335_v19  ;;  %966 = vmatprep.subr.bf16.mxu0 %v1336_v20  ;;  %v1377_v47 = vld [vmem:[%s1664_s7 + $0x1a0] ss:$8 sps:$4 sm:$0xff]   ;;  %v1380_v49 = vld [vmem:[%s1664_s7 + $0x1b4] ss:$8 sps:$4 sm:$0xff]   ;;  %v1383_v51 = vld [vmem:[%s1664_s7 + $0x1b0] ss:$8 sps:$4 sm:$0xff]  }
  0x68   : > { %1007 = vmatprep.subr.bf16.mxu1 %v1338_v21  ;;  %v1384_v52 = vld [vmem:[%s1664_s7 + $0xc4] ss:$8 sps:$4 sm:$0xff]   ;;  %v1388_v54 = vld [vmem:[%s1664_s7 + $0xc0] ss:$8 sps:$4 sm:$0xff]   ;;  %v1390_v56 = vld [vmem:[%s1664_s7 + $0xd4] ss:$8 sps:$4 sm:$0xff]  }
  0x69   : > { %v1386_v53 = vld [vmem:[%s1664_s7 + $0x1c4] ss:$8 sps:$4 sm:$0xff]   ;;  %v1389_v55 = vld [vmem:[%s1664_s7 + $0x1c0] ss:$8 sps:$4 sm:$0xff]   ;;  %v1392_v57 = vld [vmem:[%s1664_s7 + $0x1d4] ss:$8 sps:$4 sm:$0xff]  }
  0x6a   : > { %967 = vmatpush1.bf16.msra.mxu0 %v1340_v22  ;;  %v1394_v58 = vld [vmem:[%s1664_s7 + $0xd0] ss:$8 sps:$4 sm:$0xff]   ;;  %v1396_v60 = vld [vmem:[%s1664_s7 + $0xe4] ss:$8 sps:$4 sm:$0xff]   ;;  %v1400_v62 = vld [vmem:[%s1664_s7 + $0xe0] ss:$8 sps:$4 sm:$0xff]  }
  0x6b   : > { %1008 = vmatpush1.bf16.msra.mxu1 %v1341_v23  ;;  %968 = vmatprep.subr.bf16.mxu0 %v1342_v24  ;;  %v1395_v59 = vld [vmem:[%s1664_s7 + $0x1d0] ss:$8 sps:$4 sm:$0xff]   ;;  %v1398_v61 = vld [vmem:[%s1664_s7 + $0x1e4] ss:$8 sps:$4 sm:$0xff]   ;;  %v1401_v63 = vld [vmem:[%s1664_s7 + $0x1e0] ss:$8 sps:$4 sm:$0xff]  }
  0x6c   : > { %1009 = vmatprep.subr.bf16.mxu1 %v1344_v25  ;;  %v1402_v2 = vld [vmem:[%s1664_s7 + $0xf4] ss:$8 sps:$4 sm:$0xff]   ;;  %v1406_v4 = vld [vmem:[%s1664_s7 + $0xf0] ss:$8 sps:$4 sm:$0xff]   ;;  %s1767_s8 = smov (!%p536_p9, %s1198_s8), 15  ;;  %v1052_v9 = vshrl.u32 %v1051_v8, 7 }
  0x6d   : > { %v1404_v3 = vld [vmem:[%s1664_s7 + $0x1f4] ss:$8 sps:$4 sm:$0xff]   ;;  %v1407_v5 = vld [vmem:[%s1664_s7 + $0x1f0] ss:$8 sps:$4 sm:$0xff]   ;;  %s538_s11 = scalar_lea.vmem %s1758_s2, %s1767_s8  ;;  %s1200_s12 = sshll.u32 %s1767_s8, 3 }
  0x6e   : > { %969 = vmatpush1.bf16.msra.mxu0 %v1346_v26  ;;  %v1053_v10 = vsub.s32 0, %v1052_v9  ;;  %v1049_v11 = vld [vmem:[%s538_s11] sm:$0x3]  ;;  %v1057_v12 = vsub.s32 1, %v1052_v9  ;;  %s548_s19 = scalar_lea.vmem %s1759_s3, %s1200_s12 }
  0x6f   : > { %1010 = vmatpush1.bf16.msra.mxu1 %v1347_v27  ;;  %970 = vmatprep.subr.bf16.mxu0 %v1348_v28 }
  0x70   : > { %1011 = vmatprep.subr.bf16.mxu1 %v1350_v29  ;;  %v1054_v0 = vrot.slane %v1049_v11, %v1053_v10  ;;  %v1058_v14 = vrot.slane %v1049_v11, %v1057_v12 }
  0x72   : > { %971 = vmatpush1.bf16.msra.mxu0 %v1352_v30 }
  0x73   : > { %1012 = vmatpush1.bf16.msra.mxu1 %v1353_v31  ;;  %972 = vmatprep.subr.bf16.mxu0 %v1354_v32 }
  0x74   : > { %1013 = vmatprep.subr.bf16.mxu1 %v1356_v33 }
  0x76   : > { %973 = vmatpush1.bf16.msra.mxu0 %v1358_v34 }
  0x77   : > { %1014 = vmatpush1.bf16.msra.mxu1 %v1359_v35  ;;  %974 = vmatprep.subr.bf16.mxu0 %v1360_v36 }
  0x78   : > { %1015 = vmatprep.subr.bf16.mxu1 %v1362_v37 }
  0x7a   : > { %975 = vmatpush1.bf16.msra.mxu0 %v1364_v38 }
  0x7b   : > { %1016 = vmatpush1.bf16.msra.mxu1 %v1365_v39  ;;  %976 = vmatprep.subr.bf16.mxu0 %v1366_v40 }
  0x7c   : > { %1017 = vmatprep.subr.bf16.mxu1 %v1368_v41 }
  0x7e   : > { %977 = vmatpush1.bf16.msra.mxu0 %v1370_v42 }
  0x7f   : > { %1018 = vmatpush1.bf16.msra.mxu1 %v1371_v43  ;;  %978 = vmatprep.subr.bf16.mxu0 %v1372_v44 }
  0x80   : > { %1019 = vmatprep.subr.bf16.mxu1 %v1374_v45 }
  0x82   : > { %979 = vmatpush1.bf16.msra.mxu0 %v1376_v46 }
  0x83   : > { %1020 = vmatpush1.bf16.msra.mxu1 %v1377_v47  ;;  %980 = vmatprep.subr.bf16.mxu0 %v1378_v48 }
  0x84   : > { %1021 = vmatprep.subr.bf16.mxu1 %v1380_v49 }
  0x86   : > { %981 = vmatpush1.bf16.msra.mxu0 %v1382_v50 }
  0x87   : > { %1022 = vmatpush1.bf16.msra.mxu1 %v1383_v51  ;;  %982 = vmatprep.subr.bf16.mxu0 %v1384_v52 }
  0x88   : > { %1023 = vmatprep.subr.bf16.mxu1 %v1386_v53 }
  0x8a   : > { %983 = vmatpush1.bf16.msra.mxu0 %v1388_v54 }
  0x8b   : > { %1024 = vmatpush1.bf16.msra.mxu1 %v1389_v55  ;;  %984 = vmatprep.subr.bf16.mxu0 %v1390_v56 }
  0x8c   : > { %1025 = vmatprep.subr.bf16.mxu1 %v1392_v57 }
  0x8e   : > { %985 = vmatpush1.bf16.msra.mxu0 %v1394_v58 }
  0x8f   : > { %1026 = vmatpush1.bf16.msra.mxu1 %v1395_v59  ;;  %986 = vmatprep.subr.bf16.mxu0 %v1396_v60 }
  0x90   : > { %1027 = vmatprep.subr.bf16.mxu1 %v1398_v61 }
  0x92   : > { %987 = vmatpush1.bf16.msra.mxu0 %v1400_v62 }
  0x93   : > { %1028 = vmatpush1.bf16.msra.mxu1 %v1401_v63  ;;  %988 = vmatprep.subr.bf16.mxu0 %v1402_v2 }
  0x94   : > { %1029 = vmatprep.subr.bf16.mxu1 %v1404_v3 }
  0x96   : > { %989 = vmatpush1.bf16.msra.mxu0 %v1406_v4 }
  0x97   : > { %1030 = vmatpush1.bf16.msra.mxu1 %v1407_v5 }
  0x99   : > { %991 = vmatmul.mubr.bf16.vlgmr.msra.gmra.mrb[0].mxu0 %v1201_v6 }
  0x9a   : > { %1032 = vmatmul.mubr.bf16.vlgmr.msra.gmra.mrb[0].mxu1 %v1203_v7 }
 0x16c   : > { %v992_v13 = vpop.f32.mrb[0].mxu0 }
 0x16d   : > { %v1033_v1 = vpop.f32.mrb[0].mxu1  ;;  %v994_v16 = vpop.f32.mrb[1].mxu0 }
 0x16e   : > { %v1034_v15 = vadd.f32 %v1033_v1, %v992_v13  ;;  %v1035_v17 = vpop.f32.mrb[1].mxu1  ;;  %v996_v19 = vpop.f32.mrb[2].mxu0 }
 0x16f   : > { %v1036_v18 = vadd.f32 %v1035_v17, %v994_v16  ;;  %v1037_v20 = vpop.f32.mrb[2].mxu1  ;;  %v997_v22 = vpop.f32.mrb[3].mxu0 }
 0x170   : > { %v1061_v21 = vadd.f32 %v1054_v0, %v1034_v15  ;;  %v1038_v23 = vpop.f32.mrb[3].mxu1 }
 0x171   : > { %v1062_v24 = vadd.f32 %v1058_v14, %v1036_v18 }
 0x172   : > { %1063 = vst [vmem:[%s548_s19] sm:$0xff] %v1061_v21 }
 0x173   : > { %1064 = vst [vmem:[%s548_s19 + $0x8] sm:$0xff] %v1062_v24 }
 0x174 PF: > { %s13_s16 = sadd.s32 1, %s1450_s16   ;;  %s1760_s12 = smov %s1438_s13 }
 0x175   : > { %p10_p10 = scmp.ge.s32.totalorder %s13_s16, 10   ;;  %s1761_s13 = smov %s1507_s20 }
 0x176   : > { %s1762_s14 = smov %s1446_s15  ;;  %s1763_s15 = smov %s1765_s17 }
 0x177   :  { %12 = sbr.rel (!%p10_p10) target bundleno = 3 (0x3), region = 119 }

</bundles_post_ra>
